<compile_context>
chip_gen: v7x
topology: tpu7x:2x2x1
jax: 0.10.0
libtpu: 0.0.40
codegen_flags: <defaults>
</compile_context>

<pallas_src>
import jax
import jax.numpy as jnp
from jax.experimental import pallas as pl
from jax.experimental.pallas import tpu as pltpu

C_IN = 10               # train_num_classes
KERNELS = 64
H = W = 9
SOL = 9                 # solution_num_classes
HID = 9 ** 4            # 6561 (fc1 output width)
HID_PAD = 6656          # 52 * 128 (zero-padded hidden width)
OUT3 = 9 ** 3           # 729 (fc3 output width)
OUT3_PAD = 768          # 6 * 128 (lane-dense fc3 accumulator width)
FEAT = 3 * 9 * KERNELS  # 1728
PATCH = C_IN * 9        # 90  (im2col patch length per branch)
CONV_IN = 3 * PATCH     # 270 (stacked patch length)
CONV_OUT = 3 * KERNELS  # 192 (stacked conv channels)
TN = 1664               # hidden tile: HID_PAD / 4 (bf16 double-buffer ~16 MiB)
BN_EPS = 1e-5


# ----------------------------- Pallas kernels ------------------------------

def _conv_kernel(p_ref, w_ref, b_ref, o_ref):
    # p_ref: (B*9, 270)  w_ref: (270, 192) block-diag  b_ref: (1, 192)
    o_ref[...] = (jnp.dot(p_ref[...], w_ref[...],
                          preferred_element_type=jnp.float32) + b_ref[...])


def _fused_fc_kernel(feat_ref, w1_ref, b1_ref, w3_ref, b3_ref, o_ref, acc_ref):
    # feat_ref: (B, 1728) f32      w1_ref: (1728, TN) bf16 (BN folded, permuted)
    # b1_ref:  (1, TN) f32         w3_ref: (TN, 768) bf16
    # b3_ref:  (1, 768) f32        o_ref/acc_ref: (B, 768) f32
    j = pl.program_id(0)

    @pl.when(j == 0)
    def _():
        acc_ref[...] = jnp.zeros_like(acc_ref)

    h = jnp.dot(feat_ref[...].astype(jnp.bfloat16), w1_ref[...],
                preferred_element_type=jnp.float32)
    h = jnp.maximum(h + b1_ref[...], 0.0)                  # fc1 + BN + ReLU tile
    acc_ref[...] += jnp.dot(h.astype(jnp.bfloat16), w3_ref[...],
                            preferred_element_type=jnp.float32)

    @pl.when(j == pl.num_programs(0) - 1)
    def _():
        o_ref[...] = acc_ref[...] + b3_ref[...]


def _softmax_dim1_kernel(x_ref, o_ref):
    # x_ref: (B, 9, 81) -- softmax over axis 1 (first "9" of (9, 9, 9))
    x = x_ref[...]
    m = jnp.max(x, axis=1, keepdims=True)
    e = jnp.exp(x - m)
    o_ref[...] = e / jnp.sum(e, axis=1, keepdims=True)


# ---------------------------- kernel wrappers -------------------------------

def conv_branches(patches2d, w_bd, b_bd):
    rows = patches2d.shape[0]
    return pl.pallas_call(
        _conv_kernel,
        out_shape=jax.ShapeDtypeStruct((rows, CONV_OUT), jnp.float32),
        grid=(1,),
        in_specs=[
            pl.BlockSpec((rows, CONV_IN), lambda i: (0, 0)),
            pl.BlockSpec((CONV_IN, CONV_OUT), lambda i: (0, 0)),
            pl.BlockSpec((1, CONV_OUT), lambda i: (0, 0)),
        ],
        out_specs=pl.BlockSpec((rows, CONV_OUT), lambda i: (0, 0)),
        compiler_params=pltpu.CompilerParams(
            dimension_semantics=("arbitrary",)),
    )(patches2d, w_bd, b_bd)


def fused_fc(feat, w1_eff, b1_eff, w3p, b3p):
    b = feat.shape[0]
    return pl.pallas_call(
        _fused_fc_kernel,
        out_shape=jax.ShapeDtypeStruct((b, OUT3_PAD), jnp.float32),
        grid=(HID_PAD // TN,),
        in_specs=[
            pl.BlockSpec((b, FEAT), lambda j: (0, 0)),
            pl.BlockSpec((FEAT, TN), lambda j: (0, j)),
            pl.BlockSpec((1, TN), lambda j: (0, j)),
            pl.BlockSpec((TN, OUT3_PAD), lambda j: (j, 0)),
            pl.BlockSpec((1, OUT3_PAD), lambda j: (0, 0)),
        ],
        out_specs=pl.BlockSpec((b, OUT3_PAD), lambda j: (0, 0)),
        scratch_shapes=[pltpu.VMEM((b, OUT3_PAD), jnp.float32)],
        compiler_params=pltpu.CompilerParams(
            dimension_semantics=("arbitrary",),
            vmem_limit_bytes=32 * 1024 * 1024),
    )(feat, w1_eff, b1_eff, w3p, b3p)


def softmax_dim1(logits3):
    shape = logits3.shape
    return pl.pallas_call(
        _softmax_dim1_kernel,
        out_shape=jax.ShapeDtypeStruct(shape, jnp.float32),
        grid=(1,),
        in_specs=[pl.BlockSpec(shape, lambda i: (0, 0, 0))],
        out_specs=pl.BlockSpec(shape, lambda i: (0, 0, 0)),
    )(logits3)


# -------------------------------- glue --------------------------------------

def extract_patches(x):
    """im2col for the three conv branches. x: (B, 10, 9, 9) NCHW."""
    b = x.shape[0]
    # conv (1,9): feature = c*9 + kw, one patch per row
    p19 = x.transpose(0, 2, 1, 3).reshape(b, 9, PATCH)
    # conv (9,1): feature = c*9 + kh, one patch per column
    p91 = x.transpose(0, 3, 1, 2).reshape(b, 9, PATCH)
    # conv 3x3 stride 3: patch (i*3+j), feature = c*9 + kh*3 + kw
    x6 = x.reshape(b, C_IN, 3, 3, 3, 3)                  # (b, c, i, kh, j, kw)
    p33 = x6.transpose(0, 2, 4, 1, 3, 5).reshape(b, 9, PATCH)
    return p19, p33, p91


def cnn1_forward(x, kp):
    b = x.shape[0]
    p19, p33, p91 = extract_patches(x)
    # branch cat order matches forward(): conv1_9, conv3_3, conv9_1
    patches = jnp.concatenate([p19, p33, p91], axis=-1).reshape(b * 9, CONV_IN)

    conv_out = conv_branches(patches, kp["w_bd"], kp["b_bd"])   # (B*9, 192)
    # kernel-native feat layout: index = pos*192 + branch*64 + oc
    # (the torch layout difference is folded into the fc1 row permutation)
    feat = conv_out.reshape(b, FEAT)

    logits = fused_fc(feat, kp["w1_eff"], kp["b1_eff"],
                      kp["w3p"], kp["b3p"])                      # (B, 768)
    probs = softmax_dim1(logits[:, :OUT3].reshape(b, SOL, SOL * SOL))
    return probs.reshape(b, SOL, SOL, SOL)


# --------------------------- params & reference ------------------------------

def init_params(key):
    """Raw CNN_1 parameters (torch-equivalent layout, f32)."""
    ks = jax.random.split(key, 14)

    def unif(k, shape, fan_in):
        bound = 1.0 / (fan_in ** 0.5)
        return jax.random.uniform(k, shape, jnp.float32, -bound, bound)

    fan_conv = PATCH
    return {
        "w19": unif(ks[0], (fan_conv, KERNELS), fan_conv),
        "b19": unif(ks[1], (KERNELS,), fan_conv),
        "w33": unif(ks[2], (fan_conv, KERNELS), fan_conv),
        "b33": unif(ks[3], (KERNELS,), fan_conv),
        "w91": unif(ks[4], (fan_conv, KERNELS), fan_conv),
        "b91": unif(ks[5], (KERNELS,), fan_conv),
        "w1": unif(ks[6], (FEAT, HID), FEAT),
        "b1": unif(ks[7], (HID,), FEAT),
        "gamma": jax.random.uniform(ks[8], (HID,), jnp.float32, 0.5, 1.5),
        "beta": 0.1 * jax.random.normal(ks[9], (HID,), jnp.float32),
        "mean": 0.1 * jax.random.normal(ks[10], (HID,), jnp.float32),
        "var": jax.random.uniform(ks[11], (HID,), jnp.float32, 0.5, 1.5),
        "w3": unif(ks[12], (HID, OUT3), HID),
        "b3": unif(ks[13], (OUT3,), HID),
    }


def make_kernel_params(p):
    """Preprocess raw params into the kernel-friendly (bf16 / padded) form."""
    # 1) merged block-diagonal conv weight (branch order: 1x9, 3x3, 9x1).
    w_bd = jnp.zeros((CONV_IN, CONV_OUT), jnp.float32)
    w_bd = w_bd.at[0:PATCH, 0:KERNELS].set(p["w19"])
    w_bd = w_bd.at[PATCH:2 * PATCH, KERNELS:2 * KERNELS].set(p["w33"])
    w_bd = w_bd.at[2 * PATCH:, 2 * KERNELS:].set(p["w91"])
    b_bd = jnp.concatenate([p["b19"], p["b33"], p["b91"]]).reshape(1, CONV_OUT)

    # 2) fc1: permute rows so the kernel can consume the natural conv layout
    #    (k_mine = pos*192 + branch*64 + oc vs torch k = branch*576 + oc*9 + pos),
    #    fold BatchNorm (eval mode), zero-pad hidden to 6656, cast to bf16.
    k_m = jnp.arange(FEAT)
    pos = k_m // CONV_OUT
    branch = (k_m % CONV_OUT) // KERNELS
    oc = k_m % KERNELS
    k_torch = branch * (9 * KERNELS) + oc * 9 + pos
    scale = p["gamma"] * jax.lax.rsqrt(p["var"] + BN_EPS)
    w1_eff = p["w1"][k_torch, :] * scale[None, :]
    b1_eff = (p["b1"] - p["mean"]) * scale + p["beta"]
    pad_h = HID_PAD - HID
    w1_eff = jnp.pad(w1_eff, ((0, 0), (0, pad_h))).astype(jnp.bfloat16)
    b1_eff = jnp.pad(b1_eff, (0, pad_h)).reshape(1, HID_PAD)  # f32; pad h -> 0

    # 3) fc3: zero-pad K to 6656 and N to 768 (lane-dense stores), cast to bf16.
    w3p = jnp.pad(p["w3"], ((0, pad_h), (0, OUT3_PAD - OUT3))).astype(jnp.bfloat16)
    b3p = jnp.pad(p["b3"], (0, OUT3_PAD - OUT3)).reshape(1, OUT3_PAD)

    return {"w_bd": w_bd, "b_bd": b_bd,
            "w1_eff": w1_eff, "b1_eff": b1_eff,
            "w3p": w3p, "b3p": b3p}


def reference_forward(x, p):
    """Pure-JAX f32 reference of CNN_1.forward (BatchNorm in eval mode)."""
    b = x.shape[0]
    p19, p33, p91 = extract_patches(x)

    def branch(pp, w, bias):
        y = jnp.einsum("bpk,ko->bpo", pp, w) + bias          # (B, 9, 64)
        return y.transpose(0, 2, 1).reshape(b, 9 * KERNELS)  # flat: oc*9 + pos

    feat = jnp.concatenate([branch(p19, p["w19"], p["b19"]),
                            branch(p33, p["w33"], p["b33"]),
                            branch(p91, p["w91"], p["b91"])], axis=1)
    h = feat @ p["w1"] + p["b1"]
    h = (h - p["mean"]) / jnp.sqrt(p["var"] + BN_EPS) * p["gamma"] + p["beta"]
    h = jnp.maximum(h, 0.0)
    logits = h @ p["w3"] + p["b3"]
    return jax.nn.softmax(logits.reshape(b, SOL, SOL, SOL), axis=1)


# --------------------------------- main --------------------------------------

if __name__ == "__main__":
    key = jax.random.PRNGKey(0)
    kparam, kx = jax.random.split(key)
    raw = init_params(kparam)
    kparams = make_kernel_params(raw)

    B = 2
    x = jax.random.normal(kx, (B, C_IN, H, W), jnp.float32)

    fwd = jax.jit(cnn1_forward)
    out = jax.block_until_ready(fwd(x, kparams))

    assert out.shape == (B, SOL, SOL, SOL), out.shape
    # softmax over dim=1 must sum to 1
    sums = jnp.sum(out, axis=1)
    assert bool(jnp.allclose(sums, 1.0, atol=1e-4)), "softmax dim=1 sums != 1"

    ref = reference_forward(x, raw)
    max_err = float(jnp.max(jnp.abs(out - ref)))
    # bf16 weight streaming => looser tolerance than a pure-f32 comparison.
    assert bool(jnp.allclose(out, ref, atol=5e-3, rtol=5e-2)), (
        f"mismatch vs pure-JAX reference: max abs err {max_err}")

    print("KERNEL_OK")
</pallas_src>

<mosaic_0001>
module attributes {stable_mosaic.version = 11 : i64} {
  func.func @_fused_fc_kernel(%arg0: i32, %arg1: memref<2x1728xf32, #tpu.memory_space<vmem>>, %arg2: memref<1728x1664xbf16, #tpu.memory_space<vmem>>, %arg3: memref<1x1664xf32, #tpu.memory_space<vmem>>, %arg4: memref<1664x768xbf16, #tpu.memory_space<vmem>>, %arg5: memref<1x768xf32, #tpu.memory_space<vmem>>, %arg6: memref<2x768xf32, #tpu.memory_space<vmem>>, %arg7: memref<2x768xf32, #tpu.memory_space<vmem>>) attributes {dimension_semantics = [#tpu.dimension_semantics<arbitrary>], iteration_bounds = array<i64: 4>, scalar_prefetch = 0 : i64, scratch_operands = 1 : i64, tpu.core_type = #tpu.core_type<tc>, window_params = [{pipeline_mode = #tpu.pipeline_mode<synchronous>, transform_indices = @transform_0, window_bounds = array<i64: 2, 1728>}, {transform_indices = @transform_1, window_bounds = array<i64: 1728, 1664>}, {transform_indices = @transform_2, window_bounds = array<i64: 1, 1664>}, {transform_indices = @transform_3, window_bounds = array<i64: 1664, 768>}, {pipeline_mode = #tpu.pipeline_mode<synchronous>, transform_indices = @transform_4, window_bounds = array<i64: 1, 768>}, {pipeline_mode = #tpu.pipeline_mode<synchronous>, transform_indices = @transform_5, window_bounds = array<i64: 2, 768>}]} {
    %c0_i32 = arith.constant 0 : i32
    %0 = arith.cmpi eq, %arg0, %c0_i32 : i32
    %1 = arith.extui %0 : i1 to i32
    %c0_i32_0 = arith.constant 0 : i32
    %2 = arith.cmpi ne, %1, %c0_i32_0 : i32
    scf.if %2 {
      %cst_15 = arith.constant 0.000000e+00 : f32
      %21 = vector.broadcast %cst_15 : f32 to vector<2x768xf32>
      %c0_16 = arith.constant 0 : index
      %c0_17 = arith.constant 0 : index
      %22 = vector.load %arg7[%c0_16, %c0_17] : memref<2x768xf32, #tpu.memory_space<vmem>>, vector<2x768xf32>
      tpu.vector_store %arg7[%c0_16, %c0_17], %21 {strides = array<i32>} : memref<2x768xf32, #tpu.memory_space<vmem>>, vector<2x768xf32>,
    } else {
    }
    %c0 = arith.constant 0 : index
    %c0_1 = arith.constant 0 : index
    %3 = vector.load %arg1[%c0, %c0_1] : memref<2x1728xf32, #tpu.memory_space<vmem>>, vector<2x1728xf32>
    %4 = arith.truncf %3 : vector<2x1728xf32> to vector<2x1728xbf16>
    %c0_2 = arith.constant 0 : index
    %c0_3 = arith.constant 0 : index
    %5 = vector.load %arg2[%c0_2, %c0_3] : memref<1728x1664xbf16, #tpu.memory_space<vmem>>, vector<1728x1664xbf16>
    %cst = arith.constant dense<0.000000e+00> : vector<2x1664xf32>
    %6 = tpu.matmul %4, %5, %cst {dimension_numbers = #tpu.dot_dimension_numbers<[1], [0], [0], [1], [0, 0, 1, 1], [], []>} : vector<2x1728xbf16>, vector<1728x1664xbf16>, vector<2x1664xf32> -> vector<2x1664xf32>
    %c0_4 = arith.constant 0 : index
    %c0_5 = arith.constant 0 : index
    %7 = vector.load %arg3[%c0_4, %c0_5] : memref<1x1664xf32, #tpu.memory_space<vmem>>, vector<1x1664xf32>
    %8 = vector.broadcast %7 : vector<1x1664xf32> to vector<2x1664xf32>
    %9 = arith.addf %6, %8 : vector<2x1664xf32>
    %cst_6 = arith.constant 0.000000e+00 : f32
    %10 = vector.broadcast %cst_6 : f32 to vector<2x1664xf32>
    %11 = arith.maximumf %9, %10 : vector<2x1664xf32>
    %c0_7 = arith.constant 0 : index
    %c0_8 = arith.constant 0 : index
    %12 = vector.load %arg7[%c0_7, %c0_8] : memref<2x768xf32, #tpu.memory_space<vmem>>, vector<2x768xf32>
    %13 = arith.truncf %11 : vector<2x1664xf32> to vector<2x1664xbf16>
    %c0_9 = arith.constant 0 : index
    %c0_10 = arith.constant 0 : index
    %14 = vector.load %arg4[%c0_9, %c0_10] : memref<1664x768xbf16, #tpu.memory_space<vmem>>, vector<1664x768xbf16>
    %cst_11 = arith.constant dense<0.000000e+00> : vector<2x768xf32>
    %15 = tpu.matmul %13, %14, %cst_11 {dimension_numbers = #tpu.dot_dimension_numbers<[1], [0], [0], [1], [0, 0, 1, 1], [], []>} : vector<2x1664xbf16>, vector<1664x768xbf16>, vector<2x768xf32> -> vector<2x768xf32>
    %16 = arith.addf %12, %15 : vector<2x768xf32>
    %c0_12 = arith.constant 0 : index
    %c0_13 = arith.constant 0 : index
    %17 = vector.load %arg7[%c0_12, %c0_13] : memref<2x768xf32, #tpu.memory_space<vmem>>, vector<2x768xf32>
    tpu.vector_store %arg7[%c0_12, %c0_13], %16 {strides = array<i32>} : memref<2x768xf32, #tpu.memory_space<vmem>>, vector<2x768xf32>,
    %c3_i32 = arith.constant 3 : i32
    %18 = arith.cmpi eq, %arg0, %c3_i32 : i32
    %19 = arith.extui %18 : i1 to i32
    %c0_i32_14 = arith.constant 0 : i32
    %20 = arith.cmpi ne, %19, %c0_i32_14 : i32
    scf.if %20 {
      %c0_15 = arith.constant 0 : index
      %c0_16 = arith.constant 0 : index
      %21 = vector.load %arg7[%c0_15, %c0_16] : memref<2x768xf32, #tpu.memory_space<vmem>>, vector<2x768xf32>
      %c0_17 = arith.constant 0 : index
      %c0_18 = arith.constant 0 : index
      %22 = vector.load %arg5[%c0_17, %c0_18] : memref<1x768xf32, #tpu.memory_space<vmem>>, vector<1x768xf32>
      %23 = vector.broadcast %22 : vector<1x768xf32> to vector<2x768xf32>
      %24 = arith.addf %21, %23 : vector<2x768xf32>
      %c0_19 = arith.constant 0 : index
      %c0_20 = arith.constant 0 : index
      %25 = vector.load %arg6[%c0_19, %c0_20] : memref<2x768xf32, #tpu.memory_space<vmem>>, vector<2x768xf32>
      tpu.vector_store %arg6[%c0_19, %c0_20], %24 {strides = array<i32>} : memref<2x768xf32, #tpu.memory_space<vmem>>, vector<2x768xf32>,
    } else {
    }
    return
  }
  func.func @transform_0(%arg0: i32) -> (i32, i32) {
    %c0_i32 = arith.constant 0 : i32
    %c0_i32_0 = arith.constant 0 : i32
    %c0_i32_1 = arith.constant 0 : i32
    return %c0_i32, %c0_i32_0 : i32, i32
  }
  func.func @transform_1(%arg0: i32) -> (i32, i32) {
    %c0_i32 = arith.constant 0 : i32
    %c0_i32_0 = arith.constant 0 : i32
    return %c0_i32, %arg0 : i32, i32
  }
  func.func @transform_2(%arg0: i32) -> (i32, i32) {
    %c0_i32 = arith.constant 0 : i32
    %c0_i32_0 = arith.constant 0 : i32
    return %c0_i32, %arg0 : i32, i32
  }
  func.func @transform_3(%arg0: i32) -> (i32, i32) {
    %c0_i32 = arith.constant 0 : i32
    %c0_i32_0 = arith.constant 0 : i32
    return %arg0, %c0_i32 : i32, i32
  }
  func.func @transform_4(%arg0: i32) -> (i32, i32) {
    %c0_i32 = arith.constant 0 : i32
    %c0_i32_0 = arith.constant 0 : i32
    %c0_i32_1 = arith.constant 0 : i32
    return %c0_i32, %c0_i32_0 : i32, i32
  }
  func.func @transform_5(%arg0: i32) -> (i32, i32) {
    %c0_i32 = arith.constant 0 : i32
    %c0_i32_0 = arith.constant 0 : i32
    %c0_i32_1 = arith.constant 0 : i32
    return %c0_i32, %c0_i32_0 : i32, i32
  }
}

module attributes {stable_mosaic.version = 11 : i64} {
  func.func @_conv_kernel(%arg0: i32, %arg1: memref<18x270xf32, #tpu.memory_space<vmem>>, %arg2: memref<270x192xf32, #tpu.memory_space<vmem>>, %arg3: memref<1x192xf32, #tpu.memory_space<vmem>>, %arg4: memref<18x192xf32, #tpu.memory_space<vmem>>) attributes {dimension_semantics = [#tpu.dimension_semantics<arbitrary>], iteration_bounds = array<i64: 1>, scalar_prefetch = 0 : i64, scratch_operands = 0 : i64, tpu.core_type = #tpu.core_type<tc>, window_params = [{pipeline_mode = #tpu.pipeline_mode<synchronous>, transform_indices = @transform_0, window_bounds = array<i64: 18, 270>}, {pipeline_mode = #tpu.pipeline_mode<synchronous>, transform_indices = @transform_1, window_bounds = array<i64: 270, 192>}, {pipeline_mode = #tpu.pipeline_mode<synchronous>, transform_indices = @transform_2, window_bounds = array<i64: 1, 192>}, {pipeline_mode = #tpu.pipeline_mode<synchronous>, transform_indices = @transform_3, window_bounds = array<i64: 18, 192>}]} {
    %c0 = arith.constant 0 : index
    %c0_0 = arith.constant 0 : index
    %0 = vector.load %arg1[%c0, %c0_0] : memref<18x270xf32, #tpu.memory_space<vmem>>, vector<18x270xf32>
    %c0_1 = arith.constant 0 : index
    %c0_2 = arith.constant 0 : index
    %1 = vector.load %arg2[%c0_1, %c0_2] : memref<270x192xf32, #tpu.memory_space<vmem>>, vector<270x192xf32>
    %cst = arith.constant dense<0.000000e+00> : vector<18x192xf32>
    %2 = tpu.matmul %0, %1, %cst {dimension_numbers = #tpu.dot_dimension_numbers<[1], [0], [0], [1], [0, 0, 1, 1], [], []>} : vector<18x270xf32>, vector<270x192xf32>, vector<18x192xf32> -> vector<18x192xf32>
    %c0_3 = arith.constant 0 : index
    %c0_4 = arith.constant 0 : index
    %3 = vector.load %arg3[%c0_3, %c0_4] : memref<1x192xf32, #tpu.memory_space<vmem>>, vector<1x192xf32>
    %4 = vector.broadcast %3 : vector<1x192xf32> to vector<18x192xf32>
    %5 = arith.addf %2, %4 : vector<18x192xf32>
    %c0_5 = arith.constant 0 : index
    %c0_6 = arith.constant 0 : index
    %6 = vector.load %arg4[%c0_5, %c0_6] : memref<18x192xf32, #tpu.memory_space<vmem>>, vector<18x192xf32>
    tpu.vector_store %arg4[%c0_5, %c0_6], %5 {strides = array<i32>} : memref<18x192xf32, #tpu.memory_space<vmem>>, vector<18x192xf32>,
    return
  }
  func.func @transform_0(%arg0: i32) -> (i32, i32) {
    %c0_i32 = arith.constant 0 : i32
    %c0_i32_0 = arith.constant 0 : i32
    %c0_i32_1 = arith.constant 0 : i32
    return %c0_i32, %c0_i32_0 : i32, i32
  }
  func.func @transform_1(%arg0: i32) -> (i32, i32) {
    %c0_i32 = arith.constant 0 : i32
    %c0_i32_0 = arith.constant 0 : i32
    %c0_i32_1 = arith.constant 0 : i32
    return %c0_i32, %c0_i32_0 : i32, i32
  }
  func.func @transform_2(%arg0: i32) -> (i32, i32) {
    %c0_i32 = arith.constant 0 : i32
    %c0_i32_0 = arith.constant 0 : i32
    %c0_i32_1 = arith.constant 0 : i32
    return %c0_i32, %c0_i32_0 : i32, i32
  }
  func.func @transform_3(%arg0: i32) -> (i32, i32) {
    %c0_i32 = arith.constant 0 : i32
    %c0_i32_0 = arith.constant 0 : i32
    %c0_i32_1 = arith.constant 0 : i32
    return %c0_i32, %c0_i32_0 : i32, i32
  }
}

module attributes {stable_mosaic.version = 11 : i64} {
  func.func @_softmax_dim1_kernel(%arg0: i32, %arg1: memref<2x9x81xf32, #tpu.memory_space<vmem>>, %arg2: memref<2x9x81xf32, #tpu.memory_space<vmem>>) attributes {dimension_semantics = [#tpu.dimension_semantics<arbitrary>], iteration_bounds = array<i64: 1>, scalar_prefetch = 0 : i64, scratch_operands = 0 : i64, tpu.core_type = #tpu.core_type<tc>, window_params = [{pipeline_mode = #tpu.pipeline_mode<synchronous>, transform_indices = @transform_0, window_bounds = array<i64: 2, 9, 81>}, {pipeline_mode = #tpu.pipeline_mode<synchronous>, transform_indices = @transform_1, window_bounds = array<i64: 2, 9, 81>}]} {
    %c0 = arith.constant 0 : index
    %c0_0 = arith.constant 0 : index
    %c0_1 = arith.constant 0 : index
    %0 = vector.load %arg1[%c0, %c0_0, %c0_1] : memref<2x9x81xf32, #tpu.memory_space<vmem>>, vector<2x9x81xf32>
    %cst = arith.constant dense<0xFF800000> : vector<2x81xf32>
    %1 = vector.multi_reduction <maximumf>, %0, %cst [1] : vector<2x9x81xf32> to vector<2x81xf32>
    %2 = vector.shape_cast %1 : vector<2x81xf32> to vector<2x1x81xf32>
    %3 = vector.broadcast %2 : vector<2x1x81xf32> to vector<2x9x81xf32>
    %4 = arith.subf %0, %3 : vector<2x9x81xf32>
    %5 = math.exp %4 : vector<2x9x81xf32>
    %cst_2 = arith.constant dense<0.000000e+00> : vector<2x81xf32>
    %6 = vector.multi_reduction <add>, %5, %cst_2 [1] : vector<2x9x81xf32> to vector<2x81xf32>
    %7 = vector.shape_cast %6 : vector<2x81xf32> to vector<2x1x81xf32>
    %8 = vector.broadcast %7 : vector<2x1x81xf32> to vector<2x9x81xf32>
    %9 = arith.divf %5, %8 : vector<2x9x81xf32>
    %c0_3 = arith.constant 0 : index
    %c0_4 = arith.constant 0 : index
    %c0_5 = arith.constant 0 : index
    %10 = vector.load %arg2[%c0_3, %c0_4, %c0_5] : memref<2x9x81xf32, #tpu.memory_space<vmem>>, vector<2x9x81xf32>
    tpu.vector_store %arg2[%c0_3, %c0_4, %c0_5], %9 {strides = array<i32>} : memref<2x9x81xf32, #tpu.memory_space<vmem>>, vector<2x9x81xf32>,
    return
  }
  func.func @transform_0(%arg0: i32) -> (i32, i32, i32) {
    %c0_i32 = arith.constant 0 : i32
    %c0_i32_0 = arith.constant 0 : i32
    %c0_i32_1 = arith.constant 0 : i32
    %c0_i32_2 = arith.constant 0 : i32
    return %c0_i32, %c0_i32_0, %c0_i32_1 : i32, i32, i32
  }
  func.func @transform_1(%arg0: i32) -> (i32, i32, i32) {
    %c0_i32 = arith.constant 0 : i32
    %c0_i32_0 = arith.constant 0 : i32
    %c0_i32_1 = arith.constant 0 : i32
    %c0_i32_2 = arith.constant 0 : i32
    return %c0_i32, %c0_i32_0, %c0_i32_1 : i32, i32, i32
  }
}

</mosaic_0001>

<bundles_post_ra>
// kernel: cnn1_forward.5
= control target key start
LH: loop header
LB: loop body
LE: loop exit
PB: predicated region body
PF: predicated region fallthrough
CT: control target
= control target key end

     0   :  { %vm12_vm0 = vcmask 662528   ;;  %vm14_vm1 = vcmask 655360   ;;  %s134_s0 = inlined_call_operand.vmem [shape: f32[2,9,81], index: 0, kind: input, shape index: {}]   ;;  %s135_s1 = inlined_call_operand.vmem [shape: f32[2,9,81], index: 1, kind: output, shape index: {}]  }
   0x1   :  { %v8_v0 = vld [vmem:[%s134_s0] sm:$0xff]  ;;  %v9_v1 = vld [vmem:[%s134_s0 + $0x8] sm:$0x1]  ;;  %v10_v2 = vld [vmem:[%s134_s0 + $0x10] sm:$0xff] }
   0x2   :  { %v13_v3 = vsel %vm12_vm0, %v8_v0, -inf  ;;  %v15_v4 = vsel %vm14_vm1, %v9_v1, -inf  ;;  %v11_v5 = vld [vmem:[%s134_s0 + $0x18] sm:$0x1]  ;;  %v23_v6 = vsel %vm12_vm0, %v10_v2, -inf }
   0x3   :  { %v16_v7 = vmax.f32 %v13_v3, %v15_v4  ;;  %v24_v8 = vsel %vm14_vm1, %v11_v5, -inf }
   0x4   :  { %v25_v9 = vmax.f32 %v23_v6, %v24_v8 }
   0x5   :  { %v17_v10 = vrot.slane %v16_v7, 4 }
   0x6   :  { %v26_v11 = vrot.slane %v25_v9, 4 }
   0x7   :  { %v18_v12 = vmax.f32 %v16_v7, %v17_v10 }
   0x8   :  { %v27_v13 = vmax.f32 %v25_v9, %v26_v11 }
   0x9   :  { %v19_v14 = vrot.slane %v18_v12, 2 }
   0xa   :  { %v28_v15 = vrot.slane %v27_v13, 2 }
   0xb   :  { %v20_v16 = vmax.f32 %v18_v12, %v19_v14 }
   0xc   :  { %v29_v17 = vmax.f32 %v27_v13, %v28_v15 }
   0xd   :  { %v21_v18 = vrot.slane %v20_v16, 1 }
   0xe   :  { %v30_v19 = vrot.slane %v29_v17, 1 }
   0xf   :  { %v22_v20 = vmax.f32 %v20_v16, %v21_v18 }
  0x10   :  { %v31_v21 = vmax.f32 %v29_v17, %v30_v19 }
  0x11   :  { %v32_v22 = vsub.f32 %v8_v0, %v22_v20  ;;  %v33_v23 = vsub.f32 %v9_v1, %v22_v20 }
  0x12   :  { %v34_v24 = vsub.f32 %v10_v2, %v31_v21  ;;  %v35_v25 = vsub.f32 %v11_v5, %v31_v21 }
  0x13   :  { %v36_v26 = vmul.f32 1.442695, %v32_v22  ;;  %v38_v27 = vmul.f32 1.442695, %v33_v23 }
  0x14   :  { %v40_v28 = vmul.f32 1.442695, %v34_v24  ;;  %v42_v29 = vmul.f32 1.442695, %v35_v25 }
  0x15   :  { %76 = vpow2.f32 %v36_v26 }
  0x16   :  { %78 = vpow2.f32 %v38_v27 }
  0x17   :  { %80 = vpow2.f32 %v40_v28 }
  0x18   :  { %82 = vpow2.f32 %v42_v29 }
  0x1f   :  { %v77_v30 = vpop.eup %76 }
  0x20   :  { %v79_v31 = vpop.eup %78  ;;  %v44_v32 = vsel %vm12_vm0, %v77_v30, 0.0 }
  0x21   :  { %v81_v33 = vpop.eup %80  ;;  %v45_v34 = vsel %vm14_vm1, %v79_v31, 0.0 }
  0x22   :  { %v83_v35 = vpop.eup %82  ;;  %v46_v36 = vadd.f32 %v45_v34, %v44_v32  ;;  %v53_v37 = vsel %vm12_vm0, %v81_v33, 0.0 }
  0x23   :  { %v54_v38 = vsel %vm14_vm1, %v83_v35, 0.0 }
  0x24   :  { %v47_v39 = vrot.slane %v46_v36, 4  ;;  %v55_v40 = vadd.f32 %v54_v38, %v53_v37 }
  0x26   :  { %v48_v41 = vadd.f32 %v47_v39, %v46_v36  ;;  %v56_v42 = vrot.slane %v55_v40, 4 }
  0x28   :  { %v49_v43 = vrot.slane %v48_v41, 2  ;;  %v57_v44 = vadd.f32 %v56_v42, %v55_v40 }
  0x2a   :  { %v50_v45 = vadd.f32 %v49_v43, %v48_v41  ;;  %v58_v46 = vrot.slane %v57_v44, 2 }
  0x2c   :  { %v51_v47 = vrot.slane %v50_v45, 1  ;;  %v59_v48 = vadd.f32 %v58_v46, %v57_v44 }
  0x2e   :  { %v52_v49 = vadd.f32 %v51_v47, %v50_v45  ;;  %v60_v50 = vrot.slane %v59_v48, 1 }
  0x30   :  { %84 = vrcp.f32 %v52_v49  ;;  %v61_v51 = vadd.f32 %v60_v50, %v59_v48 }
  0x32   :  { %86 = vrcp.f32 %v61_v51 }
  0x3a   :  { %v85_v52 = vpop.eup %84 }
  0x3b   :  { %v63_v53 = vmul.f32 %v85_v52, %v77_v30  ;;  %v64_v54 = vmul.f32 %v85_v52, %v79_v31 }
  0x3c   :  { %v87_v55 = vpop.eup %86 }
  0x3d   :  { %68 = vst.msk [vmem:[%s135_s1] sm:$0xff] %vm12_vm0, %v63_v53  ;;  %v66_v56 = vmul.f32 %v87_v55, %v81_v33  ;;  %v67_v57 = vmul.f32 %v87_v55, %v83_v35 }
  0x3e   :  { %69 = vst.msk [vmem:[%s135_s1 + $0x8] sm:$0x1] %vm14_vm1, %v64_v54 }
  0x3f   :  { %70 = vst.msk [vmem:[%s135_s1 + $0x10] sm:$0xff] %vm12_vm0, %v66_v56 }
  0x40   :  { %71 = vst.msk [vmem:[%s135_s1 + $0x18] sm:$0x1] %vm14_vm1, %v67_v57 }

// kernel: cnn1_forward.3
= control target key start
LH: loop header
LB: loop body
LE: loop exit
PB: predicated region body
PF: predicated region fallthrough
CT: control target
= control target key end

     0   :  { %8 = vsyncpa [#allocation3], 0  ;;  %s576_s0 = inlined_call_operand.vmem [shape: f32[18,270], index: 0, kind: input, shape index: {}]   ;;  %s577_s1 = inlined_call_operand.hbm [shape: f32[270,192], index: 1, kind: input, shape index: {}]   ;;  %s578_s2 = inlined_call_operand.hbm [shape: f32[1,192], index: 2, kind: input, shape index: {}]   ;;  %s579_s3 = inlined_call_operand.vmem [shape: f32[18,192], index: 3, kind: output, shape index: {}]  }
   0x1   :  { %9 = vsyncpa [#allocation5], 0  ;;  %s467_s12 = smov [#allocation2]   ;;  %s419_s16 = scalar_lea.hbm %s577_s1, 8704 }
   0x2   :  { %s17_s13 = sshll.u32 %s467_s12, 4  ;;  %p420_p0 = scmp.ne.s32.totalorder %s577_s1, %s419_s16  ;;  %s18_s13 = int_to_ptr.vmem [resolvable:$true] %s17_s13 }
   0x3   :  { %p423_p1 = scmp.lt.u32.totalorder %s419_s16, %s577_s1 }
   0x5   :  { %p425_p2 = pnand %p423_p1, %p420_p0 }
   0x7   :  { %428 = shalt.err (!%p425_p2)
}
   0x8   :  { %s429_s21 = scalar_lea.vmem %s18_s13, 8704  ;;  %p434_p4 = scmp.lt.s32.totalorder %s18_s13, %s18_s13 }
   0x9   :  { %p430_p3 = scmp.ne.s32.totalorder %s18_s13, %s429_s21  ;;  %p435_p5 = scmp.lt.s32.totalorder %s429_s21, %s429_s21 }
   0xb   :  { %p436_p6 = por %p435_p5, %p434_p4 }
   0xd   :  { %p437_p7 = pnand %p436_p6, %p430_p3 }
   0xf   :  { %440 = shalt.err (!%p437_p7)
}
  0x10   :  { %s468_s22 = smov 256   ;;  %s469_s23 = smov 16  }
  0x11   :  { %23 = dma.hbm_to_vmem [thread:$0]  %s577_s1, 8704, %s18_s13, [#allocation3], %s468_s22, %s468_s22, %s469_s23  }
  0x12   :  { %s470_s26 = smov [#allocation4]   ;;  %s441_s30 = scalar_lea.hbm %s578_s2, 32 }
  0x13   :  { %s30_s27 = sshll.u32 %s470_s26, 4  ;;  %p442_p8 = scmp.ne.s32.totalorder %s578_s2, %s441_s30  ;;  %s31_s27 = int_to_ptr.vmem [resolvable:$true] %s30_s27 }
  0x14   :  { %p445_p9 = scmp.lt.u32.totalorder %s441_s30, %s578_s2 }
  0x16   :  { %p447_p10 = pnand %p445_p9, %p442_p8 }
  0x18   :  { %450 = shalt.err (!%p447_p10)
}
  0x19   :  { %s451_s8 = scalar_lea.vmem %s31_s27, 32  ;;  %p456_p12 = scmp.lt.s32.totalorder %s31_s27, %s31_s27 }
  0x1a   :  { %p452_p11 = scmp.ne.s32.totalorder %s31_s27, %s451_s8  ;;  %p457_p13 = scmp.lt.s32.totalorder %s451_s8, %s451_s8 }
  0x1c   :  { %p458_p0 = por %p457_p13, %p456_p12 }
  0x1e   :  { %p459_p1 = pnand %p458_p0, %p452_p11 }
  0x20   :  { %462 = shalt.err (!%p459_p1)
}
  0x21   :  { %33 = dma.hbm_to_vmem [thread:$0]  %s578_s2, 32, %s31_s27, [#allocation5]  }
  0x22   :  { %463 = dma.done.wait [#allocation3], 8704  }
  0x23   :  { %464 = vsyncadd [#allocation3], 4294958592 }
  0x24   :  { %465 = dma.done.wait [#allocation5], 32  }
  0x25   :  { %466 = vsyncadd [#allocation5], 4294967264  ;;  %v471_v0 = vmov 0.0   ;;  %v50_v1 = vld [vmem:[#allocation2 + $0x8] sm:$0xff]  ;;  %v52_v2 = vld [vmem:[#allocation2 + $0x18] sm:$0xff]  ;;  %vm139_vm0 = vcmask 1045504  }
  0x26   :  { %293 = vmatprep.mubr.f32.mxu0 %v471_v0  ;;  %v49_v3 = vld [vmem:[#allocation2] sm:$0xff]  ;;  %v331_v4 = vpack.c.bf16 %v52_v2, %v50_v1  ;;  %v51_v5 = vld [vmem:[#allocation2 + $0x10] sm:$0xff]  ;;  %v54_v6 = vld [vmem:[#allocation2 + $0x28] sm:$0xff]  ;;  %vm472_vm1 = vmmov 1   ;;  %vm129_vm3 = vcmask 113664   ;;  %vm313_vm4 = vcmask 523264  }
  0x27   :  { %v56_v7 = vld [vmem:[#allocation2 + $0x38] sm:$0xff]  ;;  %v333_v8 = vpack.c.bf16 %v51_v5, %v49_v3  ;;  %v53_v10 = vld [vmem:[#allocation2 + $0x20] sm:$0xff]  ;;  %v55_v11 = vld [vmem:[#allocation2 + $0x30] sm:$0xff]  ;;  %vm318_vm5 = vcmask 517120  }
  0x28   :  { %v335_v9 = vpack.c.bf16 %v56_v7, %v54_v6  ;;  %v58_v12 = vld [vmem:[#allocation2 + $0x48] sm:$0xff]  ;;  %332 = vmatprep.subr.bf16.mxu1 %v331_v4  ;;  %v60_v13 = vld [vmem:[#allocation2 + $0x58] sm:$0xff]  ;;  %v337_v14 = vpack.c.bf16 %v55_v11, %v53_v10  ;;  %v57_v16 = vld [vmem:[#allocation2 + $0x40] sm:$0xff] }
  0x29   :  { %334 = vmatpush1.bf16.msra.mxu1 %v333_v8  ;;  %v339_v15 = vpack.c.bf16 %v60_v13, %v58_v12  ;;  %v59_v17 = vld [vmem:[#allocation2 + $0x50] sm:$0xff]  ;;  %v62_v18 = vld [vmem:[#allocation2 + $0x68] sm:$0xff]  ;;  %v64_v19 = vld [vmem:[#allocation2 + $0x78] sm:$0xff] }
  0x2a   :  { %336 = vmatprep.subr.bf16.mxu1 %v335_v9  ;;  %v341_v20 = vpack.c.bf16 %v59_v17, %v57_v16  ;;  %v343_v21 = vpack.c.bf16 %v64_v19, %v62_v18  ;;  %v61_v22 = vld [vmem:[#allocation2 + $0x60] sm:$0xff]  ;;  %v63_v23 = vld [vmem:[#allocation2 + $0x70] sm:$0xff]  ;;  %v66_v24 = vld [vmem:[#allocation2 + $0x88] sm:$0xff] }
  0x2b   :  { %v68_v25 = vld [vmem:[#allocation2 + $0x98] sm:$0xff]  ;;  %v345_v26 = vpack.c.bf16 %v63_v23, %v61_v22  ;;  %v65_v28 = vld [vmem:[#allocation2 + $0x80] sm:$0xff]  ;;  %v67_v29 = vld [vmem:[#allocation2 + $0x90] sm:$0xff] }
  0x2c   :  { %v347_v27 = vpack.c.bf16 %v68_v25, %v66_v24  ;;  %v70_v30 = vld [vmem:[#allocation2 + $0xa8] sm:$0xff]  ;;  %v72_v31 = vld [vmem:[#allocation2 + $0xb8] sm:$0xff]  ;;  %v349_v32 = vpack.c.bf16 %v67_v29, %v65_v28  ;;  %v69_v34 = vld [vmem:[#allocation2 + $0xa0] sm:$0xff] }
  0x2d   :  { %338 = vmatpush1.bf16.msra.mxu1 %v337_v14  ;;  %v351_v33 = vpack.c.bf16 %v72_v31, %v70_v30  ;;  %v71_v35 = vld [vmem:[#allocation2 + $0xb0] sm:$0xff]  ;;  %v74_v36 = vld [vmem:[#allocation2 + $0xc8] sm:$0xff]  ;;  %v76_v37 = vld [vmem:[#allocation2 + $0xd8] sm:$0xff] }
  0x2e   :  { %340 = vmatprep.subr.bf16.mxu1 %v339_v15  ;;  %vm518_vm2 = vmpackc.low %vm139_vm0, %vm472_vm1  ;;  %v353_v39 = vpack.c.bf16 %v71_v35, %v69_v34  ;;  %v73_v40 = vld [vmem:[#allocation2 + $0xc0] sm:$0xff]  ;;  %v75_v41 = vld [vmem:[#allocation2 + $0xd0] sm:$0xff]  ;;  %v355_v43 = vpack.c.bf16 %v76_v37, %v74_v36 }
  0x2f   :  { %v78_v42 = vld [vmem:[#allocation2 + $0xe8] sm:$0xff]  ;;  %v80_v44 = vld [vmem:[#allocation2 + $0xf8] sm:$0xff]  ;;  %v113_v48 = vld [vmem:[#allocation2 + $0x200] sm:$0xff]  ;;  %v357_v52 = vpack.c.bf16 %v75_v41, %v73_v40 }
  0x30   :  { %v114_v45 = vld [vmem:[#allocation2 + $0x208] sm:$0xff]  ;;  %v116_v46 = vld [vmem:[#allocation2 + $0x218] sm:$0x3f]  ;;  %v115_v49 = vld [vmem:[#allocation2 + $0x210] sm:$0x3f]  ;;  %v359_v53 = vpack.c.bf16 %v80_v44, %v78_v42 }
  0x31   :  { %342 = vmatpush1.bf16.msra.mxu1 %v341_v20  ;;  %v395_v47 = vpack.c.bf16 %v116_v46, %v114_v45  ;;  %v41_v50 = vld [vmem:[%s576_s0 + $0x8] sm:$0xff]  ;;  %v398_v51 = vpack.c.bf16 %v115_v49, %v113_v48  ;;  %v77_v54 = vld [vmem:[#allocation2 + $0xe0] sm:$0xff]  ;;  %v79_v55 = vld [vmem:[#allocation2 + $0xf0] sm:$0xff] }
  0x32   :  { %344 = vmatprep.subr.bf16.mxu1 %v343_v21  ;;  %210 = vmatprep.mubr.f32.mxu1 %v41_v50  ;;  %v42_v56 = vld [vmem:[%s576_s0 + $0x10] sm:$0xff]  ;;  %v82_v57 = vld [vmem:[#allocation2 + $0x108] sm:$0xff]  ;;  %v84_v58 = vld [vmem:[#allocation2 + $0x118] sm:$0xff]  ;;  %v361_v59 = vpack.c.bf16 %v79_v55, %v77_v54  ;;  %v119_v55 = vlaneseq }
  0x33   :  { %397 = vmatprep.subr.msk.bf16.mxu0 %vm518_vm2, %v395_v47  ;;  %v363_v60 = vpack.c.bf16 %v84_v58, %v82_v57  ;;  %v81_v61 = vld [vmem:[#allocation2 + $0x100] sm:$0xff]  ;;  %v83_v62 = vld [vmem:[#allocation2 + $0x110] sm:$0xff]  ;;  %v45_v63 = vld [vmem:[%s576_s0 + $0x28] sm:$0xff] }
  0x34   :  { %400 = vmatpush1.bf16.msk.msra.mxu0 %vm518_vm2, %v398_v51  ;;  %v86_v1 = vld [vmem:[#allocation2 + $0x128] sm:$0xff]  ;;  %v88_v2 = vld [vmem:[#allocation2 + $0x138] sm:$0xff]  ;;  %v365_v3 = vpack.c.bf16 %v83_v62, %v81_v61  ;;  %v85_v5 = vld [vmem:[#allocation2 + $0x120] sm:$0xff] }
  0x35   :  { %346 = vmatpush1.bf16.msra.mxu1 %v345_v26  ;;  %v367_v4 = vpack.c.bf16 %v88_v2, %v86_v1  ;;  %v87_v6 = vld [vmem:[#allocation2 + $0x130] sm:$0xff]  ;;  %v48_v7 = vld [vmem:[%s576_s0 + $0x40] sm:$0x3]  ;;  %v90_v8 = vld [vmem:[#allocation2 + $0x148] sm:$0xff] }
  0x36   :  { %348 = vmatprep.subr.bf16.mxu1 %v347_v27  ;;  %v92_v9 = vld [vmem:[#allocation2 + $0x158] sm:$0xff]  ;;  %v369_v10 = vpack.c.bf16 %v87_v6, %v85_v5  ;;  %v89_v12 = vld [vmem:[#allocation2 + $0x140] sm:$0xff]  ;;  %v91_v13 = vld [vmem:[#allocation2 + $0x150] sm:$0xff] }
  0x37   :  { %328 = vmatmul.mubr.msk.f32.vlgmr.msra.gmra.mrb[0].mxu0 %vm129_vm3, %v42_v56  ;;  %v371_v11 = vpack.c.bf16 %v92_v9, %v90_v8  ;;  %v94_v14 = vld [vmem:[#allocation2 + $0x168] sm:$0xff]  ;;  %v96_v15 = vld [vmem:[#allocation2 + $0x178] sm:$0xff]  ;;  %v373_v16 = vpack.c.bf16 %v91_v13, %v89_v12  ;;  %v93_v17 = vld [vmem:[#allocation2 + $0x160] sm:$0xff]  ;;  %v120_v56 = vshrl.u32 %v119_v55, 7 }
  0x38   :  { %299 = vmatprep.mubr.f32.mxu0 %v471_v0  ;;  %v95_v18 = vld [vmem:[#allocation2 + $0x170] sm:$0xff]  ;;  %v98_v19 = vld [vmem:[#allocation2 + $0x188] sm:$0xff]  ;;  %v100_v20 = vld [vmem:[#allocation2 + $0x198] sm:$0xff] }
  0x39   :  { %350 = vmatpush1.bf16.msra.mxu1 %v349_v32  ;;  %v377_v21 = vpack.c.bf16 %v95_v18, %v93_v17  ;;  %v379_v22 = vpack.c.bf16 %v100_v20, %v98_v19  ;;  %v97_v23 = vld [vmem:[#allocation2 + $0x180] sm:$0xff]  ;;  %v99_v24 = vld [vmem:[#allocation2 + $0x190] sm:$0xff]  ;;  %v102_v25 = vld [vmem:[#allocation2 + $0x1a8] sm:$0xff]  ;;  %v121_v57 = vsub.s32 0, %v120_v56 }
  0x3a   :  { %352 = vmatprep.subr.bf16.mxu1 %v351_v33  ;;  %v104_v26 = vld [vmem:[#allocation2 + $0x1b8] sm:$0xff]  ;;  %v381_v27 = vpack.c.bf16 %v99_v24, %v97_v23  ;;  %v101_v29 = vld [vmem:[#allocation2 + $0x1a0] sm:$0xff]  ;;  %v103_v30 = vld [vmem:[#allocation2 + $0x1b0] sm:$0xff] }
  0x3b   :  { %329 = vmatmul.mubr.msk.f32.gmra.mrb[2].mxu0 %vm129_vm3, %v45_v63  ;;  %v383_v28 = vpack.c.bf16 %v104_v26, %v102_v25  ;;  %v106_v31 = vld [vmem:[#allocation2 + $0x1c8] sm:$0xff]  ;;  %v108_v32 = vld [vmem:[#allocation2 + $0x1d8] sm:$0xff]  ;;  %v385_v33 = vpack.c.bf16 %v103_v30, %v101_v29  ;;  %v105_v35 = vld [vmem:[#allocation2 + $0x1c0] sm:$0xff] }
  0x3c   :  { %305 = vmatprep.mubr.f32.mxu0 %v471_v0  ;;  %v375_v0 = vpack.c.bf16 %v96_v15, %v94_v14  ;;  %v387_v34 = vpack.c.bf16 %v108_v32, %v106_v31  ;;  %v107_v36 = vld [vmem:[#allocation2 + $0x1d0] sm:$0xff]  ;;  %v110_v37 = vld [vmem:[#allocation2 + $0x1e8] sm:$0xff]  ;;  %v112_v38 = vld [vmem:[#allocation2 + $0x1f8] sm:$0xff] }
  0x3d   :  { %354 = vmatpush1.bf16.msra.mxu1 %v353_v39  ;;  %v389_v39 = vpack.c.bf16 %v107_v36, %v105_v35  ;;  %v391_v40 = vpack.c.bf16 %v112_v38, %v110_v37  ;;  %v109_v41 = vld [vmem:[#allocation2 + $0x1e0] sm:$0xff]  ;;  %v111_v42 = vld [vmem:[#allocation2 + $0x1f0] sm:$0xff]  ;;  %v43_v46 = vld [vmem:[%s576_s0 + $0x18] sm:$0xff] }
  0x3e   :  { %356 = vmatprep.subr.bf16.mxu1 %v355_v43  ;;  %v393_v43 = vpack.c.bf16 %v111_v42, %v109_v41  ;;  %v40_v44 = vld [vmem:[%s576_s0] sm:$0xff]  ;;  %v47_v47 = vld [vmem:[%s576_s0 + $0x38] sm:$0x3]  ;;  %v46_v48 = vld [vmem:[%s576_s0 + $0x30] sm:$0x3] }
  0x3f   :  { %330 = vmatmul.mubr.msk.f32.gmra.mrb[4].mxu0 %vm129_vm3, %v48_v7  ;;  %v44_v45 = vld [vmem:[%s576_s0 + $0x20] sm:$0xff] }
  0x40   :  { %v117_v58 = vld [vmem:[#allocation4] sm:$0x3] }
  0x41   :  { %358 = vmatpush1.bf16.msra.mxu1 %v357_v52 }
  0x42   :  { %360 = vmatprep.subr.bf16.mxu1 %v359_v53 }
  0x45   :  { %362 = vmatpush1.bf16.msra.mxu1 %v361_v59  ;;  %v125_v59 = vsub.s32 1, %v120_v56 }
  0x46   :  { %364 = vmatprep.subr.bf16.mxu1 %v363_v60  ;;  %v122_v60 = vrot.slane %v117_v58, %v121_v57 }
  0x47   :  { %v126_v61 = vrot.slane %v117_v58, %v125_v59 }
  0x49   :  { %366 = vmatpush1.bf16.msra.mxu1 %v365_v3 }
  0x4a   :  { %368 = vmatprep.subr.bf16.mxu1 %v367_v4 }
  0x4d   :  { %370 = vmatpush1.bf16.msra.mxu1 %v369_v10 }
  0x4e   :  { %372 = vmatprep.subr.bf16.mxu1 %v371_v11 }
  0x51   :  { %374 = vmatpush1.bf16.msra.mxu1 %v373_v16 }
  0x52   :  { %376 = vmatprep.subr.bf16.mxu1 %v375_v0 }
  0x55   :  { %378 = vmatpush1.bf16.msra.mxu1 %v377_v21 }
  0x56   :  { %380 = vmatprep.subr.bf16.mxu1 %v379_v22 }
  0x59   :  { %382 = vmatpush1.bf16.msra.mxu1 %v381_v27 }
  0x5a   :  { %384 = vmatprep.subr.bf16.mxu1 %v383_v28 }
  0x5d   :  { %386 = vmatpush1.bf16.msra.mxu1 %v385_v33 }
  0x5e   :  { %388 = vmatprep.subr.bf16.mxu1 %v387_v34 }
  0x61   :  { %390 = vmatpush1.bf16.msra.mxu1 %v389_v39 }
  0x62   :  { %392 = vmatprep.subr.bf16.mxu1 %v391_v40 }
  0x65   :  { %394 = vmatpush1.bf16.msra.mxu1 %v393_v43 }
  0x68   :  { %211 = vmatmul.mubr.f32.vlgmr.msra.gmra.mrb[0].mxu1 %v40_v44 }
  0x69   :  { %216 = vmatprep.mubr.f32.mxu1 %v44_v45 }
  0x6c   :  { %217 = vmatmul.mubr.f32.gmra.mrb[2].mxu1 %v43_v46 }
  0x6d   :  { %222 = vmatprep.mubr.f32.mxu1 %v47_v47 }
  0x70   :  { %223 = vmatmul.mubr.f32.gmra.mrb[4].mxu1 %v46_v48 }
 0x10a   :  { %v295_v49 = vpop.f32.mrb[0].mxu0 }
 0x10b   :  { %v297_v50 = vpop.f32.mrb[1].mxu0 }
 0x10e   :  { %v301_v51 = vpop.f32.mrb[2].mxu0 }
 0x10f   :  { %v303_v52 = vpop.f32.mrb[3].mxu0 }
 0x112   :  { %v307_v53 = vpop.f32.mrb[4].mxu0 }
 0x113   :  { %v309_v54 = vpop.f32.mrb[5].mxu0 }
 0x13b   :  { %v212_v62 = vpop.f32.mrb[0].mxu1 }
 0x13c   :  { %v213_v63 = vadd.f32 %v212_v62, %v122_v60  ;;  %v214_v1 = vpop.f32.mrb[1].mxu1 }
 0x13d   :  { %v215_v2 = vadd.f32 %v214_v1, %v126_v61 }
 0x13e   :  { %v296_v3 = vadd.f32 %v295_v49, %v213_v63 }
 0x13f   :  { %v298_v4 = vadd.f32 %v297_v50, %v215_v2  ;;  %v218_v5 = vpop.f32.mrb[2].mxu1 }
 0x140   :  { %312 = vst [vmem:[%s579_s3] sm:$0xff] %v296_v3  ;;  %v219_v6 = vadd.f32 %v218_v5, %v122_v60  ;;  %v220_v7 = vpop.f32.mrb[3].mxu1 }
 0x141   :  { %314 = vst.msk [vmem:[%s579_s3 + $0x8] sm:$0xff] %vm313_vm4, %v298_v4  ;;  %v221_v8 = vadd.f32 %v220_v7, %v126_v61 }
 0x142   :  { %v302_v9 = vadd.f32 %v301_v51, %v219_v6 }
 0x143   :  { %v304_v10 = vadd.f32 %v303_v52, %v221_v8  ;;  %v224_v11 = vpop.f32.mrb[4].mxu1 }
 0x144   :  { %315 = vst [vmem:[%s579_s3 + $0x10] sm:$0xff] %v302_v9  ;;  %v225_v12 = vadd.f32 %v224_v11, %v122_v60  ;;  %v226_v13 = vpop.f32.mrb[5].mxu1 }
 0x145   :  { %316 = vst.msk [vmem:[%s579_s3 + $0x18] sm:$0xff] %vm313_vm4, %v304_v10  ;;  %v227_v14 = vadd.f32 %v226_v13, %v126_v61 }
 0x146   :  { %v308_v15 = vadd.f32 %v307_v53, %v225_v12 }
 0x147   :  { %v310_v16 = vadd.f32 %v309_v54, %v227_v14 }
 0x148   :  { %317 = vst [vmem:[%s579_s3 + $0x20] sm:$0x3] %v308_v15 }
 0x149   :  { %319 = vst.msk [vmem:[%s579_s3 + $0x28] sm:$0x3] %vm318_vm5, %v310_v16 }
 0x14a   :  { %324 = vsyncpa [#allocation3], 1 }
 0x14b   :  { %325 = vsyncpa [#allocation5], 1 }

// kernel: cnn1_forward.4
= control target key start
LH: loop header
LB: loop body
LE: loop exit
PB: predicated region body
PF: predicated region fallthrough
CT: control target
= control target key end

     0   :  { %s24306_s0 = inlined_call_operand.vmem [shape: f32[2,1728], index: 0, kind: input, shape index: {}]   ;;  %s24307_s1 = inlined_call_operand.hbm [shape: bf16[1728,6656], index: 1, kind: input, shape index: {}]   ;;  %s24308_s2 = inlined_call_operand.hbm [shape: f32[1,6656], index: 2, kind: input, shape index: {}]   ;;  %s24309_s3 = inlined_call_operand.hbm [shape: bf16[6656,768], index: 3, kind: input, shape index: {}]   ;;  %s24310_s4 = inlined_call_operand.hbm [shape: f32[1,768], index: 4, kind: input, shape index: {}]   ;;  %s24311_s5 = inlined_call_operand.vmem [shape: f32[2,768], index: 5, kind: output, shape index: {}]  }
   0x1   :  { %24319 = sst [smem:[#allocation13_spill]] %s24308_s2 }
   0x2   :  { %10 = vsyncpa [#allocation4], 0 }
   0x3   :  { %12 = vsyncpa [#allocation4 + $0x1], 0 }
   0x4   :  { %13 = vsyncpa [#allocation6], 0 }
   0x5   :  { %15 = vsyncpa [#allocation6 + $0x1], 0 }
   0x6   :  { %16 = vsyncpa [#allocation9], 0  ;;  %s21646_s18 = smov 0   ;;  %s21648_s19 = smov 0  }
   0x7   :  { %s21650_s20 = smov 0   ;;  %s21652_s21 = smov 0  }
   0x8 LB: > { %s21667_s22 = sadd.s32 1, %s21602_s21   ;;  %s50_s23 = sadd.s32 1, %s21598_s20  ;;  %s21602_s21 = sphi %s21652_s21, %s24337_s21   ;;  %s21598_s20 = sphi %s21650_s20, %s24336_s20   ;;  %s21594_s19 = sphi %s21648_s19, %s24335_s19   ;;  %s21590_s18 = sphi %s21646_s18, %s24334_s18  }
   0x9   : > { %s47_s24 = ssub.s32 %s21602_s21, %s21667_s22  ;;  %p57_p0 = scmp.ne.s32.totalorder %s21598_s20, %s21594_s19 }
   0xa   : > { %p48_p1 = scmp.eq.s32.totalorder %s47_s24, 0  ;;  %p58_p2 = scmp.eq.s32.totalorder %s21602_s21, 0 }
   0xb   : > { %p18405_p3 = scmp.lt.s32.totalorder %s21602_s21, 4  ;;  %s21680_s26 = sand.u32 1, %s21598_s20  }
   0xc   : > { %s21677_s25 = scalar_select %p48_p1, %s21598_s20, %s50_s23  }
   0xd   : > { %p59_p4 = por %p58_p2, %p57_p0  ;;  %s18373_s27 = smul.u32 11232, %s21680_s26 }
   0xe   : > { %s216_s28 = sand.u32 1, %s21602_s21   ;;  %s18374_s30 = smul.u32 13, %s21680_s26 }
   0xf   : > { %p21684_p5 = pnand %p18405_p3, %p59_p4  ;;  %s18014_s6 = smul.u32 208, %s21602_s21 }
  0x10   : > { %s24321_s2 = sld [smem:[#allocation13_spill]]  ;;  %s220_s11 = scalar_lea.vmem [#allocation5], %s18374_s30 }
  0x11   : > { %s24320_s29 = scalar_select %p21684_p5, 1, 0 }
  0x12   : > { %s228_s12 = sshll.u32 %s220_s11, 4  ;;  %s21698_s13 = scalar_lea.sflag [#allocation6], %s216_s28  ;;  %s21696_s12 = int_to_ptr.vmem [resolvable:$true] %s228_s12 }
  0x13   : > { %p21704_p7 = pneg %p21684_p5 }
  0x15   : > { %s24322_s15 = scalar_select %p21704_p7, 1, 0 }
  0x16   : > { %s21694_s10 = scalar_lea.hbm %s24321_s2, %s18014_s6  ;;  %s21447_s23 = scalar_lea.hbm %s24321_s2, 832 }
  0x17   : > { %s21442_s14 = scalar_lea.hbm %s21694_s10, 208  ;;  %p21448_p10 = scmp.lt.u32.totalorder %s21694_s10, %s24321_s2 }
  0x18   : > { %p21443_p6 = scmp.ne.s32.totalorder %s21694_s10, %s21442_s14  ;;  %p21449_p11 = scmp.lt.u32.totalorder %s21447_s23, %s21442_s14 }
  0x19   : > { %p21451_p13 = scmp.lt.u32.totalorder %s21442_s14, %s21694_s10 }
  0x1a   : > { %p21445_p8 = pnand %p21704_p7, %p21443_p6  ;;  %p21450_p12 = por %p21449_p11, %p21448_p10 }
  0x1c   : > { %p21446_p9 = pneg %p21445_p8  ;;  %p21452_p0 = por %p21451_p13, %p21450_p12 }
  0x1e   : > { %p21453_p1 = pnand %p21452_p0, %p21446_p9 }
  0x20   : > { %21456 = shalt.err (!%p21453_p1)
}
  0x21   : > { %s21457_s28 = scalar_lea.vmem %s21696_s12, 208  ;;  %s21604_s6 = smov [#allocation5]  }
  0x22   : > { %p21458_p2 = scmp.ne.s32.totalorder %s21696_s12, %s21457_s28  ;;  %s21462_s8 = sshll.u32 %s21604_s6, 4  ;;  %s21463_s8 = int_to_ptr.vmem [resolvable:$false] %s21462_s8 }
  0x23   : > { %s21464_s9 = scalar_lea.vmem %s21463_s8, 416  ;;  %p21465_p6 = scmp.lt.s32.totalorder %s21696_s12, %s21463_s8 }
  0x24   : > { %p21460_p3 = pnand %p21458_p2, %p21704_p7  ;;  %p21466_p8 = scmp.lt.s32.totalorder %s21464_s9, %s21457_s28 }
  0x26   : > { %p21461_p4 = pneg %p21460_p3  ;;  %p21467_p10 = por %p21466_p8, %p21465_p6 }
  0x28   : > { %p21468_p11 = pnand %p21467_p10, %p21461_p4 }
  0x2a   : > { %21471 = shalt.err (!%p21468_p11)
}
  0x2b   : > { %18400 = dma.hbm_to_vmem [thread:$0]  (!%p21684_p5), %s21694_s10, 208, %s21696_s12, %s21698_s13  }
  0x2c   : > { %s21729_s11 = sadd.s32 4294967295, %s21602_s21   ;;  %p63_p9 = scmp.ne.s32.totalorder %s21594_s19, %s21590_s18 }
  0x2d   : > { %p24312_p12 = scmp.eq.s32.totalorder %s21729_s11, 0  ;;  %p15965_p13 = scmp.ge.s32.totalorder %s21602_s21, 1 }
  0x2e   : > { %p168_p0 = scmp.lt.s32.totalorder %s21602_s21, 5  ;;  %s21605_s10 = smov [#allocation8]  }
  0x2f   : > { %p21739_p2 = por %p24312_p12, %p63_p9  ;;  %s184_s12 = sshll.u32 %s21605_s10, 4  ;;  %s185_s12 = int_to_ptr.vmem [resolvable:$true] %s184_s12 }
  0x30   : > { %p21743_p3 = pnand %p15965_p13, %p168_p0  ;;  %s18013_s18 = smul.u32 832, %s21602_s21 }
  0x31   : > { %s24323_s14 = scalar_select %p21739_p2, 1, 0 }
  0x32   : > { %s24324_s16 = scalar_select %p21743_p3, 1, 0 }
  0x33   : > { %p18390_p4 = pneg %p21743_p3  ;;  %s199_s17 = scalar_lea.vmem [#allocation3], %s18373_s27 }
  0x34   : > { %s206_s23 = sshll.u32 %s199_s17, 4  ;;  %s21763_s6 = scalar_lea.hbm %s24307_s1, %s18013_s18  ;;  %s21758_s23 = int_to_ptr.vmem [resolvable:$true] %s206_s23 }
  0x35   : > { %p21754_p6 = pnand %p18390_p4, %p24312_p12  ;;  %s21472_s10 = scalar_lea.hbm %s24310_s4, 96 }
  0x36   : > { %p21473_p8 = scmp.ne.s32.totalorder %s24310_s4, %s21472_s10  ;;  %p21479_p13 = scmp.lt.u32.totalorder %s21472_s10, %s24310_s4 }
  0x37   : > { %p21474_p10 = pneg %p21754_p6 }
  0x39   : > { %p21475_p11 = pnand %p21474_p10, %p21473_p8 }
  0x3b   : > { %p21476_p9 = pneg %p21475_p11 }
  0x3d   : > { %p21481_p0 = pnand %p21479_p13, %p21476_p9 }
  0x3f   : > { %21484 = shalt.err (!%p21481_p0)
}
  0x40   : > { %s21485_s18 = scalar_lea.vmem %s185_s12, 96  ;;  %p21493_p2 = scmp.lt.s32.totalorder %s185_s12, %s185_s12 }
  0x41   : > { %p21486_p4 = scmp.ne.s32.totalorder %s185_s12, %s21485_s18  ;;  %p21494_p3 = scmp.lt.s32.totalorder %s21485_s18, %s21485_s18 }
  0x43   : > { %p21488_p1 = pnand %p21486_p4, %p21474_p10  ;;  %p21495_p5 = por %p21494_p3, %p21493_p2 }
  0x45   : > { %p21489_p12 = pneg %p21488_p1 }
  0x47   : > { %p21496_p7 = pnand %p21495_p5, %p21489_p12 }
  0x49   : > { %21499 = shalt.err (!%p21496_p7)
}
  0x4a   : > { %18393 = dma.hbm_to_vmem [thread:$0]  (!%p21754_p6), %s24310_s4, 96, %s185_s12, [#allocation9]  }
  0x4b   : > { %s196_s2 = scalar_lea.sflag [#allocation4], %s21680_s26  ;;  %s21500_s28 = scalar_lea.hbm %s21763_s6, 179712 }
  0x4c   : > { %p21501_p1 = scmp.ne.s32.totalorder %s21763_s6, %s21500_s28  ;;  %p24326_p8 = scmp.ne.s32.totalorder %s24322_s15, 0 }
  0x4d   : > { %s21505_s24 = scalar_lea.hbm %s24307_s1, 718848  ;;  %p21506_p5 = scmp.lt.u32.totalorder %s21763_s6, %s24307_s1 }
  0x4e   : > { %p21503_p10 = pnand %p21501_p1, %p24326_p8  ;;  %p21507_p7 = scmp.lt.u32.totalorder %s21505_s24, %s21500_s28 }
  0x4f   : > { %p21509_p3 = scmp.lt.u32.totalorder %s21500_s28, %s21763_s6 }
  0x50   : > { %p21504_p2 = pneg %p21503_p10  ;;  %p21508_p12 = por %p21507_p7, %p21506_p5 }
  0x52   : > { %p21510_p11 = por %p21509_p3, %p21508_p12 }
  0x54   : > { %p21511_p9 = pnand %p21510_p11, %p21504_p2 }
  0x56   : > { %21514 = shalt.err (!%p21511_p9)
}
  0x57   : > { %s21515_s12 = scalar_lea.vmem %s21758_s23, 179712  ;;  %s21606_s17 = smov [#allocation3]  }
  0x58   : > { %p21516_p6 = scmp.ne.s32.totalorder %s21758_s23, %s21515_s12  ;;  %s21520_s18 = sshll.u32 %s21606_s17, 4  ;;  %s21521_s18 = int_to_ptr.vmem [resolvable:$false] %s21520_s18 }
  0x59   : > { %s21522_s7 = scalar_lea.vmem %s21521_s18, 359424  ;;  %p21523_p4 = scmp.lt.s32.totalorder %s21758_s23, %s21521_s18 }
  0x5a   : > { %p21518_p13 = pnand %p21516_p6, %p24326_p8  ;;  %p21524_p1 = scmp.lt.s32.totalorder %s21522_s7, %s21515_s12 }
  0x5c   : > { %p21519_p0 = pneg %p21518_p13  ;;  %p21525_p10 = por %p21524_p1, %p21523_p4 }
  0x5e   : > { %p21526_p5 = pnand %p21525_p10, %p21519_p0 }
  0x60   : > { %21529 = shalt.err (!%p21526_p5)
}
  0x61   : > { %s21607_s30 = smov 3328   ;;  %s21608_s28 = smov 832  }
  0x62   : > { %s21609_s8 = smov 52   ;;  %p24327_p2 = scmp.ne.s32.totalorder %s24320_s29, 0 }
  0x63   : > { %s18406_s9 = smul.u32 79872, %s21602_s21 }
  0x64   : > { %18397 = dma.hbm_to_vmem [thread:$0]  (!%p24327_p2), %s21763_s6, 179712, %s21758_s23, %s196_s2, %s21607_s30, %s21608_s28, %s21609_s8  }
  0x65   : > { %s24328_s24 = smul.u32 4992, %s21680_s26  ;;  %s21813_s18 = scalar_lea.hbm %s24309_s3, %s18406_s9 }
  0x66   : > { %s21530_s7 = scalar_lea.hbm %s21813_s18, 79872  ;;  %s21535_s23 = scalar_lea.hbm %s24309_s3, 319488 }
  0x67   : > { %s239_s10 = scalar_lea.vmem [#allocation7], %s24328_s24  ;;  %p21531_p7 = scmp.ne.s32.totalorder %s21813_s18, %s21530_s7 }
  0x68   : > { %s247_s27 = sshll.u32 %s239_s10, 4  ;;  %p21536_p11 = scmp.lt.u32.totalorder %s21813_s18, %s24309_s3  ;;  %s21808_s27 = int_to_ptr.vmem [resolvable:$true] %s247_s27 }
  0x69   : > { %p21533_p12 = pnand %p21531_p7, %p24326_p8  ;;  %p21537_p9 = scmp.lt.u32.totalorder %s21535_s23, %s21530_s7 }
  0x6a   : > { %p21539_p13 = scmp.lt.u32.totalorder %s21530_s7, %s21813_s18 }
  0x6b   : > { %p21534_p3 = pneg %p21533_p12  ;;  %p21538_p6 = por %p21537_p9, %p21536_p11 }
  0x6d   : > { %p21540_p0 = por %p21539_p13, %p21538_p6 }
  0x6f   : > { %p21541_p4 = pnand %p21540_p0, %p21534_p3 }
  0x71   : > { %21544 = shalt.err (!%p21541_p4)
}
  0x72   : > { %s21545_s30 = scalar_lea.vmem %s21808_s27, 79872  ;;  %s21610_s28 = smov [#allocation7]  }
  0x73   : > { %p21546_p1 = scmp.ne.s32.totalorder %s21808_s27, %s21545_s30  ;;  %s21550_s8 = sshll.u32 %s21610_s28, 4  ;;  %s21551_s8 = int_to_ptr.vmem [resolvable:$false] %s21550_s8 }
  0x74   : > { %s21552_s9 = scalar_lea.vmem %s21551_s8, 159744  ;;  %p21553_p7 = scmp.lt.s32.totalorder %s21808_s27, %s21551_s8 }
  0x75   : > { %p21548_p10 = pnand %p21546_p1, %p24326_p8  ;;  %p21554_p12 = scmp.lt.s32.totalorder %s21552_s9, %s21545_s30 }
  0x77   : > { %p21549_p5 = pneg %p21548_p10  ;;  %p21555_p11 = por %p21554_p12, %p21553_p7 }
  0x79   : > { %p21556_p9 = pnand %p21555_p11, %p21549_p5 }
  0x7b   : > { %21559 = shalt.err (!%p21556_p9)
}
  0x7c   : > { %s21611_s24 = smov 384   ;;  %s21612_s10 = smov 24  }
  0x7d   : > { %18403 = dma.hbm_to_vmem [thread:$0]  (!%p24327_p2), %s21813_s18, 79872, %s21808_s27, %s21698_s13, %s21611_s24, %s21611_s24, %s21612_s10  }
  0x7e   : > { %p24329_p8 = scmp.ne.s32.totalorder %s24324_s16, 0 }
  0x7f   : > { %s261_s15 = sand.u32 (!%p24329_p8), 1, %s21594_s19   ;;  %p24330_p3 = scmp.ne.s32.totalorder (!%p24329_p8), %s24323_s14, 0 }
  0x80   : > { %259 = sbr.rel (%p24329_p8) target bundleno = 2650 (0xa5a), region = 40  ;;  %s262_s17 = scalar_lea.sflag (!%p24329_p8), [#allocation4], %s261_s15 }
  0x81   : > { %s18377_s12 = smul.u32 (!%p24329_p8), 11232, %s261_s15 }
  0x83   : > { %s21840_s7 = scalar_lea.vmem (!%p24329_p8), [#allocation3], %s18377_s12 }
  0x87   : > { %21577 = dma.done.wait (%p24330_p3), %s262_s17, 179712  }
  0x88   : > { %21579 = vsyncadd (%p24330_p3), %s262_s17, 4294787584  ;;  %s270_s21 = sand.u32 1, %s21729_s11   ;;  %s18378_s29 = smul.u32 13, %s261_s15 }
  0x89   : > { %s271_s13 = scalar_lea.sflag [#allocation6], %s270_s21 }
  0x8a   : > { %s21847_s27 = scalar_lea.vmem [#allocation5], %s18378_s29 }
  0x8b   : > { %21581 = dma.done.wait (%p24330_p3), %s271_s13, 80080  }
  0x8c   : > { %21583 = vsyncadd (%p24330_p3), %s271_s13, 4294887216  ;;  %s18379_s16 = smul.u32 4992, %s261_s15  ;;  %p24331_p2 = scmp.eq.s32.totalorder %s21729_s11, 0 }
  0x8e   : > { %s21853_s18 = scalar_lea.vmem [#allocation7], %s18379_s16 }
  0x8f   : > { %21585 = dma.done.wait (%p24331_p2), [#allocation9], 96   ;;  %p24332_p6 = pmov %p24331_p2 }
  0x90   : > { %p24333_p13 = scmp.ne.s32.totalorder %s21729_s11, 0 }
  0x91   : > { %21587 = vsyncadd (%p24332_p6), [#allocation9], 4294967200  ;;  %v21613_v0 = vmov (!%p24333_p13), 0.0  }
  0x92   : > { %326 = sbr.rel (%p24333_p13) target bundleno = 153 (0x99), region = 60  ;;  %327 = vst [vmem:[#allocation2] sm:$0xff] (!%p24333_p13), %v21613_v0  ;;  %328 = vst [vmem:[#allocation2 + $0x8] sm:$0xf] (!%p24333_p13), %v21613_v0 }
  0x99 PF: > { %v18449_v1 = vld [vmem:[%s21840_s7 + $0x4] ss:$52 sps:$4 sm:$0xff]   ;;  %v18451_v2 = vld [vmem:[%s21840_s7 + $0x138c] ss:$52 sps:$4 sm:$0xff]   ;;  %v18454_v4 = vld [vmem:[%s21840_s7 + $0x1388] ss:$52 sps:$4 sm:$0xff]   ;;  %v341_v39 = vlaneseq }
  0x9a   : > { %9137 = vmatprep.subr.bf16.mxu0 %v18449_v1  ;;  %v18453_v3 = vld [vmem:[%s21840_s7] ss:$52 sps:$4 sm:$0xff]   ;;  %9547 = vmatprep.subr.bf16.mxu1 %v18451_v2  ;;  %v18459_v7 = vld [vmem:[%s21840_s7 + $0x68] ss:$52 sps:$4 sm:$0xff]   ;;  %v18460_v8 = vld [vmem:[%s21840_s7 + $0x13f0] ss:$52 sps:$4 sm:$0xff]  }
  0x9b   : > { %v18455_v5 = vld [vmem:[%s21840_s7 + $0x6c] ss:$52 sps:$4 sm:$0xff]   ;;  %9138 = vmatpush1.bf16.msra.mxu0 %v18453_v3  ;;  %9548 = vmatpush1.bf16.msra.mxu1 %v18454_v4  ;;  %v18457_v6 = vld [vmem:[%s21840_s7 + $0x13f4] ss:$52 sps:$4 sm:$0xff]   ;;  %v18463_v10 = vld [vmem:[%s21840_s7 + $0x145c] ss:$52 sps:$4 sm:$0xff]  }
  0x9c   : > { %9139 = vmatprep.subr.bf16.mxu0 %v18455_v5  ;;  %9549 = vmatprep.subr.bf16.mxu1 %v18457_v6  ;;  %v18461_v9 = vld [vmem:[%s21840_s7 + $0xd4] ss:$52 sps:$4 sm:$0xff]   ;;  %v18465_v11 = vld [vmem:[%s21840_s7 + $0xd0] ss:$52 sps:$4 sm:$0xff]   ;;  %v18466_v12 = vld [vmem:[%s21840_s7 + $0x1458] ss:$52 sps:$4 sm:$0xff]  }
  0x9d   : > { %v18467_v13 = vld [vmem:[%s21840_s7 + $0x13c] ss:$52 sps:$4 sm:$0xff]   ;;  %v18469_v14 = vld [vmem:[%s21840_s7 + $0x14c4] ss:$52 sps:$4 sm:$0xff]   ;;  %v18472_v16 = vld [vmem:[%s21840_s7 + $0x14c0] ss:$52 sps:$4 sm:$0xff]  }
  0x9e   : > { %v18471_v15 = vld [vmem:[%s21840_s7 + $0x138] ss:$52 sps:$4 sm:$0xff]   ;;  %v18477_v19 = vld [vmem:[%s21840_s7 + $0x1a0] ss:$52 sps:$4 sm:$0xff]   ;;  %v18478_v20 = vld [vmem:[%s21840_s7 + $0x1528] ss:$52 sps:$4 sm:$0xff]  }
  0x9f   : > { %9140 = vmatpush1.bf16.msra.mxu0 %v18459_v7  ;;  %9550 = vmatpush1.bf16.msra.mxu1 %v18460_v8  ;;  %v18473_v17 = vld [vmem:[%s21840_s7 + $0x1a4] ss:$52 sps:$4 sm:$0xff]   ;;  %v18475_v18 = vld [vmem:[%s21840_s7 + $0x152c] ss:$52 sps:$4 sm:$0xff]   ;;  %v18481_v22 = vld [vmem:[%s21840_s7 + $0x1594] ss:$52 sps:$4 sm:$0xff]  }
  0xa0   : > { %9141 = vmatprep.subr.bf16.mxu0 %v18461_v9  ;;  %9551 = vmatprep.subr.bf16.mxu1 %v18463_v10  ;;  %v18479_v21 = vld [vmem:[%s21840_s7 + $0x20c] ss:$52 sps:$4 sm:$0xff]   ;;  %v18483_v23 = vld [vmem:[%s21840_s7 + $0x208] ss:$52 sps:$4 sm:$0xff]   ;;  %v18484_v24 = vld [vmem:[%s21840_s7 + $0x1590] ss:$52 sps:$4 sm:$0xff]  }
  0xa1   : > { %v18485_v25 = vld [vmem:[%s21840_s7 + $0x274] ss:$52 sps:$4 sm:$0xff]   ;;  %v18487_v26 = vld [vmem:[%s21840_s7 + $0x15fc] ss:$52 sps:$4 sm:$0xff]   ;;  %v18490_v28 = vld [vmem:[%s21840_s7 + $0x15f8] ss:$52 sps:$4 sm:$0xff]  }
  0xa2   : > { %v18489_v27 = vld [vmem:[%s21840_s7 + $0x270] ss:$52 sps:$4 sm:$0xff]   ;;  %v18495_v31 = vld [vmem:[%s21840_s7 + $0x2d8] ss:$52 sps:$4 sm:$0xff]   ;;  %v18496_v32 = vld [vmem:[%s21840_s7 + $0x1660] ss:$52 sps:$4 sm:$0xff]  }
  0xa3   : > { %9142 = vmatpush1.bf16.msra.mxu0 %v18465_v11  ;;  %9552 = vmatpush1.bf16.msra.mxu1 %v18466_v12  ;;  %v18491_v29 = vld [vmem:[%s21840_s7 + $0x2dc] ss:$52 sps:$4 sm:$0xff]   ;;  %v18493_v30 = vld [vmem:[%s21840_s7 + $0x1664] ss:$52 sps:$4 sm:$0xff]   ;;  %v18499_v34 = vld [vmem:[%s21840_s7 + $0x16cc] ss:$52 sps:$4 sm:$0xff]  }
  0xa4   : > { %9143 = vmatprep.subr.bf16.mxu0 %v18467_v13  ;;  %9553 = vmatprep.subr.bf16.mxu1 %v18469_v14  ;;  %v18497_v33 = vld [vmem:[%s21840_s7 + $0x344] ss:$52 sps:$4 sm:$0xff]   ;;  %v18501_v35 = vld [vmem:[%s21840_s7 + $0x340] ss:$52 sps:$4 sm:$0xff]   ;;  %v18502_v36 = vld [vmem:[%s21840_s7 + $0x16c8] ss:$52 sps:$4 sm:$0xff]  }
  0xa5   : > { %v21614_v37 = vmov 1983009808   ;;  %v18503_v40 = vld [vmem:[%s21840_s7 + $0x3ac] ss:$52 sps:$4 sm:$0xff]   ;;  %v18505_v41 = vld [vmem:[%s21840_s7 + $0x1734] ss:$52 sps:$4 sm:$0xff]  }
  0xa6   : > { %v339_v38 = vunpack.c.l.s4 %v21614_v37  ;;  %v18507_v42 = vld [vmem:[%s21840_s7 + $0x3a8] ss:$52 sps:$4 sm:$0xff]   ;;  %v21900_v44 = vshrl.u32 %v341_v39, 7  ;;  %v18508_v45 = vld [vmem:[%s21840_s7 + $0x1730] ss:$52 sps:$4 sm:$0xff]   ;;  %v329_v53 = vld [vmem:[%s24306_s0] sm:$0xff] }
  0xa7   : > { %9144 = vmatpush1.bf16.msra.mxu0 %v18471_v15  ;;  %9554 = vmatpush1.bf16.msra.mxu1 %v18472_v16  ;;  %v18509_v46 = vld [vmem:[%s21840_s7 + $0x414] ss:$52 sps:$4 sm:$0xff]   ;;  %v18511_v47 = vld [vmem:[%s21840_s7 + $0x179c] ss:$52 sps:$4 sm:$0xff]   ;;  %v18514_v49 = vld [vmem:[%s21840_s7 + $0x1798] ss:$52 sps:$4 sm:$0xff]   ;;  %v337_v10 = vcombine.high %v329_v53, %v329_v53 }
  0xa8   : > { %9145 = vmatprep.subr.bf16.mxu0 %v18473_v17  ;;  %9555 = vmatprep.subr.bf16.mxu1 %v18475_v18  ;;  %v340_v43 = vunpack.c.0.s8 %v339_v38  ;;  %v18513_v48 = vld [vmem:[%s21840_s7 + $0x410] ss:$52 sps:$4 sm:$0xff]   ;;  %v18519_v54 = vld [vmem:[%s21840_s7 + $0x478] ss:$52 sps:$4 sm:$0xff]   ;;  %v18520_v56 = vld [vmem:[%s21840_s7 + $0x1800] ss:$52 sps:$4 sm:$0xff]  }
  0xa9   : > { %v18515_v51 = vld [vmem:[%s21840_s7 + $0x47c] ss:$52 sps:$4 sm:$0xff]   ;;  %v18517_v52 = vld [vmem:[%s21840_s7 + $0x1804] ss:$52 sps:$4 sm:$0xff]   ;;  %v18523_v59 = vld [vmem:[%s21840_s7 + $0x186c] ss:$52 sps:$4 sm:$0xff]  }
  0xaa   : > { %v21908_v50 = vsub.s32 %v340_v43, %v21900_v44  ;;  %v21921_v57 = vld [vmem:[%s24306_s0 + $0x8] sm:$0xff]  ;;  %v18521_v58 = vld [vmem:[%s21840_s7 + $0x4e4] ss:$52 sps:$4 sm:$0xff]   ;;  %v18529_v3 = vld [vmem:[%s21840_s7 + $0x18d4] ss:$52 sps:$4 sm:$0xff]   ;;  %vm9133_vm0 = vcmask 523264  }
  0xab   : > { %9146 = vmatpush1.bf16.msra.mxu0 %v18477_v19  ;;  %9556 = vmatpush1.bf16.msra.mxu1 %v18478_v20  ;;  %v354_v61 = vcombine.high %v21921_v57, %v21921_v57  ;;  %v18525_v0 = vld [vmem:[%s21840_s7 + $0x4e0] ss:$52 sps:$4 sm:$0xff]   ;;  %v18526_v1 = vld [vmem:[%s21840_s7 + $0x1868] ss:$52 sps:$4 sm:$0xff]   ;;  %v18532_v7 = vld [vmem:[%s21840_s7 + $0x18d0] ss:$52 sps:$4 sm:$0xff]  }
  0xac   : > { %9147 = vmatprep.subr.bf16.mxu0 %v18479_v21  ;;  %9557 = vmatprep.subr.bf16.mxu1 %v18481_v22  ;;  %v344_v55 = vrot.slane %v329_v53, %v21908_v50  ;;  %v18527_v2 = vld [vmem:[%s21840_s7 + $0x54c] ss:$52 sps:$4 sm:$0xff]   ;;  %v18531_v6 = vld [vmem:[%s21840_s7 + $0x548] ss:$52 sps:$4 sm:$0xff]   ;;  %v18537_v11 = vld [vmem:[%s21840_s7 + $0x5b0] ss:$52 sps:$4 sm:$0xff]   ;;  %v21947_v15 = vrot.slane %v337_v10, %v21908_v50 }
  0xad   : > { %v368_v63 = vrot.slane %v354_v61, %v21908_v50  ;;  %v18533_v8 = vld [vmem:[%s21840_s7 + $0x5b4] ss:$52 sps:$4 sm:$0xff]   ;;  %v18535_v9 = vld [vmem:[%s21840_s7 + $0x193c] ss:$52 sps:$4 sm:$0xff]   ;;  %v18538_v12 = vld [vmem:[%s21840_s7 + $0x1938] ss:$52 sps:$4 sm:$0xff]  }
  0xae   : > { %v352_v60 = vcombine.high %v344_v55, %v344_v55  ;;  %v18539_v13 = vld [vmem:[%s21840_s7 + $0x61c] ss:$52 sps:$4 sm:$0xff]   ;;  %v18541_v14 = vld [vmem:[%s21840_s7 + $0x19a4] ss:$52 sps:$4 sm:$0xff]   ;;  %v18544_v17 = vld [vmem:[%s21840_s7 + $0x19a0] ss:$52 sps:$4 sm:$0xff]   ;;  %v353_v20 = vcombine.high %v21947_v15, %v21947_v15  ;;  %v21955_v21 = vpack.c.bf16 %v344_v55, %v344_v55 }
  0xaf   : > { %9148 = vmatpush1.bf16.msra.mxu0 %v18483_v23  ;;  %9558 = vmatpush1.bf16.msra.mxu1 %v18484_v24  ;;  %v370_v4 = vcombine.high %v368_v63, %v368_v63  ;;  %v18543_v16 = vld [vmem:[%s21840_s7 + $0x618] ss:$52 sps:$4 sm:$0xff]   ;;  %v21957_v22 = vpack.c.bf16 %v368_v63, %v368_v63  ;;  %v18545_v23 = vld [vmem:[%s21840_s7 + $0x680] ss:$52 sps:$4 sm:$0xff]   ;;  %v18549_v24 = vld [vmem:[%s21840_s7 + $0x1a08] ss:$52 sps:$4 sm:$0xff]  }
  0xb0   : > { %9149 = vmatprep.subr.bf16.mxu0 %v18485_v25  ;;  %9559 = vmatprep.subr.bf16.mxu1 %v18487_v26  ;;  %v21927_v62 = vpack.c.bf16 %v352_v60, %v352_v60  ;;  %v18547_v18 = vld [vmem:[%s21840_s7 + $0x684] ss:$52 sps:$4 sm:$0xff]   ;;  %v18551_v19 = vld [vmem:[%s21840_s7 + $0x1a0c] ss:$52 sps:$4 sm:$0xff]   ;;  %v18557_v26 = vld [vmem:[%s21840_s7 + $0x1a74] ss:$52 sps:$4 sm:$0xff]  }
  0xb1   : > { %v21935_v5 = vpack.c.bf16 %v370_v4, %v370_v4  ;;  %v18554_v25 = vld [vmem:[%s21840_s7 + $0x6ec] ss:$52 sps:$4 sm:$0xff]   ;;  %v18572_v38 = vld [vmem:[%s21840_s7 + $0x824] ss:$52 sps:$4 sm:$0xff]   ;;  %v18581_v43 = vld [vmem:[%s21840_s7 + $0x1c14] ss:$52 sps:$4 sm:$0xff]  }
  0xb2   : > { %9169 = vmatprep.mubr.bf16.mxu0 %v21927_v62  ;;  %v18567_v37 = vld [vmem:[%s21840_s7 + $0x1b40] ss:$52 sps:$4 sm:$0xff]   ;;  %v18590_v53 = vld [vmem:[%s21840_s7 + $0x95c] ss:$52 sps:$4 sm:$0xff]   ;;  %v18593_v55 = vld [vmem:[%s21840_s7 + $0x1ce4] ss:$52 sps:$4 sm:$0xff]  }
  0xb3   : > { %9150 = vmatpush1.bf16.msra.mxu0 %v18489_v27  ;;  %9560 = vmatpush1.bf16.msra.mxu1 %v18490_v28  ;;  %v21963_v27 = vpack.c.bf16 %v353_v20, %v353_v20  ;;  %v18552_v28 = vld [vmem:[%s21840_s7 + $0x6e8] ss:$52 sps:$4 sm:$0xff]   ;;  %v18575_v39 = vld [vmem:[%s21840_s7 + $0x1bac] ss:$52 sps:$4 sm:$0xff]   ;;  %v18596_v60 = vld [vmem:[%s21840_s7 + $0x9c4] ss:$52 sps:$4 sm:$0xff]  }
  0xb4   : > { %9151 = vmatprep.subr.bf16.mxu0 %v18491_v29  ;;  %9561 = vmatprep.subr.bf16.mxu1 %v18493_v30  ;;  %v18555_v29 = vld [vmem:[%s21840_s7 + $0x1a70] ss:$52 sps:$4 sm:$0xff]   ;;  %v18560_v30 = vld [vmem:[%s21840_s7 + $0x754] ss:$52 sps:$4 sm:$0xff]   ;;  %v18599_v63 = vld [vmem:[%s21840_s7 + $0x1d4c] ss:$52 sps:$4 sm:$0xff]  }
  0xb5   : > { %9579 = vmatprep.mubr.bf16.mxu1 %v21935_v5  ;;  %v18600_v4 = vld [vmem:[%s21840_s7 + $0xa28] ss:$52 sps:$4 sm:$0xff]   ;;  %v18609_v10 = vld [vmem:[%s21840_s7 + $0x1e18] ss:$52 sps:$4 sm:$0xff]   ;;  %p18010_p0 = scmp.ne.s32.totalorder %s21729_s11, 3 }
  0xb6   : > { %v18626_v20 = vld [vmem:[%s21840_s7 + $0xbcc] ss:$52 sps:$4 sm:$0xff]  }
  0xb7   : > { %9152 = vmatpush1.bf16.msra.mxu0 %v18495_v31  ;;  %9562 = vmatpush1.bf16.msra.mxu1 %v18496_v32  ;;  %v18563_v31 = vld [vmem:[%s21840_s7 + $0x1adc] ss:$52 sps:$4 sm:$0xff]  }
  0xb8   : > { %9153 = vmatprep.subr.bf16.mxu0 %v18497_v33  ;;  %9563 = vmatprep.subr.bf16.mxu1 %v18499_v34  ;;  %v18558_v32 = vld [vmem:[%s21840_s7 + $0x750] ss:$52 sps:$4 sm:$0xff]   ;;  %v18561_v33 = vld [vmem:[%s21840_s7 + $0x1ad8] ss:$52 sps:$4 sm:$0xff]  }
  0xb9   : > { %v18566_v34 = vld [vmem:[%s21840_s7 + $0x7bc] ss:$52 sps:$4 sm:$0xff]  }
  0xbb   : > { %9154 = vmatpush1.bf16.msra.mxu0 %v18501_v35  ;;  %9564 = vmatpush1.bf16.msra.mxu1 %v18502_v36  ;;  %v18569_v35 = vld [vmem:[%s21840_s7 + $0x1b44] ss:$52 sps:$4 sm:$0xff]  }
  0xbc   : > { %9155 = vmatprep.subr.bf16.mxu0 %v18503_v40  ;;  %9565 = vmatprep.subr.bf16.mxu1 %v18505_v41  ;;  %v18564_v36 = vld [vmem:[%s21840_s7 + $0x7b8] ss:$52 sps:$4 sm:$0xff]   ;;  %v18570_v40 = vld [vmem:[%s21840_s7 + $0x820] ss:$52 sps:$4 sm:$0xff]   ;;  %v18573_v41 = vld [vmem:[%s21840_s7 + $0x1ba8] ss:$52 sps:$4 sm:$0xff]  }
  0xbf   : > { %9156 = vmatpush1.bf16.msra.mxu0 %v18507_v42  ;;  %9566 = vmatpush1.bf16.msra.mxu1 %v18508_v45  ;;  %v18578_v42 = vld [vmem:[%s21840_s7 + $0x88c] ss:$52 sps:$4 sm:$0xff]   ;;  %v18576_v45 = vld [vmem:[%s21840_s7 + $0x888] ss:$52 sps:$4 sm:$0xff]  }
  0xc0   : > { %9157 = vmatprep.subr.bf16.mxu0 %v18509_v46  ;;  %9567 = vmatprep.subr.bf16.mxu1 %v18511_v47  ;;  %v18579_v46 = vld [vmem:[%s21840_s7 + $0x1c10] ss:$52 sps:$4 sm:$0xff]   ;;  %v18584_v47 = vld [vmem:[%s21840_s7 + $0x8f4] ss:$52 sps:$4 sm:$0xff]  }
  0xc3   : > { %9158 = vmatpush1.bf16.msra.mxu0 %v18513_v48  ;;  %9568 = vmatpush1.bf16.msra.mxu1 %v18514_v49  ;;  %v18587_v48 = vld [vmem:[%s21840_s7 + $0x1c7c] ss:$52 sps:$4 sm:$0xff]  }
  0xc4   : > { %9159 = vmatprep.subr.bf16.mxu0 %v18515_v51  ;;  %9569 = vmatprep.subr.bf16.mxu1 %v18517_v52  ;;  %v18582_v49 = vld [vmem:[%s21840_s7 + $0x8f0] ss:$52 sps:$4 sm:$0xff]   ;;  %v18585_v52 = vld [vmem:[%s21840_s7 + $0x1c78] ss:$52 sps:$4 sm:$0xff]  }
  0xc5   : > { %v21992_v51 = vld [vmem:[%s24306_s0 + $0x10] sm:$0xff] }
  0xc7   : > { %9160 = vmatpush1.bf16.msra.mxu0 %v18519_v54  ;;  %9570 = vmatpush1.bf16.msra.mxu1 %v18520_v56  ;;  %v21998_v54 = vrot.slane %v21992_v51, %v21908_v50 }
  0xc8   : > { %9161 = vmatprep.subr.bf16.mxu0 %v18521_v58  ;;  %9571 = vmatprep.subr.bf16.mxu1 %v18523_v59  ;;  %v18588_v58 = vld [vmem:[%s21840_s7 + $0x958] ss:$52 sps:$4 sm:$0xff]   ;;  %v18591_v59 = vld [vmem:[%s21840_s7 + $0x1ce0] ss:$52 sps:$4 sm:$0xff]  }
  0xc9   : > { %v386_v56 = vcombine.high %v21998_v54, %v21998_v54 }
  0xcb   : > { %9162 = vmatpush1.bf16.msra.mxu0 %v18525_v0  ;;  %9572 = vmatpush1.bf16.msra.mxu1 %v18526_v1  ;;  %v22006_v61 = vpack.c.bf16 %v386_v56, %v386_v56  ;;  %v18594_v0 = vld [vmem:[%s21840_s7 + $0x9c0] ss:$52 sps:$4 sm:$0xff]   ;;  %v18597_v1 = vld [vmem:[%s21840_s7 + $0x1d48] ss:$52 sps:$4 sm:$0xff]  }
  0xcc   : > { %9163 = vmatprep.subr.bf16.mxu0 %v18527_v2  ;;  %9573 = vmatprep.subr.bf16.mxu1 %v18529_v3  ;;  %v18602_v2 = vld [vmem:[%s21840_s7 + $0xa2c] ss:$52 sps:$4 sm:$0xff]   ;;  %v18605_v3 = vld [vmem:[%s21840_s7 + $0x1db4] ss:$52 sps:$4 sm:$0xff]   ;;  %v18663_v56 = vld [vmem:[%s21840_s7 + $0xe3c] ss:$52 sps:$4 sm:$0xff]  }
  0xcf   : > { %9164 = vmatpush1.bf16.msra.mxu0 %v18531_v6  ;;  %9574 = vmatpush1.bf16.msra.mxu1 %v18532_v7  ;;  %v18603_v6 = vld [vmem:[%s21840_s7 + $0x1db0] ss:$52 sps:$4 sm:$0xff]   ;;  %v18608_v7 = vld [vmem:[%s21840_s7 + $0xa94] ss:$52 sps:$4 sm:$0xff]  }
  0xd0   : > { %9165 = vmatprep.subr.bf16.mxu0 %v18533_v8  ;;  %9575 = vmatprep.subr.bf16.mxu1 %v18535_v9  ;;  %v18611_v8 = vld [vmem:[%s21840_s7 + $0x1e1c] ss:$52 sps:$4 sm:$0xff]  }
  0xd1   : > { %v18606_v9 = vld [vmem:[%s21840_s7 + $0xa90] ss:$52 sps:$4 sm:$0xff]  }
  0xd3   : > { %9166 = vmatpush1.bf16.msra.mxu0 %v18537_v11  ;;  %9576 = vmatpush1.bf16.msra.mxu1 %v18538_v12  ;;  %v18614_v11 = vld [vmem:[%s21840_s7 + $0xafc] ss:$52 sps:$4 sm:$0xff]   ;;  %v18617_v12 = vld [vmem:[%s21840_s7 + $0x1e84] ss:$52 sps:$4 sm:$0xff]  }
  0xd4   : > { %9167 = vmatprep.subr.bf16.mxu0 %v18539_v13  ;;  %9577 = vmatprep.subr.bf16.mxu1 %v18541_v14  ;;  %v18612_v13 = vld [vmem:[%s21840_s7 + $0xaf8] ss:$52 sps:$4 sm:$0xff]   ;;  %v18615_v14 = vld [vmem:[%s21840_s7 + $0x1e80] ss:$52 sps:$4 sm:$0xff]  }
  0xd7   : > { %9168 = vmatpush1.bf16.msra.mxu0 %v18543_v16  ;;  %9578 = vmatpush1.bf16.msra.mxu1 %v18544_v17  ;;  %v18620_v16 = vld [vmem:[%s21840_s7 + $0xb64] ss:$52 sps:$4 sm:$0xff]   ;;  %v18623_v17 = vld [vmem:[%s21840_s7 + $0x1eec] ss:$52 sps:$4 sm:$0xff]  }
  0xd8   : > { %9178 = vmatprep.subr.bf16.mxu0 %v18547_v18  ;;  %9588 = vmatprep.subr.bf16.mxu1 %v18551_v19  ;;  %v18618_v18 = vld [vmem:[%s21840_s7 + $0xb60] ss:$52 sps:$4 sm:$0xff]   ;;  %v18621_v19 = vld [vmem:[%s21840_s7 + $0x1ee8] ss:$52 sps:$4 sm:$0xff]  }
  0xda   : > { %9170 = vmatmul.mubr.bf16.vlgmr.msra.gmra.mrb[0].mxu0 %v21955_v21  ;;  %9580 = vmatmul.mubr.bf16.vlgmr.msra.gmra.mrb[0].mxu1 %v21957_v22 }
  0xdb   : > { %9179 = vmatpush1.bf16.msra.mxu0 %v18545_v23  ;;  %9589 = vmatpush1.bf16.msra.mxu1 %v18549_v24  ;;  %v18629_v23 = vld [vmem:[%s21840_s7 + $0x1f54] ss:$52 sps:$4 sm:$0xff]  }
  0xdc   : > { %9180 = vmatprep.subr.bf16.mxu0 %v18554_v25  ;;  %9590 = vmatprep.subr.bf16.mxu1 %v18557_v26  ;;  %v18624_v24 = vld [vmem:[%s21840_s7 + $0xbc8] ss:$52 sps:$4 sm:$0xff]   ;;  %v18627_v25 = vld [vmem:[%s21840_s7 + $0x1f50] ss:$52 sps:$4 sm:$0xff]  }
  0xdd   : > { %9210 = vmatprep.mubr.bf16.mxu0 %v21963_v27  ;;  %9620 = vmatprep.mubr.bf16.mxu1 %v22006_v61  ;;  %v18632_v26 = vld [vmem:[%s21840_s7 + $0xc34] ss:$52 sps:$4 sm:$0xff]  }
  0xdf   : > { %9181 = vmatpush1.bf16.msra.mxu0 %v18552_v28  ;;  %9591 = vmatpush1.bf16.msra.mxu1 %v18555_v29  ;;  %v18635_v28 = vld [vmem:[%s21840_s7 + $0x1fbc] ss:$52 sps:$4 sm:$0xff]   ;;  %v371_v29 = vcombine.high %v21992_v51, %v21992_v51 }
  0xe0   : > { %9182 = vmatprep.subr.bf16.mxu0 %v18560_v30  ;;  %9592 = vmatprep.subr.bf16.mxu1 %v18563_v31  ;;  %v18630_v30 = vld [vmem:[%s21840_s7 + $0xc30] ss:$52 sps:$4 sm:$0xff]   ;;  %v18633_v31 = vld [vmem:[%s21840_s7 + $0x1fb8] ss:$52 sps:$4 sm:$0xff]  }
  0xe1   : > { %v18652_v51 = vld [vmem:[%s21840_s7 + $0x20f0] ss:$52 sps:$4 sm:$0xff]  }
  0xe3   : > { %9183 = vmatpush1.bf16.msra.mxu0 %v18558_v32  ;;  %9593 = vmatpush1.bf16.msra.mxu1 %v18561_v33  ;;  %v18638_v32 = vld [vmem:[%s21840_s7 + $0xc9c] ss:$52 sps:$4 sm:$0xff]   ;;  %v18641_v33 = vld [vmem:[%s21840_s7 + $0x2024] ss:$52 sps:$4 sm:$0xff]  }
  0xe4   : > { %9184 = vmatprep.subr.bf16.mxu0 %v18566_v34  ;;  %9594 = vmatprep.subr.bf16.mxu1 %v18569_v35  ;;  %v22042_v34 = vrot.slane %v21921_v57, %v21908_v50  ;;  %v22045_v35 = vrot.slane %v371_v29, %v21908_v50  ;;  %v18708_v29 = vld [vmem:[%s21840_s7 + $0x249c] ss:$52 sps:$4 sm:$0xff]  }
  0xe6   : > { %v387_v57 = vcombine.high %v22045_v35, %v22045_v35 }
  0xe7   : > { %9185 = vmatpush1.bf16.msra.mxu0 %v18564_v36  ;;  %9595 = vmatpush1.bf16.msra.mxu1 %v18567_v37  ;;  %v18636_v36 = vld [vmem:[%s21840_s7 + $0xc98] ss:$52 sps:$4 sm:$0xff]   ;;  %v18639_v37 = vld [vmem:[%s21840_s7 + $0x2020] ss:$52 sps:$4 sm:$0xff]  }
  0xe8   : > { %9186 = vmatprep.subr.bf16.mxu0 %v18572_v38  ;;  %9596 = vmatprep.subr.bf16.mxu1 %v18575_v39  ;;  %v18645_v38 = vld [vmem:[%s21840_s7 + $0xd04] ss:$52 sps:$4 sm:$0xff]   ;;  %v18648_v39 = vld [vmem:[%s21840_s7 + $0x208c] ss:$52 sps:$4 sm:$0xff]  }
  0xeb   : > { %9187 = vmatpush1.bf16.msra.mxu0 %v18570_v40  ;;  %9597 = vmatpush1.bf16.msra.mxu1 %v18573_v41  ;;  %v369_v40 = vcombine.high %v22042_v34, %v22042_v34  ;;  %v18643_v41 = vld [vmem:[%s21840_s7 + $0xd00] ss:$52 sps:$4 sm:$0xff]  }
  0xec   : > { %9188 = vmatprep.subr.bf16.mxu0 %v18578_v42  ;;  %9598 = vmatprep.subr.bf16.mxu1 %v18581_v43  ;;  %v22058_v42 = vpack.c.bf16 %v21947_v15, %v21947_v15  ;;  %v22062_v43 = vpack.c.bf16 %v21998_v54, %v21998_v54  ;;  %v18649_v15 = vld [vmem:[%s21840_s7 + $0xd68] ss:$52 sps:$4 sm:$0xff]   ;;  %v18655_v54 = vld [vmem:[%s21840_s7 + $0xdd0] ss:$52 sps:$4 sm:$0xff]  }
  0xef   : > { %9189 = vmatpush1.bf16.msra.mxu0 %v18576_v45  ;;  %9599 = vmatpush1.bf16.msra.mxu1 %v18579_v46  ;;  %v18646_v45 = vld [vmem:[%s21840_s7 + $0x2088] ss:$52 sps:$4 sm:$0xff]   ;;  %v18651_v46 = vld [vmem:[%s21840_s7 + $0xd6c] ss:$52 sps:$4 sm:$0xff]  }
  0xf0   : > { %9190 = vmatprep.subr.bf16.mxu0 %v18584_v47  ;;  %9600 = vmatprep.subr.bf16.mxu1 %v18587_v48  ;;  %v18654_v47 = vld [vmem:[%s21840_s7 + $0x20f4] ss:$52 sps:$4 sm:$0xff]   ;;  %v22067_v48 = vpack.c.bf16 %v369_v40, %v369_v40 }
  0xf1   : > { %v18715_v40 = vld [vmem:[%s21840_s7 + $0x11e0] ss:$52 sps:$4 sm:$0xff]  }
  0xf3   : > { %9191 = vmatpush1.bf16.msra.mxu0 %v18582_v49  ;;  %9601 = vmatpush1.bf16.msra.mxu1 %v18585_v52  ;;  %v22069_v49 = vpack.c.bf16 %v387_v57, %v387_v57  ;;  %v18657_v52 = vld [vmem:[%s21840_s7 + $0xdd4] ss:$52 sps:$4 sm:$0xff]  }
  0xf4   : > { %9192 = vmatprep.subr.bf16.mxu0 %v18590_v53  ;;  %9602 = vmatprep.subr.bf16.mxu1 %v18593_v55  ;;  %v18660_v53 = vld [vmem:[%s21840_s7 + $0x215c] ss:$52 sps:$4 sm:$0xff]   ;;  %v18658_v55 = vld [vmem:[%s21840_s7 + $0x2158] ss:$52 sps:$4 sm:$0xff]  }
  0xf5   : > { %v18718_v57 = vld [vmem:[%s21840_s7 + $0x2568] ss:$52 sps:$4 sm:$0xff]  }
  0xf7   : > { %9193 = vmatpush1.bf16.msra.mxu0 %v18588_v58  ;;  %9603 = vmatpush1.bf16.msra.mxu1 %v18591_v59  ;;  %v18666_v58 = vld [vmem:[%s21840_s7 + $0x21c4] ss:$52 sps:$4 sm:$0xff]  }
  0xf8   : > { %9194 = vmatprep.subr.bf16.mxu0 %v18596_v60  ;;  %9604 = vmatprep.subr.bf16.mxu1 %v18599_v63  ;;  %v18661_v59 = vld [vmem:[%s21840_s7 + $0xe38] ss:$52 sps:$4 sm:$0xff]   ;;  %v18664_v60 = vld [vmem:[%s21840_s7 + $0x21c0] ss:$52 sps:$4 sm:$0xff]  }
  0xf9   : > { %v18669_v63 = vld [vmem:[%s21840_s7 + $0xea4] ss:$52 sps:$4 sm:$0xff]  }
  0xfb   : > { %9195 = vmatpush1.bf16.msra.mxu0 %v18594_v0  ;;  %9605 = vmatpush1.bf16.msra.mxu1 %v18597_v1  ;;  %v18672_v0 = vld [vmem:[%s21840_s7 + $0x222c] ss:$52 sps:$4 sm:$0xff]  }
  0xfc   : > { %9196 = vmatprep.subr.bf16.mxu0 %v18602_v2  ;;  %9606 = vmatprep.subr.bf16.mxu1 %v18605_v3  ;;  %v18667_v1 = vld [vmem:[%s21840_s7 + $0xea0] ss:$52 sps:$4 sm:$0xff]   ;;  %v18670_v2 = vld [vmem:[%s21840_s7 + $0x2228] ss:$52 sps:$4 sm:$0xff]  }
  0xfd   : > { %v18675_v3 = vld [vmem:[%s21840_s7 + $0xf0c] ss:$52 sps:$4 sm:$0xff]  }
  0xff   : > { %9197 = vmatpush1.bf16.msra.mxu0 %v18600_v4  ;;  %9607 = vmatpush1.bf16.msra.mxu1 %v18603_v6  ;;  %v18678_v4 = vld [vmem:[%s21840_s7 + $0x2294] ss:$52 sps:$4 sm:$0xff]  }
 0x100   : > { %9198 = vmatprep.subr.bf16.mxu0 %v18608_v7  ;;  %9608 = vmatprep.subr.bf16.mxu1 %v18611_v8  ;;  %v18673_v6 = vld [vmem:[%s21840_s7 + $0xf08] ss:$52 sps:$4 sm:$0xff]   ;;  %v18676_v7 = vld [vmem:[%s21840_s7 + $0x2290] ss:$52 sps:$4 sm:$0xff]  }
 0x101   : > { %v18681_v8 = vld [vmem:[%s21840_s7 + $0xf74] ss:$52 sps:$4 sm:$0xff]  }
 0x103   : > { %9199 = vmatpush1.bf16.msra.mxu0 %v18606_v9  ;;  %9609 = vmatpush1.bf16.msra.mxu1 %v18609_v10  ;;  %v18684_v9 = vld [vmem:[%s21840_s7 + $0x22fc] ss:$52 sps:$4 sm:$0xff]  }
 0x104   : > { %9200 = vmatprep.subr.bf16.mxu0 %v18614_v11  ;;  %9610 = vmatprep.subr.bf16.mxu1 %v18617_v12  ;;  %v18679_v10 = vld [vmem:[%s21840_s7 + $0xf70] ss:$52 sps:$4 sm:$0xff]   ;;  %v18682_v11 = vld [vmem:[%s21840_s7 + $0x22f8] ss:$52 sps:$4 sm:$0xff]  }
 0x105   : > { %v18687_v12 = vld [vmem:[%s21840_s7 + $0xfdc] ss:$52 sps:$4 sm:$0xff]  }
 0x107   : > { %9201 = vmatpush1.bf16.msra.mxu0 %v18612_v13  ;;  %9611 = vmatpush1.bf16.msra.mxu1 %v18615_v14  ;;  %v18690_v13 = vld [vmem:[%s21840_s7 + $0x2364] ss:$52 sps:$4 sm:$0xff]  }
 0x108   : > { %9202 = vmatprep.subr.bf16.mxu0 %v18620_v16  ;;  %9612 = vmatprep.subr.bf16.mxu1 %v18623_v17  ;;  %v18685_v14 = vld [vmem:[%s21840_s7 + $0xfd8] ss:$52 sps:$4 sm:$0xff]   ;;  %v18688_v16 = vld [vmem:[%s21840_s7 + $0x2360] ss:$52 sps:$4 sm:$0xff]  }
 0x109   : > { %v18693_v17 = vld [vmem:[%s21840_s7 + $0x1044] ss:$52 sps:$4 sm:$0xff]  }
 0x10b   : > { %9203 = vmatpush1.bf16.msra.mxu0 %v18618_v18  ;;  %9613 = vmatpush1.bf16.msra.mxu1 %v18621_v19  ;;  %v18696_v18 = vld [vmem:[%s21840_s7 + $0x23cc] ss:$52 sps:$4 sm:$0xff]  }
 0x10c   : > { %9204 = vmatprep.subr.bf16.mxu0 %v18626_v20  ;;  %9614 = vmatprep.subr.bf16.mxu1 %v18629_v23  ;;  %v18691_v19 = vld [vmem:[%s21840_s7 + $0x1040] ss:$52 sps:$4 sm:$0xff]   ;;  %v18694_v20 = vld [vmem:[%s21840_s7 + $0x23c8] ss:$52 sps:$4 sm:$0xff]  }
 0x10d   : > { %v18699_v23 = vld [vmem:[%s21840_s7 + $0x10ac] ss:$52 sps:$4 sm:$0xff]  }
 0x10f   : > { %9205 = vmatpush1.bf16.msra.mxu0 %v18624_v24  ;;  %9615 = vmatpush1.bf16.msra.mxu1 %v18627_v25  ;;  %v18702_v24 = vld [vmem:[%s21840_s7 + $0x2434] ss:$52 sps:$4 sm:$0xff]  }
 0x110   : > { %9206 = vmatprep.subr.bf16.mxu0 %v18632_v26  ;;  %9616 = vmatprep.subr.bf16.mxu1 %v18635_v28  ;;  %v18697_v25 = vld [vmem:[%s21840_s7 + $0x10a8] ss:$52 sps:$4 sm:$0xff]   ;;  %v18700_v26 = vld [vmem:[%s21840_s7 + $0x2430] ss:$52 sps:$4 sm:$0xff]  }
 0x111   : > { %v18705_v28 = vld [vmem:[%s21840_s7 + $0x1114] ss:$52 sps:$4 sm:$0xff]  }
 0x113   : > { %9207 = vmatpush1.bf16.msra.mxu0 %v18630_v30  ;;  %9617 = vmatpush1.bf16.msra.mxu1 %v18633_v31  ;;  %v18703_v30 = vld [vmem:[%s21840_s7 + $0x1110] ss:$52 sps:$4 sm:$0xff]   ;;  %v18706_v31 = vld [vmem:[%s21840_s7 + $0x2498] ss:$52 sps:$4 sm:$0xff]  }
 0x114   : > { %9208 = vmatprep.subr.bf16.mxu0 %v18638_v32  ;;  %9618 = vmatprep.subr.bf16.mxu1 %v18641_v33  ;;  %v18711_v32 = vld [vmem:[%s21840_s7 + $0x117c] ss:$52 sps:$4 sm:$0xff]   ;;  %v18714_v33 = vld [vmem:[%s21840_s7 + $0x2504] ss:$52 sps:$4 sm:$0xff]  }
 0x117   : > { %9209 = vmatpush1.bf16.msra.mxu0 %v18636_v36  ;;  %9619 = vmatpush1.bf16.msra.mxu1 %v18639_v37  ;;  %v18709_v36 = vld [vmem:[%s21840_s7 + $0x1178] ss:$52 sps:$4 sm:$0xff]   ;;  %v18712_v37 = vld [vmem:[%s21840_s7 + $0x2500] ss:$52 sps:$4 sm:$0xff]  }
 0x118   : > { %9219 = vmatprep.subr.bf16.mxu0 %v18645_v38  ;;  %9629 = vmatprep.subr.bf16.mxu1 %v18648_v39  ;;  %v18717_v38 = vld [vmem:[%s21840_s7 + $0x11e4] ss:$52 sps:$4 sm:$0xff]   ;;  %v18720_v39 = vld [vmem:[%s21840_s7 + $0x256c] ss:$52 sps:$4 sm:$0xff]  }
 0x11a   : > { %9211 = vmatmul.mubr.bf16.vlgmr.msra.gmra.mrb[0].mxu0 %v22058_v42  ;;  %9621 = vmatmul.mubr.bf16.vlgmr.msra.gmra.mrb[0].mxu1 %v22062_v43 }
 0x11b   : > { %9220 = vmatpush1.bf16.msra.mxu0 %v18643_v41  ;;  %9630 = vmatpush1.bf16.msra.mxu1 %v18646_v45  ;;  %v18723_v41 = vld [vmem:[%s21840_s7 + $0x124c] ss:$52 sps:$4 sm:$0xff]   ;;  %v18726_v45 = vld [vmem:[%s21840_s7 + $0x25d4] ss:$52 sps:$4 sm:$0xff]  }
 0x11c   : > { %9221 = vmatprep.subr.bf16.mxu0 %v18651_v46  ;;  %9631 = vmatprep.subr.bf16.mxu1 %v18654_v47  ;;  %v18721_v46 = vld [vmem:[%s21840_s7 + $0x1248] ss:$52 sps:$4 sm:$0xff]   ;;  %v18724_v47 = vld [vmem:[%s21840_s7 + $0x25d0] ss:$52 sps:$4 sm:$0xff]  }
 0x11d   : > { %9251 = vmatprep.mubr.bf16.mxu0 %v22067_v48  ;;  %9661 = vmatprep.mubr.bf16.mxu1 %v22069_v49 }
 0x11f   : > { %9222 = vmatpush1.bf16.msra.mxu0 %v18649_v15  ;;  %9632 = vmatpush1.bf16.msra.mxu1 %v18652_v51  ;;  %v18729_v15 = vld [vmem:[%s21840_s7 + $0x12b4] ss:$52 sps:$4 sm:$0xff]   ;;  %v18732_v51 = vld [vmem:[%s21840_s7 + $0x263c] ss:$52 sps:$4 sm:$0xff]  }
 0x120   : > { %9223 = vmatprep.subr.bf16.mxu0 %v18657_v52  ;;  %9633 = vmatprep.subr.bf16.mxu1 %v18660_v53  ;;  %v18727_v52 = vld [vmem:[%s21840_s7 + $0x12b0] ss:$52 sps:$4 sm:$0xff]   ;;  %v18730_v53 = vld [vmem:[%s21840_s7 + $0x2638] ss:$52 sps:$4 sm:$0xff]  }
 0x123   : > { %9224 = vmatpush1.bf16.msra.mxu0 %v18655_v54  ;;  %9634 = vmatpush1.bf16.msra.mxu1 %v18658_v55  ;;  %v18735_v54 = vld [vmem:[%s21840_s7 + $0x131c] ss:$52 sps:$4 sm:$0xff]   ;;  %v18738_v55 = vld [vmem:[%s21840_s7 + $0x26a4] ss:$52 sps:$4 sm:$0xff]  }
 0x124   : > { %9225 = vmatprep.subr.bf16.mxu0 %v18663_v56  ;;  %9635 = vmatprep.subr.bf16.mxu1 %v18666_v58  ;;  %v18733_v56 = vld [vmem:[%s21840_s7 + $0x1318] ss:$52 sps:$4 sm:$0xff]  }
 0x125   : > { %v22135_v58 = vld.sshfl [vmem:[%s24306_s0 + $0x18] sm:$0x33 pattern:$0x76325410] }
 0x127   : > { %9226 = vmatpush1.bf16.msra.mxu0 %v18661_v59  ;;  %9636 = vmatpush1.bf16.msra.mxu1 %v18664_v60  ;;  %v18736_v59 = vld [vmem:[%s21840_s7 + $0x26a0] ss:$52 sps:$4 sm:$0xff]   ;;  %v18741_v60 = vld [vmem:[%s21840_s7 + $0x1384] ss:$52 sps:$4 sm:$0xff]  }
 0x128   : > { %9227 = vmatprep.subr.bf16.mxu0 %v18669_v63  ;;  %9637 = vmatprep.subr.bf16.mxu1 %v18672_v0  ;;  %v18745_v63 = vld [vmem:[%s21840_s7 + $0x270c] ss:$52 sps:$4 sm:$0xff]   ;;  %v395_v0 = vcombine.high %v22135_v58, %v22135_v58 }
 0x12b   : > { %9228 = vmatpush1.bf16.msra.mxu0 %v18667_v1  ;;  %9638 = vmatpush1.bf16.msra.mxu1 %v18670_v2  ;;  %v18739_v1 = vld [vmem:[%s21840_s7 + $0x1380] ss:$52 sps:$4 sm:$0xff]   ;;  %v22145_v2 = vpack.c.bf16 %v22042_v34, %v22042_v34  ;;  %v18746_v34 = vld [vmem:[%s21840_s7 + $0x13e8] ss:$52 sps:$4 sm:$0xff]  }
 0x12c   : > { %9229 = vmatprep.subr.bf16.mxu0 %v18675_v3  ;;  %9639 = vmatprep.subr.bf16.mxu1 %v18678_v4  ;;  %v22149_v3 = vpack.c.bf16 %v22045_v35, %v22045_v35  ;;  %v18743_v4 = vld [vmem:[%s21840_s7 + $0x2708] ss:$52 sps:$4 sm:$0xff]   ;;  %v18749_v35 = vld [vmem:[%s21840_s7 + $0x2770] ss:$52 sps:$4 sm:$0xff]  }
 0x12f   : > { %9230 = vmatpush1.bf16.msra.mxu0 %v18673_v6  ;;  %9640 = vmatpush1.bf16.msra.mxu1 %v18676_v7  ;;  %v18748_v6 = vld [vmem:[%s21840_s7 + $0x13ec] ss:$52 sps:$4 sm:$0xff]   ;;  %v18751_v7 = vld [vmem:[%s21840_s7 + $0x2774] ss:$52 sps:$4 sm:$0xff]  }
 0x130   : > { %9231 = vmatprep.subr.bf16.mxu0 %v18681_v8  ;;  %9641 = vmatprep.subr.bf16.mxu1 %v18684_v9  ;;  %v22154_v8 = vpack.c.bf16 %v395_v0, %v395_v0  ;;  %v18754_v9 = vld [vmem:[%s21840_s7 + $0x1454] ss:$52 sps:$4 sm:$0xff]   ;;  %v18817_v0 = vld [vmem:[%s21840_s7 + $0x1c] ss:$52 sps:$4 sm:$0xff]  }
 0x133   : > { %9232 = vmatpush1.bf16.msra.mxu0 %v18679_v10  ;;  %9642 = vmatpush1.bf16.msra.mxu1 %v18682_v11  ;;  %v18757_v10 = vld [vmem:[%s21840_s7 + $0x27dc] ss:$52 sps:$4 sm:$0xff]  }
 0x134   : > { %9233 = vmatprep.subr.bf16.mxu0 %v18687_v12  ;;  %9643 = vmatprep.subr.bf16.mxu1 %v18690_v13  ;;  %v18752_v11 = vld [vmem:[%s21840_s7 + $0x1450] ss:$52 sps:$4 sm:$0xff]   ;;  %v18755_v12 = vld [vmem:[%s21840_s7 + $0x27d8] ss:$52 sps:$4 sm:$0xff]  }
 0x135   : > { %v18760_v13 = vld [vmem:[%s21840_s7 + $0x14bc] ss:$52 sps:$4 sm:$0xff]  }
 0x137   : > { %9234 = vmatpush1.bf16.msra.mxu0 %v18685_v14  ;;  %9644 = vmatpush1.bf16.msra.mxu1 %v18688_v16  ;;  %v18763_v14 = vld [vmem:[%s21840_s7 + $0x2844] ss:$52 sps:$4 sm:$0xff]  }
 0x138   : > { %9235 = vmatprep.subr.bf16.mxu0 %v18693_v17  ;;  %9645 = vmatprep.subr.bf16.mxu1 %v18696_v18  ;;  %v18758_v16 = vld [vmem:[%s21840_s7 + $0x14b8] ss:$52 sps:$4 sm:$0xff]   ;;  %v18761_v17 = vld [vmem:[%s21840_s7 + $0x2840] ss:$52 sps:$4 sm:$0xff]  }
 0x139   : > { %v18766_v18 = vld [vmem:[%s21840_s7 + $0x1524] ss:$52 sps:$4 sm:$0xff]  }
 0x13b   : > { %9236 = vmatpush1.bf16.msra.mxu0 %v18691_v19  ;;  %9646 = vmatpush1.bf16.msra.mxu1 %v18694_v20  ;;  %v18769_v19 = vld [vmem:[%s21840_s7 + $0x28ac] ss:$52 sps:$4 sm:$0xff]  }
 0x13c   : > { %9237 = vmatprep.subr.bf16.mxu0 %v18699_v23  ;;  %9647 = vmatprep.subr.bf16.mxu1 %v18702_v24  ;;  %v18764_v20 = vld [vmem:[%s21840_s7 + $0x1520] ss:$52 sps:$4 sm:$0xff]   ;;  %v18767_v23 = vld [vmem:[%s21840_s7 + $0x28a8] ss:$52 sps:$4 sm:$0xff]  }
 0x13d   : > { %v18772_v24 = vld [vmem:[%s21840_s7 + $0x158c] ss:$52 sps:$4 sm:$0xff]  }
 0x13f   : > { %9238 = vmatpush1.bf16.msra.mxu0 %v18697_v25  ;;  %9648 = vmatpush1.bf16.msra.mxu1 %v18700_v26  ;;  %v18775_v25 = vld [vmem:[%s21840_s7 + $0x2914] ss:$52 sps:$4 sm:$0xff]  }
 0x140   : > { %9239 = vmatprep.subr.bf16.mxu0 %v18705_v28  ;;  %9649 = vmatprep.subr.bf16.mxu1 %v18708_v29  ;;  %v18770_v26 = vld [vmem:[%s21840_s7 + $0x1588] ss:$52 sps:$4 sm:$0xff]   ;;  %v18773_v28 = vld [vmem:[%s21840_s7 + $0x2910] ss:$52 sps:$4 sm:$0xff]  }
 0x141   : > { %v18778_v29 = vld [vmem:[%s21840_s7 + $0x15f4] ss:$52 sps:$4 sm:$0xff]  }
 0x143   : > { %9240 = vmatpush1.bf16.msra.mxu0 %v18703_v30  ;;  %9650 = vmatpush1.bf16.msra.mxu1 %v18706_v31  ;;  %v18781_v30 = vld [vmem:[%s21840_s7 + $0x297c] ss:$52 sps:$4 sm:$0xff]  }
 0x144   : > { %9241 = vmatprep.subr.bf16.mxu0 %v18711_v32  ;;  %9651 = vmatprep.subr.bf16.mxu1 %v18714_v33  ;;  %v18776_v31 = vld [vmem:[%s21840_s7 + $0x15f0] ss:$52 sps:$4 sm:$0xff]   ;;  %v18779_v32 = vld [vmem:[%s21840_s7 + $0x2978] ss:$52 sps:$4 sm:$0xff]  }
 0x145   : > { %v18784_v33 = vld [vmem:[%s21840_s7 + $0x165c] ss:$52 sps:$4 sm:$0xff]  }
 0x147   : > { %9242 = vmatpush1.bf16.msra.mxu0 %v18709_v36  ;;  %9652 = vmatpush1.bf16.msra.mxu1 %v18712_v37  ;;  %v18787_v36 = vld [vmem:[%s21840_s7 + $0x29e4] ss:$52 sps:$4 sm:$0xff]  }
 0x148   : > { %9243 = vmatprep.subr.bf16.mxu0 %v18717_v38  ;;  %9653 = vmatprep.subr.bf16.mxu1 %v18720_v39  ;;  %v18782_v37 = vld [vmem:[%s21840_s7 + $0x1658] ss:$52 sps:$4 sm:$0xff]   ;;  %v18785_v38 = vld [vmem:[%s21840_s7 + $0x29e0] ss:$52 sps:$4 sm:$0xff]  }
 0x149   : > { %v18790_v39 = vld [vmem:[%s21840_s7 + $0x16c4] ss:$52 sps:$4 sm:$0xff]  }
 0x14b   : > { %9244 = vmatpush1.bf16.msra.mxu0 %v18715_v40  ;;  %9654 = vmatpush1.bf16.msra.mxu1 %v18718_v57  ;;  %v18793_v40 = vld [vmem:[%s21840_s7 + $0x2a4c] ss:$52 sps:$4 sm:$0xff]  }
 0x14c   : > { %9245 = vmatprep.subr.bf16.mxu0 %v18723_v41  ;;  %9655 = vmatprep.subr.bf16.mxu1 %v18726_v45  ;;  %v18788_v57 = vld [vmem:[%s21840_s7 + $0x16c0] ss:$52 sps:$4 sm:$0xff]   ;;  %v18791_v41 = vld [vmem:[%s21840_s7 + $0x2a48] ss:$52 sps:$4 sm:$0xff]  }
 0x14d   : > { %v18796_v45 = vld [vmem:[%s21840_s7 + $0x172c] ss:$52 sps:$4 sm:$0xff]  }
 0x14f   : > { %9246 = vmatpush1.bf16.msra.mxu0 %v18721_v46  ;;  %9656 = vmatpush1.bf16.msra.mxu1 %v18724_v47  ;;  %v18799_v46 = vld [vmem:[%s21840_s7 + $0x2ab4] ss:$52 sps:$4 sm:$0xff]  }
 0x150   : > { %9247 = vmatprep.subr.bf16.mxu0 %v18729_v15  ;;  %9657 = vmatprep.subr.bf16.mxu1 %v18732_v51  ;;  %v18794_v47 = vld [vmem:[%s21840_s7 + $0x1728] ss:$52 sps:$4 sm:$0xff]   ;;  %v18797_v15 = vld [vmem:[%s21840_s7 + $0x2ab0] ss:$52 sps:$4 sm:$0xff]  }
 0x151   : > { %v18802_v51 = vld [vmem:[%s21840_s7 + $0x1794] ss:$52 sps:$4 sm:$0xff]  }
 0x153   : > { %9248 = vmatpush1.bf16.msra.mxu0 %v18727_v52  ;;  %9658 = vmatpush1.bf16.msra.mxu1 %v18730_v53  ;;  %v18805_v52 = vld [vmem:[%s21840_s7 + $0x2b1c] ss:$52 sps:$4 sm:$0xff]  }
 0x154   : > { %9249 = vmatprep.subr.bf16.mxu0 %v18735_v54  ;;  %9659 = vmatprep.subr.bf16.mxu1 %v18738_v55  ;;  %v18800_v53 = vld [vmem:[%s21840_s7 + $0x1790] ss:$52 sps:$4 sm:$0xff]   ;;  %v18803_v54 = vld [vmem:[%s21840_s7 + $0x2b18] ss:$52 sps:$4 sm:$0xff]  }
 0x155   : > { %v18808_v55 = vld [vmem:[%s21840_s7 + $0x17fc] ss:$52 sps:$4 sm:$0xff]  }
 0x157   : > { %9250 = vmatpush1.bf16.msra.mxu0 %v18733_v56  ;;  %9660 = vmatpush1.bf16.msra.mxu1 %v18736_v59  ;;  %v18811_v56 = vld [vmem:[%s21840_s7 + $0x2b84] ss:$52 sps:$4 sm:$0xff]  }
 0x158   : > { %9260 = vmatprep.subr.bf16.mxu0 %v18741_v60  ;;  %9670 = vmatprep.subr.bf16.mxu1 %v18745_v63  ;;  %v18806_v59 = vld [vmem:[%s21840_s7 + $0x17f8] ss:$52 sps:$4 sm:$0xff]   ;;  %v18809_v60 = vld [vmem:[%s21840_s7 + $0x2b80] ss:$52 sps:$4 sm:$0xff]  }
 0x159   : > { %v18814_v63 = vld [vmem:[%s21840_s7 + $0x1864] ss:$52 sps:$4 sm:$0xff]  }
 0x15a   : > { %9252 = vmatmul.mubr.bf16.vlgmr.msra.gmra.mrb[0].mxu0 %v22145_v2  ;;  %9662 = vmatmul.mubr.bf16.vlgmr.msra.gmra.mrb[0].mxu1 %v22149_v3 }
 0x15b   : > { %9261 = vmatpush1.bf16.msra.mxu0 %v18739_v1  ;;  %9671 = vmatpush1.bf16.msra.mxu1 %v18743_v4  ;;  %v18812_v1 = vld [vmem:[%s21840_s7 + $0x1860] ss:$52 sps:$4 sm:$0xff]   ;;  %v22208_v4 = vpack.c.bf16 %v22135_v58, %v22135_v58 }
 0x15c   : > { %9262 = vmatprep.subr.bf16.mxu0 %v18748_v6  ;;  %9672 = vmatprep.subr.bf16.mxu1 %v18751_v7  ;;  %v18815_v6 = vld [vmem:[%s21840_s7 + $0x18] ss:$52 sps:$4 sm:$0xff]   ;;  %v18821_v58 = vld [vmem:[%s21840_s7 + $0x80] ss:$52 sps:$4 sm:$0xff]  }
 0x15d   : > { %17380 = vmatprep.mubr.msk.bf16.mxu1 %vm9133_vm0, %v22154_v8  ;;  %9292 = vmatprep.mubr.bf16.mxu0 %v21935_v5  ;;  %v18820_v7 = vld [vmem:[%s21840_s7 + $0x18cc] ss:$52 sps:$4 sm:$0xff]  }
 0x15f   : > { %9263 = vmatpush1.bf16.msra.mxu0 %v18746_v34  ;;  %9673 = vmatpush1.bf16.msra.mxu1 %v18749_v35  ;;  %v18823_v34 = vld [vmem:[%s21840_s7 + $0x84] ss:$52 sps:$4 sm:$0xff]   ;;  %v18818_v35 = vld [vmem:[%s21840_s7 + $0x18c8] ss:$52 sps:$4 sm:$0xff]  }
 0x160   : > { %9264 = vmatprep.subr.bf16.mxu0 %v18754_v9  ;;  %9674 = vmatprep.subr.bf16.mxu1 %v18757_v10  ;;  %v18826_v9 = vld [vmem:[%s21840_s7 + $0x1934] ss:$52 sps:$4 sm:$0xff]   ;;  %v18829_v10 = vld [vmem:[%s21840_s7 + $0xec] ss:$52 sps:$4 sm:$0xff]  }
 0x163   : > { %9265 = vmatpush1.bf16.msra.mxu0 %v18752_v11  ;;  %9675 = vmatpush1.bf16.msra.mxu1 %v18755_v12  ;;  %v18824_v11 = vld [vmem:[%s21840_s7 + $0x1930] ss:$52 sps:$4 sm:$0xff]   ;;  %v18827_v12 = vld [vmem:[%s21840_s7 + $0xe8] ss:$52 sps:$4 sm:$0xff]  }
 0x164   : > { %9266 = vmatprep.subr.bf16.mxu0 %v18760_v13  ;;  %9676 = vmatprep.subr.bf16.mxu1 %v18763_v14  ;;  %v18832_v13 = vld [vmem:[%s21840_s7 + $0x199c] ss:$52 sps:$4 sm:$0xff]   ;;  %v18835_v14 = vld [vmem:[%s21840_s7 + $0x154] ss:$52 sps:$4 sm:$0xff]  }
 0x167   : > { %9267 = vmatpush1.bf16.msra.mxu0 %v18758_v16  ;;  %9677 = vmatpush1.bf16.msra.mxu1 %v18761_v17  ;;  %v18830_v16 = vld [vmem:[%s21840_s7 + $0x1998] ss:$52 sps:$4 sm:$0xff]   ;;  %v18833_v17 = vld [vmem:[%s21840_s7 + $0x150] ss:$52 sps:$4 sm:$0xff]  }
 0x168   : > { %9268 = vmatprep.subr.bf16.mxu0 %v18766_v18  ;;  %9678 = vmatprep.subr.bf16.mxu1 %v18769_v19  ;;  %v18838_v18 = vld [vmem:[%s21840_s7 + $0x1a04] ss:$52 sps:$4 sm:$0xff]   ;;  %v18841_v19 = vld [vmem:[%s21840_s7 + $0x1bc] ss:$52 sps:$4 sm:$0xff]  }
 0x16b   : > { %9269 = vmatpush1.bf16.msra.mxu0 %v18764_v20  ;;  %9679 = vmatpush1.bf16.msra.mxu1 %v18767_v23  ;;  %v18836_v20 = vld [vmem:[%s21840_s7 + $0x1a00] ss:$52 sps:$4 sm:$0xff]   ;;  %v18839_v23 = vld [vmem:[%s21840_s7 + $0x1b8] ss:$52 sps:$4 sm:$0xff]  }
 0x16c   : > { %9270 = vmatprep.subr.bf16.mxu0 %v18772_v24  ;;  %9680 = vmatprep.subr.bf16.mxu1 %v18775_v25  ;;  %v18844_v24 = vld [vmem:[%s21840_s7 + $0x1a6c] ss:$52 sps:$4 sm:$0xff]   ;;  %v18847_v25 = vld [vmem:[%s21840_s7 + $0x224] ss:$52 sps:$4 sm:$0xff]  }
 0x16f   : > { %9271 = vmatpush1.bf16.msra.mxu0 %v18770_v26  ;;  %9681 = vmatpush1.bf16.msra.mxu1 %v18773_v28  ;;  %v18842_v26 = vld [vmem:[%s21840_s7 + $0x1a68] ss:$52 sps:$4 sm:$0xff]   ;;  %v18845_v28 = vld [vmem:[%s21840_s7 + $0x220] ss:$52 sps:$4 sm:$0xff]  }
 0x170   : > { %9272 = vmatprep.subr.bf16.mxu0 %v18778_v29  ;;  %9682 = vmatprep.subr.bf16.mxu1 %v18781_v30  ;;  %v18850_v29 = vld [vmem:[%s21840_s7 + $0x1ad4] ss:$52 sps:$4 sm:$0xff]   ;;  %v18853_v30 = vld [vmem:[%s21840_s7 + $0x28c] ss:$52 sps:$4 sm:$0xff]  }
 0x173   : > { %9273 = vmatpush1.bf16.msra.mxu0 %v18776_v31  ;;  %9683 = vmatpush1.bf16.msra.mxu1 %v18779_v32  ;;  %v18848_v31 = vld [vmem:[%s21840_s7 + $0x1ad0] ss:$52 sps:$4 sm:$0xff]   ;;  %v18851_v32 = vld [vmem:[%s21840_s7 + $0x288] ss:$52 sps:$4 sm:$0xff]  }
 0x174   : > { %9274 = vmatprep.subr.bf16.mxu0 %v18784_v33  ;;  %9684 = vmatprep.subr.bf16.mxu1 %v18787_v36  ;;  %v18856_v33 = vld [vmem:[%s21840_s7 + $0x1b3c] ss:$52 sps:$4 sm:$0xff]   ;;  %v18859_v36 = vld [vmem:[%s21840_s7 + $0x2f4] ss:$52 sps:$4 sm:$0xff]  }
 0x177   : > { %9275 = vmatpush1.bf16.msra.mxu0 %v18782_v37  ;;  %9685 = vmatpush1.bf16.msra.mxu1 %v18785_v38  ;;  %v18854_v37 = vld [vmem:[%s21840_s7 + $0x1b38] ss:$52 sps:$4 sm:$0xff]   ;;  %v18857_v38 = vld [vmem:[%s21840_s7 + $0x2f0] ss:$52 sps:$4 sm:$0xff]  }
 0x178   : > { %9276 = vmatprep.subr.bf16.mxu0 %v18790_v39  ;;  %9686 = vmatprep.subr.bf16.mxu1 %v18793_v40  ;;  %v18862_v39 = vld [vmem:[%s21840_s7 + $0x1ba4] ss:$52 sps:$4 sm:$0xff]   ;;  %v18865_v40 = vld [vmem:[%s21840_s7 + $0x35c] ss:$52 sps:$4 sm:$0xff]  }
 0x17b   : > { %9277 = vmatpush1.bf16.msra.mxu0 %v18788_v57  ;;  %9687 = vmatpush1.bf16.msra.mxu1 %v18791_v41  ;;  %v18860_v57 = vld [vmem:[%s21840_s7 + $0x1ba0] ss:$52 sps:$4 sm:$0xff]   ;;  %v18863_v41 = vld [vmem:[%s21840_s7 + $0x358] ss:$52 sps:$4 sm:$0xff]  }
 0x17c   : > { %9278 = vmatprep.subr.bf16.mxu0 %v18796_v45  ;;  %9688 = vmatprep.subr.bf16.mxu1 %v18799_v46  ;;  %v18868_v45 = vld [vmem:[%s21840_s7 + $0x1c0c] ss:$52 sps:$4 sm:$0xff]   ;;  %v18871_v46 = vld [vmem:[%s21840_s7 + $0x3c4] ss:$52 sps:$4 sm:$0xff]  }
 0x17f   : > { %9279 = vmatpush1.bf16.msra.mxu0 %v18794_v47  ;;  %9689 = vmatpush1.bf16.msra.mxu1 %v18797_v15  ;;  %v18866_v47 = vld [vmem:[%s21840_s7 + $0x1c08] ss:$52 sps:$4 sm:$0xff]   ;;  %v18869_v15 = vld [vmem:[%s21840_s7 + $0x3c0] ss:$52 sps:$4 sm:$0xff]  }
 0x180   : > { %9280 = vmatprep.subr.bf16.mxu0 %v18802_v51  ;;  %9690 = vmatprep.subr.bf16.mxu1 %v18805_v52  ;;  %v18874_v51 = vld [vmem:[%s21840_s7 + $0x1c74] ss:$52 sps:$4 sm:$0xff]   ;;  %v18877_v52 = vld [vmem:[%s21840_s7 + $0x42c] ss:$52 sps:$4 sm:$0xff]  }
 0x183   : > { %9281 = vmatpush1.bf16.msra.mxu0 %v18800_v53  ;;  %9691 = vmatpush1.bf16.msra.mxu1 %v18803_v54  ;;  %v18872_v53 = vld [vmem:[%s21840_s7 + $0x1c70] ss:$52 sps:$4 sm:$0xff]   ;;  %v18875_v54 = vld [vmem:[%s21840_s7 + $0x428] ss:$52 sps:$4 sm:$0xff]  }
 0x184   : > { %9282 = vmatprep.subr.bf16.mxu0 %v18808_v55  ;;  %9692 = vmatprep.subr.bf16.mxu1 %v18811_v56  ;;  %v18880_v55 = vld [vmem:[%s21840_s7 + $0x1cdc] ss:$52 sps:$4 sm:$0xff]   ;;  %v18883_v56 = vld [vmem:[%s21840_s7 + $0x494] ss:$52 sps:$4 sm:$0xff]  }
 0x187   : > { %9283 = vmatpush1.bf16.msra.mxu0 %v18806_v59  ;;  %9693 = vmatpush1.bf16.msra.mxu1 %v18809_v60  ;;  %v18878_v59 = vld [vmem:[%s21840_s7 + $0x1cd8] ss:$52 sps:$4 sm:$0xff]   ;;  %v18881_v60 = vld [vmem:[%s21840_s7 + $0x490] ss:$52 sps:$4 sm:$0xff]  }
 0x188   : > { %9284 = vmatprep.subr.bf16.mxu0 %v18814_v63  ;;  %9998 = vmatprep.subr.bf16.mxu1 %v18817_v0  ;;  %v18886_v63 = vld [vmem:[%s21840_s7 + $0x1d44] ss:$52 sps:$4 sm:$0xff]   ;;  %v18889_v0 = vld [vmem:[%s21840_s7 + $0x4fc] ss:$52 sps:$4 sm:$0xff]  }
 0x18a   : > { %9703 = vmatmul.mubr.bf16.vlgmr.msra.gmra.mrb[0].mxu1 %v22208_v4 }
 0x18b   : > { %9285 = vmatpush1.bf16.msra.mxu0 %v18812_v1  ;;  %9999 = vmatpush1.bf16.msra.mxu1 %v18815_v6  ;;  %v18884_v1 = vld [vmem:[%s21840_s7 + $0x1d40] ss:$52 sps:$4 sm:$0xff]   ;;  %v18887_v6 = vld [vmem:[%s21840_s7 + $0x4f8] ss:$52 sps:$4 sm:$0xff]  }
 0x18c   : > { %9286 = vmatprep.subr.bf16.mxu0 %v18820_v7  ;;  %10000 = vmatprep.subr.bf16.mxu1 %v18823_v34  ;;  %v18892_v7 = vld [vmem:[%s21840_s7 + $0x1dac] ss:$52 sps:$4 sm:$0xff]   ;;  %v18895_v34 = vld [vmem:[%s21840_s7 + $0x564] ss:$52 sps:$4 sm:$0xff]  }
 0x18d   : > { %10030 = vmatprep.mubr.bf16.mxu1 %v21927_v62 }
 0x18f   : > { %9287 = vmatpush1.bf16.msra.mxu0 %v18818_v35  ;;  %10001 = vmatpush1.bf16.msra.mxu1 %v18821_v58  ;;  %v18890_v35 = vld [vmem:[%s21840_s7 + $0x1da8] ss:$52 sps:$4 sm:$0xff]   ;;  %v18893_v58 = vld [vmem:[%s21840_s7 + $0x560] ss:$52 sps:$4 sm:$0xff]  }
 0x190   : > { %9288 = vmatprep.subr.bf16.mxu0 %v18826_v9  ;;  %10002 = vmatprep.subr.bf16.mxu1 %v18829_v10  ;;  %v18898_v9 = vld [vmem:[%s21840_s7 + $0x1e14] ss:$52 sps:$4 sm:$0xff]   ;;  %v18901_v10 = vld [vmem:[%s21840_s7 + $0x5cc] ss:$52 sps:$4 sm:$0xff]  }
 0x193   : > { %9289 = vmatpush1.bf16.msra.mxu0 %v18824_v11  ;;  %10003 = vmatpush1.bf16.msra.mxu1 %v18827_v12  ;;  %v18896_v11 = vld [vmem:[%s21840_s7 + $0x1e10] ss:$52 sps:$4 sm:$0xff]   ;;  %v18899_v12 = vld [vmem:[%s21840_s7 + $0x5c8] ss:$52 sps:$4 sm:$0xff]  }
 0x194   : > { %9290 = vmatprep.subr.bf16.mxu0 %v18832_v13  ;;  %10004 = vmatprep.subr.bf16.mxu1 %v18835_v14  ;;  %v18904_v13 = vld [vmem:[%s21840_s7 + $0x1e7c] ss:$52 sps:$4 sm:$0xff]   ;;  %v18907_v14 = vld [vmem:[%s21840_s7 + $0x634] ss:$52 sps:$4 sm:$0xff]  }
 0x197   : > { %9291 = vmatpush1.bf16.msra.mxu0 %v18830_v16  ;;  %10005 = vmatpush1.bf16.msra.mxu1 %v18833_v17  ;;  %v18902_v16 = vld [vmem:[%s21840_s7 + $0x1e78] ss:$52 sps:$4 sm:$0xff]   ;;  %v18905_v17 = vld [vmem:[%s21840_s7 + $0x630] ss:$52 sps:$4 sm:$0xff]  }
 0x198   : > { %9301 = vmatprep.subr.bf16.mxu0 %v18838_v18  ;;  %10006 = vmatprep.subr.bf16.mxu1 %v18841_v19  ;;  %v18910_v18 = vld [vmem:[%s21840_s7 + $0x1ee4] ss:$52 sps:$4 sm:$0xff]   ;;  %v18913_v19 = vld [vmem:[%s21840_s7 + $0x69c] ss:$52 sps:$4 sm:$0xff]  }
 0x19a   : > { %9293 = vmatmul.mubr.bf16.vlgmr.msra.gmra.mrb[0].mxu0 %v21957_v22 }
 0x19b   : > { %9302 = vmatpush1.bf16.msra.mxu0 %v18836_v20  ;;  %10007 = vmatpush1.bf16.msra.mxu1 %v18839_v23  ;;  %v18908_v20 = vld [vmem:[%s21840_s7 + $0x1ee0] ss:$52 sps:$4 sm:$0xff]   ;;  %v18911_v23 = vld [vmem:[%s21840_s7 + $0x698] ss:$52 sps:$4 sm:$0xff]  }
 0x19c   : > { %9303 = vmatprep.subr.bf16.mxu0 %v18844_v24  ;;  %10008 = vmatprep.subr.bf16.mxu1 %v18847_v25  ;;  %v18916_v24 = vld [vmem:[%s21840_s7 + $0x1f4c] ss:$52 sps:$4 sm:$0xff]   ;;  %v18919_v25 = vld [vmem:[%s21840_s7 + $0x704] ss:$52 sps:$4 sm:$0xff]  }
 0x19d   : > { %9333 = vmatprep.mubr.bf16.mxu0 %v22006_v61 }
 0x19f   : > { %9304 = vmatpush1.bf16.msra.mxu0 %v18842_v26  ;;  %10009 = vmatpush1.bf16.msra.mxu1 %v18845_v28  ;;  %v18914_v26 = vld [vmem:[%s21840_s7 + $0x1f48] ss:$52 sps:$4 sm:$0xff]   ;;  %v18917_v28 = vld [vmem:[%s21840_s7 + $0x700] ss:$52 sps:$4 sm:$0xff]  }
 0x1a0   : > { %9305 = vmatprep.subr.bf16.mxu0 %v18850_v29  ;;  %10010 = vmatprep.subr.bf16.mxu1 %v18853_v30  ;;  %v18922_v29 = vld [vmem:[%s21840_s7 + $0x1fb4] ss:$52 sps:$4 sm:$0xff]   ;;  %v18925_v30 = vld [vmem:[%s21840_s7 + $0x76c] ss:$52 sps:$4 sm:$0xff]  }
 0x1a3   : > { %9306 = vmatpush1.bf16.msra.mxu0 %v18848_v31  ;;  %10011 = vmatpush1.bf16.msra.mxu1 %v18851_v32  ;;  %v18920_v31 = vld [vmem:[%s21840_s7 + $0x1fb0] ss:$52 sps:$4 sm:$0xff]   ;;  %v18923_v32 = vld [vmem:[%s21840_s7 + $0x768] ss:$52 sps:$4 sm:$0xff]  }
 0x1a4   : > { %9307 = vmatprep.subr.bf16.mxu0 %v18856_v33  ;;  %10012 = vmatprep.subr.bf16.mxu1 %v18859_v36  ;;  %v18928_v33 = vld [vmem:[%s21840_s7 + $0x201c] ss:$52 sps:$4 sm:$0xff]   ;;  %v18931_v36 = vld [vmem:[%s21840_s7 + $0x7d4] ss:$52 sps:$4 sm:$0xff]  }
 0x1a7   : > { %9308 = vmatpush1.bf16.msra.mxu0 %v18854_v37  ;;  %10013 = vmatpush1.bf16.msra.mxu1 %v18857_v38  ;;  %v18926_v37 = vld [vmem:[%s21840_s7 + $0x2018] ss:$52 sps:$4 sm:$0xff]   ;;  %v18929_v38 = vld [vmem:[%s21840_s7 + $0x7d0] ss:$52 sps:$4 sm:$0xff]  }
 0x1a8   : > { %9309 = vmatprep.subr.bf16.mxu0 %v18862_v39  ;;  %10014 = vmatprep.subr.bf16.mxu1 %v18865_v40  ;;  %v18934_v39 = vld [vmem:[%s21840_s7 + $0x2084] ss:$52 sps:$4 sm:$0xff]   ;;  %v18937_v40 = vld [vmem:[%s21840_s7 + $0x83c] ss:$52 sps:$4 sm:$0xff]  }
 0x1ab   : > { %9310 = vmatpush1.bf16.msra.mxu0 %v18860_v57  ;;  %10015 = vmatpush1.bf16.msra.mxu1 %v18863_v41  ;;  %v18932_v57 = vld [vmem:[%s21840_s7 + $0x2080] ss:$52 sps:$4 sm:$0xff]   ;;  %v18935_v41 = vld [vmem:[%s21840_s7 + $0x838] ss:$52 sps:$4 sm:$0xff]  }
 0x1ac   : > { %9311 = vmatprep.subr.bf16.mxu0 %v18868_v45  ;;  %10016 = vmatprep.subr.bf16.mxu1 %v18871_v46  ;;  %v18940_v45 = vld [vmem:[%s21840_s7 + $0x20ec] ss:$52 sps:$4 sm:$0xff]   ;;  %v18943_v46 = vld [vmem:[%s21840_s7 + $0x8a4] ss:$52 sps:$4 sm:$0xff]  }
 0x1af   : > { %9312 = vmatpush1.bf16.msra.mxu0 %v18866_v47  ;;  %10017 = vmatpush1.bf16.msra.mxu1 %v18869_v15  ;;  %v18938_v47 = vld [vmem:[%s21840_s7 + $0x20e8] ss:$52 sps:$4 sm:$0xff]   ;;  %v18941_v15 = vld [vmem:[%s21840_s7 + $0x8a0] ss:$52 sps:$4 sm:$0xff]  }
 0x1b0   : > { %9313 = vmatprep.subr.bf16.mxu0 %v18874_v51  ;;  %10018 = vmatprep.subr.bf16.mxu1 %v18877_v52  ;;  %v18946_v51 = vld [vmem:[%s21840_s7 + $0x2154] ss:$52 sps:$4 sm:$0xff]   ;;  %v18949_v52 = vld [vmem:[%s21840_s7 + $0x90c] ss:$52 sps:$4 sm:$0xff]  }
 0x1b3   : > { %9314 = vmatpush1.bf16.msra.mxu0 %v18872_v53  ;;  %10019 = vmatpush1.bf16.msra.mxu1 %v18875_v54  ;;  %v18944_v53 = vld [vmem:[%s21840_s7 + $0x2150] ss:$52 sps:$4 sm:$0xff]   ;;  %v18947_v54 = vld [vmem:[%s21840_s7 + $0x908] ss:$52 sps:$4 sm:$0xff]  }
 0x1b4   : > { %9315 = vmatprep.subr.bf16.mxu0 %v18880_v55  ;;  %10020 = vmatprep.subr.bf16.mxu1 %v18883_v56  ;;  %v18952_v55 = vld [vmem:[%s21840_s7 + $0x21bc] ss:$52 sps:$4 sm:$0xff]   ;;  %v18955_v56 = vld [vmem:[%s21840_s7 + $0x974] ss:$52 sps:$4 sm:$0xff]  }
 0x1b7   : > { %9316 = vmatpush1.bf16.msra.mxu0 %v18878_v59  ;;  %10021 = vmatpush1.bf16.msra.mxu1 %v18881_v60  ;;  %v18950_v59 = vld [vmem:[%s21840_s7 + $0x21b8] ss:$52 sps:$4 sm:$0xff]   ;;  %v18953_v60 = vld [vmem:[%s21840_s7 + $0x970] ss:$52 sps:$4 sm:$0xff]  }
 0x1b8   : > { %9317 = vmatprep.subr.bf16.mxu0 %v18886_v63  ;;  %10022 = vmatprep.subr.bf16.mxu1 %v18889_v0  ;;  %v18958_v63 = vld [vmem:[%s21840_s7 + $0x2224] ss:$52 sps:$4 sm:$0xff]   ;;  %v18961_v0 = vld [vmem:[%s21840_s7 + $0x9dc] ss:$52 sps:$4 sm:$0xff]  }
 0x1bb   : > { %9318 = vmatpush1.bf16.msra.mxu0 %v18884_v1  ;;  %10023 = vmatpush1.bf16.msra.mxu1 %v18887_v6  ;;  %v18956_v1 = vld [vmem:[%s21840_s7 + $0x2220] ss:$52 sps:$4 sm:$0xff]   ;;  %v18959_v6 = vld [vmem:[%s21840_s7 + $0x9d8] ss:$52 sps:$4 sm:$0xff]  }
 0x1bc   : > { %9319 = vmatprep.subr.bf16.mxu0 %v18892_v7  ;;  %10024 = vmatprep.subr.bf16.mxu1 %v18895_v34  ;;  %v18964_v7 = vld [vmem:[%s21840_s7 + $0x228c] ss:$52 sps:$4 sm:$0xff]   ;;  %v18967_v34 = vld [vmem:[%s21840_s7 + $0xa44] ss:$52 sps:$4 sm:$0xff]  }
 0x1bf   : > { %9320 = vmatpush1.bf16.msra.mxu0 %v18890_v35  ;;  %10025 = vmatpush1.bf16.msra.mxu1 %v18893_v58  ;;  %v18962_v35 = vld [vmem:[%s21840_s7 + $0x2288] ss:$52 sps:$4 sm:$0xff]   ;;  %v18965_v58 = vld [vmem:[%s21840_s7 + $0xa40] ss:$52 sps:$4 sm:$0xff]  }
 0x1c0   : > { %9321 = vmatprep.subr.bf16.mxu0 %v18898_v9  ;;  %10026 = vmatprep.subr.bf16.mxu1 %v18901_v10  ;;  %v18970_v9 = vld [vmem:[%s21840_s7 + $0x22f4] ss:$52 sps:$4 sm:$0xff]   ;;  %v18973_v10 = vld [vmem:[%s21840_s7 + $0xaac] ss:$52 sps:$4 sm:$0xff]  }
 0x1c3   : > { %9322 = vmatpush1.bf16.msra.mxu0 %v18896_v11  ;;  %10027 = vmatpush1.bf16.msra.mxu1 %v18899_v12  ;;  %v18968_v11 = vld [vmem:[%s21840_s7 + $0x22f0] ss:$52 sps:$4 sm:$0xff]   ;;  %v18971_v12 = vld [vmem:[%s21840_s7 + $0xaa8] ss:$52 sps:$4 sm:$0xff]  }
 0x1c4   : > { %9323 = vmatprep.subr.bf16.mxu0 %v18904_v13  ;;  %10028 = vmatprep.subr.bf16.mxu1 %v18907_v14  ;;  %v18976_v13 = vld [vmem:[%s21840_s7 + $0x235c] ss:$52 sps:$4 sm:$0xff]   ;;  %v18979_v14 = vld [vmem:[%s21840_s7 + $0xb14] ss:$52 sps:$4 sm:$0xff]  }
 0x1c7   : > { %9324 = vmatpush1.bf16.msra.mxu0 %v18902_v16  ;;  %10029 = vmatpush1.bf16.msra.mxu1 %v18905_v17  ;;  %v18974_v16 = vld [vmem:[%s21840_s7 + $0x2358] ss:$52 sps:$4 sm:$0xff]   ;;  %v18977_v17 = vld [vmem:[%s21840_s7 + $0xb10] ss:$52 sps:$4 sm:$0xff]  }
 0x1c8   : > { %9325 = vmatprep.subr.bf16.mxu0 %v18910_v18  ;;  %10039 = vmatprep.subr.bf16.mxu1 %v18913_v19  ;;  %v18982_v18 = vld [vmem:[%s21840_s7 + $0x23c4] ss:$52 sps:$4 sm:$0xff]   ;;  %v18985_v19 = vld [vmem:[%s21840_s7 + $0xb7c] ss:$52 sps:$4 sm:$0xff]  }
 0x1ca   : > { %10031 = vmatmul.mubr.bf16.vlgmr.msra.gmra.mrb[4].mxu1 %v21955_v21 }
 0x1cb   : > { %9326 = vmatpush1.bf16.msra.mxu0 %v18908_v20  ;;  %10040 = vmatpush1.bf16.msra.mxu1 %v18911_v23  ;;  %v18980_v20 = vld [vmem:[%s21840_s7 + $0x23c0] ss:$52 sps:$4 sm:$0xff]   ;;  %v18983_v23 = vld [vmem:[%s21840_s7 + $0xb78] ss:$52 sps:$4 sm:$0xff]  }
 0x1cc   : > { %9327 = vmatprep.subr.bf16.mxu0 %v18916_v24  ;;  %10041 = vmatprep.subr.bf16.mxu1 %v18919_v25  ;;  %v18988_v24 = vld [vmem:[%s21840_s7 + $0x242c] ss:$52 sps:$4 sm:$0xff]   ;;  %v18991_v25 = vld [vmem:[%s21840_s7 + $0xbe4] ss:$52 sps:$4 sm:$0xff]  }
 0x1cd   : > { %10071 = vmatprep.mubr.bf16.mxu1 %v21963_v27 }
 0x1cf   : > { %9328 = vmatpush1.bf16.msra.mxu0 %v18914_v26  ;;  %10042 = vmatpush1.bf16.msra.mxu1 %v18917_v28  ;;  %v18986_v26 = vld [vmem:[%s21840_s7 + $0x2428] ss:$52 sps:$4 sm:$0xff]   ;;  %v18989_v28 = vld [vmem:[%s21840_s7 + $0xbe0] ss:$52 sps:$4 sm:$0xff]  }
 0x1d0   : > { %9329 = vmatprep.subr.bf16.mxu0 %v18922_v29  ;;  %10043 = vmatprep.subr.bf16.mxu1 %v18925_v30  ;;  %v18994_v29 = vld [vmem:[%s21840_s7 + $0x2494] ss:$52 sps:$4 sm:$0xff]   ;;  %v18997_v30 = vld [vmem:[%s21840_s7 + $0xc4c] ss:$52 sps:$4 sm:$0xff]  }
 0x1d3   : > { %9330 = vmatpush1.bf16.msra.mxu0 %v18920_v31  ;;  %10044 = vmatpush1.bf16.msra.mxu1 %v18923_v32  ;;  %v18992_v31 = vld [vmem:[%s21840_s7 + $0x2490] ss:$52 sps:$4 sm:$0xff]   ;;  %v18995_v32 = vld [vmem:[%s21840_s7 + $0xc48] ss:$52 sps:$4 sm:$0xff]  }
 0x1d4   : > { %9331 = vmatprep.subr.bf16.mxu0 %v18928_v33  ;;  %10045 = vmatprep.subr.bf16.mxu1 %v18931_v36  ;;  %v19000_v33 = vld [vmem:[%s21840_s7 + $0x24fc] ss:$52 sps:$4 sm:$0xff]   ;;  %v19003_v36 = vld [vmem:[%s21840_s7 + $0xcb4] ss:$52 sps:$4 sm:$0xff]  }
 0x1d7   : > { %9332 = vmatpush1.bf16.msra.mxu0 %v18926_v37  ;;  %10046 = vmatpush1.bf16.msra.mxu1 %v18929_v38  ;;  %v18998_v37 = vld [vmem:[%s21840_s7 + $0x24f8] ss:$52 sps:$4 sm:$0xff]   ;;  %v19001_v38 = vld [vmem:[%s21840_s7 + $0xcb0] ss:$52 sps:$4 sm:$0xff]  }
 0x1d8   : > { %9342 = vmatprep.subr.bf16.mxu0 %v18934_v39  ;;  %10047 = vmatprep.subr.bf16.mxu1 %v18937_v40  ;;  %v19006_v39 = vld [vmem:[%s21840_s7 + $0x2564] ss:$52 sps:$4 sm:$0xff]   ;;  %v19009_v40 = vld [vmem:[%s21840_s7 + $0xd1c] ss:$52 sps:$4 sm:$0xff]  }
 0x1da   : > { %9334 = vmatmul.mubr.bf16.vlgmr.msra.gmra.mrb[0].mxu0 %v22062_v43 }
 0x1db   : > { %9343 = vmatpush1.bf16.msra.mxu0 %v18932_v57  ;;  %10048 = vmatpush1.bf16.msra.mxu1 %v18935_v41  ;;  %v19004_v57 = vld [vmem:[%s21840_s7 + $0x2560] ss:$52 sps:$4 sm:$0xff]   ;;  %v19007_v41 = vld [vmem:[%s21840_s7 + $0xd18] ss:$52 sps:$4 sm:$0xff]  }
 0x1dc   : > { %9344 = vmatprep.subr.bf16.mxu0 %v18940_v45  ;;  %10049 = vmatprep.subr.bf16.mxu1 %v18943_v46  ;;  %v19012_v45 = vld [vmem:[%s21840_s7 + $0x25cc] ss:$52 sps:$4 sm:$0xff]   ;;  %v19015_v46 = vld [vmem:[%s21840_s7 + $0xd84] ss:$52 sps:$4 sm:$0xff]  }
 0x1dd   : > { %9374 = vmatprep.mubr.bf16.mxu0 %v22069_v49 }
 0x1df   : > { %9345 = vmatpush1.bf16.msra.mxu0 %v18938_v47  ;;  %10050 = vmatpush1.bf16.msra.mxu1 %v18941_v15  ;;  %v19010_v47 = vld [vmem:[%s21840_s7 + $0x25c8] ss:$52 sps:$4 sm:$0xff]   ;;  %v19013_v15 = vld [vmem:[%s21840_s7 + $0xd80] ss:$52 sps:$4 sm:$0xff]  }
 0x1e0   : > { %9346 = vmatprep.subr.bf16.mxu0 %v18946_v51  ;;  %10051 = vmatprep.subr.bf16.mxu1 %v18949_v52  ;;  %v19018_v51 = vld [vmem:[%s21840_s7 + $0x2634] ss:$52 sps:$4 sm:$0xff]   ;;  %v19021_v52 = vld [vmem:[%s21840_s7 + $0xdec] ss:$52 sps:$4 sm:$0xff]  }
 0x1e3   : > { %9347 = vmatpush1.bf16.msra.mxu0 %v18944_v53  ;;  %10052 = vmatpush1.bf16.msra.mxu1 %v18947_v54  ;;  %v19016_v53 = vld [vmem:[%s21840_s7 + $0x2630] ss:$52 sps:$4 sm:$0xff]   ;;  %v19019_v54 = vld [vmem:[%s21840_s7 + $0xde8] ss:$52 sps:$4 sm:$0xff]  }
 0x1e4   : > { %9348 = vmatprep.subr.bf16.mxu0 %v18952_v55  ;;  %10053 = vmatprep.subr.bf16.mxu1 %v18955_v56  ;;  %v19024_v55 = vld [vmem:[%s21840_s7 + $0x269c] ss:$52 sps:$4 sm:$0xff]   ;;  %v19027_v56 = vld [vmem:[%s21840_s7 + $0xe54] ss:$52 sps:$4 sm:$0xff]  }
 0x1e7   : > { %9349 = vmatpush1.bf16.msra.mxu0 %v18950_v59  ;;  %10054 = vmatpush1.bf16.msra.mxu1 %v18953_v60  ;;  %v19022_v59 = vld [vmem:[%s21840_s7 + $0x2698] ss:$52 sps:$4 sm:$0xff]   ;;  %v19025_v60 = vld [vmem:[%s21840_s7 + $0xe50] ss:$52 sps:$4 sm:$0xff]  }
 0x1e8   : > { %9350 = vmatprep.subr.bf16.mxu0 %v18958_v63  ;;  %10055 = vmatprep.subr.bf16.mxu1 %v18961_v0  ;;  %v19030_v63 = vld [vmem:[%s21840_s7 + $0x2704] ss:$52 sps:$4 sm:$0xff]   ;;  %v19033_v0 = vld [vmem:[%s21840_s7 + $0xebc] ss:$52 sps:$4 sm:$0xff]  }
 0x1eb   : > { %9351 = vmatpush1.bf16.msra.mxu0 %v18956_v1  ;;  %10056 = vmatpush1.bf16.msra.mxu1 %v18959_v6  ;;  %v19028_v1 = vld [vmem:[%s21840_s7 + $0x2700] ss:$52 sps:$4 sm:$0xff]   ;;  %v19031_v6 = vld [vmem:[%s21840_s7 + $0xeb8] ss:$52 sps:$4 sm:$0xff]  }
 0x1ec   : > { %9352 = vmatprep.subr.bf16.mxu0 %v18964_v7  ;;  %10057 = vmatprep.subr.bf16.mxu1 %v18967_v34  ;;  %v19036_v7 = vld [vmem:[%s21840_s7 + $0x276c] ss:$52 sps:$4 sm:$0xff]   ;;  %v19039_v34 = vld [vmem:[%s21840_s7 + $0xf24] ss:$52 sps:$4 sm:$0xff]  }
 0x1ef   : > { %9353 = vmatpush1.bf16.msra.mxu0 %v18962_v35  ;;  %10058 = vmatpush1.bf16.msra.mxu1 %v18965_v58  ;;  %v19034_v35 = vld [vmem:[%s21840_s7 + $0x2768] ss:$52 sps:$4 sm:$0xff]   ;;  %v19037_v58 = vld [vmem:[%s21840_s7 + $0xf20] ss:$52 sps:$4 sm:$0xff]  }
 0x1f0   : > { %9354 = vmatprep.subr.bf16.mxu0 %v18970_v9  ;;  %10059 = vmatprep.subr.bf16.mxu1 %v18973_v10  ;;  %v19042_v9 = vld [vmem:[%s21840_s7 + $0x27d4] ss:$52 sps:$4 sm:$0xff]   ;;  %v19045_v10 = vld [vmem:[%s21840_s7 + $0xf8c] ss:$52 sps:$4 sm:$0xff]  }
 0x1f3   : > { %9355 = vmatpush1.bf16.msra.mxu0 %v18968_v11  ;;  %10060 = vmatpush1.bf16.msra.mxu1 %v18971_v12  ;;  %v19040_v11 = vld [vmem:[%s21840_s7 + $0x27d0] ss:$52 sps:$4 sm:$0xff]   ;;  %v19043_v12 = vld [vmem:[%s21840_s7 + $0xf88] ss:$52 sps:$4 sm:$0xff]  }
 0x1f4   : > { %9356 = vmatprep.subr.bf16.mxu0 %v18976_v13  ;;  %10061 = vmatprep.subr.bf16.mxu1 %v18979_v14  ;;  %v19048_v13 = vld [vmem:[%s21840_s7 + $0x283c] ss:$52 sps:$4 sm:$0xff]   ;;  %v19051_v14 = vld [vmem:[%s21840_s7 + $0xff4] ss:$52 sps:$4 sm:$0xff]  }
 0x1f7   : > { %9357 = vmatpush1.bf16.msra.mxu0 %v18974_v16  ;;  %10062 = vmatpush1.bf16.msra.mxu1 %v18977_v17  ;;  %v19046_v16 = vld [vmem:[%s21840_s7 + $0x2838] ss:$52 sps:$4 sm:$0xff]   ;;  %v19049_v17 = vld [vmem:[%s21840_s7 + $0xff0] ss:$52 sps:$4 sm:$0xff]  }
 0x1f8   : > { %9358 = vmatprep.subr.bf16.mxu0 %v18982_v18  ;;  %10063 = vmatprep.subr.bf16.mxu1 %v18985_v19  ;;  %v19054_v18 = vld [vmem:[%s21840_s7 + $0x28a4] ss:$52 sps:$4 sm:$0xff]   ;;  %v19057_v19 = vld [vmem:[%s21840_s7 + $0x105c] ss:$52 sps:$4 sm:$0xff]  }
 0x1fb   : > { %9359 = vmatpush1.bf16.msra.mxu0 %v18980_v20  ;;  %10064 = vmatpush1.bf16.msra.mxu1 %v18983_v23  ;;  %v19052_v20 = vld [vmem:[%s21840_s7 + $0x28a0] ss:$52 sps:$4 sm:$0xff]   ;;  %v19055_v23 = vld [vmem:[%s21840_s7 + $0x1058] ss:$52 sps:$4 sm:$0xff]  }
 0x1fc   : > { %9360 = vmatprep.subr.bf16.mxu0 %v18988_v24  ;;  %10065 = vmatprep.subr.bf16.mxu1 %v18991_v25  ;;  %v19060_v24 = vld [vmem:[%s21840_s7 + $0x290c] ss:$52 sps:$4 sm:$0xff]   ;;  %v19063_v25 = vld [vmem:[%s21840_s7 + $0x10c4] ss:$52 sps:$4 sm:$0xff]  }
 0x1ff   : > { %9361 = vmatpush1.bf16.msra.mxu0 %v18986_v26  ;;  %10066 = vmatpush1.bf16.msra.mxu1 %v18989_v28  ;;  %v19058_v26 = vld [vmem:[%s21840_s7 + $0x2908] ss:$52 sps:$4 sm:$0xff]   ;;  %v19061_v28 = vld [vmem:[%s21840_s7 + $0x10c0] ss:$52 sps:$4 sm:$0xff]  }
 0x200   : > { %9362 = vmatprep.subr.bf16.mxu0 %v18994_v29  ;;  %10067 = vmatprep.subr.bf16.mxu1 %v18997_v30  ;;  %v19066_v29 = vld [vmem:[%s21840_s7 + $0x2974] ss:$52 sps:$4 sm:$0xff]   ;;  %v19069_v30 = vld [vmem:[%s21840_s7 + $0x112c] ss:$52 sps:$4 sm:$0xff]  }
 0x203   : > { %9363 = vmatpush1.bf16.msra.mxu0 %v18992_v31  ;;  %10068 = vmatpush1.bf16.msra.mxu1 %v18995_v32  ;;  %v19064_v31 = vld [vmem:[%s21840_s7 + $0x2970] ss:$52 sps:$4 sm:$0xff]   ;;  %v19067_v32 = vld [vmem:[%s21840_s7 + $0x1128] ss:$52 sps:$4 sm:$0xff]  }
 0x204   : > { %9364 = vmatprep.subr.bf16.mxu0 %v19000_v33  ;;  %10069 = vmatprep.subr.bf16.mxu1 %v19003_v36  ;;  %v19072_v33 = vld [vmem:[%s21840_s7 + $0x29dc] ss:$52 sps:$4 sm:$0xff]   ;;  %v19075_v36 = vld [vmem:[%s21840_s7 + $0x1194] ss:$52 sps:$4 sm:$0xff]  }
 0x207   : > { %9365 = vmatpush1.bf16.msra.mxu0 %v18998_v37  ;;  %10070 = vmatpush1.bf16.msra.mxu1 %v19001_v38  ;;  %v19070_v37 = vld [vmem:[%s21840_s7 + $0x29d8] ss:$52 sps:$4 sm:$0xff]   ;;  %v19073_v38 = vld [vmem:[%s21840_s7 + $0x1190] ss:$52 sps:$4 sm:$0xff]  }
 0x208   : > { %9366 = vmatprep.subr.bf16.mxu0 %v19006_v39  ;;  %10080 = vmatprep.subr.bf16.mxu1 %v19009_v40  ;;  %v19078_v39 = vld [vmem:[%s21840_s7 + $0x2a44] ss:$52 sps:$4 sm:$0xff]   ;;  %v19081_v40 = vld [vmem:[%s21840_s7 + $0x11fc] ss:$52 sps:$4 sm:$0xff]  }
 0x20a   : > { %10072 = vmatmul.mubr.bf16.vlgmr.msra.gmra.mrb[4].mxu1 %v22058_v42 }
 0x20b   : > { %9367 = vmatpush1.bf16.msra.mxu0 %v19004_v57  ;;  %10081 = vmatpush1.bf16.msra.mxu1 %v19007_v41  ;;  %v19076_v57 = vld [vmem:[%s21840_s7 + $0x2a40] ss:$52 sps:$4 sm:$0xff]   ;;  %v19079_v41 = vld [vmem:[%s21840_s7 + $0x11f8] ss:$52 sps:$4 sm:$0xff]  }
 0x20c   : > { %9368 = vmatprep.subr.bf16.mxu0 %v19012_v45  ;;  %10082 = vmatprep.subr.bf16.mxu1 %v19015_v46  ;;  %v19084_v45 = vld [vmem:[%s21840_s7 + $0x2aac] ss:$52 sps:$4 sm:$0xff]   ;;  %v19087_v46 = vld [vmem:[%s21840_s7 + $0x1264] ss:$52 sps:$4 sm:$0xff]  }
 0x20d   : > { %10112 = vmatprep.mubr.bf16.mxu1 %v22067_v48 }
 0x20f   : > { %9369 = vmatpush1.bf16.msra.mxu0 %v19010_v47  ;;  %10083 = vmatpush1.bf16.msra.mxu1 %v19013_v15  ;;  %v19082_v47 = vld [vmem:[%s21840_s7 + $0x2aa8] ss:$52 sps:$4 sm:$0xff]   ;;  %v19085_v15 = vld [vmem:[%s21840_s7 + $0x1260] ss:$52 sps:$4 sm:$0xff]  }
 0x210   : > { %9370 = vmatprep.subr.bf16.mxu0 %v19018_v51  ;;  %10084 = vmatprep.subr.bf16.mxu1 %v19021_v52  ;;  %v19090_v51 = vld [vmem:[%s21840_s7 + $0x2b14] ss:$52 sps:$4 sm:$0xff]   ;;  %v19093_v52 = vld [vmem:[%s21840_s7 + $0x12cc] ss:$52 sps:$4 sm:$0xff]  }
 0x213   : > { %9371 = vmatpush1.bf16.msra.mxu0 %v19016_v53  ;;  %10085 = vmatpush1.bf16.msra.mxu1 %v19019_v54  ;;  %v19088_v53 = vld [vmem:[%s21840_s7 + $0x2b10] ss:$52 sps:$4 sm:$0xff]   ;;  %v19091_v54 = vld [vmem:[%s21840_s7 + $0x12c8] ss:$52 sps:$4 sm:$0xff]  }
 0x214   : > { %9372 = vmatprep.subr.bf16.mxu0 %v19024_v55  ;;  %10086 = vmatprep.subr.bf16.mxu1 %v19027_v56  ;;  %v19096_v55 = vld [vmem:[%s21840_s7 + $0x2b7c] ss:$52 sps:$4 sm:$0xff]   ;;  %v19099_v56 = vld [vmem:[%s21840_s7 + $0x1334] ss:$52 sps:$4 sm:$0xff]  }
 0x217   : > { %9373 = vmatpush1.bf16.msra.mxu0 %v19022_v59  ;;  %10087 = vmatpush1.bf16.msra.mxu1 %v19025_v60  ;;  %v19094_v59 = vld [vmem:[%s21840_s7 + $0x2b78] ss:$52 sps:$4 sm:$0xff]   ;;  %v19097_v60 = vld [vmem:[%s21840_s7 + $0x1330] ss:$52 sps:$4 sm:$0xff]  }
 0x218   : > { %9383 = vmatprep.subr.bf16.mxu0 %v19030_v63  ;;  %10088 = vmatprep.subr.bf16.mxu1 %v19033_v0  ;;  %v19102_v63 = vld [vmem:[%s21840_s7 + $0xc] ss:$52 sps:$4 sm:$0xff]   ;;  %v19105_v0 = vld [vmem:[%s21840_s7 + $0x139c] ss:$52 sps:$4 sm:$0xff]  }
 0x21a   : > { %9375 = vmatmul.mubr.bf16.vlgmr.msra.gmra.mrb[0].mxu0 %v22149_v3 }
 0x21b   : > { %9384 = vmatpush1.bf16.msra.mxu0 %v19028_v1  ;;  %10089 = vmatpush1.bf16.msra.mxu1 %v19031_v6  ;;  %v19100_v1 = vld [vmem:[%s21840_s7 + $0x8] ss:$52 sps:$4 sm:$0xff]   ;;  %v19103_v6 = vld [vmem:[%s21840_s7 + $0x1398] ss:$52 sps:$4 sm:$0xff]  }
 0x21c   : > { %9385 = vmatprep.subr.bf16.mxu0 %v19036_v7  ;;  %10090 = vmatprep.subr.bf16.mxu1 %v19039_v34  ;;  %v19108_v7 = vld [vmem:[%s21840_s7 + $0x74] ss:$52 sps:$4 sm:$0xff]   ;;  %v19111_v34 = vld [vmem:[%s21840_s7 + $0x1404] ss:$52 sps:$4 sm:$0xff]  }
 0x21d   : > { %17379 = vmatprep.mubr.msk.bf16.mxu0 %vm9133_vm0, %v22154_v8 }
 0x21f   : > { %9386 = vmatpush1.bf16.msra.mxu0 %v19034_v35  ;;  %10091 = vmatpush1.bf16.msra.mxu1 %v19037_v58  ;;  %v19106_v35 = vld [vmem:[%s21840_s7 + $0x70] ss:$52 sps:$4 sm:$0xff]   ;;  %v19109_v58 = vld [vmem:[%s21840_s7 + $0x1400] ss:$52 sps:$4 sm:$0xff]  }
 0x220   : > { %9387 = vmatprep.subr.bf16.mxu0 %v19042_v9  ;;  %10092 = vmatprep.subr.bf16.mxu1 %v19045_v10  ;;  %v19114_v9 = vld [vmem:[%s21840_s7 + $0xdc] ss:$52 sps:$4 sm:$0xff]   ;;  %v19117_v10 = vld [vmem:[%s21840_s7 + $0x146c] ss:$52 sps:$4 sm:$0xff]  }
 0x223   : > { %9388 = vmatpush1.bf16.msra.mxu0 %v19040_v11  ;;  %10093 = vmatpush1.bf16.msra.mxu1 %v19043_v12  ;;  %v19112_v11 = vld [vmem:[%s21840_s7 + $0xd8] ss:$52 sps:$4 sm:$0xff]   ;;  %v19115_v12 = vld [vmem:[%s21840_s7 + $0x1468] ss:$52 sps:$4 sm:$0xff]  }
 0x224   : > { %9389 = vmatprep.subr.bf16.mxu0 %v19048_v13  ;;  %10094 = vmatprep.subr.bf16.mxu1 %v19051_v14  ;;  %v19120_v13 = vld [vmem:[%s21840_s7 + $0x144] ss:$52 sps:$4 sm:$0xff]   ;;  %v19123_v14 = vld [vmem:[%s21840_s7 + $0x14d4] ss:$52 sps:$4 sm:$0xff]  }
 0x227   : > { %9390 = vmatpush1.bf16.msra.mxu0 %v19046_v16  ;;  %10095 = vmatpush1.bf16.msra.mxu1 %v19049_v17  ;;  %v19118_v16 = vld [vmem:[%s21840_s7 + $0x140] ss:$52 sps:$4 sm:$0xff]   ;;  %v19121_v17 = vld [vmem:[%s21840_s7 + $0x14d0] ss:$52 sps:$4 sm:$0xff]  }
 0x228   : > { %9391 = vmatprep.subr.bf16.mxu0 %v19054_v18  ;;  %10096 = vmatprep.subr.bf16.mxu1 %v19057_v19  ;;  %v19126_v18 = vld [vmem:[%s21840_s7 + $0x1ac] ss:$52 sps:$4 sm:$0xff]   ;;  %v19129_v19 = vld [vmem:[%s21840_s7 + $0x153c] ss:$52 sps:$4 sm:$0xff]  }
 0x22b   : > { %9392 = vmatpush1.bf16.msra.mxu0 %v19052_v20  ;;  %10097 = vmatpush1.bf16.msra.mxu1 %v19055_v23  ;;  %v19124_v20 = vld [vmem:[%s21840_s7 + $0x1a8] ss:$52 sps:$4 sm:$0xff]   ;;  %v19127_v23 = vld [vmem:[%s21840_s7 + $0x1538] ss:$52 sps:$4 sm:$0xff]  }
 0x22c   : > { %9393 = vmatprep.subr.bf16.mxu0 %v19060_v24  ;;  %10098 = vmatprep.subr.bf16.mxu1 %v19063_v25  ;;  %v19132_v24 = vld [vmem:[%s21840_s7 + $0x214] ss:$52 sps:$4 sm:$0xff]   ;;  %v19135_v25 = vld [vmem:[%s21840_s7 + $0x15a4] ss:$52 sps:$4 sm:$0xff]  }
 0x22f   : > { %9394 = vmatpush1.bf16.msra.mxu0 %v19058_v26  ;;  %10099 = vmatpush1.bf16.msra.mxu1 %v19061_v28  ;;  %v19130_v26 = vld [vmem:[%s21840_s7 + $0x210] ss:$52 sps:$4 sm:$0xff]   ;;  %v19133_v28 = vld [vmem:[%s21840_s7 + $0x15a0] ss:$52 sps:$4 sm:$0xff]  }
 0x230   : > { %9395 = vmatprep.subr.bf16.mxu0 %v19066_v29  ;;  %10100 = vmatprep.subr.bf16.mxu1 %v19069_v30  ;;  %v19138_v29 = vld [vmem:[%s21840_s7 + $0x27c] ss:$52 sps:$4 sm:$0xff]   ;;  %v19141_v30 = vld [vmem:[%s21840_s7 + $0x160c] ss:$52 sps:$4 sm:$0xff]  }
 0x233   : > { %9396 = vmatpush1.bf16.msra.mxu0 %v19064_v31  ;;  %10101 = vmatpush1.bf16.msra.mxu1 %v19067_v32 }
 0x234   : > { %9397 = vmatprep.subr.bf16.mxu0 %v19072_v33  ;;  %10102 = vmatprep.subr.bf16.mxu1 %v19075_v36  ;;  %v19136_v33 = vld [vmem:[%s21840_s7 + $0x278] ss:$52 sps:$4 sm:$0xff]   ;;  %v19139_v36 = vld [vmem:[%s21840_s7 + $0x1608] ss:$52 sps:$4 sm:$0xff]  }
 0x237   : > { %9398 = vmatpush1.bf16.msra.mxu0 %v19070_v37  ;;  %10103 = vmatpush1.bf16.msra.mxu1 %v19073_v38  ;;  %v19144_v38 = vld [vmem:[%s21840_s7 + $0x2e4] ss:$52 sps:$4 sm:$0xff]  }
 0x238   : > { %9399 = vmatprep.subr.bf16.mxu0 %v19078_v39  ;;  %10104 = vmatprep.subr.bf16.mxu1 %v19081_v40  ;;  %v19147_v39 = vld [vmem:[%s21840_s7 + $0x1674] ss:$52 sps:$4 sm:$0xff]  }
 0x23b   : > { %9400 = vmatpush1.bf16.msra.mxu0 %v19076_v57  ;;  %10105 = vmatpush1.bf16.msra.mxu1 %v19079_v41  ;;  %v19142_v57 = vld [vmem:[%s21840_s7 + $0x2e0] ss:$52 sps:$4 sm:$0xff]   ;;  %v19145_v41 = vld [vmem:[%s21840_s7 + $0x1670] ss:$52 sps:$4 sm:$0xff]  }
 0x23c   : > { %9401 = vmatprep.subr.bf16.mxu0 %v19084_v45  ;;  %10106 = vmatprep.subr.bf16.mxu1 %v19087_v46  ;;  %v19150_v45 = vld [vmem:[%s21840_s7 + $0x34c] ss:$52 sps:$4 sm:$0xff]   ;;  %v19153_v46 = vld [vmem:[%s21840_s7 + $0x16dc] ss:$52 sps:$4 sm:$0xff]  }
 0x23f   : > { %9402 = vmatpush1.bf16.msra.mxu0 %v19082_v47  ;;  %10107 = vmatpush1.bf16.msra.mxu1 %v19085_v15  ;;  %v19148_v47 = vld [vmem:[%s21840_s7 + $0x348] ss:$52 sps:$4 sm:$0xff]   ;;  %v19151_v15 = vld [vmem:[%s21840_s7 + $0x16d8] ss:$52 sps:$4 sm:$0xff]  }
 0x240   : > { %9403 = vmatprep.subr.bf16.mxu0 %v19090_v51  ;;  %10108 = vmatprep.subr.bf16.mxu1 %v19093_v52  ;;  %v19156_v51 = vld [vmem:[%s21840_s7 + $0x3b4] ss:$52 sps:$4 sm:$0xff]   ;;  %v19159_v52 = vld [vmem:[%s21840_s7 + $0x1744] ss:$52 sps:$4 sm:$0xff]  }
 0x243   : > { %9404 = vmatpush1.bf16.msra.mxu0 %v19088_v53  ;;  %10109 = vmatpush1.bf16.msra.mxu1 %v19091_v54  ;;  %v19154_v53 = vld [vmem:[%s21840_s7 + $0x3b0] ss:$52 sps:$4 sm:$0xff]   ;;  %v19157_v54 = vld [vmem:[%s21840_s7 + $0x1740] ss:$52 sps:$4 sm:$0xff]  }
 0x244   : > { %9405 = vmatprep.subr.bf16.mxu0 %v19096_v55  ;;  %10110 = vmatprep.subr.bf16.mxu1 %v19099_v56  ;;  %v19162_v55 = vld [vmem:[%s21840_s7 + $0x41c] ss:$52 sps:$4 sm:$0xff]   ;;  %v19165_v56 = vld [vmem:[%s21840_s7 + $0x17ac] ss:$52 sps:$4 sm:$0xff]  }
 0x247   : > { %9406 = vmatpush1.bf16.msra.mxu0 %v19094_v59  ;;  %10111 = vmatpush1.bf16.msra.mxu1 %v19097_v60  ;;  %v19160_v59 = vld [vmem:[%s21840_s7 + $0x418] ss:$52 sps:$4 sm:$0xff]   ;;  %v19163_v60 = vld [vmem:[%s21840_s7 + $0x17a8] ss:$52 sps:$4 sm:$0xff]  }
 0x248   : > { %9424 = vmatprep.subr.bf16.mxu0 %v19102_v63  ;;  %10121 = vmatprep.subr.bf16.mxu1 %v19105_v0  ;;  %v19168_v63 = vld [vmem:[%s21840_s7 + $0x484] ss:$52 sps:$4 sm:$0xff]   ;;  %v19171_v0 = vld [vmem:[%s21840_s7 + $0x1814] ss:$52 sps:$4 sm:$0xff]  }
 0x24a   : > { %9416 = vmatmul.mubr.bf16.vlgmr.msra.gmra.mrb[0].mxu0 %v22208_v4  ;;  %10113 = vmatmul.mubr.bf16.vlgmr.msra.gmra.mrb[4].mxu1 %v22145_v2 }
 0x24b   : > { %9425 = vmatpush1.bf16.msra.mxu0 %v19100_v1  ;;  %10122 = vmatpush1.bf16.msra.mxu1 %v19103_v6  ;;  %v19166_v1 = vld [vmem:[%s21840_s7 + $0x480] ss:$52 sps:$4 sm:$0xff]   ;;  %v19169_v6 = vld [vmem:[%s21840_s7 + $0x1810] ss:$52 sps:$4 sm:$0xff]  }
 0x24c   : > { %9426 = vmatprep.subr.bf16.mxu0 %v19108_v7  ;;  %10123 = vmatprep.subr.bf16.mxu1 %v19111_v34  ;;  %v19174_v7 = vld [vmem:[%s21840_s7 + $0x4ec] ss:$52 sps:$4 sm:$0xff]   ;;  %v19177_v34 = vld [vmem:[%s21840_s7 + $0x187c] ss:$52 sps:$4 sm:$0xff]  }
 0x24d   : > { %9456 = vmatprep.mubr.bf16.mxu0 %v21927_v62  ;;  %10153 = vmatprep.mubr.bf16.mxu1 %v21935_v5 }
 0x24f   : > { %9427 = vmatpush1.bf16.msra.mxu0 %v19106_v35  ;;  %10124 = vmatpush1.bf16.msra.mxu1 %v19109_v58  ;;  %v19172_v35 = vld [vmem:[%s21840_s7 + $0x4e8] ss:$52 sps:$4 sm:$0xff]   ;;  %v19175_v58 = vld [vmem:[%s21840_s7 + $0x1878] ss:$52 sps:$4 sm:$0xff]  }
 0x250   : > { %9428 = vmatprep.subr.bf16.mxu0 %v19114_v9  ;;  %10125 = vmatprep.subr.bf16.mxu1 %v19117_v10  ;;  %v19180_v9 = vld [vmem:[%s21840_s7 + $0x554] ss:$52 sps:$4 sm:$0xff]   ;;  %v19183_v10 = vld [vmem:[%s21840_s7 + $0x18e4] ss:$52 sps:$4 sm:$0xff]  }
 0x253   : > { %9429 = vmatpush1.bf16.msra.mxu0 %v19112_v11  ;;  %10126 = vmatpush1.bf16.msra.mxu1 %v19115_v12  ;;  %v19178_v11 = vld [vmem:[%s21840_s7 + $0x550] ss:$52 sps:$4 sm:$0xff]   ;;  %v19181_v12 = vld [vmem:[%s21840_s7 + $0x18e0] ss:$52 sps:$4 sm:$0xff]  }
 0x254   : > { %9430 = vmatprep.subr.bf16.mxu0 %v19120_v13  ;;  %10127 = vmatprep.subr.bf16.mxu1 %v19123_v14  ;;  %v19186_v13 = vld [vmem:[%s21840_s7 + $0x5bc] ss:$52 sps:$4 sm:$0xff]   ;;  %v19189_v14 = vld [vmem:[%s21840_s7 + $0x194c] ss:$52 sps:$4 sm:$0xff]  }
 0x257   : > { %9431 = vmatpush1.bf16.msra.mxu0 %v19118_v16  ;;  %10128 = vmatpush1.bf16.msra.mxu1 %v19121_v17  ;;  %v19184_v16 = vld [vmem:[%s21840_s7 + $0x5b8] ss:$52 sps:$4 sm:$0xff]   ;;  %v19187_v17 = vld [vmem:[%s21840_s7 + $0x1948] ss:$52 sps:$4 sm:$0xff]  }
 0x258   : > { %9432 = vmatprep.subr.bf16.mxu0 %v19126_v18  ;;  %10129 = vmatprep.subr.bf16.mxu1 %v19129_v19  ;;  %v19192_v18 = vld [vmem:[%s21840_s7 + $0x624] ss:$52 sps:$4 sm:$0xff]   ;;  %v19195_v19 = vld [vmem:[%s21840_s7 + $0x19b4] ss:$52 sps:$4 sm:$0xff]  }
 0x25b   : > { %9433 = vmatpush1.bf16.msra.mxu0 %v19124_v20  ;;  %10130 = vmatpush1.bf16.msra.mxu1 %v19127_v23  ;;  %v19190_v20 = vld [vmem:[%s21840_s7 + $0x620] ss:$52 sps:$4 sm:$0xff]   ;;  %v19193_v23 = vld [vmem:[%s21840_s7 + $0x19b0] ss:$52 sps:$4 sm:$0xff]  }
 0x25c   : > { %9434 = vmatprep.subr.bf16.mxu0 %v19132_v24  ;;  %10131 = vmatprep.subr.bf16.mxu1 %v19135_v25  ;;  %v19198_v24 = vld [vmem:[%s21840_s7 + $0x68c] ss:$52 sps:$4 sm:$0xff]   ;;  %v19201_v25 = vld [vmem:[%s21840_s7 + $0x1a1c] ss:$52 sps:$4 sm:$0xff]  }
 0x25d   : > { %v22442_v31 = vpop.f32.mrb[0].mxu1 }
 0x25e   : > { %v22444_v32 = vpop.f32.mrb[1].mxu1 }
 0x25f   : > { %9435 = vmatpush1.bf16.msra.mxu0 %v19130_v26  ;;  %10132 = vmatpush1.bf16.msra.mxu1 %v19133_v28  ;;  %v9708_v37 = vpop.f32.mrb[2].mxu1  ;;  %v19196_v26 = vld [vmem:[%s21840_s7 + $0x688] ss:$52 sps:$4 sm:$0xff]   ;;  %v19199_v28 = vld [vmem:[%s21840_s7 + $0x1a18] ss:$52 sps:$4 sm:$0xff]  }
 0x260   : > { %9436 = vmatprep.subr.bf16.mxu0 %v19138_v29  ;;  %10133 = vmatprep.subr.bf16.mxu1 %v19141_v30  ;;  %v9709_v40 = vpop.f32.mrb[3].mxu1  ;;  %v19204_v29 = vld [vmem:[%s21840_s7 + $0x6f4] ss:$52 sps:$4 sm:$0xff]   ;;  %v19207_v30 = vld [vmem:[%s21840_s7 + $0x1a84] ss:$52 sps:$4 sm:$0xff]  }
 0x261   : > { %v19210_v37 = vld [vmem:[%s21840_s7 + $0x75c] ss:$52 sps:$4 sm:$0xff]  }
 0x262   : > { %v19211_v40 = vld [vmem:[%s21840_s7 + $0x1ae8] ss:$52 sps:$4 sm:$0xff]  }
 0x263   : > { %9437 = vmatpush1.bf16.msra.mxu0 %v19136_v33  ;;  %10134 = vmatpush1.bf16.msra.mxu1 %v19139_v36  ;;  %v19202_v33 = vld [vmem:[%s21840_s7 + $0x6f0] ss:$52 sps:$4 sm:$0xff]   ;;  %v19205_v36 = vld [vmem:[%s21840_s7 + $0x1a80] ss:$52 sps:$4 sm:$0xff]  }
 0x264   : > { %9438 = vmatprep.subr.bf16.mxu0 %v19144_v38  ;;  %10135 = vmatprep.subr.bf16.mxu1 %v19147_v39  ;;  %v19213_v38 = vld [vmem:[%s21840_s7 + $0x1aec] ss:$52 sps:$4 sm:$0xff]  }
 0x265   : > { %v19208_v39 = vld [vmem:[%s21840_s7 + $0x758] ss:$52 sps:$4 sm:$0xff]  }
 0x267   : > { %9439 = vmatpush1.bf16.msra.mxu0 %v19142_v57  ;;  %10136 = vmatpush1.bf16.msra.mxu1 %v19145_v41  ;;  %v19216_v57 = vld [vmem:[%s21840_s7 + $0x7c4] ss:$52 sps:$4 sm:$0xff]   ;;  %v19219_v41 = vld [vmem:[%s21840_s7 + $0x1b54] ss:$52 sps:$4 sm:$0xff]  }
 0x268   : > { %9440 = vmatprep.subr.bf16.mxu0 %v19150_v45  ;;  %10137 = vmatprep.subr.bf16.mxu1 %v19153_v46  ;;  %v19214_v45 = vld [vmem:[%s21840_s7 + $0x7c0] ss:$52 sps:$4 sm:$0xff]   ;;  %v19217_v46 = vld [vmem:[%s21840_s7 + $0x1b50] ss:$52 sps:$4 sm:$0xff]  }
 0x26b   : > { %9441 = vmatpush1.bf16.msra.mxu0 %v19148_v47  ;;  %10138 = vmatpush1.bf16.msra.mxu1 %v19151_v15  ;;  %v19222_v47 = vld [vmem:[%s21840_s7 + $0x82c] ss:$52 sps:$4 sm:$0xff]   ;;  %v19225_v15 = vld [vmem:[%s21840_s7 + $0x1bbc] ss:$52 sps:$4 sm:$0xff]  }
 0x26c   : > { %9442 = vmatprep.subr.bf16.mxu0 %v19156_v51  ;;  %10139 = vmatprep.subr.bf16.mxu1 %v19159_v52  ;;  %v19220_v51 = vld [vmem:[%s21840_s7 + $0x828] ss:$52 sps:$4 sm:$0xff]   ;;  %v19223_v52 = vld [vmem:[%s21840_s7 + $0x1bb8] ss:$52 sps:$4 sm:$0xff]  }
 0x26f   : > { %9443 = vmatpush1.bf16.msra.mxu0 %v19154_v53  ;;  %10140 = vmatpush1.bf16.msra.mxu1 %v19157_v54  ;;  %v19228_v53 = vld [vmem:[%s21840_s7 + $0x894] ss:$52 sps:$4 sm:$0xff]   ;;  %v19231_v54 = vld [vmem:[%s21840_s7 + $0x1c24] ss:$52 sps:$4 sm:$0xff]  }
 0x270   : > { %9444 = vmatprep.subr.bf16.mxu0 %v19162_v55  ;;  %10141 = vmatprep.subr.bf16.mxu1 %v19165_v56  ;;  %v19226_v55 = vld [vmem:[%s21840_s7 + $0x890] ss:$52 sps:$4 sm:$0xff]   ;;  %v19229_v56 = vld [vmem:[%s21840_s7 + $0x1c20] ss:$52 sps:$4 sm:$0xff]  }
 0x273   : > { %9445 = vmatpush1.bf16.msra.mxu0 %v19160_v59  ;;  %10142 = vmatpush1.bf16.msra.mxu1 %v19163_v60  ;;  %v19234_v59 = vld [vmem:[%s21840_s7 + $0x8fc] ss:$52 sps:$4 sm:$0xff]   ;;  %v19237_v60 = vld [vmem:[%s21840_s7 + $0x1c8c] ss:$52 sps:$4 sm:$0xff]  }
 0x274   : > { %9446 = vmatprep.subr.bf16.mxu0 %v19168_v63  ;;  %10143 = vmatprep.subr.bf16.mxu1 %v19171_v0  ;;  %v19232_v63 = vld [vmem:[%s21840_s7 + $0x8f8] ss:$52 sps:$4 sm:$0xff]   ;;  %v19235_v0 = vld [vmem:[%s21840_s7 + $0x1c88] ss:$52 sps:$4 sm:$0xff]  }
 0x277   : > { %9447 = vmatpush1.bf16.msra.mxu0 %v19166_v1  ;;  %10144 = vmatpush1.bf16.msra.mxu1 %v19169_v6  ;;  %v19240_v1 = vld [vmem:[%s21840_s7 + $0x964] ss:$52 sps:$4 sm:$0xff]   ;;  %v19243_v6 = vld [vmem:[%s21840_s7 + $0x1cf4] ss:$52 sps:$4 sm:$0xff]  }
 0x278   : > { %9448 = vmatprep.subr.bf16.mxu0 %v19174_v7  ;;  %10145 = vmatprep.subr.bf16.mxu1 %v19177_v34  ;;  %v19238_v7 = vld [vmem:[%s21840_s7 + $0x960] ss:$52 sps:$4 sm:$0xff]   ;;  %v19241_v34 = vld [vmem:[%s21840_s7 + $0x1cf0] ss:$52 sps:$4 sm:$0xff]  }
 0x27b   : > { %9449 = vmatpush1.bf16.msra.mxu0 %v19172_v35  ;;  %10146 = vmatpush1.bf16.msra.mxu1 %v19175_v58  ;;  %v19246_v35 = vld [vmem:[%s21840_s7 + $0x9cc] ss:$52 sps:$4 sm:$0xff]   ;;  %v19249_v58 = vld [vmem:[%s21840_s7 + $0x1d5c] ss:$52 sps:$4 sm:$0xff]  }
 0x27c   : > { %9450 = vmatprep.subr.bf16.mxu0 %v19180_v9  ;;  %10147 = vmatprep.subr.bf16.mxu1 %v19183_v10  ;;  %v19244_v9 = vld [vmem:[%s21840_s7 + $0x9c8] ss:$52 sps:$4 sm:$0xff]   ;;  %v19247_v10 = vld [vmem:[%s21840_s7 + $0x1d58] ss:$52 sps:$4 sm:$0xff]  }
 0x27f   : > { %9451 = vmatpush1.bf16.msra.mxu0 %v19178_v11  ;;  %10148 = vmatpush1.bf16.msra.mxu1 %v19181_v12  ;;  %v19252_v11 = vld [vmem:[%s21840_s7 + $0xa34] ss:$52 sps:$4 sm:$0xff]   ;;  %v19255_v12 = vld [vmem:[%s21840_s7 + $0x1dc4] ss:$52 sps:$4 sm:$0xff]  }
 0x280   : > { %9452 = vmatprep.subr.bf16.mxu0 %v19186_v13  ;;  %10149 = vmatprep.subr.bf16.mxu1 %v19189_v14  ;;  %v19250_v13 = vld [vmem:[%s21840_s7 + $0xa30] ss:$52 sps:$4 sm:$0xff]   ;;  %v19253_v14 = vld [vmem:[%s21840_s7 + $0x1dc0] ss:$52 sps:$4 sm:$0xff]  }
 0x283   : > { %9453 = vmatpush1.bf16.msra.mxu0 %v19184_v16  ;;  %10150 = vmatpush1.bf16.msra.mxu1 %v19187_v17  ;;  %v19258_v16 = vld [vmem:[%s21840_s7 + $0xa9c] ss:$52 sps:$4 sm:$0xff]   ;;  %v19261_v17 = vld [vmem:[%s21840_s7 + $0x1e2c] ss:$52 sps:$4 sm:$0xff]  }
 0x284   : > { %9454 = vmatprep.subr.bf16.mxu0 %v19192_v18  ;;  %10151 = vmatprep.subr.bf16.mxu1 %v19195_v19  ;;  %v19256_v18 = vld [vmem:[%s21840_s7 + $0xa98] ss:$52 sps:$4 sm:$0xff]   ;;  %v19259_v19 = vld [vmem:[%s21840_s7 + $0x1e28] ss:$52 sps:$4 sm:$0xff]  }
 0x287   : > { %9455 = vmatpush1.bf16.msra.mxu0 %v19190_v20  ;;  %10152 = vmatpush1.bf16.msra.mxu1 %v19193_v23  ;;  %v19264_v20 = vld [vmem:[%s21840_s7 + $0xb04] ss:$52 sps:$4 sm:$0xff]   ;;  %v19267_v23 = vld [vmem:[%s21840_s7 + $0x1e94] ss:$52 sps:$4 sm:$0xff]  }
 0x288   : > { %9465 = vmatprep.subr.bf16.mxu0 %v19198_v24  ;;  %10162 = vmatprep.subr.bf16.mxu1 %v19201_v25  ;;  %v19262_v24 = vld [vmem:[%s21840_s7 + $0xb00] ss:$52 sps:$4 sm:$0xff]   ;;  %v19265_v25 = vld [vmem:[%s21840_s7 + $0x1e90] ss:$52 sps:$4 sm:$0xff]  }
 0x28a   : > { %9457 = vmatmul.mubr.bf16.vlgmr.msra.gmra.mrb[4].mxu0 %v21955_v21  ;;  %10154 = vmatmul.mubr.bf16.vlgmr.msra.gmra.mrb[4].mxu1 %v21957_v22 }
 0x28b   : > { %9466 = vmatpush1.bf16.msra.mxu0 %v19196_v26  ;;  %10163 = vmatpush1.bf16.msra.mxu1 %v19199_v28  ;;  %v19270_v26 = vld [vmem:[%s21840_s7 + $0xb6c] ss:$52 sps:$4 sm:$0xff]   ;;  %v19273_v28 = vld [vmem:[%s21840_s7 + $0x1efc] ss:$52 sps:$4 sm:$0xff]  }
 0x28c   : > { %9467 = vmatprep.subr.bf16.mxu0 %v19204_v29  ;;  %10164 = vmatprep.subr.bf16.mxu1 %v19207_v30  ;;  %v19268_v29 = vld [vmem:[%s21840_s7 + $0xb68] ss:$52 sps:$4 sm:$0xff]   ;;  %v19271_v30 = vld [vmem:[%s21840_s7 + $0x1ef8] ss:$52 sps:$4 sm:$0xff]  }
 0x28d   : > { %9497 = vmatprep.mubr.bf16.mxu0 %v21963_v27  ;;  %10194 = vmatprep.mubr.bf16.mxu1 %v22006_v61 }
 0x28f   : > { %9468 = vmatpush1.bf16.msra.mxu0 %v19202_v33  ;;  %10165 = vmatpush1.bf16.msra.mxu1 %v19205_v36  ;;  %v19276_v33 = vld [vmem:[%s21840_s7 + $0xbd4] ss:$52 sps:$4 sm:$0xff]   ;;  %v19279_v36 = vld [vmem:[%s21840_s7 + $0x1f64] ss:$52 sps:$4 sm:$0xff]  }
 0x290   : > { %9469 = vmatprep.subr.bf16.mxu0 %v19210_v37  ;;  %10166 = vmatprep.subr.bf16.mxu1 %v19213_v38  ;;  %v19274_v37 = vld [vmem:[%s21840_s7 + $0xbd0] ss:$52 sps:$4 sm:$0xff]   ;;  %v19277_v38 = vld [vmem:[%s21840_s7 + $0x1f60] ss:$52 sps:$4 sm:$0xff]  }
 0x293   : > { %9470 = vmatpush1.bf16.msra.mxu0 %v19208_v39  ;;  %10167 = vmatpush1.bf16.msra.mxu1 %v19211_v40  ;;  %v19282_v39 = vld [vmem:[%s21840_s7 + $0xc3c] ss:$52 sps:$4 sm:$0xff]   ;;  %v19285_v40 = vld [vmem:[%s21840_s7 + $0x1fcc] ss:$52 sps:$4 sm:$0xff]  }
 0x294   : > { %9471 = vmatprep.subr.bf16.mxu0 %v19216_v57  ;;  %10168 = vmatprep.subr.bf16.mxu1 %v19219_v41  ;;  %v19280_v57 = vld [vmem:[%s21840_s7 + $0xc38] ss:$52 sps:$4 sm:$0xff]   ;;  %v19283_v41 = vld [vmem:[%s21840_s7 + $0x1fc8] ss:$52 sps:$4 sm:$0xff]  }
 0x297   : > { %9472 = vmatpush1.bf16.msra.mxu0 %v19214_v45  ;;  %10169 = vmatpush1.bf16.msra.mxu1 %v19217_v46  ;;  %v19288_v45 = vld [vmem:[%s21840_s7 + $0xca4] ss:$52 sps:$4 sm:$0xff]   ;;  %v19291_v46 = vld [vmem:[%s21840_s7 + $0x2034] ss:$52 sps:$4 sm:$0xff]  }
 0x298   : > { %9473 = vmatprep.subr.bf16.mxu0 %v19222_v47  ;;  %10170 = vmatprep.subr.bf16.mxu1 %v19225_v15  ;;  %v19286_v47 = vld [vmem:[%s21840_s7 + $0xca0] ss:$52 sps:$4 sm:$0xff]   ;;  %v19289_v15 = vld [vmem:[%s21840_s7 + $0x2030] ss:$52 sps:$4 sm:$0xff]  }
 0x29b   : > { %9474 = vmatpush1.bf16.msra.mxu0 %v19220_v51  ;;  %10171 = vmatpush1.bf16.msra.mxu1 %v19223_v52  ;;  %v19294_v51 = vld [vmem:[%s21840_s7 + $0xd0c] ss:$52 sps:$4 sm:$0xff]   ;;  %v19297_v52 = vld [vmem:[%s21840_s7 + $0x209c] ss:$52 sps:$4 sm:$0xff]  }
 0x29c   : > { %9475 = vmatprep.subr.bf16.mxu0 %v19228_v53  ;;  %10172 = vmatprep.subr.bf16.mxu1 %v19231_v54  ;;  %v19292_v53 = vld [vmem:[%s21840_s7 + $0xd08] ss:$52 sps:$4 sm:$0xff]   ;;  %v19295_v54 = vld [vmem:[%s21840_s7 + $0x2098] ss:$52 sps:$4 sm:$0xff]  }
 0x29f   : > { %9476 = vmatpush1.bf16.msra.mxu0 %v19226_v55  ;;  %10173 = vmatpush1.bf16.msra.mxu1 %v19229_v56  ;;  %v19300_v55 = vld [vmem:[%s21840_s7 + $0xd74] ss:$52 sps:$4 sm:$0xff]   ;;  %v19303_v56 = vld [vmem:[%s21840_s7 + $0x2104] ss:$52 sps:$4 sm:$0xff]  }
 0x2a0   : > { %9477 = vmatprep.subr.bf16.mxu0 %v19234_v59  ;;  %10174 = vmatprep.subr.bf16.mxu1 %v19237_v60  ;;  %v19298_v59 = vld [vmem:[%s21840_s7 + $0xd70] ss:$52 sps:$4 sm:$0xff]   ;;  %v19301_v60 = vld [vmem:[%s21840_s7 + $0x2100] ss:$52 sps:$4 sm:$0xff]  }
 0x2a3   : > { %9478 = vmatpush1.bf16.msra.mxu0 %v19232_v63  ;;  %10175 = vmatpush1.bf16.msra.mxu1 %v19235_v0  ;;  %v19306_v63 = vld [vmem:[%s21840_s7 + $0xddc] ss:$52 sps:$4 sm:$0xff]   ;;  %v19309_v0 = vld [vmem:[%s21840_s7 + $0x216c] ss:$52 sps:$4 sm:$0xff]  }
 0x2a4   : > { %9479 = vmatprep.subr.bf16.mxu0 %v19240_v1  ;;  %10176 = vmatprep.subr.bf16.mxu1 %v19243_v6  ;;  %v19304_v1 = vld [vmem:[%s21840_s7 + $0xdd8] ss:$52 sps:$4 sm:$0xff]   ;;  %v19307_v6 = vld [vmem:[%s21840_s7 + $0x2168] ss:$52 sps:$4 sm:$0xff]  }
 0x2a7   : > { %9480 = vmatpush1.bf16.msra.mxu0 %v19238_v7  ;;  %10177 = vmatpush1.bf16.msra.mxu1 %v19241_v34  ;;  %v19312_v7 = vld [vmem:[%s21840_s7 + $0xe44] ss:$52 sps:$4 sm:$0xff]   ;;  %v19315_v34 = vld [vmem:[%s21840_s7 + $0x21d4] ss:$52 sps:$4 sm:$0xff]  }
 0x2a8   : > { %9481 = vmatprep.subr.bf16.mxu0 %v19246_v35  ;;  %10178 = vmatprep.subr.bf16.mxu1 %v19249_v58  ;;  %v19310_v35 = vld [vmem:[%s21840_s7 + $0xe40] ss:$52 sps:$4 sm:$0xff]   ;;  %v19313_v58 = vld [vmem:[%s21840_s7 + $0x21d0] ss:$52 sps:$4 sm:$0xff]  }
 0x2ab   : > { %9482 = vmatpush1.bf16.msra.mxu0 %v19244_v9  ;;  %10179 = vmatpush1.bf16.msra.mxu1 %v19247_v10  ;;  %v19318_v9 = vld [vmem:[%s21840_s7 + $0xeac] ss:$52 sps:$4 sm:$0xff]   ;;  %v19321_v10 = vld [vmem:[%s21840_s7 + $0x223c] ss:$52 sps:$4 sm:$0xff]  }
 0x2ac   : > { %9483 = vmatprep.subr.bf16.mxu0 %v19252_v11  ;;  %10180 = vmatprep.subr.bf16.mxu1 %v19255_v12  ;;  %v19316_v11 = vld [vmem:[%s21840_s7 + $0xea8] ss:$52 sps:$4 sm:$0xff]   ;;  %v19319_v12 = vld [vmem:[%s21840_s7 + $0x2238] ss:$52 sps:$4 sm:$0xff]  }
 0x2af   : > { %9484 = vmatpush1.bf16.msra.mxu0 %v19250_v13  ;;  %10181 = vmatpush1.bf16.msra.mxu1 %v19253_v14  ;;  %v19324_v13 = vld [vmem:[%s21840_s7 + $0xf14] ss:$52 sps:$4 sm:$0xff]   ;;  %v19327_v14 = vld [vmem:[%s21840_s7 + $0x22a4] ss:$52 sps:$4 sm:$0xff]  }
 0x2b0   : > { %9485 = vmatprep.subr.bf16.mxu0 %v19258_v16  ;;  %10182 = vmatprep.subr.bf16.mxu1 %v19261_v17  ;;  %v19322_v16 = vld [vmem:[%s21840_s7 + $0xf10] ss:$52 sps:$4 sm:$0xff]   ;;  %v19325_v17 = vld [vmem:[%s21840_s7 + $0x22a0] ss:$52 sps:$4 sm:$0xff]  }
 0x2b3   : > { %9486 = vmatpush1.bf16.msra.mxu0 %v19256_v18  ;;  %10183 = vmatpush1.bf16.msra.mxu1 %v19259_v19  ;;  %v19330_v18 = vld [vmem:[%s21840_s7 + $0xf7c] ss:$52 sps:$4 sm:$0xff]   ;;  %v19333_v19 = vld [vmem:[%s21840_s7 + $0x230c] ss:$52 sps:$4 sm:$0xff]  }
 0x2b4   : > { %9487 = vmatprep.subr.bf16.mxu0 %v19264_v20  ;;  %10184 = vmatprep.subr.bf16.mxu1 %v19267_v23  ;;  %v19328_v20 = vld [vmem:[%s21840_s7 + $0xf78] ss:$52 sps:$4 sm:$0xff]   ;;  %v19331_v23 = vld [vmem:[%s21840_s7 + $0x2308] ss:$52 sps:$4 sm:$0xff]  }
 0x2b7   : > { %9488 = vmatpush1.bf16.msra.mxu0 %v19262_v24  ;;  %10185 = vmatpush1.bf16.msra.mxu1 %v19265_v25  ;;  %v19336_v24 = vld [vmem:[%s21840_s7 + $0xfe4] ss:$52 sps:$4 sm:$0xff]   ;;  %v19339_v25 = vld [vmem:[%s21840_s7 + $0x2374] ss:$52 sps:$4 sm:$0xff]  }
 0x2b8   : > { %9489 = vmatprep.subr.bf16.mxu0 %v19270_v26  ;;  %10186 = vmatprep.subr.bf16.mxu1 %v19273_v28  ;;  %v19334_v26 = vld [vmem:[%s21840_s7 + $0xfe0] ss:$52 sps:$4 sm:$0xff]   ;;  %v19337_v28 = vld [vmem:[%s21840_s7 + $0x2370] ss:$52 sps:$4 sm:$0xff]  }
 0x2bb   : > { %9490 = vmatpush1.bf16.msra.mxu0 %v19268_v29  ;;  %10187 = vmatpush1.bf16.msra.mxu1 %v19271_v30  ;;  %v19342_v29 = vld [vmem:[%s21840_s7 + $0x104c] ss:$52 sps:$4 sm:$0xff]   ;;  %v19345_v30 = vld [vmem:[%s21840_s7 + $0x23dc] ss:$52 sps:$4 sm:$0xff]  }
 0x2bc   : > { %9491 = vmatprep.subr.bf16.mxu0 %v19276_v33  ;;  %10188 = vmatprep.subr.bf16.mxu1 %v19279_v36  ;;  %v19340_v33 = vld [vmem:[%s21840_s7 + $0x1048] ss:$52 sps:$4 sm:$0xff]   ;;  %v19343_v36 = vld [vmem:[%s21840_s7 + $0x23d8] ss:$52 sps:$4 sm:$0xff]  }
 0x2bf   : > { %9492 = vmatpush1.bf16.msra.mxu0 %v19274_v37  ;;  %10189 = vmatpush1.bf16.msra.mxu1 %v19277_v38  ;;  %v19348_v37 = vld [vmem:[%s21840_s7 + $0x10b4] ss:$52 sps:$4 sm:$0xff]   ;;  %v19351_v38 = vld [vmem:[%s21840_s7 + $0x2444] ss:$52 sps:$4 sm:$0xff]  }
 0x2c0   : > { %9493 = vmatprep.subr.bf16.mxu0 %v19282_v39  ;;  %10190 = vmatprep.subr.bf16.mxu1 %v19285_v40  ;;  %v19346_v39 = vld [vmem:[%s21840_s7 + $0x10b0] ss:$52 sps:$4 sm:$0xff]   ;;  %v19349_v40 = vld [vmem:[%s21840_s7 + $0x2440] ss:$52 sps:$4 sm:$0xff]  }
 0x2c3   : > { %9494 = vmatpush1.bf16.msra.mxu0 %v19280_v57  ;;  %10191 = vmatpush1.bf16.msra.mxu1 %v19283_v41  ;;  %v19354_v57 = vld [vmem:[%s21840_s7 + $0x111c] ss:$52 sps:$4 sm:$0xff]   ;;  %v19357_v41 = vld [vmem:[%s21840_s7 + $0x24ac] ss:$52 sps:$4 sm:$0xff]  }
 0x2c4   : > { %9495 = vmatprep.subr.bf16.mxu0 %v19288_v45  ;;  %10192 = vmatprep.subr.bf16.mxu1 %v19291_v46  ;;  %v19352_v45 = vld [vmem:[%s21840_s7 + $0x1118] ss:$52 sps:$4 sm:$0xff]   ;;  %v19355_v46 = vld [vmem:[%s21840_s7 + $0x24a8] ss:$52 sps:$4 sm:$0xff]  }
 0x2c7   : > { %9496 = vmatpush1.bf16.msra.mxu0 %v19286_v47  ;;  %10193 = vmatpush1.bf16.msra.mxu1 %v19289_v15  ;;  %v19360_v47 = vld [vmem:[%s21840_s7 + $0x1184] ss:$52 sps:$4 sm:$0xff]   ;;  %v19363_v15 = vld [vmem:[%s21840_s7 + $0x2514] ss:$52 sps:$4 sm:$0xff]  }
 0x2c8   : > { %9506 = vmatprep.subr.bf16.mxu0 %v19294_v51  ;;  %10203 = vmatprep.subr.bf16.mxu1 %v19297_v52  ;;  %v19358_v51 = vld [vmem:[%s21840_s7 + $0x1180] ss:$52 sps:$4 sm:$0xff]   ;;  %v19361_v52 = vld [vmem:[%s21840_s7 + $0x2510] ss:$52 sps:$4 sm:$0xff]  }
 0x2ca   : > { %9498 = vmatmul.mubr.bf16.vlgmr.msra.gmra.mrb[4].mxu0 %v22058_v42  ;;  %10195 = vmatmul.mubr.bf16.vlgmr.msra.gmra.mrb[4].mxu1 %v22062_v43 }
 0x2cb   : > { %9507 = vmatpush1.bf16.msra.mxu0 %v19292_v53  ;;  %10204 = vmatpush1.bf16.msra.mxu1 %v19295_v54  ;;  %v19366_v53 = vld [vmem:[%s21840_s7 + $0x11ec] ss:$52 sps:$4 sm:$0xff]   ;;  %v19369_v54 = vld [vmem:[%s21840_s7 + $0x257c] ss:$52 sps:$4 sm:$0xff]  }
 0x2cc   : > { %9508 = vmatprep.subr.bf16.mxu0 %v19300_v55  ;;  %10205 = vmatprep.subr.bf16.mxu1 %v19303_v56  ;;  %v19364_v55 = vld [vmem:[%s21840_s7 + $0x11e8] ss:$52 sps:$4 sm:$0xff]   ;;  %v19367_v56 = vld [vmem:[%s21840_s7 + $0x2578] ss:$52 sps:$4 sm:$0xff]  }
 0x2cd   : > { %9538 = vmatprep.mubr.bf16.mxu0 %v22067_v48  ;;  %10235 = vmatprep.mubr.bf16.mxu1 %v22069_v49 }
 0x2cf   : > { %9509 = vmatpush1.bf16.msra.mxu0 %v19298_v59  ;;  %10206 = vmatpush1.bf16.msra.mxu1 %v19301_v60  ;;  %v19372_v59 = vld [vmem:[%s21840_s7 + $0x1254] ss:$52 sps:$4 sm:$0xff]   ;;  %v19375_v60 = vld [vmem:[%s21840_s7 + $0x25e4] ss:$52 sps:$4 sm:$0xff]  }
 0x2d0   : > { %9510 = vmatprep.subr.bf16.mxu0 %v19306_v63  ;;  %10207 = vmatprep.subr.bf16.mxu1 %v19309_v0  ;;  %v19370_v63 = vld [vmem:[%s21840_s7 + $0x1250] ss:$52 sps:$4 sm:$0xff]   ;;  %v19373_v0 = vld [vmem:[%s21840_s7 + $0x25e0] ss:$52 sps:$4 sm:$0xff]  }
 0x2d3   : > { %9511 = vmatpush1.bf16.msra.mxu0 %v19304_v1  ;;  %10208 = vmatpush1.bf16.msra.mxu1 %v19307_v6  ;;  %v19378_v1 = vld [vmem:[%s21840_s7 + $0x12bc] ss:$52 sps:$4 sm:$0xff]   ;;  %v19381_v6 = vld [vmem:[%s21840_s7 + $0x264c] ss:$52 sps:$4 sm:$0xff]  }
 0x2d4   : > { %9512 = vmatprep.subr.bf16.mxu0 %v19312_v7  ;;  %10209 = vmatprep.subr.bf16.mxu1 %v19315_v34  ;;  %v19376_v7 = vld [vmem:[%s21840_s7 + $0x12b8] ss:$52 sps:$4 sm:$0xff]   ;;  %v19379_v34 = vld [vmem:[%s21840_s7 + $0x2648] ss:$52 sps:$4 sm:$0xff]  }
 0x2d7   : > { %9513 = vmatpush1.bf16.msra.mxu0 %v19310_v35  ;;  %10210 = vmatpush1.bf16.msra.mxu1 %v19313_v58  ;;  %v19384_v35 = vld [vmem:[%s21840_s7 + $0x1324] ss:$52 sps:$4 sm:$0xff]   ;;  %v19387_v58 = vld [vmem:[%s21840_s7 + $0x26b4] ss:$52 sps:$4 sm:$0xff]  }
 0x2d8   : > { %9514 = vmatprep.subr.bf16.mxu0 %v19318_v9  ;;  %10211 = vmatprep.subr.bf16.mxu1 %v19321_v10  ;;  %v19382_v9 = vld [vmem:[%s21840_s7 + $0x1320] ss:$52 sps:$4 sm:$0xff]   ;;  %v19385_v10 = vld [vmem:[%s21840_s7 + $0x26b0] ss:$52 sps:$4 sm:$0xff]  }
 0x2db   : > { %9515 = vmatpush1.bf16.msra.mxu0 %v19316_v11  ;;  %10212 = vmatpush1.bf16.msra.mxu1 %v19319_v12  ;;  %v19390_v11 = vld [vmem:[%s21840_s7 + $0x14] ss:$52 sps:$4 sm:$0xff]   ;;  %v19393_v12 = vld [vmem:[%s21840_s7 + $0x271c] ss:$52 sps:$4 sm:$0xff]  }
 0x2dc   : > { %9516 = vmatprep.subr.bf16.mxu0 %v19324_v13  ;;  %10213 = vmatprep.subr.bf16.mxu1 %v19327_v14  ;;  %v19388_v13 = vld [vmem:[%s21840_s7 + $0x10] ss:$52 sps:$4 sm:$0xff]   ;;  %v19391_v14 = vld [vmem:[%s21840_s7 + $0x2718] ss:$52 sps:$4 sm:$0xff]  }
 0x2df   : > { %9517 = vmatpush1.bf16.msra.mxu0 %v19322_v16  ;;  %10214 = vmatpush1.bf16.msra.mxu1 %v19325_v17  ;;  %v19396_v16 = vld [vmem:[%s21840_s7 + $0x7c] ss:$52 sps:$4 sm:$0xff]   ;;  %v19399_v17 = vld [vmem:[%s21840_s7 + $0x2784] ss:$52 sps:$4 sm:$0xff]  }
 0x2e0   : > { %9518 = vmatprep.subr.bf16.mxu0 %v19330_v18  ;;  %10215 = vmatprep.subr.bf16.mxu1 %v19333_v19  ;;  %v19394_v18 = vld [vmem:[%s21840_s7 + $0x78] ss:$52 sps:$4 sm:$0xff]   ;;  %v19397_v19 = vld [vmem:[%s21840_s7 + $0x2780] ss:$52 sps:$4 sm:$0xff]  }
 0x2e3   : > { %9519 = vmatpush1.bf16.msra.mxu0 %v19328_v20  ;;  %10216 = vmatpush1.bf16.msra.mxu1 %v19331_v23  ;;  %v19402_v20 = vld [vmem:[%s21840_s7 + $0xe4] ss:$52 sps:$4 sm:$0xff]   ;;  %v19405_v23 = vld [vmem:[%s21840_s7 + $0x27ec] ss:$52 sps:$4 sm:$0xff]  }
 0x2e4   : > { %9520 = vmatprep.subr.bf16.mxu0 %v19336_v24  ;;  %10217 = vmatprep.subr.bf16.mxu1 %v19339_v25  ;;  %v19400_v24 = vld [vmem:[%s21840_s7 + $0xe0] ss:$52 sps:$4 sm:$0xff]   ;;  %v19403_v25 = vld [vmem:[%s21840_s7 + $0x27e8] ss:$52 sps:$4 sm:$0xff]  }
 0x2e7   : > { %9521 = vmatpush1.bf16.msra.mxu0 %v19334_v26  ;;  %10218 = vmatpush1.bf16.msra.mxu1 %v19337_v28  ;;  %v19408_v26 = vld [vmem:[%s21840_s7 + $0x14c] ss:$52 sps:$4 sm:$0xff]   ;;  %v19411_v28 = vld [vmem:[%s21840_s7 + $0x2854] ss:$52 sps:$4 sm:$0xff]  }
 0x2e8   : > { %9522 = vmatprep.subr.bf16.mxu0 %v19342_v29  ;;  %10219 = vmatprep.subr.bf16.mxu1 %v19345_v30  ;;  %v19406_v29 = vld [vmem:[%s21840_s7 + $0x148] ss:$52 sps:$4 sm:$0xff]   ;;  %v19409_v30 = vld [vmem:[%s21840_s7 + $0x2850] ss:$52 sps:$4 sm:$0xff]  }
 0x2eb   : > { %9523 = vmatpush1.bf16.msra.mxu0 %v19340_v33  ;;  %10220 = vmatpush1.bf16.msra.mxu1 %v19343_v36  ;;  %v19414_v33 = vld [vmem:[%s21840_s7 + $0x1b4] ss:$52 sps:$4 sm:$0xff]   ;;  %v19417_v36 = vld [vmem:[%s21840_s7 + $0x28bc] ss:$52 sps:$4 sm:$0xff]  }
 0x2ec   : > { %9524 = vmatprep.subr.bf16.mxu0 %v19348_v37  ;;  %10221 = vmatprep.subr.bf16.mxu1 %v19351_v38  ;;  %v19412_v37 = vld [vmem:[%s21840_s7 + $0x1b0] ss:$52 sps:$4 sm:$0xff]   ;;  %v19415_v38 = vld [vmem:[%s21840_s7 + $0x28b8] ss:$52 sps:$4 sm:$0xff]  }
 0x2ef   : > { %9525 = vmatpush1.bf16.msra.mxu0 %v19346_v39  ;;  %10222 = vmatpush1.bf16.msra.mxu1 %v19349_v40  ;;  %v19420_v39 = vld [vmem:[%s21840_s7 + $0x21c] ss:$52 sps:$4 sm:$0xff]   ;;  %v19423_v40 = vld [vmem:[%s21840_s7 + $0x2924] ss:$52 sps:$4 sm:$0xff]  }
 0x2f0   : > { %9526 = vmatprep.subr.bf16.mxu0 %v19354_v57  ;;  %10223 = vmatprep.subr.bf16.mxu1 %v19357_v41  ;;  %v19418_v57 = vld [vmem:[%s21840_s7 + $0x218] ss:$52 sps:$4 sm:$0xff]   ;;  %v19421_v41 = vld [vmem:[%s21840_s7 + $0x2920] ss:$52 sps:$4 sm:$0xff]  }
 0x2f3   : > { %9527 = vmatpush1.bf16.msra.mxu0 %v19352_v45  ;;  %10224 = vmatpush1.bf16.msra.mxu1 %v19355_v46  ;;  %v19426_v45 = vld [vmem:[%s21840_s7 + $0x284] ss:$52 sps:$4 sm:$0xff]   ;;  %v19429_v46 = vld [vmem:[%s21840_s7 + $0x298c] ss:$52 sps:$4 sm:$0xff]  }
 0x2f4   : > { %9528 = vmatprep.subr.bf16.mxu0 %v19360_v47  ;;  %10225 = vmatprep.subr.bf16.mxu1 %v19363_v15 }
 0x2f7   : > { %9529 = vmatpush1.bf16.msra.mxu0 %v19358_v51  ;;  %10226 = vmatpush1.bf16.msra.mxu1 %v19361_v52  ;;  %v19424_v52 = vld [vmem:[%s21840_s7 + $0x280] ss:$52 sps:$4 sm:$0xff]  }
 0x2f8   : > { %9530 = vmatprep.subr.bf16.mxu0 %v19366_v53  ;;  %10227 = vmatprep.subr.bf16.mxu1 %v19369_v54  ;;  %v19427_v53 = vld [vmem:[%s21840_s7 + $0x2988] ss:$52 sps:$4 sm:$0xff]  }
 0x2fb   : > { %9531 = vmatpush1.bf16.msra.mxu0 %v19364_v55  ;;  %10228 = vmatpush1.bf16.msra.mxu1 %v19367_v56  ;;  %v19432_v55 = vld [vmem:[%s21840_s7 + $0x2ec] ss:$52 sps:$4 sm:$0xff]   ;;  %v19435_v56 = vld [vmem:[%s21840_s7 + $0x29f4] ss:$52 sps:$4 sm:$0xff]  }
 0x2fc   : > { %9532 = vmatprep.subr.bf16.mxu0 %v19372_v59  ;;  %10229 = vmatprep.subr.bf16.mxu1 %v19375_v60  ;;  %v19430_v59 = vld [vmem:[%s21840_s7 + $0x2e8] ss:$52 sps:$4 sm:$0xff]   ;;  %v19433_v60 = vld [vmem:[%s21840_s7 + $0x29f0] ss:$52 sps:$4 sm:$0xff]  }
 0x2ff   : > { %9533 = vmatpush1.bf16.msra.mxu0 %v19370_v63  ;;  %10230 = vmatpush1.bf16.msra.mxu1 %v19373_v0  ;;  %v19438_v63 = vld [vmem:[%s21840_s7 + $0x354] ss:$52 sps:$4 sm:$0xff]   ;;  %v19441_v0 = vld [vmem:[%s21840_s7 + $0x2a5c] ss:$52 sps:$4 sm:$0xff]  }
 0x300   : > { %9534 = vmatprep.subr.bf16.mxu0 %v19378_v1  ;;  %10231 = vmatprep.subr.bf16.mxu1 %v19381_v6  ;;  %v19436_v1 = vld [vmem:[%s21840_s7 + $0x350] ss:$52 sps:$4 sm:$0xff]   ;;  %v19439_v6 = vld [vmem:[%s21840_s7 + $0x2a58] ss:$52 sps:$4 sm:$0xff]  }
 0x303   : > { %9535 = vmatpush1.bf16.msra.mxu0 %v19376_v7  ;;  %10232 = vmatpush1.bf16.msra.mxu1 %v19379_v34  ;;  %v19444_v7 = vld [vmem:[%s21840_s7 + $0x3bc] ss:$52 sps:$4 sm:$0xff]   ;;  %v19447_v34 = vld [vmem:[%s21840_s7 + $0x2ac4] ss:$52 sps:$4 sm:$0xff]  }
 0x304   : > { %9536 = vmatprep.subr.bf16.mxu0 %v19384_v35  ;;  %10233 = vmatprep.subr.bf16.mxu1 %v19387_v58  ;;  %v19442_v35 = vld [vmem:[%s21840_s7 + $0x3b8] ss:$52 sps:$4 sm:$0xff]   ;;  %v19445_v58 = vld [vmem:[%s21840_s7 + $0x2ac0] ss:$52 sps:$4 sm:$0xff]  }
 0x307   : > { %9537 = vmatpush1.bf16.msra.mxu0 %v19382_v9  ;;  %10234 = vmatpush1.bf16.msra.mxu1 %v19385_v10  ;;  %v19450_v9 = vld [vmem:[%s21840_s7 + $0x424] ss:$52 sps:$4 sm:$0xff]   ;;  %v19453_v10 = vld [vmem:[%s21840_s7 + $0x2b2c] ss:$52 sps:$4 sm:$0xff]  }
 0x308   : > { %9711 = vmatprep.subr.bf16.mxu0 %v19390_v11  ;;  %10244 = vmatprep.subr.bf16.mxu1 %v19393_v12  ;;  %v19448_v11 = vld [vmem:[%s21840_s7 + $0x420] ss:$52 sps:$4 sm:$0xff]   ;;  %v19451_v12 = vld [vmem:[%s21840_s7 + $0x2b28] ss:$52 sps:$4 sm:$0xff]  }
 0x30a   : > { %9539 = vmatmul.mubr.bf16.vlgmr.msra.gmra.mrb[4].mxu0 %v22145_v2  ;;  %10236 = vmatmul.mubr.bf16.vlgmr.msra.gmra.mrb[4].mxu1 %v22149_v3 }
 0x30b   : > { %9712 = vmatpush1.bf16.msra.mxu0 %v19388_v13  ;;  %10245 = vmatpush1.bf16.msra.mxu1 %v19391_v14  ;;  %v19456_v13 = vld [vmem:[%s21840_s7 + $0x48c] ss:$52 sps:$4 sm:$0xff]   ;;  %v19459_v14 = vld [vmem:[%s21840_s7 + $0x2b94] ss:$52 sps:$4 sm:$0xff]  }
 0x30c   : > { %9713 = vmatprep.subr.bf16.mxu0 %v19396_v16  ;;  %10246 = vmatprep.subr.bf16.mxu1 %v19399_v17  ;;  %v19454_v16 = vld [vmem:[%s21840_s7 + $0x488] ss:$52 sps:$4 sm:$0xff]   ;;  %v19457_v17 = vld [vmem:[%s21840_s7 + $0x2b90] ss:$52 sps:$4 sm:$0xff]  }
 0x30d   : > { %17382 = vmatprep.mubr.msk.bf16.mxu1 %vm9133_vm0, %v22154_v8  ;;  %9743 = vmatprep.mubr.bf16.mxu0 %v21927_v62 }
 0x30f   : > { %9714 = vmatpush1.bf16.msra.mxu0 %v19394_v18  ;;  %10247 = vmatpush1.bf16.msra.mxu1 %v19397_v19  ;;  %v19462_v18 = vld [vmem:[%s21840_s7 + $0x4f4] ss:$52 sps:$4 sm:$0xff]   ;;  %v19465_v19 = vld [vmem:[%s21840_s7 + $0x2c] ss:$52 sps:$4 sm:$0xff]  }
 0x310   : > { %9715 = vmatprep.subr.bf16.mxu0 %v19402_v20  ;;  %10248 = vmatprep.subr.bf16.mxu1 %v19405_v23  ;;  %v19460_v20 = vld [vmem:[%s21840_s7 + $0x4f0] ss:$52 sps:$4 sm:$0xff]   ;;  %v19463_v23 = vld [vmem:[%s21840_s7 + $0x28] ss:$52 sps:$4 sm:$0xff]  }
 0x313   : > { %9716 = vmatpush1.bf16.msra.mxu0 %v19400_v24  ;;  %10249 = vmatpush1.bf16.msra.mxu1 %v19403_v25  ;;  %v19468_v24 = vld [vmem:[%s21840_s7 + $0x55c] ss:$52 sps:$4 sm:$0xff]   ;;  %v19471_v25 = vld [vmem:[%s21840_s7 + $0x94] ss:$52 sps:$4 sm:$0xff]  }
 0x314   : > { %9717 = vmatprep.subr.bf16.mxu0 %v19408_v26  ;;  %10250 = vmatprep.subr.bf16.mxu1 %v19411_v28  ;;  %v19466_v26 = vld [vmem:[%s21840_s7 + $0x558] ss:$52 sps:$4 sm:$0xff]   ;;  %v19469_v28 = vld [vmem:[%s21840_s7 + $0x90] ss:$52 sps:$4 sm:$0xff]  }
 0x317   : > { %9718 = vmatpush1.bf16.msra.mxu0 %v19406_v29  ;;  %10251 = vmatpush1.bf16.msra.mxu1 %v19409_v30  ;;  %v19474_v29 = vld [vmem:[%s21840_s7 + $0x5c4] ss:$52 sps:$4 sm:$0xff]   ;;  %v19477_v30 = vld [vmem:[%s21840_s7 + $0xfc] ss:$52 sps:$4 sm:$0xff]  }
 0x318   : > { %9719 = vmatprep.subr.bf16.mxu0 %v19414_v33  ;;  %10252 = vmatprep.subr.bf16.mxu1 %v19417_v36  ;;  %v19472_v33 = vld [vmem:[%s21840_s7 + $0x5c0] ss:$52 sps:$4 sm:$0xff]   ;;  %v19475_v36 = vld [vmem:[%s21840_s7 + $0xf8] ss:$52 sps:$4 sm:$0xff]  }
 0x31b   : > { %9720 = vmatpush1.bf16.msra.mxu0 %v19412_v37  ;;  %10253 = vmatpush1.bf16.msra.mxu1 %v19415_v38  ;;  %v19480_v37 = vld [vmem:[%s21840_s7 + $0x62c] ss:$52 sps:$4 sm:$0xff]   ;;  %v19483_v38 = vld [vmem:[%s21840_s7 + $0x164] ss:$52 sps:$4 sm:$0xff]  }
 0x31c   : > { %9721 = vmatprep.subr.bf16.mxu0 %v19420_v39  ;;  %10254 = vmatprep.subr.bf16.mxu1 %v19423_v40  ;;  %v19478_v39 = vld [vmem:[%s21840_s7 + $0x628] ss:$52 sps:$4 sm:$0xff]   ;;  %v19481_v40 = vld [vmem:[%s21840_s7 + $0x160] ss:$52 sps:$4 sm:$0xff]  }
 0x31d   : > { %v22651_v47 = vpop.f32.mrb[0].mxu0 }
 0x31e   : > { %v22653_v15 = vpop.f32.mrb[1].mxu0 }
 0x31f   : > { %v9421_v51 = vpop.f32.mrb[2].mxu0  ;;  %9722 = vmatpush1.bf16.msra.mxu0 %v19418_v57  ;;  %10255 = vmatpush1.bf16.msra.mxu1 %v19421_v41  ;;  %v19486_v57 = vld [vmem:[%s21840_s7 + $0x694] ss:$52 sps:$4 sm:$0xff]   ;;  %v19489_v41 = vld [vmem:[%s21840_s7 + $0x1cc] ss:$52 sps:$4 sm:$0xff]  }
 0x320   : > { %v9422_v54 = vpop.f32.mrb[3].mxu0  ;;  %9723 = vmatprep.subr.bf16.mxu0 %v19426_v45  ;;  %10256 = vmatprep.subr.bf16.mxu1 %v19429_v46  ;;  %v19484_v45 = vld [vmem:[%s21840_s7 + $0x690] ss:$52 sps:$4 sm:$0xff]   ;;  %v19487_v46 = vld [vmem:[%s21840_s7 + $0x1c8] ss:$52 sps:$4 sm:$0xff]  }
 0x321   : > { %v19492_v51 = vld [vmem:[%s21840_s7 + $0x6fc] ss:$52 sps:$4 sm:$0xff]  }
 0x322   : > { %v19493_v54 = vld [vmem:[%s21840_s7 + $0x230] ss:$52 sps:$4 sm:$0xff]  }
 0x323   : > { %9724 = vmatpush1.bf16.msra.mxu0 %v19424_v52  ;;  %10257 = vmatpush1.bf16.msra.mxu1 %v19427_v53  ;;  %v19495_v52 = vld [vmem:[%s21840_s7 + $0x234] ss:$52 sps:$4 sm:$0xff]   ;;  %v19490_v53 = vld [vmem:[%s21840_s7 + $0x6f8] ss:$52 sps:$4 sm:$0xff]  }
 0x324   : > { %9725 = vmatprep.subr.bf16.mxu0 %v19432_v55  ;;  %10258 = vmatprep.subr.bf16.mxu1 %v19435_v56  ;;  %v19498_v55 = vld [vmem:[%s21840_s7 + $0x764] ss:$52 sps:$4 sm:$0xff]   ;;  %v19501_v56 = vld [vmem:[%s21840_s7 + $0x29c] ss:$52 sps:$4 sm:$0xff]  }
 0x327   : > { %9726 = vmatpush1.bf16.msra.mxu0 %v19430_v59  ;;  %10259 = vmatpush1.bf16.msra.mxu1 %v19433_v60  ;;  %v19496_v59 = vld [vmem:[%s21840_s7 + $0x760] ss:$52 sps:$4 sm:$0xff]   ;;  %v19499_v60 = vld [vmem:[%s21840_s7 + $0x298] ss:$52 sps:$4 sm:$0xff]  }
 0x328   : > { %9727 = vmatprep.subr.bf16.mxu0 %v19438_v63  ;;  %10260 = vmatprep.subr.bf16.mxu1 %v19441_v0  ;;  %v19504_v63 = vld [vmem:[%s21840_s7 + $0x7cc] ss:$52 sps:$4 sm:$0xff]   ;;  %v19507_v0 = vld [vmem:[%s21840_s7 + $0x304] ss:$52 sps:$4 sm:$0xff]  }
 0x32b   : > { %9728 = vmatpush1.bf16.msra.mxu0 %v19436_v1  ;;  %10261 = vmatpush1.bf16.msra.mxu1 %v19439_v6  ;;  %v19502_v1 = vld [vmem:[%s21840_s7 + $0x7c8] ss:$52 sps:$4 sm:$0xff]   ;;  %v19505_v6 = vld [vmem:[%s21840_s7 + $0x300] ss:$52 sps:$4 sm:$0xff]  }
 0x32c   : > { %9729 = vmatprep.subr.bf16.mxu0 %v19444_v7  ;;  %10262 = vmatprep.subr.bf16.mxu1 %v19447_v34  ;;  %v19510_v7 = vld [vmem:[%s21840_s7 + $0x834] ss:$52 sps:$4 sm:$0xff]   ;;  %v19513_v34 = vld [vmem:[%s21840_s7 + $0x36c] ss:$52 sps:$4 sm:$0xff]  }
 0x32f   : > { %9730 = vmatpush1.bf16.msra.mxu0 %v19442_v35  ;;  %10263 = vmatpush1.bf16.msra.mxu1 %v19445_v58  ;;  %v19508_v35 = vld [vmem:[%s21840_s7 + $0x830] ss:$52 sps:$4 sm:$0xff]   ;;  %v19511_v58 = vld [vmem:[%s21840_s7 + $0x368] ss:$52 sps:$4 sm:$0xff]  }
 0x330   : > { %9731 = vmatprep.subr.bf16.mxu0 %v19450_v9  ;;  %10264 = vmatprep.subr.bf16.mxu1 %v19453_v10  ;;  %v19516_v9 = vld [vmem:[%s21840_s7 + $0x89c] ss:$52 sps:$4 sm:$0xff]   ;;  %v19519_v10 = vld [vmem:[%s21840_s7 + $0x3d4] ss:$52 sps:$4 sm:$0xff]  }
 0x333   : > { %9732 = vmatpush1.bf16.msra.mxu0 %v19448_v11  ;;  %10265 = vmatpush1.bf16.msra.mxu1 %v19451_v12  ;;  %v19514_v11 = vld [vmem:[%s21840_s7 + $0x898] ss:$52 sps:$4 sm:$0xff]   ;;  %v19517_v12 = vld [vmem:[%s21840_s7 + $0x3d0] ss:$52 sps:$4 sm:$0xff]  }
 0x334   : > { %9733 = vmatprep.subr.bf16.mxu0 %v19456_v13  ;;  %10266 = vmatprep.subr.bf16.mxu1 %v19459_v14  ;;  %v19522_v13 = vld [vmem:[%s21840_s7 + $0x904] ss:$52 sps:$4 sm:$0xff]   ;;  %v19525_v14 = vld [vmem:[%s21840_s7 + $0x43c] ss:$52 sps:$4 sm:$0xff]  }
 0x337   : > { %9734 = vmatpush1.bf16.msra.mxu0 %v19454_v16  ;;  %10267 = vmatpush1.bf16.msra.mxu1 %v19457_v17  ;;  %v19520_v16 = vld [vmem:[%s21840_s7 + $0x900] ss:$52 sps:$4 sm:$0xff]   ;;  %v19523_v17 = vld [vmem:[%s21840_s7 + $0x438] ss:$52 sps:$4 sm:$0xff]  }
 0x338   : > { %9735 = vmatprep.subr.bf16.mxu0 %v19462_v18  ;;  %10572 = vmatprep.subr.bf16.mxu1 %v19465_v19  ;;  %v19528_v18 = vld [vmem:[%s21840_s7 + $0x96c] ss:$52 sps:$4 sm:$0xff]   ;;  %v19531_v19 = vld [vmem:[%s21840_s7 + $0x4a4] ss:$52 sps:$4 sm:$0xff]  }
 0x33a   : > { %10277 = vmatmul.mubr.bf16.vlgmr.msra.gmra.mrb[4].mxu1 %v22208_v4 }
 0x33b   : > { %9736 = vmatpush1.bf16.msra.mxu0 %v19460_v20  ;;  %10573 = vmatpush1.bf16.msra.mxu1 %v19463_v23  ;;  %v19526_v20 = vld [vmem:[%s21840_s7 + $0x968] ss:$52 sps:$4 sm:$0xff]   ;;  %v19529_v23 = vld [vmem:[%s21840_s7 + $0x4a0] ss:$52 sps:$4 sm:$0xff]  }
 0x33c   : > { %9737 = vmatprep.subr.bf16.mxu0 %v19468_v24  ;;  %10574 = vmatprep.subr.bf16.mxu1 %v19471_v25  ;;  %v19534_v24 = vld [vmem:[%s21840_s7 + $0x9d4] ss:$52 sps:$4 sm:$0xff]   ;;  %v19537_v25 = vld [vmem:[%s21840_s7 + $0x50c] ss:$52 sps:$4 sm:$0xff]  }
 0x33d   : > { %10604 = vmatprep.mubr.bf16.mxu1 %v21927_v62 }
 0x33f   : > { %9738 = vmatpush1.bf16.msra.mxu0 %v19466_v26  ;;  %10575 = vmatpush1.bf16.msra.mxu1 %v19469_v28  ;;  %v19532_v26 = vld [vmem:[%s21840_s7 + $0x9d0] ss:$52 sps:$4 sm:$0xff]   ;;  %v19535_v28 = vld [vmem:[%s21840_s7 + $0x508] ss:$52 sps:$4 sm:$0xff]  }
 0x340   : > { %9739 = vmatprep.subr.bf16.mxu0 %v19474_v29  ;;  %10576 = vmatprep.subr.bf16.mxu1 %v19477_v30  ;;  %v19540_v29 = vld [vmem:[%s21840_s7 + $0xa3c] ss:$52 sps:$4 sm:$0xff]   ;;  %v19543_v30 = vld [vmem:[%s21840_s7 + $0x574] ss:$52 sps:$4 sm:$0xff]  }
 0x343   : > { %9740 = vmatpush1.bf16.msra.mxu0 %v19472_v33  ;;  %10577 = vmatpush1.bf16.msra.mxu1 %v19475_v36  ;;  %v19538_v33 = vld [vmem:[%s21840_s7 + $0xa38] ss:$52 sps:$4 sm:$0xff]   ;;  %v19541_v36 = vld [vmem:[%s21840_s7 + $0x570] ss:$52 sps:$4 sm:$0xff]  }
 0x344   : > { %9741 = vmatprep.subr.bf16.mxu0 %v19480_v37  ;;  %10578 = vmatprep.subr.bf16.mxu1 %v19483_v38  ;;  %v19546_v37 = vld [vmem:[%s21840_s7 + $0xaa4] ss:$52 sps:$4 sm:$0xff]   ;;  %v19549_v38 = vld [vmem:[%s21840_s7 + $0x5dc] ss:$52 sps:$4 sm:$0xff]  }
 0x347   : > { %9742 = vmatpush1.bf16.msra.mxu0 %v19478_v39  ;;  %10579 = vmatpush1.bf16.msra.mxu1 %v19481_v40  ;;  %v19544_v39 = vld [vmem:[%s21840_s7 + $0xaa0] ss:$52 sps:$4 sm:$0xff]   ;;  %v19547_v40 = vld [vmem:[%s21840_s7 + $0x5d8] ss:$52 sps:$4 sm:$0xff]  }
 0x348   : > { %9752 = vmatprep.subr.bf16.mxu0 %v19486_v57  ;;  %10580 = vmatprep.subr.bf16.mxu1 %v19489_v41  ;;  %v19552_v57 = vld [vmem:[%s21840_s7 + $0xb0c] ss:$52 sps:$4 sm:$0xff]   ;;  %v19555_v41 = vld [vmem:[%s21840_s7 + $0x644] ss:$52 sps:$4 sm:$0xff]  }
 0x34a   : > { %9744 = vmatmul.mubr.bf16.vlgmr.msra.gmra.mrb[8].mxu0 %v21955_v21 }
 0x34b   : > { %9753 = vmatpush1.bf16.msra.mxu0 %v19484_v45  ;;  %10581 = vmatpush1.bf16.msra.mxu1 %v19487_v46  ;;  %v19550_v45 = vld [vmem:[%s21840_s7 + $0xb08] ss:$52 sps:$4 sm:$0xff]   ;;  %v19553_v46 = vld [vmem:[%s21840_s7 + $0x640] ss:$52 sps:$4 sm:$0xff]  }
 0x34c   : > { %9754 = vmatprep.subr.bf16.mxu0 %v19492_v51  ;;  %10582 = vmatprep.subr.bf16.mxu1 %v19495_v52  ;;  %v19558_v51 = vld [vmem:[%s21840_s7 + $0xb74] ss:$52 sps:$4 sm:$0xff]   ;;  %v19561_v52 = vld [vmem:[%s21840_s7 + $0x6ac] ss:$52 sps:$4 sm:$0xff]  }
 0x34d   : > { %9784 = vmatprep.mubr.bf16.mxu0 %v21963_v27 }
 0x34f   : > { %9755 = vmatpush1.bf16.msra.mxu0 %v19490_v53  ;;  %10583 = vmatpush1.bf16.msra.mxu1 %v19493_v54  ;;  %v19556_v53 = vld [vmem:[%s21840_s7 + $0xb70] ss:$52 sps:$4 sm:$0xff]   ;;  %v19559_v54 = vld [vmem:[%s21840_s7 + $0x6a8] ss:$52 sps:$4 sm:$0xff]  }
 0x350   : > { %9756 = vmatprep.subr.bf16.mxu0 %v19498_v55  ;;  %10584 = vmatprep.subr.bf16.mxu1 %v19501_v56  ;;  %v19564_v55 = vld [vmem:[%s21840_s7 + $0xbdc] ss:$52 sps:$4 sm:$0xff]   ;;  %v19567_v56 = vld [vmem:[%s21840_s7 + $0x714] ss:$52 sps:$4 sm:$0xff]  }
 0x353   : > { %9757 = vmatpush1.bf16.msra.mxu0 %v19496_v59  ;;  %10585 = vmatpush1.bf16.msra.mxu1 %v19499_v60  ;;  %v19562_v59 = vld [vmem:[%s21840_s7 + $0xbd8] ss:$52 sps:$4 sm:$0xff]   ;;  %v19565_v60 = vld [vmem:[%s21840_s7 + $0x710] ss:$52 sps:$4 sm:$0xff]  }
 0x354   : > { %9758 = vmatprep.subr.bf16.mxu0 %v19504_v63  ;;  %10586 = vmatprep.subr.bf16.mxu1 %v19507_v0  ;;  %v19570_v63 = vld [vmem:[%s21840_s7 + $0xc44] ss:$52 sps:$4 sm:$0xff]   ;;  %v19573_v0 = vld [vmem:[%s21840_s7 + $0x77c] ss:$52 sps:$4 sm:$0xff]  }
 0x357   : > { %9759 = vmatpush1.bf16.msra.mxu0 %v19502_v1  ;;  %10587 = vmatpush1.bf16.msra.mxu1 %v19505_v6  ;;  %v19568_v1 = vld [vmem:[%s21840_s7 + $0xc40] ss:$52 sps:$4 sm:$0xff]   ;;  %v19571_v6 = vld [vmem:[%s21840_s7 + $0x778] ss:$52 sps:$4 sm:$0xff]  }
 0x358   : > { %9760 = vmatprep.subr.bf16.mxu0 %v19510_v7  ;;  %10588 = vmatprep.subr.bf16.mxu1 %v19513_v34  ;;  %v19576_v7 = vld [vmem:[%s21840_s7 + $0xcac] ss:$52 sps:$4 sm:$0xff]   ;;  %v19579_v34 = vld [vmem:[%s21840_s7 + $0x7e4] ss:$52 sps:$4 sm:$0xff]  }
 0x35b   : > { %9761 = vmatpush1.bf16.msra.mxu0 %v19508_v35  ;;  %10589 = vmatpush1.bf16.msra.mxu1 %v19511_v58  ;;  %v19574_v35 = vld [vmem:[%s21840_s7 + $0xca8] ss:$52 sps:$4 sm:$0xff]   ;;  %v19577_v58 = vld [vmem:[%s21840_s7 + $0x7e0] ss:$52 sps:$4 sm:$0xff]  }
 0x35c   : > { %9762 = vmatprep.subr.bf16.mxu0 %v19516_v9  ;;  %10590 = vmatprep.subr.bf16.mxu1 %v19519_v10  ;;  %v19582_v9 = vld [vmem:[%s21840_s7 + $0xd14] ss:$52 sps:$4 sm:$0xff]   ;;  %v19585_v10 = vld [vmem:[%s21840_s7 + $0x84c] ss:$52 sps:$4 sm:$0xff]  }
 0x35f   : > { %9763 = vmatpush1.bf16.msra.mxu0 %v19514_v11  ;;  %10591 = vmatpush1.bf16.msra.mxu1 %v19517_v12  ;;  %v19580_v11 = vld [vmem:[%s21840_s7 + $0xd10] ss:$52 sps:$4 sm:$0xff]   ;;  %v19583_v12 = vld [vmem:[%s21840_s7 + $0x848] ss:$52 sps:$4 sm:$0xff]  }
 0x360   : > { %9764 = vmatprep.subr.bf16.mxu0 %v19522_v13  ;;  %10592 = vmatprep.subr.bf16.mxu1 %v19525_v14  ;;  %v19588_v13 = vld [vmem:[%s21840_s7 + $0xd7c] ss:$52 sps:$4 sm:$0xff]   ;;  %v19591_v14 = vld [vmem:[%s21840_s7 + $0x8b4] ss:$52 sps:$4 sm:$0xff]  }
 0x363   : > { %9765 = vmatpush1.bf16.msra.mxu0 %v19520_v16  ;;  %10593 = vmatpush1.bf16.msra.mxu1 %v19523_v17  ;;  %v19586_v16 = vld [vmem:[%s21840_s7 + $0xd78] ss:$52 sps:$4 sm:$0xff]   ;;  %v19589_v17 = vld [vmem:[%s21840_s7 + $0x8b0] ss:$52 sps:$4 sm:$0xff]  }
 0x364   : > { %9766 = vmatprep.subr.bf16.mxu0 %v19528_v18  ;;  %10594 = vmatprep.subr.bf16.mxu1 %v19531_v19  ;;  %v19594_v18 = vld [vmem:[%s21840_s7 + $0xde4] ss:$52 sps:$4 sm:$0xff]   ;;  %v19597_v19 = vld [vmem:[%s21840_s7 + $0x91c] ss:$52 sps:$4 sm:$0xff]  }
 0x367   : > { %9767 = vmatpush1.bf16.msra.mxu0 %v19526_v20  ;;  %10595 = vmatpush1.bf16.msra.mxu1 %v19529_v23  ;;  %v19592_v20 = vld [vmem:[%s21840_s7 + $0xde0] ss:$52 sps:$4 sm:$0xff]   ;;  %v19595_v23 = vld [vmem:[%s21840_s7 + $0x918] ss:$52 sps:$4 sm:$0xff]  }
 0x368   : > { %9768 = vmatprep.subr.bf16.mxu0 %v19534_v24  ;;  %10596 = vmatprep.subr.bf16.mxu1 %v19537_v25  ;;  %v19600_v24 = vld [vmem:[%s21840_s7 + $0xe4c] ss:$52 sps:$4 sm:$0xff]   ;;  %v19603_v25 = vld [vmem:[%s21840_s7 + $0x984] ss:$52 sps:$4 sm:$0xff]  }
 0x36b   : > { %9769 = vmatpush1.bf16.msra.mxu0 %v19532_v26  ;;  %10597 = vmatpush1.bf16.msra.mxu1 %v19535_v28  ;;  %v19598_v26 = vld [vmem:[%s21840_s7 + $0xe48] ss:$52 sps:$4 sm:$0xff]   ;;  %v19601_v28 = vld [vmem:[%s21840_s7 + $0x980] ss:$52 sps:$4 sm:$0xff]  }
 0x36c   : > { %9770 = vmatprep.subr.bf16.mxu0 %v19540_v29  ;;  %10598 = vmatprep.subr.bf16.mxu1 %v19543_v30  ;;  %v19606_v29 = vld [vmem:[%s21840_s7 + $0xeb4] ss:$52 sps:$4 sm:$0xff]   ;;  %v19609_v30 = vld [vmem:[%s21840_s7 + $0x9ec] ss:$52 sps:$4 sm:$0xff]  }
 0x36f   : > { %9771 = vmatpush1.bf16.msra.mxu0 %v19538_v33  ;;  %10599 = vmatpush1.bf16.msra.mxu1 %v19541_v36  ;;  %v19604_v33 = vld [vmem:[%s21840_s7 + $0xeb0] ss:$52 sps:$4 sm:$0xff]   ;;  %v19607_v36 = vld [vmem:[%s21840_s7 + $0x9e8] ss:$52 sps:$4 sm:$0xff]  }
 0x370   : > { %9772 = vmatprep.subr.bf16.mxu0 %v19546_v37  ;;  %10600 = vmatprep.subr.bf16.mxu1 %v19549_v38  ;;  %v19612_v37 = vld [vmem:[%s21840_s7 + $0xf1c] ss:$52 sps:$4 sm:$0xff]   ;;  %v19615_v38 = vld [vmem:[%s21840_s7 + $0xa54] ss:$52 sps:$4 sm:$0xff]  }
 0x373   : > { %9773 = vmatpush1.bf16.msra.mxu0 %v19544_v39  ;;  %10601 = vmatpush1.bf16.msra.mxu1 %v19547_v40  ;;  %v19610_v39 = vld [vmem:[%s21840_s7 + $0xf18] ss:$52 sps:$4 sm:$0xff]   ;;  %v19613_v40 = vld [vmem:[%s21840_s7 + $0xa50] ss:$52 sps:$4 sm:$0xff]  }
 0x374   : > { %9774 = vmatprep.subr.bf16.mxu0 %v19552_v57  ;;  %10602 = vmatprep.subr.bf16.mxu1 %v19555_v41  ;;  %v19618_v57 = vld [vmem:[%s21840_s7 + $0xf84] ss:$52 sps:$4 sm:$0xff]   ;;  %v19621_v41 = vld [vmem:[%s21840_s7 + $0xabc] ss:$52 sps:$4 sm:$0xff]  }
 0x377   : > { %9775 = vmatpush1.bf16.msra.mxu0 %v19550_v45  ;;  %10603 = vmatpush1.bf16.msra.mxu1 %v19553_v46  ;;  %v19616_v45 = vld [vmem:[%s21840_s7 + $0xf80] ss:$52 sps:$4 sm:$0xff]   ;;  %v19619_v46 = vld [vmem:[%s21840_s7 + $0xab8] ss:$52 sps:$4 sm:$0xff]  }
 0x378   : > { %9776 = vmatprep.subr.bf16.mxu0 %v19558_v51  ;;  %10613 = vmatprep.subr.bf16.mxu1 %v19561_v52  ;;  %v19624_v51 = vld [vmem:[%s21840_s7 + $0xfec] ss:$52 sps:$4 sm:$0xff]   ;;  %v19627_v52 = vld [vmem:[%s21840_s7 + $0xb24] ss:$52 sps:$4 sm:$0xff]  }
 0x37a   : > { %10605 = vmatmul.mubr.bf16.vlgmr.msra.gmra.mrb[8].mxu1 %v21955_v21 }
 0x37b   : > { %9777 = vmatpush1.bf16.msra.mxu0 %v19556_v53  ;;  %10614 = vmatpush1.bf16.msra.mxu1 %v19559_v54  ;;  %v19622_v53 = vld [vmem:[%s21840_s7 + $0xfe8] ss:$52 sps:$4 sm:$0xff]   ;;  %v19625_v54 = vld [vmem:[%s21840_s7 + $0xb20] ss:$52 sps:$4 sm:$0xff]  }
 0x37c   : > { %9778 = vmatprep.subr.bf16.mxu0 %v19564_v55  ;;  %10615 = vmatprep.subr.bf16.mxu1 %v19567_v56  ;;  %v19630_v55 = vld [vmem:[%s21840_s7 + $0x1054] ss:$52 sps:$4 sm:$0xff]   ;;  %v19633_v56 = vld [vmem:[%s21840_s7 + $0xb8c] ss:$52 sps:$4 sm:$0xff]  }
 0x37d   : > { %10645 = vmatprep.mubr.bf16.mxu1 %v21963_v27 }
 0x37f   : > { %9779 = vmatpush1.bf16.msra.mxu0 %v19562_v59  ;;  %10616 = vmatpush1.bf16.msra.mxu1 %v19565_v60  ;;  %v19628_v59 = vld [vmem:[%s21840_s7 + $0x1050] ss:$52 sps:$4 sm:$0xff]   ;;  %v19631_v60 = vld [vmem:[%s21840_s7 + $0xb88] ss:$52 sps:$4 sm:$0xff]  }
 0x380   : > { %9780 = vmatprep.subr.bf16.mxu0 %v19570_v63  ;;  %10617 = vmatprep.subr.bf16.mxu1 %v19573_v0  ;;  %v19636_v63 = vld [vmem:[%s21840_s7 + $0x10bc] ss:$52 sps:$4 sm:$0xff]   ;;  %v19639_v0 = vld [vmem:[%s21840_s7 + $0xbf4] ss:$52 sps:$4 sm:$0xff]  }
 0x383   : > { %9781 = vmatpush1.bf16.msra.mxu0 %v19568_v1  ;;  %10618 = vmatpush1.bf16.msra.mxu1 %v19571_v6  ;;  %v19634_v1 = vld [vmem:[%s21840_s7 + $0x10b8] ss:$52 sps:$4 sm:$0xff]   ;;  %v19637_v6 = vld [vmem:[%s21840_s7 + $0xbf0] ss:$52 sps:$4 sm:$0xff]  }
 0x384   : > { %9782 = vmatprep.subr.bf16.mxu0 %v19576_v7  ;;  %10619 = vmatprep.subr.bf16.mxu1 %v19579_v34  ;;  %v19642_v7 = vld [vmem:[%s21840_s7 + $0x1124] ss:$52 sps:$4 sm:$0xff]   ;;  %v19645_v34 = vld [vmem:[%s21840_s7 + $0xc5c] ss:$52 sps:$4 sm:$0xff]  }
 0x387   : > { %9783 = vmatpush1.bf16.msra.mxu0 %v19574_v35  ;;  %10620 = vmatpush1.bf16.msra.mxu1 %v19577_v58  ;;  %v19640_v35 = vld [vmem:[%s21840_s7 + $0x1120] ss:$52 sps:$4 sm:$0xff]   ;;  %v19643_v58 = vld [vmem:[%s21840_s7 + $0xc58] ss:$52 sps:$4 sm:$0xff]  }
 0x388   : > { %9793 = vmatprep.subr.bf16.mxu0 %v19582_v9  ;;  %10621 = vmatprep.subr.bf16.mxu1 %v19585_v10  ;;  %v19648_v9 = vld [vmem:[%s21840_s7 + $0x118c] ss:$52 sps:$4 sm:$0xff]   ;;  %v19651_v10 = vld [vmem:[%s21840_s7 + $0xcc4] ss:$52 sps:$4 sm:$0xff]  }
 0x38a   : > { %9785 = vmatmul.mubr.bf16.vlgmr.msra.gmra.mrb[8].mxu0 %v22058_v42 }
 0x38b   : > { %9794 = vmatpush1.bf16.msra.mxu0 %v19580_v11  ;;  %10622 = vmatpush1.bf16.msra.mxu1 %v19583_v12  ;;  %v19646_v11 = vld [vmem:[%s21840_s7 + $0x1188] ss:$52 sps:$4 sm:$0xff]   ;;  %v19649_v12 = vld [vmem:[%s21840_s7 + $0xcc0] ss:$52 sps:$4 sm:$0xff]  }
 0x38c   : > { %9795 = vmatprep.subr.bf16.mxu0 %v19588_v13  ;;  %10623 = vmatprep.subr.bf16.mxu1 %v19591_v14  ;;  %v19654_v13 = vld [vmem:[%s21840_s7 + $0x11f4] ss:$52 sps:$4 sm:$0xff]   ;;  %v19657_v14 = vld [vmem:[%s21840_s7 + $0xd2c] ss:$52 sps:$4 sm:$0xff]  }
 0x38d   : > { %9825 = vmatprep.mubr.bf16.mxu0 %v22067_v48 }
 0x38f   : > { %9796 = vmatpush1.bf16.msra.mxu0 %v19586_v16  ;;  %10624 = vmatpush1.bf16.msra.mxu1 %v19589_v17  ;;  %v19652_v16 = vld [vmem:[%s21840_s7 + $0x11f0] ss:$52 sps:$4 sm:$0xff]   ;;  %v19655_v17 = vld [vmem:[%s21840_s7 + $0xd28] ss:$52 sps:$4 sm:$0xff]  }
 0x390   : > { %9797 = vmatprep.subr.bf16.mxu0 %v19594_v18  ;;  %10625 = vmatprep.subr.bf16.mxu1 %v19597_v19  ;;  %v19660_v18 = vld [vmem:[%s21840_s7 + $0x125c] ss:$52 sps:$4 sm:$0xff]   ;;  %v19663_v19 = vld [vmem:[%s21840_s7 + $0xd94] ss:$52 sps:$4 sm:$0xff]  }
 0x393   : > { %9798 = vmatpush1.bf16.msra.mxu0 %v19592_v20  ;;  %10626 = vmatpush1.bf16.msra.mxu1 %v19595_v23  ;;  %v19658_v20 = vld [vmem:[%s21840_s7 + $0x1258] ss:$52 sps:$4 sm:$0xff]   ;;  %v19661_v23 = vld [vmem:[%s21840_s7 + $0xd90] ss:$52 sps:$4 sm:$0xff]  }
 0x394   : > { %9799 = vmatprep.subr.bf16.mxu0 %v19600_v24  ;;  %10627 = vmatprep.subr.bf16.mxu1 %v19603_v25  ;;  %v19666_v24 = vld [vmem:[%s21840_s7 + $0x12c4] ss:$52 sps:$4 sm:$0xff]   ;;  %v19669_v25 = vld [vmem:[%s21840_s7 + $0xdfc] ss:$52 sps:$4 sm:$0xff]  }
 0x397   : > { %9800 = vmatpush1.bf16.msra.mxu0 %v19598_v26  ;;  %10628 = vmatpush1.bf16.msra.mxu1 %v19601_v28  ;;  %v19664_v26 = vld [vmem:[%s21840_s7 + $0x12c0] ss:$52 sps:$4 sm:$0xff]   ;;  %v19667_v28 = vld [vmem:[%s21840_s7 + $0xdf8] ss:$52 sps:$4 sm:$0xff]  }
 0x398   : > { %9801 = vmatprep.subr.bf16.mxu0 %v19606_v29  ;;  %10629 = vmatprep.subr.bf16.mxu1 %v19609_v30  ;;  %v19672_v29 = vld [vmem:[%s21840_s7 + $0x132c] ss:$52 sps:$4 sm:$0xff]   ;;  %v19675_v30 = vld [vmem:[%s21840_s7 + $0xe64] ss:$52 sps:$4 sm:$0xff]  }
 0x39b   : > { %9802 = vmatpush1.bf16.msra.mxu0 %v19604_v33  ;;  %10630 = vmatpush1.bf16.msra.mxu1 %v19607_v36  ;;  %v19670_v33 = vld [vmem:[%s21840_s7 + $0x1328] ss:$52 sps:$4 sm:$0xff]   ;;  %v19673_v36 = vld [vmem:[%s21840_s7 + $0xe60] ss:$52 sps:$4 sm:$0xff]  }
 0x39c   : > { %9803 = vmatprep.subr.bf16.mxu0 %v19612_v37  ;;  %10631 = vmatprep.subr.bf16.mxu1 %v19615_v38  ;;  %v19678_v37 = vld [vmem:[%s21840_s7 + $0x1394] ss:$52 sps:$4 sm:$0xff]   ;;  %v19681_v38 = vld [vmem:[%s21840_s7 + $0xecc] ss:$52 sps:$4 sm:$0xff]  }
 0x39f   : > { %9804 = vmatpush1.bf16.msra.mxu0 %v19610_v39  ;;  %10632 = vmatpush1.bf16.msra.mxu1 %v19613_v40  ;;  %v19676_v39 = vld [vmem:[%s21840_s7 + $0x1390] ss:$52 sps:$4 sm:$0xff]   ;;  %v19679_v40 = vld [vmem:[%s21840_s7 + $0xec8] ss:$52 sps:$4 sm:$0xff]  }
 0x3a0   : > { %9805 = vmatprep.subr.bf16.mxu0 %v19618_v57  ;;  %10633 = vmatprep.subr.bf16.mxu1 %v19621_v41  ;;  %v19684_v57 = vld [vmem:[%s21840_s7 + $0x13fc] ss:$52 sps:$4 sm:$0xff]   ;;  %v19687_v41 = vld [vmem:[%s21840_s7 + $0xf34] ss:$52 sps:$4 sm:$0xff]  }
 0x3a3   : > { %9806 = vmatpush1.bf16.msra.mxu0 %v19616_v45  ;;  %10634 = vmatpush1.bf16.msra.mxu1 %v19619_v46  ;;  %v19682_v45 = vld [vmem:[%s21840_s7 + $0x13f8] ss:$52 sps:$4 sm:$0xff]   ;;  %v19685_v46 = vld [vmem:[%s21840_s7 + $0xf30] ss:$52 sps:$4 sm:$0xff]  }
 0x3a4   : > { %9807 = vmatprep.subr.bf16.mxu0 %v19624_v51  ;;  %10635 = vmatprep.subr.bf16.mxu1 %v19627_v52  ;;  %v19690_v51 = vld [vmem:[%s21840_s7 + $0x1464] ss:$52 sps:$4 sm:$0xff]   ;;  %v19693_v52 = vld [vmem:[%s21840_s7 + $0xf9c] ss:$52 sps:$4 sm:$0xff]  }
 0x3a7   : > { %9808 = vmatpush1.bf16.msra.mxu0 %v19622_v53  ;;  %10636 = vmatpush1.bf16.msra.mxu1 %v19625_v54  ;;  %v19688_v53 = vld [vmem:[%s21840_s7 + $0x1460] ss:$52 sps:$4 sm:$0xff]   ;;  %v19691_v54 = vld [vmem:[%s21840_s7 + $0xf98] ss:$52 sps:$4 sm:$0xff]  }
 0x3a8   : > { %9809 = vmatprep.subr.bf16.mxu0 %v19630_v55  ;;  %10637 = vmatprep.subr.bf16.mxu1 %v19633_v56  ;;  %v19696_v55 = vld [vmem:[%s21840_s7 + $0x14cc] ss:$52 sps:$4 sm:$0xff]   ;;  %v19699_v56 = vld [vmem:[%s21840_s7 + $0x1004] ss:$52 sps:$4 sm:$0xff]  }
 0x3ab   : > { %9810 = vmatpush1.bf16.msra.mxu0 %v19628_v59  ;;  %10638 = vmatpush1.bf16.msra.mxu1 %v19631_v60  ;;  %v19694_v59 = vld [vmem:[%s21840_s7 + $0x14c8] ss:$52 sps:$4 sm:$0xff]   ;;  %v19697_v60 = vld [vmem:[%s21840_s7 + $0x1000] ss:$52 sps:$4 sm:$0xff]  }
 0x3ac   : > { %9811 = vmatprep.subr.bf16.mxu0 %v19636_v63  ;;  %10639 = vmatprep.subr.bf16.mxu1 %v19639_v0  ;;  %v19702_v63 = vld [vmem:[%s21840_s7 + $0x1534] ss:$52 sps:$4 sm:$0xff]   ;;  %v19705_v0 = vld [vmem:[%s21840_s7 + $0x106c] ss:$52 sps:$4 sm:$0xff]  }
 0x3af   : > { %9812 = vmatpush1.bf16.msra.mxu0 %v19634_v1  ;;  %10640 = vmatpush1.bf16.msra.mxu1 %v19637_v6  ;;  %v22852_v1 = vsub.s32 2, %v21900_v44  ;;  %v19700_v6 = vld [vmem:[%s21840_s7 + $0x1530] ss:$52 sps:$4 sm:$0xff]  }
 0x3b0   : > { %9813 = vmatprep.subr.bf16.mxu0 %v19642_v7  ;;  %10641 = vmatprep.subr.bf16.mxu1 %v19645_v34  ;;  %v1936_v7 = vld [vmem:[%s21847_s27] sm:$0xff]  ;;  %v19703_v34 = vld [vmem:[%s21840_s7 + $0x1068] ss:$52 sps:$4 sm:$0xff]  }
 0x3b3   : > { %9814 = vmatpush1.bf16.msra.mxu0 %v19640_v35  ;;  %10642 = vmatpush1.bf16.msra.mxu1 %v19643_v58  ;;  %v22858_v35 = vsub.s32 3, %v21900_v44  ;;  %v19708_v58 = vld [vmem:[%s21840_s7 + $0x159c] ss:$52 sps:$4 sm:$0xff]  }
 0x3b4   : > { %9815 = vmatprep.subr.bf16.mxu0 %v19648_v9  ;;  %10643 = vmatprep.subr.bf16.mxu1 %v19651_v10  ;;  %v19711_v9 = vld [vmem:[%s21840_s7 + $0x10d4] ss:$52 sps:$4 sm:$0xff]   ;;  %v1951_v10 = vrot.slane %v1936_v7, %v22852_v1 }
 0x3b7   : > { %9816 = vmatpush1.bf16.msra.mxu0 %v19646_v11  ;;  %10644 = vmatpush1.bf16.msra.mxu1 %v19649_v12  ;;  %v1955_v11 = vrot.slane %v1936_v7, %v22858_v35  ;;  %v19706_v12 = vld [vmem:[%s21840_s7 + $0x1598] ss:$52 sps:$4 sm:$0xff]   ;;  %v19756_v7 = vld [vmem:[%s21840_s7 + $0x18dc] ss:$52 sps:$4 sm:$0xff]  }
 0x3b8   : > { %9817 = vmatprep.subr.bf16.mxu0 %v19654_v13  ;;  %10654 = vmatprep.subr.bf16.mxu1 %v19657_v14  ;;  %v19709_v13 = vld [vmem:[%s21840_s7 + $0x10d0] ss:$52 sps:$4 sm:$0xff]  }
 0x3b9   : > { %v19714_v14 = vld [vmem:[%s21840_s7 + $0x1604] ss:$52 sps:$4 sm:$0xff]  }
 0x3ba   : > { %10646 = vmatmul.mubr.bf16.vlgmr.msra.gmra.mrb[8].mxu1 %v22058_v42 }
 0x3bb   : > { %9818 = vmatpush1.bf16.msra.mxu0 %v19652_v16  ;;  %10655 = vmatpush1.bf16.msra.mxu1 %v19655_v17  ;;  %v19717_v16 = vld [vmem:[%s21840_s7 + $0x113c] ss:$52 sps:$4 sm:$0xff]  }
 0x3bc   : > { %9819 = vmatprep.subr.bf16.mxu0 %v19660_v18  ;;  %10656 = vmatprep.subr.bf16.mxu1 %v19663_v19 }
 0x3bd   : > { %10686 = vmatprep.mubr.bf16.mxu1 %v22067_v48 }
 0x3bf   : > { %9820 = vmatpush1.bf16.msra.mxu0 %v19658_v20  ;;  %10657 = vmatpush1.bf16.msra.mxu1 %v19661_v23 }
 0x3c0   : > { %9821 = vmatprep.subr.bf16.mxu0 %v19666_v24  ;;  %10658 = vmatprep.subr.bf16.mxu1 %v19669_v25  ;;  %v19712_v24 = vld [vmem:[%s21840_s7 + $0x1600] ss:$52 sps:$4 sm:$0xff]   ;;  %v19715_v25 = vld [vmem:[%s21840_s7 + $0x1138] ss:$52 sps:$4 sm:$0xff]  }
 0x3c3   : > { %9822 = vmatpush1.bf16.msra.mxu0 %v19664_v26  ;;  %10659 = vmatpush1.bf16.msra.mxu1 %v19667_v28 }
 0x3c4   : > { %9823 = vmatprep.subr.bf16.mxu0 %v19672_v29  ;;  %10660 = vmatprep.subr.bf16.mxu1 %v19675_v30  ;;  %v19720_v29 = vld [vmem:[%s21840_s7 + $0x166c] ss:$52 sps:$4 sm:$0xff]   ;;  %v19723_v30 = vld [vmem:[%s21840_s7 + $0x11a4] ss:$52 sps:$4 sm:$0xff]  }
 0x3c7   : > { %9824 = vmatpush1.bf16.msra.mxu0 %v19670_v33  ;;  %10661 = vmatpush1.bf16.msra.mxu1 %v19673_v36  ;;  %v19718_v36 = vld [vmem:[%s21840_s7 + $0x1668] ss:$52 sps:$4 sm:$0xff]  }
 0x3c8   : > { %9834 = vmatprep.subr.bf16.mxu0 %v19678_v37  ;;  %10662 = vmatprep.subr.bf16.mxu1 %v19681_v38  ;;  %v19721_v37 = vld [vmem:[%s21840_s7 + $0x11a0] ss:$52 sps:$4 sm:$0xff]  }
 0x3c9   : > { %v19729_v38 = vld [vmem:[%s21840_s7 + $0x120c] ss:$52 sps:$4 sm:$0xff]  }
 0x3ca   : > { %9826 = vmatmul.mubr.bf16.vlgmr.msra.gmra.mrb[8].mxu0 %v22145_v2 }
 0x3cb   : > { %9835 = vmatpush1.bf16.msra.mxu0 %v19676_v39  ;;  %10663 = vmatpush1.bf16.msra.mxu1 %v19679_v40  ;;  %v19724_v39 = vld [vmem:[%s21840_s7 + $0x16d0] ss:$52 sps:$4 sm:$0xff]   ;;  %v19727_v40 = vld [vmem:[%s21840_s7 + $0x1208] ss:$52 sps:$4 sm:$0xff]  }
 0x3cc   : > { %9836 = vmatprep.subr.bf16.mxu0 %v19684_v57  ;;  %10664 = vmatprep.subr.bf16.mxu1 %v19687_v41  ;;  %v19735_v57 = vld [vmem:[%s21840_s7 + $0x1274] ss:$52 sps:$4 sm:$0xff]   ;;  %v19730_v41 = vld [vmem:[%s21840_s7 + $0x1738] ss:$52 sps:$4 sm:$0xff]  }
 0x3cd   : > { %9866 = vmatprep.mubr.bf16.mxu0 %v21935_v5 }
 0x3cf   : > { %9837 = vmatpush1.bf16.msra.mxu0 %v19682_v45  ;;  %10665 = vmatpush1.bf16.msra.mxu1 %v19685_v46  ;;  %v19733_v45 = vld [vmem:[%s21840_s7 + $0x1270] ss:$52 sps:$4 sm:$0xff]  }
 0x3d0   : > { %9838 = vmatprep.subr.bf16.mxu0 %v19690_v51  ;;  %10666 = vmatprep.subr.bf16.mxu1 %v19693_v52  ;;  %v19738_v46 = vld [vmem:[%s21840_s7 + $0x17a4] ss:$52 sps:$4 sm:$0xff]   ;;  %v19741_v51 = vld [vmem:[%s21840_s7 + $0x12dc] ss:$52 sps:$4 sm:$0xff]   ;;  %v19736_v52 = vld [vmem:[%s21840_s7 + $0x17a0] ss:$52 sps:$4 sm:$0xff]  }
 0x3d3   : > { %9839 = vmatpush1.bf16.msra.mxu0 %v19688_v53  ;;  %10667 = vmatpush1.bf16.msra.mxu1 %v19691_v54  ;;  %v19739_v53 = vld [vmem:[%s21840_s7 + $0x12d8] ss:$52 sps:$4 sm:$0xff]  }
 0x3d4   : > { %9840 = vmatprep.subr.bf16.mxu0 %v19696_v55  ;;  %10668 = vmatprep.subr.bf16.mxu1 %v19699_v56  ;;  %v19744_v54 = vld [vmem:[%s21840_s7 + $0x180c] ss:$52 sps:$4 sm:$0xff]   ;;  %v19747_v55 = vld [vmem:[%s21840_s7 + $0x1344] ss:$52 sps:$4 sm:$0xff]   ;;  %v19742_v56 = vld [vmem:[%s21840_s7 + $0x1808] ss:$52 sps:$4 sm:$0xff]  }
 0x3d7   : > { %9841 = vmatpush1.bf16.msra.mxu0 %v19694_v59  ;;  %10669 = vmatpush1.bf16.msra.mxu1 %v19697_v60  ;;  %v19745_v59 = vld [vmem:[%s21840_s7 + $0x1340] ss:$52 sps:$4 sm:$0xff]  }
 0x3d8   : > { %9842 = vmatprep.subr.bf16.mxu0 %v19702_v63  ;;  %10670 = vmatprep.subr.bf16.mxu1 %v19705_v0  ;;  %v19750_v60 = vld [vmem:[%s21840_s7 + $0x1874] ss:$52 sps:$4 sm:$0xff]   ;;  %v19753_v63 = vld [vmem:[%s21840_s7 + $0x13ac] ss:$52 sps:$4 sm:$0xff]   ;;  %v19748_v0 = vld [vmem:[%s21840_s7 + $0x1870] ss:$52 sps:$4 sm:$0xff]  }
 0x3db   : > { %9843 = vmatpush1.bf16.msra.mxu0 %v19700_v6  ;;  %10671 = vmatpush1.bf16.msra.mxu1 %v19703_v34  ;;  %v19751_v6 = vld [vmem:[%s21840_s7 + $0x13a8] ss:$52 sps:$4 sm:$0xff]  }
 0x3dc   : > { %9844 = vmatprep.subr.bf16.mxu0 %v19708_v58  ;;  %10672 = vmatprep.subr.bf16.mxu1 %v19711_v9  ;;  %v19759_v34 = vld [vmem:[%s21840_s7 + $0x1414] ss:$52 sps:$4 sm:$0xff]   ;;  %v19754_v58 = vld [vmem:[%s21840_s7 + $0x18d8] ss:$52 sps:$4 sm:$0xff]   ;;  %v19757_v9 = vld [vmem:[%s21840_s7 + $0x1410] ss:$52 sps:$4 sm:$0xff]  }
 0x3dd   : > { %v9540_v17 = vpop.f32.mrb[4].mxu0 }
 0x3de   : > { %v18149_v18 = vadd.f32 %v9540_v17, %v1951_v10  ;;  %v9542_v19 = vpop.f32.mrb[5].mxu0  ;;  %v19762_v10 = vld [vmem:[%s21840_s7 + $0x1944] ss:$52 sps:$4 sm:$0xff]   ;;  %v19766_v17 = vld [vmem:[%s21840_s7 + $0x19a8] ss:$52 sps:$4 sm:$0xff]  }
 0x3df   : > { %v18151_v20 = vadd.f32 %v9542_v19, %v1955_v11  ;;  %v9544_v23 = vpop.f32.mrb[6].mxu0  ;;  %9845 = vmatpush1.bf16.msra.mxu0 %v19706_v12  ;;  %10673 = vmatpush1.bf16.msra.mxu1 %v19709_v13  ;;  %v19765_v11 = vld [vmem:[%s21840_s7 + $0x147c] ss:$52 sps:$4 sm:$0xff]   ;;  %v19760_v12 = vld [vmem:[%s21840_s7 + $0x1940] ss:$52 sps:$4 sm:$0xff]  }
 0x3e0   : > { %v22871_v26 = vadd.f32 %v18149_v18, %v22442_v31  ;;  %v9545_v28 = vpop.f32.mrb[7].mxu0  ;;  %9846 = vmatprep.subr.bf16.mxu0 %v19714_v14  ;;  %10674 = vmatprep.subr.bf16.mxu1 %v19717_v16  ;;  %v19726_v31 = vld [vmem:[%s21840_s7 + $0x16d4] ss:$52 sps:$4 sm:$0xff]   ;;  %v19763_v13 = vld [vmem:[%s21840_s7 + $0x1478] ss:$52 sps:$4 sm:$0xff]  }
 0x3e1   : > { %v22876_v33 = vadd.f32 %v18151_v20, %v22444_v32  ;;  %v19732_v32 = vld [vmem:[%s21840_s7 + $0x173c] ss:$52 sps:$4 sm:$0xff]   ;;  %v19768_v14 = vld [vmem:[%s21840_s7 + $0x19ac] ss:$52 sps:$4 sm:$0xff]   ;;  %v19771_v16 = vld [vmem:[%s21840_s7 + $0x14e4] ss:$52 sps:$4 sm:$0xff]  }
 0x3e2   : > { %v19769_v18 = vld [vmem:[%s21840_s7 + $0x14e0] ss:$52 sps:$4 sm:$0xff]   ;;  %v19772_v23 = vld [vmem:[%s21840_s7 + $0x1a10] ss:$52 sps:$4 sm:$0xff]  }
 0x3e3   : > { %9847 = vmatpush1.bf16.msra.mxu0 %v19712_v24  ;;  %10675 = vmatpush1.bf16.msra.mxu1 %v19715_v25  ;;  %v19774_v19 = vld [vmem:[%s21840_s7 + $0x1a14] ss:$52 sps:$4 sm:$0xff]   ;;  %v19777_v20 = vld [vmem:[%s21840_s7 + $0x154c] ss:$52 sps:$4 sm:$0xff]   ;;  %v19780_v25 = vld [vmem:[%s21840_s7 + $0x1a7c] ss:$52 sps:$4 sm:$0xff]  }
 0x3e4   : > { %9848 = vmatprep.subr.bf16.mxu0 %v19720_v29  ;;  %10676 = vmatprep.subr.bf16.mxu1 %v19723_v30  ;;  %v19775_v24 = vld [vmem:[%s21840_s7 + $0x1548] ss:$52 sps:$4 sm:$0xff]   ;;  %v19778_v29 = vld [vmem:[%s21840_s7 + $0x1a78] ss:$52 sps:$4 sm:$0xff]   ;;  %v19781_v30 = vld [vmem:[%s21840_s7 + $0x15b0] ss:$52 sps:$4 sm:$0xff]  }
 0x3e5   : > { %v19783_v28 = vld [vmem:[%s21840_s7 + $0x15b4] ss:$52 sps:$4 sm:$0xff]  }
 0x3e7   : > { %9849 = vmatpush1.bf16.msra.mxu0 %v19718_v36  ;;  %10677 = vmatpush1.bf16.msra.mxu1 %v19721_v37  ;;  %v19786_v36 = vld [vmem:[%s21840_s7 + $0x1ae4] ss:$52 sps:$4 sm:$0xff]   ;;  %v19789_v37 = vld [vmem:[%s21840_s7 + $0x161c] ss:$52 sps:$4 sm:$0xff]  }
 0x3e8   : > { %9850 = vmatprep.subr.bf16.mxu0 %v19726_v31  ;;  %10678 = vmatprep.subr.bf16.mxu1 %v19729_v38 }
 0x3eb   : > { %9851 = vmatpush1.bf16.msra.mxu0 %v19724_v39  ;;  %10679 = vmatpush1.bf16.msra.mxu1 %v19727_v40  ;;  %v19784_v40 = vld [vmem:[%s21840_s7 + $0x1ae0] ss:$52 sps:$4 sm:$0xff]  }
 0x3ec   : > { %9852 = vmatprep.subr.bf16.mxu0 %v19732_v32  ;;  %10680 = vmatprep.subr.bf16.mxu1 %v19735_v57  ;;  %v19787_v32 = vld [vmem:[%s21840_s7 + $0x1618] ss:$52 sps:$4 sm:$0xff]  }
 0x3ef   : > { %9853 = vmatpush1.bf16.msra.mxu0 %v19730_v41  ;;  %10681 = vmatpush1.bf16.msra.mxu1 %v19733_v45  ;;  %v19792_v41 = vld [vmem:[%s21840_s7 + $0x1b4c] ss:$52 sps:$4 sm:$0xff]   ;;  %v19795_v45 = vld [vmem:[%s21840_s7 + $0x1684] ss:$52 sps:$4 sm:$0xff]  }
 0x3f0   : > { %9854 = vmatprep.subr.bf16.mxu0 %v19738_v46  ;;  %10682 = vmatprep.subr.bf16.mxu1 %v19741_v51  ;;  %v19790_v46 = vld [vmem:[%s21840_s7 + $0x1b48] ss:$52 sps:$4 sm:$0xff]   ;;  %v19793_v51 = vld [vmem:[%s21840_s7 + $0x1680] ss:$52 sps:$4 sm:$0xff]  }
 0x3f3   : > { %9855 = vmatpush1.bf16.msra.mxu0 %v19736_v52  ;;  %10683 = vmatpush1.bf16.msra.mxu1 %v19739_v53  ;;  %v19798_v52 = vld [vmem:[%s21840_s7 + $0x1bb4] ss:$52 sps:$4 sm:$0xff]   ;;  %v19801_v53 = vld [vmem:[%s21840_s7 + $0x16ec] ss:$52 sps:$4 sm:$0xff]  }
 0x3f4   : > { %9856 = vmatprep.subr.bf16.mxu0 %v19744_v54  ;;  %10684 = vmatprep.subr.bf16.mxu1 %v19747_v55  ;;  %v19796_v54 = vld [vmem:[%s21840_s7 + $0x1bb0] ss:$52 sps:$4 sm:$0xff]   ;;  %v19799_v55 = vld [vmem:[%s21840_s7 + $0x16e8] ss:$52 sps:$4 sm:$0xff]  }
 0x3f7   : > { %9857 = vmatpush1.bf16.msra.mxu0 %v19742_v56  ;;  %10685 = vmatpush1.bf16.msra.mxu1 %v19745_v59  ;;  %v19804_v56 = vld [vmem:[%s21840_s7 + $0x1c1c] ss:$52 sps:$4 sm:$0xff]   ;;  %v19807_v59 = vld [vmem:[%s21840_s7 + $0x1754] ss:$52 sps:$4 sm:$0xff]  }
 0x3f8   : > { %9858 = vmatprep.subr.bf16.mxu0 %v19750_v60  ;;  %10695 = vmatprep.subr.bf16.mxu1 %v19753_v63  ;;  %v19802_v60 = vld [vmem:[%s21840_s7 + $0x1c18] ss:$52 sps:$4 sm:$0xff]   ;;  %v19805_v63 = vld [vmem:[%s21840_s7 + $0x1750] ss:$52 sps:$4 sm:$0xff]  }
 0x3fa   : > { %10687 = vmatmul.mubr.bf16.vlgmr.msra.gmra.mrb[8].mxu1 %v22145_v2 }
 0x3fb   : > { %9859 = vmatpush1.bf16.msra.mxu0 %v19748_v0  ;;  %10696 = vmatpush1.bf16.msra.mxu1 %v19751_v6  ;;  %v19810_v0 = vld [vmem:[%s21840_s7 + $0x1c84] ss:$52 sps:$4 sm:$0xff]   ;;  %v19813_v6 = vld [vmem:[%s21840_s7 + $0x17bc] ss:$52 sps:$4 sm:$0xff]  }
 0x3fc   : > { %9860 = vmatprep.subr.bf16.mxu0 %v19756_v7  ;;  %10697 = vmatprep.subr.bf16.mxu1 %v19759_v34  ;;  %v19808_v7 = vld [vmem:[%s21840_s7 + $0x1c80] ss:$52 sps:$4 sm:$0xff]   ;;  %v19811_v34 = vld [vmem:[%s21840_s7 + $0x17b8] ss:$52 sps:$4 sm:$0xff]  }
 0x3fd   : > { %10727 = vmatprep.mubr.bf16.mxu1 %v21935_v5 }
 0x3ff   : > { %9861 = vmatpush1.bf16.msra.mxu0 %v19754_v58  ;;  %10698 = vmatpush1.bf16.msra.mxu1 %v19757_v9  ;;  %v19816_v58 = vld [vmem:[%s21840_s7 + $0x1cec] ss:$52 sps:$4 sm:$0xff]   ;;  %v19819_v9 = vld [vmem:[%s21840_s7 + $0x1824] ss:$52 sps:$4 sm:$0xff]  }
 0x400   : > { %9862 = vmatprep.subr.bf16.mxu0 %v19762_v10  ;;  %10699 = vmatprep.subr.bf16.mxu1 %v19765_v11  ;;  %v19814_v10 = vld [vmem:[%s21840_s7 + $0x1ce8] ss:$52 sps:$4 sm:$0xff]   ;;  %v19817_v11 = vld [vmem:[%s21840_s7 + $0x1820] ss:$52 sps:$4 sm:$0xff]  }
 0x403   : > { %9863 = vmatpush1.bf16.msra.mxu0 %v19760_v12  ;;  %10700 = vmatpush1.bf16.msra.mxu1 %v19763_v13  ;;  %v19822_v12 = vld [vmem:[%s21840_s7 + $0x1d54] ss:$52 sps:$4 sm:$0xff]   ;;  %v19825_v13 = vld [vmem:[%s21840_s7 + $0x188c] ss:$52 sps:$4 sm:$0xff]  }
 0x404   : > { %9864 = vmatprep.subr.bf16.mxu0 %v19768_v14  ;;  %10701 = vmatprep.subr.bf16.mxu1 %v19771_v16  ;;  %v19820_v14 = vld [vmem:[%s21840_s7 + $0x1d50] ss:$52 sps:$4 sm:$0xff]   ;;  %v19823_v16 = vld [vmem:[%s21840_s7 + $0x1888] ss:$52 sps:$4 sm:$0xff]  }
 0x407   : > { %9865 = vmatpush1.bf16.msra.mxu0 %v19766_v17  ;;  %10702 = vmatpush1.bf16.msra.mxu1 %v19769_v18  ;;  %v19828_v17 = vld [vmem:[%s21840_s7 + $0x1dbc] ss:$52 sps:$4 sm:$0xff]   ;;  %v19831_v18 = vld [vmem:[%s21840_s7 + $0x18f4] ss:$52 sps:$4 sm:$0xff]  }
 0x408   : > { %9875 = vmatprep.subr.bf16.mxu0 %v19774_v19  ;;  %10703 = vmatprep.subr.bf16.mxu1 %v19777_v20  ;;  %v19826_v19 = vld [vmem:[%s21840_s7 + $0x1db8] ss:$52 sps:$4 sm:$0xff]   ;;  %v19829_v20 = vld [vmem:[%s21840_s7 + $0x18f0] ss:$52 sps:$4 sm:$0xff]  }
 0x40a   : > { %9867 = vmatmul.mubr.bf16.vlgmr.msra.gmra.mrb[8].mxu0 %v21957_v22 }
 0x40b   : > { %9876 = vmatpush1.bf16.msra.mxu0 %v19772_v23  ;;  %10704 = vmatpush1.bf16.msra.mxu1 %v19775_v24  ;;  %v19834_v23 = vld [vmem:[%s21840_s7 + $0x1e24] ss:$52 sps:$4 sm:$0xff]   ;;  %v19837_v24 = vld [vmem:[%s21840_s7 + $0x195c] ss:$52 sps:$4 sm:$0xff]  }
 0x40c   : > { %9877 = vmatprep.subr.bf16.mxu0 %v19780_v25  ;;  %10705 = vmatprep.subr.bf16.mxu1 %v19783_v28  ;;  %v19832_v25 = vld [vmem:[%s21840_s7 + $0x1e20] ss:$52 sps:$4 sm:$0xff]   ;;  %v19835_v28 = vld [vmem:[%s21840_s7 + $0x1958] ss:$52 sps:$4 sm:$0xff]  }
 0x40d   : > { %v22925_v31 = vpop.f32.mrb[4].mxu1  ;;  %9907 = vmatprep.mubr.bf16.mxu0 %v22006_v61 }
 0x40e   : > { %v22928_v38 = vpop.f32.mrb[5].mxu1 }
 0x40f   : > { %9878 = vmatpush1.bf16.msra.mxu0 %v19778_v29  ;;  %v10282_v39 = vpop.f32.mrb[6].mxu1  ;;  %10706 = vmatpush1.bf16.msra.mxu1 %v19781_v30  ;;  %v19840_v29 = vld [vmem:[%s21840_s7 + $0x1e8c] ss:$52 sps:$4 sm:$0xff]   ;;  %v19843_v30 = vld [vmem:[%s21840_s7 + $0x19c4] ss:$52 sps:$4 sm:$0xff]  }
 0x410   : > { %v10283_v57 = vpop.f32.mrb[7].mxu1  ;;  %9879 = vmatprep.subr.bf16.mxu0 %v19786_v36  ;;  %10707 = vmatprep.subr.bf16.mxu1 %v19789_v37  ;;  %v19838_v36 = vld [vmem:[%s21840_s7 + $0x1e88] ss:$52 sps:$4 sm:$0xff]   ;;  %v19841_v37 = vld [vmem:[%s21840_s7 + $0x19c0] ss:$52 sps:$4 sm:$0xff]  }
 0x411   : > { %v19846_v39 = vld [vmem:[%s21840_s7 + $0x1ef4] ss:$52 sps:$4 sm:$0xff]  }
 0x412   : > { %v19847_v57 = vld [vmem:[%s21840_s7 + $0x1a28] ss:$52 sps:$4 sm:$0xff]  }
 0x413   : > { %9880 = vmatpush1.bf16.msra.mxu0 %v19784_v40  ;;  %10708 = vmatpush1.bf16.msra.mxu1 %v19787_v32  ;;  %v19849_v40 = vld [vmem:[%s21840_s7 + $0x1a2c] ss:$52 sps:$4 sm:$0xff]   ;;  %v19844_v32 = vld [vmem:[%s21840_s7 + $0x1ef0] ss:$52 sps:$4 sm:$0xff]  }
 0x414   : > { %9881 = vmatprep.subr.bf16.mxu0 %v19792_v41  ;;  %10709 = vmatprep.subr.bf16.mxu1 %v19795_v45  ;;  %v19852_v41 = vld [vmem:[%s21840_s7 + $0x1f5c] ss:$52 sps:$4 sm:$0xff]   ;;  %v19855_v45 = vld [vmem:[%s21840_s7 + $0x1a94] ss:$52 sps:$4 sm:$0xff]  }
 0x417   : > { %9882 = vmatpush1.bf16.msra.mxu0 %v19790_v46  ;;  %10710 = vmatpush1.bf16.msra.mxu1 %v19793_v51  ;;  %v19850_v46 = vld [vmem:[%s21840_s7 + $0x1f58] ss:$52 sps:$4 sm:$0xff]   ;;  %v19853_v51 = vld [vmem:[%s21840_s7 + $0x1a90] ss:$52 sps:$4 sm:$0xff]  }
 0x418   : > { %9883 = vmatprep.subr.bf16.mxu0 %v19798_v52  ;;  %10711 = vmatprep.subr.bf16.mxu1 %v19801_v53  ;;  %v19858_v52 = vld [vmem:[%s21840_s7 + $0x1fc4] ss:$52 sps:$4 sm:$0xff]   ;;  %v19861_v53 = vld [vmem:[%s21840_s7 + $0x1afc] ss:$52 sps:$4 sm:$0xff]  }
 0x41b   : > { %9884 = vmatpush1.bf16.msra.mxu0 %v19796_v54  ;;  %10712 = vmatpush1.bf16.msra.mxu1 %v19799_v55  ;;  %v19856_v54 = vld [vmem:[%s21840_s7 + $0x1fc0] ss:$52 sps:$4 sm:$0xff]   ;;  %v19859_v55 = vld [vmem:[%s21840_s7 + $0x1af8] ss:$52 sps:$4 sm:$0xff]  }
 0x41c   : > { %9885 = vmatprep.subr.bf16.mxu0 %v19804_v56  ;;  %10713 = vmatprep.subr.bf16.mxu1 %v19807_v59  ;;  %v19864_v56 = vld [vmem:[%s21840_s7 + $0x202c] ss:$52 sps:$4 sm:$0xff]   ;;  %v19867_v59 = vld [vmem:[%s21840_s7 + $0x1b64] ss:$52 sps:$4 sm:$0xff]  }
 0x41f   : > { %9886 = vmatpush1.bf16.msra.mxu0 %v19802_v60  ;;  %10714 = vmatpush1.bf16.msra.mxu1 %v19805_v63  ;;  %v19862_v60 = vld [vmem:[%s21840_s7 + $0x2028] ss:$52 sps:$4 sm:$0xff]   ;;  %v19865_v63 = vld [vmem:[%s21840_s7 + $0x1b60] ss:$52 sps:$4 sm:$0xff]  }
 0x420   : > { %9887 = vmatprep.subr.bf16.mxu0 %v19810_v0  ;;  %10715 = vmatprep.subr.bf16.mxu1 %v19813_v6  ;;  %v19870_v0 = vld [vmem:[%s21840_s7 + $0x2094] ss:$52 sps:$4 sm:$0xff]   ;;  %v19873_v6 = vld [vmem:[%s21840_s7 + $0x1bcc] ss:$52 sps:$4 sm:$0xff]  }
 0x423   : > { %9888 = vmatpush1.bf16.msra.mxu0 %v19808_v7  ;;  %10716 = vmatpush1.bf16.msra.mxu1 %v19811_v34  ;;  %v19868_v7 = vld [vmem:[%s21840_s7 + $0x2090] ss:$52 sps:$4 sm:$0xff]   ;;  %v19871_v34 = vld [vmem:[%s21840_s7 + $0x1bc8] ss:$52 sps:$4 sm:$0xff]  }
 0x424   : > { %9889 = vmatprep.subr.bf16.mxu0 %v19816_v58  ;;  %10717 = vmatprep.subr.bf16.mxu1 %v19819_v9  ;;  %v19876_v58 = vld [vmem:[%s21840_s7 + $0x20fc] ss:$52 sps:$4 sm:$0xff]   ;;  %v19879_v9 = vld [vmem:[%s21840_s7 + $0x1c34] ss:$52 sps:$4 sm:$0xff]  }
 0x427   : > { %9890 = vmatpush1.bf16.msra.mxu0 %v19814_v10  ;;  %10718 = vmatpush1.bf16.msra.mxu1 %v19817_v11  ;;  %v19874_v10 = vld [vmem:[%s21840_s7 + $0x20f8] ss:$52 sps:$4 sm:$0xff]   ;;  %v19877_v11 = vld [vmem:[%s21840_s7 + $0x1c30] ss:$52 sps:$4 sm:$0xff]  }
 0x428   : > { %9891 = vmatprep.subr.bf16.mxu0 %v19822_v12  ;;  %10719 = vmatprep.subr.bf16.mxu1 %v19825_v13  ;;  %v19882_v12 = vld [vmem:[%s21840_s7 + $0x2164] ss:$52 sps:$4 sm:$0xff]   ;;  %v19885_v13 = vld [vmem:[%s21840_s7 + $0x1c9c] ss:$52 sps:$4 sm:$0xff]  }
 0x42b   : > { %9892 = vmatpush1.bf16.msra.mxu0 %v19820_v14  ;;  %10720 = vmatpush1.bf16.msra.mxu1 %v19823_v16  ;;  %v19880_v14 = vld [vmem:[%s21840_s7 + $0x2160] ss:$52 sps:$4 sm:$0xff]   ;;  %v19883_v16 = vld [vmem:[%s21840_s7 + $0x1c98] ss:$52 sps:$4 sm:$0xff]  }
 0x42c   : > { %9893 = vmatprep.subr.bf16.mxu0 %v19828_v17  ;;  %10721 = vmatprep.subr.bf16.mxu1 %v19831_v18  ;;  %v19888_v17 = vld [vmem:[%s21840_s7 + $0x21cc] ss:$52 sps:$4 sm:$0xff]   ;;  %v19891_v18 = vld [vmem:[%s21840_s7 + $0x1d04] ss:$52 sps:$4 sm:$0xff]  }
 0x42f   : > { %9894 = vmatpush1.bf16.msra.mxu0 %v19826_v19  ;;  %10722 = vmatpush1.bf16.msra.mxu1 %v19829_v20  ;;  %v19886_v19 = vld [vmem:[%s21840_s7 + $0x21c8] ss:$52 sps:$4 sm:$0xff]   ;;  %v19889_v20 = vld [vmem:[%s21840_s7 + $0x1d00] ss:$52 sps:$4 sm:$0xff]  }
 0x430   : > { %9895 = vmatprep.subr.bf16.mxu0 %v19834_v23  ;;  %10723 = vmatprep.subr.bf16.mxu1 %v19837_v24  ;;  %v19894_v23 = vld [vmem:[%s21840_s7 + $0x2234] ss:$52 sps:$4 sm:$0xff]   ;;  %v19897_v24 = vld [vmem:[%s21840_s7 + $0x1d6c] ss:$52 sps:$4 sm:$0xff]  }
 0x433   : > { %9896 = vmatpush1.bf16.msra.mxu0 %v19832_v25  ;;  %10724 = vmatpush1.bf16.msra.mxu1 %v19835_v28  ;;  %v19892_v25 = vld [vmem:[%s21840_s7 + $0x2230] ss:$52 sps:$4 sm:$0xff]   ;;  %v19895_v28 = vld [vmem:[%s21840_s7 + $0x1d68] ss:$52 sps:$4 sm:$0xff]  }
 0x434   : > { %9897 = vmatprep.subr.bf16.mxu0 %v19840_v29  ;;  %10725 = vmatprep.subr.bf16.mxu1 %v19843_v30  ;;  %v19900_v29 = vld [vmem:[%s21840_s7 + $0x229c] ss:$52 sps:$4 sm:$0xff]   ;;  %v19903_v30 = vld [vmem:[%s21840_s7 + $0x1dd4] ss:$52 sps:$4 sm:$0xff]  }
 0x437   : > { %9898 = vmatpush1.bf16.msra.mxu0 %v19838_v36  ;;  %10726 = vmatpush1.bf16.msra.mxu1 %v19841_v37  ;;  %v19898_v36 = vld [vmem:[%s21840_s7 + $0x2298] ss:$52 sps:$4 sm:$0xff]   ;;  %v19901_v37 = vld [vmem:[%s21840_s7 + $0x1dd0] ss:$52 sps:$4 sm:$0xff]  }
 0x438   : > { %9899 = vmatprep.subr.bf16.mxu0 %v19846_v39  ;;  %10736 = vmatprep.subr.bf16.mxu1 %v19849_v40  ;;  %v19906_v39 = vld [vmem:[%s21840_s7 + $0x2304] ss:$52 sps:$4 sm:$0xff]   ;;  %v19909_v40 = vld [vmem:[%s21840_s7 + $0x1e3c] ss:$52 sps:$4 sm:$0xff]  }
 0x43a   : > { %10728 = vmatmul.mubr.bf16.vlgmr.msra.gmra.mrb[8].mxu1 %v21957_v22 }
 0x43b   : > { %9900 = vmatpush1.bf16.msra.mxu0 %v19844_v32  ;;  %10737 = vmatpush1.bf16.msra.mxu1 %v19847_v57  ;;  %v19904_v32 = vld [vmem:[%s21840_s7 + $0x2300] ss:$52 sps:$4 sm:$0xff]   ;;  %v19907_v57 = vld [vmem:[%s21840_s7 + $0x1e38] ss:$52 sps:$4 sm:$0xff]  }
 0x43c   : > { %9901 = vmatprep.subr.bf16.mxu0 %v19852_v41  ;;  %10738 = vmatprep.subr.bf16.mxu1 %v19855_v45  ;;  %v19912_v41 = vld [vmem:[%s21840_s7 + $0x236c] ss:$52 sps:$4 sm:$0xff]   ;;  %v19915_v45 = vld [vmem:[%s21840_s7 + $0x1ea4] ss:$52 sps:$4 sm:$0xff]  }
 0x43d   : > { %10768 = vmatprep.mubr.bf16.mxu1 %v22006_v61 }
 0x43f   : > { %9902 = vmatpush1.bf16.msra.mxu0 %v19850_v46  ;;  %10739 = vmatpush1.bf16.msra.mxu1 %v19853_v51  ;;  %v19910_v46 = vld [vmem:[%s21840_s7 + $0x2368] ss:$52 sps:$4 sm:$0xff]   ;;  %v19913_v51 = vld [vmem:[%s21840_s7 + $0x1ea0] ss:$52 sps:$4 sm:$0xff]  }
 0x440   : > { %9903 = vmatprep.subr.bf16.mxu0 %v19858_v52  ;;  %10740 = vmatprep.subr.bf16.mxu1 %v19861_v53  ;;  %v19918_v52 = vld [vmem:[%s21840_s7 + $0x23d4] ss:$52 sps:$4 sm:$0xff]   ;;  %v19921_v53 = vld [vmem:[%s21840_s7 + $0x1f0c] ss:$52 sps:$4 sm:$0xff]  }
 0x443   : > { %9904 = vmatpush1.bf16.msra.mxu0 %v19856_v54  ;;  %10741 = vmatpush1.bf16.msra.mxu1 %v19859_v55  ;;  %v19916_v54 = vld [vmem:[%s21840_s7 + $0x23d0] ss:$52 sps:$4 sm:$0xff]   ;;  %v19919_v55 = vld [vmem:[%s21840_s7 + $0x1f08] ss:$52 sps:$4 sm:$0xff]  }
 0x444   : > { %9905 = vmatprep.subr.bf16.mxu0 %v19864_v56  ;;  %10742 = vmatprep.subr.bf16.mxu1 %v19867_v59  ;;  %v19924_v56 = vld [vmem:[%s21840_s7 + $0x243c] ss:$52 sps:$4 sm:$0xff]   ;;  %v19927_v59 = vld [vmem:[%s21840_s7 + $0x1f74] ss:$52 sps:$4 sm:$0xff]  }
 0x447   : > { %9906 = vmatpush1.bf16.msra.mxu0 %v19862_v60  ;;  %10743 = vmatpush1.bf16.msra.mxu1 %v19865_v63  ;;  %v19922_v60 = vld [vmem:[%s21840_s7 + $0x2438] ss:$52 sps:$4 sm:$0xff]   ;;  %v19925_v63 = vld [vmem:[%s21840_s7 + $0x1f70] ss:$52 sps:$4 sm:$0xff]  }
 0x448   : > { %9916 = vmatprep.subr.bf16.mxu0 %v19870_v0  ;;  %10744 = vmatprep.subr.bf16.mxu1 %v19873_v6  ;;  %v19930_v0 = vld [vmem:[%s21840_s7 + $0x24a4] ss:$52 sps:$4 sm:$0xff]   ;;  %v19933_v6 = vld [vmem:[%s21840_s7 + $0x1fdc] ss:$52 sps:$4 sm:$0xff]  }
 0x44a   : > { %9908 = vmatmul.mubr.bf16.vlgmr.msra.gmra.mrb[8].mxu0 %v22062_v43 }
 0x44b   : > { %9917 = vmatpush1.bf16.msra.mxu0 %v19868_v7  ;;  %10745 = vmatpush1.bf16.msra.mxu1 %v19871_v34  ;;  %v19928_v7 = vld [vmem:[%s21840_s7 + $0x24a0] ss:$52 sps:$4 sm:$0xff]   ;;  %v19931_v34 = vld [vmem:[%s21840_s7 + $0x1fd8] ss:$52 sps:$4 sm:$0xff]  }
 0x44c   : > { %9918 = vmatprep.subr.bf16.mxu0 %v19876_v58  ;;  %10746 = vmatprep.subr.bf16.mxu1 %v19879_v9  ;;  %v19936_v58 = vld [vmem:[%s21840_s7 + $0x250c] ss:$52 sps:$4 sm:$0xff]   ;;  %v19939_v9 = vld [vmem:[%s21840_s7 + $0x2044] ss:$52 sps:$4 sm:$0xff]  }
 0x44d   : > { %9948 = vmatprep.mubr.bf16.mxu0 %v22069_v49 }
 0x44f   : > { %9919 = vmatpush1.bf16.msra.mxu0 %v19874_v10  ;;  %10747 = vmatpush1.bf16.msra.mxu1 %v19877_v11  ;;  %v19934_v10 = vld [vmem:[%s21840_s7 + $0x2508] ss:$52 sps:$4 sm:$0xff]   ;;  %v19937_v11 = vld [vmem:[%s21840_s7 + $0x2040] ss:$52 sps:$4 sm:$0xff]  }
 0x450   : > { %9920 = vmatprep.subr.bf16.mxu0 %v19882_v12  ;;  %10748 = vmatprep.subr.bf16.mxu1 %v19885_v13  ;;  %v19942_v12 = vld [vmem:[%s21840_s7 + $0x2574] ss:$52 sps:$4 sm:$0xff]   ;;  %v19945_v13 = vld [vmem:[%s21840_s7 + $0x20ac] ss:$52 sps:$4 sm:$0xff]  }
 0x453   : > { %9921 = vmatpush1.bf16.msra.mxu0 %v19880_v14  ;;  %10749 = vmatpush1.bf16.msra.mxu1 %v19883_v16  ;;  %v19940_v14 = vld [vmem:[%s21840_s7 + $0x2570] ss:$52 sps:$4 sm:$0xff]   ;;  %v19943_v16 = vld [vmem:[%s21840_s7 + $0x20a8] ss:$52 sps:$4 sm:$0xff]  }
 0x454   : > { %9922 = vmatprep.subr.bf16.mxu0 %v19888_v17  ;;  %10750 = vmatprep.subr.bf16.mxu1 %v19891_v18  ;;  %v19948_v17 = vld [vmem:[%s21840_s7 + $0x25dc] ss:$52 sps:$4 sm:$0xff]   ;;  %v19951_v18 = vld [vmem:[%s21840_s7 + $0x2114] ss:$52 sps:$4 sm:$0xff]  }
 0x457   : > { %9923 = vmatpush1.bf16.msra.mxu0 %v19886_v19  ;;  %10751 = vmatpush1.bf16.msra.mxu1 %v19889_v20  ;;  %v19946_v19 = vld [vmem:[%s21840_s7 + $0x25d8] ss:$52 sps:$4 sm:$0xff]   ;;  %v19949_v20 = vld [vmem:[%s21840_s7 + $0x2110] ss:$52 sps:$4 sm:$0xff]  }
 0x458   : > { %9924 = vmatprep.subr.bf16.mxu0 %v19894_v23  ;;  %10752 = vmatprep.subr.bf16.mxu1 %v19897_v24  ;;  %v19954_v23 = vld [vmem:[%s21840_s7 + $0x2644] ss:$52 sps:$4 sm:$0xff]   ;;  %v19957_v24 = vld [vmem:[%s21840_s7 + $0x217c] ss:$52 sps:$4 sm:$0xff]  }
 0x45b   : > { %9925 = vmatpush1.bf16.msra.mxu0 %v19892_v25  ;;  %10753 = vmatpush1.bf16.msra.mxu1 %v19895_v28  ;;  %v19952_v25 = vld [vmem:[%s21840_s7 + $0x2640] ss:$52 sps:$4 sm:$0xff]   ;;  %v19955_v28 = vld [vmem:[%s21840_s7 + $0x2178] ss:$52 sps:$4 sm:$0xff]  }
 0x45c   : > { %9926 = vmatprep.subr.bf16.mxu0 %v19900_v29  ;;  %10754 = vmatprep.subr.bf16.mxu1 %v19903_v30  ;;  %v19960_v29 = vld [vmem:[%s21840_s7 + $0x26ac] ss:$52 sps:$4 sm:$0xff]   ;;  %v19963_v30 = vld [vmem:[%s21840_s7 + $0x21e4] ss:$52 sps:$4 sm:$0xff]  }
 0x45f   : > { %9927 = vmatpush1.bf16.msra.mxu0 %v19898_v36  ;;  %10755 = vmatpush1.bf16.msra.mxu1 %v19901_v37  ;;  %v19958_v36 = vld [vmem:[%s21840_s7 + $0x26a8] ss:$52 sps:$4 sm:$0xff]   ;;  %v19961_v37 = vld [vmem:[%s21840_s7 + $0x21e0] ss:$52 sps:$4 sm:$0xff]  }
 0x460   : > { %9928 = vmatprep.subr.bf16.mxu0 %v19906_v39  ;;  %10756 = vmatprep.subr.bf16.mxu1 %v19909_v40  ;;  %v19966_v39 = vld [vmem:[%s21840_s7 + $0x2714] ss:$52 sps:$4 sm:$0xff]   ;;  %v19969_v40 = vld [vmem:[%s21840_s7 + $0x224c] ss:$52 sps:$4 sm:$0xff]  }
 0x463   : > { %9929 = vmatpush1.bf16.msra.mxu0 %v19904_v32  ;;  %10757 = vmatpush1.bf16.msra.mxu1 %v19907_v57  ;;  %v19964_v32 = vld [vmem:[%s21840_s7 + $0x2710] ss:$52 sps:$4 sm:$0xff]   ;;  %v19967_v57 = vld [vmem:[%s21840_s7 + $0x2248] ss:$52 sps:$4 sm:$0xff]  }
 0x464   : > { %9930 = vmatprep.subr.bf16.mxu0 %v19912_v41  ;;  %10758 = vmatprep.subr.bf16.mxu1 %v19915_v45  ;;  %v19972_v41 = vld [vmem:[%s21840_s7 + $0x277c] ss:$52 sps:$4 sm:$0xff]   ;;  %v19975_v45 = vld [vmem:[%s21840_s7 + $0x22b4] ss:$52 sps:$4 sm:$0xff]  }
 0x467   : > { %9931 = vmatpush1.bf16.msra.mxu0 %v19910_v46  ;;  %10759 = vmatpush1.bf16.msra.mxu1 %v19913_v51  ;;  %v19970_v46 = vld [vmem:[%s21840_s7 + $0x2778] ss:$52 sps:$4 sm:$0xff]   ;;  %v19973_v51 = vld [vmem:[%s21840_s7 + $0x22b0] ss:$52 sps:$4 sm:$0xff]  }
 0x468   : > { %9932 = vmatprep.subr.bf16.mxu0 %v19918_v52  ;;  %10760 = vmatprep.subr.bf16.mxu1 %v19921_v53  ;;  %v19978_v52 = vld [vmem:[%s21840_s7 + $0x27e4] ss:$52 sps:$4 sm:$0xff]   ;;  %v19981_v53 = vld [vmem:[%s21840_s7 + $0x231c] ss:$52 sps:$4 sm:$0xff]  }
 0x46b   : > { %9933 = vmatpush1.bf16.msra.mxu0 %v19916_v54  ;;  %10761 = vmatpush1.bf16.msra.mxu1 %v19919_v55  ;;  %v19976_v54 = vld [vmem:[%s21840_s7 + $0x27e0] ss:$52 sps:$4 sm:$0xff]   ;;  %v19979_v55 = vld [vmem:[%s21840_s7 + $0x2318] ss:$52 sps:$4 sm:$0xff]  }
 0x46c   : > { %9934 = vmatprep.subr.bf16.mxu0 %v19924_v56  ;;  %10762 = vmatprep.subr.bf16.mxu1 %v19927_v59  ;;  %v19984_v56 = vld [vmem:[%s21840_s7 + $0x284c] ss:$52 sps:$4 sm:$0xff]   ;;  %v19987_v59 = vld [vmem:[%s21840_s7 + $0x2384] ss:$52 sps:$4 sm:$0xff]  }
 0x46f   : > { %9935 = vmatpush1.bf16.msra.mxu0 %v19922_v60  ;;  %10763 = vmatpush1.bf16.msra.mxu1 %v19925_v63  ;;  %v19982_v60 = vld [vmem:[%s21840_s7 + $0x2848] ss:$52 sps:$4 sm:$0xff]   ;;  %v19985_v63 = vld [vmem:[%s21840_s7 + $0x2380] ss:$52 sps:$4 sm:$0xff]  }
 0x470   : > { %9936 = vmatprep.subr.bf16.mxu0 %v19930_v0  ;;  %10764 = vmatprep.subr.bf16.mxu1 %v19933_v6  ;;  %v19990_v0 = vld [vmem:[%s21840_s7 + $0x28b4] ss:$52 sps:$4 sm:$0xff]   ;;  %v19993_v6 = vld [vmem:[%s21840_s7 + $0x23ec] ss:$52 sps:$4 sm:$0xff]  }
 0x473   : > { %9937 = vmatpush1.bf16.msra.mxu0 %v19928_v7  ;;  %10765 = vmatpush1.bf16.msra.mxu1 %v19931_v34  ;;  %v19988_v7 = vld [vmem:[%s21840_s7 + $0x28b0] ss:$52 sps:$4 sm:$0xff]   ;;  %v19991_v34 = vld [vmem:[%s21840_s7 + $0x23e8] ss:$52 sps:$4 sm:$0xff]  }
 0x474   : > { %9938 = vmatprep.subr.bf16.mxu0 %v19936_v58  ;;  %10766 = vmatprep.subr.bf16.mxu1 %v19939_v9  ;;  %v19996_v58 = vld [vmem:[%s21840_s7 + $0x291c] ss:$52 sps:$4 sm:$0xff]   ;;  %v19999_v9 = vld [vmem:[%s21840_s7 + $0x2454] ss:$52 sps:$4 sm:$0xff]  }
 0x477   : > { %9939 = vmatpush1.bf16.msra.mxu0 %v19934_v10  ;;  %10767 = vmatpush1.bf16.msra.mxu1 %v19937_v11  ;;  %v19994_v10 = vld [vmem:[%s21840_s7 + $0x2918] ss:$52 sps:$4 sm:$0xff]   ;;  %v19997_v11 = vld [vmem:[%s21840_s7 + $0x2450] ss:$52 sps:$4 sm:$0xff]  }
 0x478   : > { %9940 = vmatprep.subr.bf16.mxu0 %v19942_v12  ;;  %10777 = vmatprep.subr.bf16.mxu1 %v19945_v13  ;;  %v20002_v12 = vld [vmem:[%s21840_s7 + $0x2984] ss:$52 sps:$4 sm:$0xff]   ;;  %v20005_v13 = vld [vmem:[%s21840_s7 + $0x24bc] ss:$52 sps:$4 sm:$0xff]  }
 0x47a   : > { %10769 = vmatmul.mubr.bf16.vlgmr.msra.gmra.mrb[8].mxu1 %v22062_v43 }
 0x47b   : > { %9941 = vmatpush1.bf16.msra.mxu0 %v19940_v14  ;;  %10778 = vmatpush1.bf16.msra.mxu1 %v19943_v16  ;;  %v20000_v14 = vld [vmem:[%s21840_s7 + $0x2980] ss:$52 sps:$4 sm:$0xff]   ;;  %v20003_v16 = vld [vmem:[%s21840_s7 + $0x24b8] ss:$52 sps:$4 sm:$0xff]  }
 0x47c   : > { %9942 = vmatprep.subr.bf16.mxu0 %v19948_v17  ;;  %10779 = vmatprep.subr.bf16.mxu1 %v19951_v18  ;;  %v20008_v17 = vld [vmem:[%s21840_s7 + $0x29ec] ss:$52 sps:$4 sm:$0xff]   ;;  %v20011_v18 = vld [vmem:[%s21840_s7 + $0x2524] ss:$52 sps:$4 sm:$0xff]  }
 0x47d   : > { %10809 = vmatprep.mubr.bf16.mxu1 %v22069_v49 }
 0x47f   : > { %9943 = vmatpush1.bf16.msra.mxu0 %v19946_v19  ;;  %10780 = vmatpush1.bf16.msra.mxu1 %v19949_v20  ;;  %v20006_v19 = vld [vmem:[%s21840_s7 + $0x29e8] ss:$52 sps:$4 sm:$0xff]   ;;  %v20009_v20 = vld [vmem:[%s21840_s7 + $0x2520] ss:$52 sps:$4 sm:$0xff]  }
 0x480   : > { %9944 = vmatprep.subr.bf16.mxu0 %v19954_v23  ;;  %10781 = vmatprep.subr.bf16.mxu1 %v19957_v24  ;;  %v20014_v23 = vld [vmem:[%s21840_s7 + $0x2a54] ss:$52 sps:$4 sm:$0xff]   ;;  %v20017_v24 = vld [vmem:[%s21840_s7 + $0x258c] ss:$52 sps:$4 sm:$0xff]  }
 0x483   : > { %9945 = vmatpush1.bf16.msra.mxu0 %v19952_v25  ;;  %10782 = vmatpush1.bf16.msra.mxu1 %v19955_v28  ;;  %v20012_v25 = vld [vmem:[%s21840_s7 + $0x2a50] ss:$52 sps:$4 sm:$0xff]   ;;  %v20015_v28 = vld [vmem:[%s21840_s7 + $0x2588] ss:$52 sps:$4 sm:$0xff]  }
 0x484   : > { %9946 = vmatprep.subr.bf16.mxu0 %v19960_v29  ;;  %10783 = vmatprep.subr.bf16.mxu1 %v19963_v30  ;;  %v20020_v29 = vld [vmem:[%s21840_s7 + $0x2abc] ss:$52 sps:$4 sm:$0xff]   ;;  %v20023_v30 = vld [vmem:[%s21840_s7 + $0x25f4] ss:$52 sps:$4 sm:$0xff]  }
 0x487   : > { %9947 = vmatpush1.bf16.msra.mxu0 %v19958_v36  ;;  %10784 = vmatpush1.bf16.msra.mxu1 %v19961_v37  ;;  %v20018_v36 = vld [vmem:[%s21840_s7 + $0x2ab8] ss:$52 sps:$4 sm:$0xff]   ;;  %v20021_v37 = vld [vmem:[%s21840_s7 + $0x25f0] ss:$52 sps:$4 sm:$0xff]  }
 0x488   : > { %9957 = vmatprep.subr.bf16.mxu0 %v19966_v39  ;;  %10785 = vmatprep.subr.bf16.mxu1 %v19969_v40  ;;  %v20026_v39 = vld [vmem:[%s21840_s7 + $0x2b24] ss:$52 sps:$4 sm:$0xff]   ;;  %v20029_v40 = vld [vmem:[%s21840_s7 + $0x265c] ss:$52 sps:$4 sm:$0xff]  }
 0x48a   : > { %9949 = vmatmul.mubr.bf16.vlgmr.msra.gmra.mrb[8].mxu0 %v22149_v3 }
 0x48b   : > { %9958 = vmatpush1.bf16.msra.mxu0 %v19964_v32  ;;  %10786 = vmatpush1.bf16.msra.mxu1 %v19967_v57  ;;  %v20024_v32 = vld [vmem:[%s21840_s7 + $0x2b20] ss:$52 sps:$4 sm:$0xff]   ;;  %v20027_v57 = vld [vmem:[%s21840_s7 + $0x2658] ss:$52 sps:$4 sm:$0xff]  }
 0x48c   : > { %9959 = vmatprep.subr.bf16.mxu0 %v19972_v41  ;;  %10787 = vmatprep.subr.bf16.mxu1 %v19975_v45  ;;  %v20032_v41 = vld [vmem:[%s21840_s7 + $0x2b8c] ss:$52 sps:$4 sm:$0xff]   ;;  %v20035_v45 = vld [vmem:[%s21840_s7 + $0x26c4] ss:$52 sps:$4 sm:$0xff]  }
 0x48d   : > { %17381 = vmatprep.mubr.msk.bf16.mxu0 %vm9133_vm0, %v22154_v8 }
 0x48f   : > { %9960 = vmatpush1.bf16.msra.mxu0 %v19970_v46  ;;  %10788 = vmatpush1.bf16.msra.mxu1 %v19973_v51  ;;  %v20030_v46 = vld [vmem:[%s21840_s7 + $0x2b88] ss:$52 sps:$4 sm:$0xff]   ;;  %v20033_v51 = vld [vmem:[%s21840_s7 + $0x26c0] ss:$52 sps:$4 sm:$0xff]  }
 0x490   : > { %9961 = vmatprep.subr.bf16.mxu0 %v19978_v52  ;;  %10789 = vmatprep.subr.bf16.mxu1 %v19981_v53  ;;  %v20038_v52 = vld [vmem:[%s21840_s7 + $0x24] ss:$52 sps:$4 sm:$0xff]   ;;  %v20041_v53 = vld [vmem:[%s21840_s7 + $0x272c] ss:$52 sps:$4 sm:$0xff]  }
 0x493   : > { %9962 = vmatpush1.bf16.msra.mxu0 %v19976_v54  ;;  %10790 = vmatpush1.bf16.msra.mxu1 %v19979_v55  ;;  %v20036_v54 = vld [vmem:[%s21840_s7 + $0x20] ss:$52 sps:$4 sm:$0xff]   ;;  %v20039_v55 = vld [vmem:[%s21840_s7 + $0x2728] ss:$52 sps:$4 sm:$0xff]  }
 0x494   : > { %9963 = vmatprep.subr.bf16.mxu0 %v19984_v56  ;;  %10791 = vmatprep.subr.bf16.mxu1 %v19987_v59  ;;  %v20044_v56 = vld [vmem:[%s21840_s7 + $0x8c] ss:$52 sps:$4 sm:$0xff]   ;;  %v20047_v59 = vld [vmem:[%s21840_s7 + $0x2794] ss:$52 sps:$4 sm:$0xff]  }
 0x497   : > { %9964 = vmatpush1.bf16.msra.mxu0 %v19982_v60  ;;  %10792 = vmatpush1.bf16.msra.mxu1 %v19985_v63  ;;  %v20042_v60 = vld [vmem:[%s21840_s7 + $0x88] ss:$52 sps:$4 sm:$0xff]   ;;  %v20045_v63 = vld [vmem:[%s21840_s7 + $0x2790] ss:$52 sps:$4 sm:$0xff]  }
 0x498   : > { %9965 = vmatprep.subr.bf16.mxu0 %v19990_v0  ;;  %10793 = vmatprep.subr.bf16.mxu1 %v19993_v6  ;;  %v20050_v0 = vld [vmem:[%s21840_s7 + $0xf4] ss:$52 sps:$4 sm:$0xff]   ;;  %v20053_v6 = vld [vmem:[%s21840_s7 + $0x27fc] ss:$52 sps:$4 sm:$0xff]  }
 0x49b   : > { %9966 = vmatpush1.bf16.msra.mxu0 %v19988_v7  ;;  %10794 = vmatpush1.bf16.msra.mxu1 %v19991_v34  ;;  %v20048_v7 = vld [vmem:[%s21840_s7 + $0xf0] ss:$52 sps:$4 sm:$0xff]   ;;  %v20051_v34 = vld [vmem:[%s21840_s7 + $0x27f8] ss:$52 sps:$4 sm:$0xff]  }
 0x49c   : > { %9967 = vmatprep.subr.bf16.mxu0 %v19996_v58  ;;  %10795 = vmatprep.subr.bf16.mxu1 %v19999_v9  ;;  %v20056_v58 = vld [vmem:[%s21840_s7 + $0x15c] ss:$52 sps:$4 sm:$0xff]   ;;  %v20059_v9 = vld [vmem:[%s21840_s7 + $0x2864] ss:$52 sps:$4 sm:$0xff]  }
 0x49f   : > { %9968 = vmatpush1.bf16.msra.mxu0 %v19994_v10  ;;  %10796 = vmatpush1.bf16.msra.mxu1 %v19997_v11  ;;  %v20054_v10 = vld [vmem:[%s21840_s7 + $0x158] ss:$52 sps:$4 sm:$0xff]   ;;  %v20057_v11 = vld [vmem:[%s21840_s7 + $0x2860] ss:$52 sps:$4 sm:$0xff]  }
 0x4a0   : > { %9969 = vmatprep.subr.bf16.mxu0 %v20002_v12  ;;  %10797 = vmatprep.subr.bf16.mxu1 %v20005_v13  ;;  %v20062_v12 = vld [vmem:[%s21840_s7 + $0x1c4] ss:$52 sps:$4 sm:$0xff]   ;;  %v20065_v13 = vld [vmem:[%s21840_s7 + $0x28cc] ss:$52 sps:$4 sm:$0xff]  }
 0x4a3   : > { %9970 = vmatpush1.bf16.msra.mxu0 %v20000_v14  ;;  %10798 = vmatpush1.bf16.msra.mxu1 %v20003_v16  ;;  %v20060_v14 = vld [vmem:[%s21840_s7 + $0x1c0] ss:$52 sps:$4 sm:$0xff]   ;;  %v20063_v16 = vld [vmem:[%s21840_s7 + $0x28c8] ss:$52 sps:$4 sm:$0xff]  }
 0x4a4   : > { %9971 = vmatprep.subr.bf16.mxu0 %v20008_v17  ;;  %10799 = vmatprep.subr.bf16.mxu1 %v20011_v18  ;;  %v20068_v17 = vld [vmem:[%s21840_s7 + $0x22c] ss:$52 sps:$4 sm:$0xff]   ;;  %v20071_v18 = vld [vmem:[%s21840_s7 + $0x2934] ss:$52 sps:$4 sm:$0xff]  }
 0x4a7   : > { %9972 = vmatpush1.bf16.msra.mxu0 %v20006_v19  ;;  %10800 = vmatpush1.bf16.msra.mxu1 %v20009_v20  ;;  %v20066_v19 = vld [vmem:[%s21840_s7 + $0x228] ss:$52 sps:$4 sm:$0xff]   ;;  %v20069_v20 = vld [vmem:[%s21840_s7 + $0x2930] ss:$52 sps:$4 sm:$0xff]  }
 0x4a8   : > { %9973 = vmatprep.subr.bf16.mxu0 %v20014_v23  ;;  %10801 = vmatprep.subr.bf16.mxu1 %v20017_v24  ;;  %v20074_v23 = vld [vmem:[%s21840_s7 + $0x294] ss:$52 sps:$4 sm:$0xff]   ;;  %v20077_v24 = vld [vmem:[%s21840_s7 + $0x299c] ss:$52 sps:$4 sm:$0xff]  }
 0x4ab   : > { %9974 = vmatpush1.bf16.msra.mxu0 %v20012_v25  ;;  %10802 = vmatpush1.bf16.msra.mxu1 %v20015_v28  ;;  %v20072_v25 = vld [vmem:[%s21840_s7 + $0x290] ss:$52 sps:$4 sm:$0xff]   ;;  %v20075_v28 = vld [vmem:[%s21840_s7 + $0x2998] ss:$52 sps:$4 sm:$0xff]  }
 0x4ac   : > { %9975 = vmatprep.subr.bf16.mxu0 %v20020_v29  ;;  %10803 = vmatprep.subr.bf16.mxu1 %v20023_v30  ;;  %v20080_v29 = vld [vmem:[%s21840_s7 + $0x2fc] ss:$52 sps:$4 sm:$0xff]   ;;  %v20083_v30 = vld [vmem:[%s21840_s7 + $0x2a04] ss:$52 sps:$4 sm:$0xff]  }
 0x4af   : > { %9976 = vmatpush1.bf16.msra.mxu0 %v20018_v36  ;;  %10804 = vmatpush1.bf16.msra.mxu1 %v20021_v37  ;;  %v20078_v36 = vld [vmem:[%s21840_s7 + $0x2f8] ss:$52 sps:$4 sm:$0xff]   ;;  %v20081_v37 = vld [vmem:[%s21840_s7 + $0x2a00] ss:$52 sps:$4 sm:$0xff]  }
 0x4b0   : > { %9977 = vmatprep.subr.bf16.mxu0 %v20026_v39  ;;  %10805 = vmatprep.subr.bf16.mxu1 %v20029_v40  ;;  %v20086_v39 = vld [vmem:[%s21840_s7 + $0x364] ss:$52 sps:$4 sm:$0xff]   ;;  %v20089_v40 = vld [vmem:[%s21840_s7 + $0x2a6c] ss:$52 sps:$4 sm:$0xff]  }
 0x4b3   : > { %9978 = vmatpush1.bf16.msra.mxu0 %v20024_v32  ;;  %10806 = vmatpush1.bf16.msra.mxu1 %v20027_v57  ;;  %v20084_v32 = vld [vmem:[%s21840_s7 + $0x360] ss:$52 sps:$4 sm:$0xff]   ;;  %v20087_v57 = vld [vmem:[%s21840_s7 + $0x2a68] ss:$52 sps:$4 sm:$0xff]  }
 0x4b4   : > { %9979 = vmatprep.subr.bf16.mxu0 %v20032_v41  ;;  %10807 = vmatprep.subr.bf16.mxu1 %v20035_v45  ;;  %v20092_v41 = vld [vmem:[%s21840_s7 + $0x3cc] ss:$52 sps:$4 sm:$0xff]   ;;  %v20095_v45 = vld [vmem:[%s21840_s7 + $0x2ad4] ss:$52 sps:$4 sm:$0xff]  }
 0x4b7   : > { %9980 = vmatpush1.bf16.msra.mxu0 %v20030_v46  ;;  %10808 = vmatpush1.bf16.msra.mxu1 %v20033_v51  ;;  %v20090_v46 = vld [vmem:[%s21840_s7 + $0x3c8] ss:$52 sps:$4 sm:$0xff]   ;;  %v20093_v51 = vld [vmem:[%s21840_s7 + $0x2ad0] ss:$52 sps:$4 sm:$0xff]  }
 0x4b8   : > { %10285 = vmatprep.subr.bf16.mxu0 %v20038_v52  ;;  %10818 = vmatprep.subr.bf16.mxu1 %v20041_v53  ;;  %v20098_v52 = vld [vmem:[%s21840_s7 + $0x434] ss:$52 sps:$4 sm:$0xff]   ;;  %v20101_v53 = vld [vmem:[%s21840_s7 + $0x2b3c] ss:$52 sps:$4 sm:$0xff]  }
 0x4ba   : > { %9990 = vmatmul.mubr.bf16.vlgmr.msra.gmra.mrb[8].mxu0 %v22208_v4  ;;  %10810 = vmatmul.mubr.bf16.vlgmr.msra.gmra.mrb[8].mxu1 %v22149_v3 }
 0x4bb   : > { %10286 = vmatpush1.bf16.msra.mxu0 %v20036_v54  ;;  %10819 = vmatpush1.bf16.msra.mxu1 %v20039_v55  ;;  %v20096_v54 = vld [vmem:[%s21840_s7 + $0x430] ss:$52 sps:$4 sm:$0xff]   ;;  %v20099_v55 = vld [vmem:[%s21840_s7 + $0x2b38] ss:$52 sps:$4 sm:$0xff]  }
 0x4bc   : > { %10287 = vmatprep.subr.bf16.mxu0 %v20044_v56  ;;  %10820 = vmatprep.subr.bf16.mxu1 %v20047_v59  ;;  %v20104_v56 = vld [vmem:[%s21840_s7 + $0x49c] ss:$52 sps:$4 sm:$0xff]   ;;  %v20107_v59 = vld [vmem:[%s21840_s7 + $0x2ba4] ss:$52 sps:$4 sm:$0xff]  }
 0x4bd   : > { %17384 = vmatprep.mubr.msk.bf16.mxu1 %vm9133_vm0, %v22154_v8  ;;  %10317 = vmatprep.mubr.bf16.mxu0 %v21927_v62 }
 0x4bf   : > { %10288 = vmatpush1.bf16.msra.mxu0 %v20042_v60  ;;  %10821 = vmatpush1.bf16.msra.mxu1 %v20045_v63  ;;  %v20102_v60 = vld [vmem:[%s21840_s7 + $0x498] ss:$52 sps:$4 sm:$0xff]   ;;  %v20105_v63 = vld [vmem:[%s21840_s7 + $0x2ba0] ss:$52 sps:$4 sm:$0xff]  }
 0x4c0   : > { %10289 = vmatprep.subr.bf16.mxu0 %v20050_v0  ;;  %10822 = vmatprep.subr.bf16.mxu1 %v20053_v6  ;;  %v20110_v0 = vld [vmem:[%s21840_s7 + $0x504] ss:$52 sps:$4 sm:$0xff]  }
 0x4c1   : > { %v20111_v6 = vld [vmem:[%s21840_s7 + $0x9f0] ss:$52 sps:$4 sm:$0xff]  }
 0x4c3   : > { %10290 = vmatpush1.bf16.msra.mxu0 %v20048_v7  ;;  %10823 = vmatpush1.bf16.msra.mxu1 %v20051_v34  ;;  %v20108_v7 = vld [vmem:[%s21840_s7 + $0x500] ss:$52 sps:$4 sm:$0xff]   ;;  %v20112_v34 = vld [vmem:[%s21840_s7 + $0x6b0] ss:$52 sps:$4 sm:$0xff]  }
 0x4c4   : > { %10291 = vmatprep.subr.bf16.mxu0 %v20056_v58  ;;  %10824 = vmatprep.subr.bf16.mxu1 %v20059_v9  ;;  %v20115_v58 = vld [vmem:[%s21840_s7 + $0x56c] ss:$52 sps:$4 sm:$0xff]  }
 0x4c5   : > { %v20116_v9 = vld [vmem:[%s21840_s7 + $0xa58] ss:$52 sps:$4 sm:$0xff]  }
 0x4c7   : > { %10292 = vmatpush1.bf16.msra.mxu0 %v20054_v10  ;;  %10825 = vmatpush1.bf16.msra.mxu1 %v20057_v11  ;;  %v20113_v10 = vld [vmem:[%s21840_s7 + $0x568] ss:$52 sps:$4 sm:$0xff]   ;;  %v20117_v11 = vld [vmem:[%s21840_s7 + $0x718] ss:$52 sps:$4 sm:$0xff]  }
 0x4c8   : > { %10293 = vmatprep.subr.bf16.mxu0 %v20062_v12  ;;  %10826 = vmatprep.subr.bf16.mxu1 %v20065_v13  ;;  %v20120_v12 = vld [vmem:[%s21840_s7 + $0x5d4] ss:$52 sps:$4 sm:$0xff]  }
 0x4c9   : > { %v20121_v13 = vld [vmem:[%s21840_s7 + $0xac0] ss:$52 sps:$4 sm:$0xff]  }
 0x4cb   : > { %10294 = vmatpush1.bf16.msra.mxu0 %v20060_v14  ;;  %10827 = vmatpush1.bf16.msra.mxu1 %v20063_v16  ;;  %v20118_v14 = vld [vmem:[%s21840_s7 + $0x5d0] ss:$52 sps:$4 sm:$0xff]   ;;  %v20122_v16 = vld [vmem:[%s21840_s7 + $0x780] ss:$52 sps:$4 sm:$0xff]  }
 0x4cc   : > { %10295 = vmatprep.subr.bf16.mxu0 %v20068_v17  ;;  %10828 = vmatprep.subr.bf16.mxu1 %v20071_v18  ;;  %v20125_v17 = vld [vmem:[%s21840_s7 + $0x63c] ss:$52 sps:$4 sm:$0xff]  }
 0x4cd   : > { %v20126_v18 = vld [vmem:[%s21840_s7 + $0xb28] ss:$52 sps:$4 sm:$0xff]  }
 0x4cf   : > { %10296 = vmatpush1.bf16.msra.mxu0 %v20066_v19  ;;  %10829 = vmatpush1.bf16.msra.mxu1 %v20069_v20  ;;  %v20123_v19 = vld [vmem:[%s21840_s7 + $0x638] ss:$52 sps:$4 sm:$0xff]   ;;  %v20127_v20 = vld [vmem:[%s21840_s7 + $0x7e8] ss:$52 sps:$4 sm:$0xff]  }
 0x4d0   : > { %10297 = vmatprep.subr.bf16.mxu0 %v20074_v23  ;;  %10830 = vmatprep.subr.bf16.mxu1 %v20077_v24  ;;  %v20130_v23 = vld [vmem:[%s21840_s7 + $0x6a4] ss:$52 sps:$4 sm:$0xff]  }
 0x4d1   : > { %v20131_v24 = vld [vmem:[%s21840_s7 + $0xb90] ss:$52 sps:$4 sm:$0xff]  }
 0x4d3   : > { %10298 = vmatpush1.bf16.msra.mxu0 %v20072_v25  ;;  %10831 = vmatpush1.bf16.msra.mxu1 %v20075_v28  ;;  %v20128_v25 = vld [vmem:[%s21840_s7 + $0x6a0] ss:$52 sps:$4 sm:$0xff]   ;;  %v20132_v28 = vld [vmem:[%s21840_s7 + $0x850] ss:$52 sps:$4 sm:$0xff]  }
 0x4d4   : > { %10299 = vmatprep.subr.bf16.mxu0 %v20080_v29  ;;  %10832 = vmatprep.subr.bf16.mxu1 %v20083_v30  ;;  %v20135_v29 = vld [vmem:[%s21840_s7 + $0x70c] ss:$52 sps:$4 sm:$0xff]  }
 0x4d5   : > { %v20136_v30 = vld [vmem:[%s21840_s7 + $0xbf8] ss:$52 sps:$4 sm:$0xff]  }
 0x4d7   : > { %10300 = vmatpush1.bf16.msra.mxu0 %v20078_v36  ;;  %10833 = vmatpush1.bf16.msra.mxu1 %v20081_v37  ;;  %v20133_v36 = vld [vmem:[%s21840_s7 + $0x708] ss:$52 sps:$4 sm:$0xff]   ;;  %v20137_v37 = vld [vmem:[%s21840_s7 + $0x8b8] ss:$52 sps:$4 sm:$0xff]  }
 0x4d8   : > { %10301 = vmatprep.subr.bf16.mxu0 %v20086_v39  ;;  %10834 = vmatprep.subr.bf16.mxu1 %v20089_v40  ;;  %v20140_v39 = vld [vmem:[%s21840_s7 + $0x774] ss:$52 sps:$4 sm:$0xff]  }
 0x4d9   : > { %v20141_v40 = vld [vmem:[%s21840_s7 + $0xc60] ss:$52 sps:$4 sm:$0xff]  }
 0x4db   : > { %10302 = vmatpush1.bf16.msra.mxu0 %v20084_v32  ;;  %10835 = vmatpush1.bf16.msra.mxu1 %v20087_v57  ;;  %v20138_v32 = vld [vmem:[%s21840_s7 + $0x770] ss:$52 sps:$4 sm:$0xff]   ;;  %v20142_v57 = vld [vmem:[%s21840_s7 + $0x920] ss:$52 sps:$4 sm:$0xff]  }
 0x4dc   : > { %10303 = vmatprep.subr.bf16.mxu0 %v20092_v41  ;;  %10836 = vmatprep.subr.bf16.mxu1 %v20095_v45  ;;  %v20145_v41 = vld [vmem:[%s21840_s7 + $0x7dc] ss:$52 sps:$4 sm:$0xff]  }
 0x4dd   : > { %v20146_v45 = vld [vmem:[%s21840_s7 + $0xcc8] ss:$52 sps:$4 sm:$0xff]  }
 0x4df   : > { %10304 = vmatpush1.bf16.msra.mxu0 %v20090_v46  ;;  %10837 = vmatpush1.bf16.msra.mxu1 %v20093_v51  ;;  %v20143_v46 = vld [vmem:[%s21840_s7 + $0x7d8] ss:$52 sps:$4 sm:$0xff]   ;;  %v20147_v51 = vld [vmem:[%s21840_s7 + $0x988] ss:$52 sps:$4 sm:$0xff]  }
 0x4e0   : > { %10305 = vmatprep.subr.bf16.mxu0 %v20098_v52  ;;  %10838 = vmatprep.subr.bf16.mxu1 %v20101_v53  ;;  %v20151_v52 = vld [vmem:[%s21840_s7 + $0x16f0] ss:$52 sps:$4 sm:$0xff]   ;;  %v20148_v53 = vld [vmem:[%s21840_s7 + $0x840] ss:$52 sps:$4 sm:$0xff]  }
 0x4e3   : > { %10306 = vmatpush1.bf16.msra.mxu0 %v20096_v54  ;;  %10839 = vmatpush1.bf16.msra.mxu1 %v20099_v55  ;;  %v20152_v54 = vld [vmem:[%s21840_s7 + $0x13b0] ss:$52 sps:$4 sm:$0xff]   ;;  %v20155_v55 = vld [vmem:[%s21840_s7 + $0x8ac] ss:$52 sps:$4 sm:$0xff]  }
 0x4e4   : > { %10307 = vmatprep.subr.bf16.mxu0 %v20104_v56  ;;  %10840 = vmatprep.subr.bf16.mxu1 %v20107_v59  ;;  %v20156_v56 = vld [vmem:[%s21840_s7 + $0x1758] ss:$52 sps:$4 sm:$0xff]   ;;  %v20153_v59 = vld [vmem:[%s21840_s7 + $0x8a8] ss:$52 sps:$4 sm:$0xff]  }
 0x4e7   : > { %10308 = vmatpush1.bf16.msra.mxu0 %v20102_v60  ;;  %10841 = vmatpush1.bf16.msra.mxu1 %v20105_v63  ;;  %v20157_v60 = vld [vmem:[%s21840_s7 + $0x1418] ss:$52 sps:$4 sm:$0xff]   ;;  %v20160_v63 = vld [vmem:[%s21840_s7 + $0x914] ss:$52 sps:$4 sm:$0xff]  }
 0x4e8   : > { %10309 = vmatprep.subr.bf16.mxu0 %v20110_v0  ;;  %18037 = vmatprep.subr.bf16.mxu1 %v20111_v6  ;;  %v20161_v0 = vld [vmem:[%s21840_s7 + $0x17c0] ss:$52 sps:$4 sm:$0xff]   ;;  %v20158_v6 = vld [vmem:[%s21840_s7 + $0x910] ss:$52 sps:$4 sm:$0xff]  }
 0x4ea   : > { %10851 = vmatmul.mubr.bf16.vlgmr.msra.gmra.mrb[8].mxu1 %v22208_v4 }
 0x4eb   : > { %10310 = vmatpush1.bf16.msra.mxu0 %v20108_v7  ;;  %18038 = vmatpush3.bf16.msra.mxu1 %v20112_v34  ;;  %v20162_v7 = vld [vmem:[%s21840_s7 + $0x1480] ss:$52 sps:$4 sm:$0xff]   ;;  %v20165_v34 = vld [vmem:[%s21840_s7 + $0x97c] ss:$52 sps:$4 sm:$0xff]  }
 0x4ec   : > { %10311 = vmatprep.subr.bf16.mxu0 %v20115_v58  ;;  %18039 = vmatprep.subr.bf16.mxu1 %v20116_v9  ;;  %v20166_v58 = vld [vmem:[%s21840_s7 + $0x1828] ss:$52 sps:$4 sm:$0xff]   ;;  %v20163_v9 = vld [vmem:[%s21840_s7 + $0x978] ss:$52 sps:$4 sm:$0xff]  }
 0x4ed   : > { %10931 = vmatprep.mubr.bf16.mxu1 %v21963_v27 }
 0x4ef   : > { %10312 = vmatpush1.bf16.msra.mxu0 %v20113_v10  ;;  %18040 = vmatpush3.bf16.msra.mxu1 %v20117_v11  ;;  %v20167_v10 = vld [vmem:[%s21840_s7 + $0x14e8] ss:$52 sps:$4 sm:$0xff]   ;;  %v20170_v11 = vld [vmem:[%s21840_s7 + $0x9e4] ss:$52 sps:$4 sm:$0xff]  }
 0x4f0   : > { %10313 = vmatprep.subr.bf16.mxu0 %v20120_v12  ;;  %18041 = vmatprep.subr.bf16.mxu1 %v20121_v13  ;;  %v20171_v12 = vld [vmem:[%s21840_s7 + $0x1890] ss:$52 sps:$4 sm:$0xff]   ;;  %v20168_v13 = vld [vmem:[%s21840_s7 + $0x9e0] ss:$52 sps:$4 sm:$0xff]  }
 0x4f3   : > { %10314 = vmatpush1.bf16.msra.mxu0 %v20118_v14  ;;  %18042 = vmatpush3.bf16.msra.mxu1 %v20122_v16  ;;  %v20172_v14 = vld [vmem:[%s21840_s7 + $0x1550] ss:$52 sps:$4 sm:$0xff]   ;;  %v20175_v16 = vld [vmem:[%s21840_s7 + $0xa4c] ss:$52 sps:$4 sm:$0xff]  }
 0x4f4   : > { %10315 = vmatprep.subr.bf16.mxu0 %v20125_v17  ;;  %18043 = vmatprep.subr.bf16.mxu1 %v20126_v18  ;;  %v20176_v17 = vld [vmem:[%s21840_s7 + $0x18f8] ss:$52 sps:$4 sm:$0xff]   ;;  %v20173_v18 = vld [vmem:[%s21840_s7 + $0xa48] ss:$52 sps:$4 sm:$0xff]  }
 0x4f7   : > { %10316 = vmatpush1.bf16.msra.mxu0 %v20123_v19  ;;  %18044 = vmatpush3.bf16.msra.mxu1 %v20127_v20  ;;  %v20177_v19 = vld [vmem:[%s21840_s7 + $0x15b8] ss:$52 sps:$4 sm:$0xff]   ;;  %v20180_v20 = vld [vmem:[%s21840_s7 + $0xab4] ss:$52 sps:$4 sm:$0xff]  }
 0x4f8   : > { %10326 = vmatprep.subr.bf16.mxu0 %v20130_v23  ;;  %18045 = vmatprep.subr.bf16.mxu1 %v20131_v24  ;;  %v20181_v23 = vld [vmem:[%s21840_s7 + $0x1960] ss:$52 sps:$4 sm:$0xff]   ;;  %v20178_v24 = vld [vmem:[%s21840_s7 + $0xab0] ss:$52 sps:$4 sm:$0xff]  }
 0x4fa   : > { %10318 = vmatmul.mubr.bf16.vlgmr.msra.gmra.mrb[12].mxu0 %v21955_v21 }
 0x4fb   : > { %10327 = vmatpush1.bf16.msra.mxu0 %v20128_v25  ;;  %18046 = vmatpush3.bf16.msra.mxu1 %v20132_v28  ;;  %v20182_v25 = vld [vmem:[%s21840_s7 + $0x1620] ss:$52 sps:$4 sm:$0xff]   ;;  %v20185_v28 = vld [vmem:[%s21840_s7 + $0xb1c] ss:$52 sps:$4 sm:$0xff]  }
 0x4fc   : > { %10328 = vmatprep.subr.bf16.mxu0 %v20135_v29  ;;  %18047 = vmatprep.subr.bf16.mxu1 %v20136_v30  ;;  %v20186_v29 = vld [vmem:[%s21840_s7 + $0x19c8] ss:$52 sps:$4 sm:$0xff]   ;;  %v20183_v30 = vld [vmem:[%s21840_s7 + $0xb18] ss:$52 sps:$4 sm:$0xff]  }
 0x4fd   : > { %10358 = vmatprep.mubr.bf16.mxu0 %v21963_v27  ;;  %v20150_v27 = vld [vmem:[%s21840_s7 + $0x844] ss:$52 sps:$4 sm:$0xff]  }
 0x4ff   : > { %10329 = vmatpush1.bf16.msra.mxu0 %v20133_v36  ;;  %18048 = vmatpush3.bf16.msra.mxu1 %v20137_v37  ;;  %v20187_v36 = vld [vmem:[%s21840_s7 + $0x1688] ss:$52 sps:$4 sm:$0xff]   ;;  %v20190_v37 = vld [vmem:[%s21840_s7 + $0xb84] ss:$52 sps:$4 sm:$0xff]  }
 0x500   : > { %10330 = vmatprep.subr.bf16.mxu0 %v20140_v39  ;;  %18049 = vmatprep.subr.bf16.mxu1 %v20141_v40  ;;  %v20191_v39 = vld [vmem:[%s21840_s7 + $0x23f0] ss:$52 sps:$4 sm:$0xff]   ;;  %v20188_v40 = vld [vmem:[%s21840_s7 + $0xb80] ss:$52 sps:$4 sm:$0xff]  }
 0x503   : > { %10331 = vmatpush1.bf16.msra.mxu0 %v20138_v32  ;;  %18050 = vmatpush3.bf16.msra.mxu1 %v20142_v57  ;;  %v20192_v32 = vld [vmem:[%s21840_s7 + $0x20b0] ss:$52 sps:$4 sm:$0xff]   ;;  %v20195_v57 = vld [vmem:[%s21840_s7 + $0xbec] ss:$52 sps:$4 sm:$0xff]  }
 0x504   : > { %10332 = vmatprep.subr.bf16.mxu0 %v20145_v41  ;;  %18051 = vmatprep.subr.bf16.mxu1 %v20146_v45  ;;  %v20196_v41 = vld [vmem:[%s21840_s7 + $0x2458] ss:$52 sps:$4 sm:$0xff]   ;;  %v20193_v45 = vld [vmem:[%s21840_s7 + $0xbe8] ss:$52 sps:$4 sm:$0xff]  }
 0x507   : > { %10333 = vmatpush1.bf16.msra.mxu0 %v20143_v46  ;;  %18052 = vmatpush3.bf16.msra.mxu1 %v20147_v51  ;;  %v20197_v46 = vld [vmem:[%s21840_s7 + $0x2118] ss:$52 sps:$4 sm:$0xff]   ;;  %v20200_v51 = vld [vmem:[%s21840_s7 + $0xc54] ss:$52 sps:$4 sm:$0xff]  }
 0x508   : > { %10334 = vmatprep.subr.bf16.mxu0 %v20150_v27  ;;  %18081 = vmatprep.subr.bf16.mxu1 %v20151_v52  ;;  %v20201_v27 = vld [vmem:[%s21840_s7 + $0x24c0] ss:$52 sps:$4 sm:$0xff]   ;;  %v20198_v52 = vld [vmem:[%s21840_s7 + $0xc50] ss:$52 sps:$4 sm:$0xff]  }
 0x50a   : > { %10932 = vmatmul.mubr.bf16.vlgmr.msra.gmra.mrb[12].mxu1 %v22058_v42 }
 0x50b   : > { %10335 = vmatpush1.bf16.msra.mxu0 %v20148_v53  ;;  %18082 = vmatpush3.bf16.msra.mxu1 %v20152_v54  ;;  %v20202_v53 = vld [vmem:[%s21840_s7 + $0x2180] ss:$52 sps:$4 sm:$0xff]   ;;  %v20205_v54 = vld [vmem:[%s21840_s7 + $0xcbc] ss:$52 sps:$4 sm:$0xff]  }
 0x50c   : > { %10336 = vmatprep.subr.bf16.mxu0 %v20155_v55  ;;  %18083 = vmatprep.subr.bf16.mxu1 %v20156_v56  ;;  %v20206_v55 = vld [vmem:[%s21840_s7 + $0x2528] ss:$52 sps:$4 sm:$0xff]   ;;  %v20203_v56 = vld [vmem:[%s21840_s7 + $0xcb8] ss:$52 sps:$4 sm:$0xff]  }
 0x50d   : > { %11011 = vmatprep.mubr.bf16.mxu1 %v21935_v5 }
 0x50f   : > { %10337 = vmatpush1.bf16.msra.mxu0 %v20153_v59  ;;  %18084 = vmatpush3.bf16.msra.mxu1 %v20157_v60  ;;  %v20207_v59 = vld [vmem:[%s21840_s7 + $0x21e8] ss:$52 sps:$4 sm:$0xff]   ;;  %v20210_v60 = vld [vmem:[%s21840_s7 + $0xd24] ss:$52 sps:$4 sm:$0xff]  }
 0x510   : > { %10338 = vmatprep.subr.bf16.mxu0 %v20160_v63  ;;  %18085 = vmatprep.subr.bf16.mxu1 %v20161_v0  ;;  %v20211_v63 = vld [vmem:[%s21840_s7 + $0x2590] ss:$52 sps:$4 sm:$0xff]   ;;  %v20208_v0 = vld [vmem:[%s21840_s7 + $0xd20] ss:$52 sps:$4 sm:$0xff]  }
 0x513   : > { %10339 = vmatpush1.bf16.msra.mxu0 %v20158_v6  ;;  %18086 = vmatpush3.bf16.msra.mxu1 %v20162_v7  ;;  %v20212_v6 = vld [vmem:[%s21840_s7 + $0x2250] ss:$52 sps:$4 sm:$0xff]   ;;  %v20215_v7 = vld [vmem:[%s21840_s7 + $0xd8c] ss:$52 sps:$4 sm:$0xff]  }
 0x514   : > { %10340 = vmatprep.subr.bf16.mxu0 %v20165_v34  ;;  %18087 = vmatprep.subr.bf16.mxu1 %v20166_v58  ;;  %v20216_v34 = vld [vmem:[%s21840_s7 + $0x25f8] ss:$52 sps:$4 sm:$0xff]   ;;  %v23253_v58 = vsub.s32 1, %v21900_v44 }
 0x517   : > { %10341 = vmatpush1.bf16.msra.mxu0 %v20163_v9  ;;  %18088 = vmatpush3.bf16.msra.mxu1 %v20167_v10  ;;  %v20213_v9 = vld [vmem:[%s21840_s7 + $0xd88] ss:$52 sps:$4 sm:$0xff]   ;;  %v20217_v10 = vld [vmem:[%s21840_s7 + $0x22b8] ss:$52 sps:$4 sm:$0xff]  }
 0x518   : > { %10342 = vmatprep.subr.bf16.mxu0 %v20170_v11  ;;  %18089 = vmatprep.subr.bf16.mxu1 %v20171_v12  ;;  %v20220_v11 = vld [vmem:[%s21840_s7 + $0xdf4] ss:$52 sps:$4 sm:$0xff]  }
 0x519   : > { %v20221_v12 = vld [vmem:[%s21840_s7 + $0x2660] ss:$52 sps:$4 sm:$0xff]  }
 0x51b   : > { %10343 = vmatpush1.bf16.msra.mxu0 %v20168_v13  ;;  %18090 = vmatpush3.bf16.msra.mxu1 %v20172_v14  ;;  %v23262_v13 = vld [vmem:[%s21847_s27] sm:$0xff] }
 0x51c   : > { %10344 = vmatprep.subr.bf16.mxu0 %v20175_v16  ;;  %18091 = vmatprep.subr.bf16.mxu1 %v20176_v17  ;;  %v1947_v14 = vrot.slane %v23262_v13, %v23253_v58  ;;  %v20222_v16 = vld [vmem:[%s21840_s7 + $0x2320] ss:$52 sps:$4 sm:$0xff]   ;;  %v20225_v17 = vld [vmem:[%s21840_s7 + $0xe5c] ss:$52 sps:$4 sm:$0xff]  }
 0x51f   : > { %10345 = vmatpush1.bf16.msra.mxu0 %v20173_v18  ;;  %18092 = vmatpush3.bf16.msra.mxu1 %v20177_v19  ;;  %v20226_v18 = vld [vmem:[%s21840_s7 + $0x26c8] ss:$52 sps:$4 sm:$0xff]   ;;  %v18148_v19 = vadd.f32 %v22653_v15, %v1947_v14  ;;  %v20236_v15 = vld [vmem:[%s21840_s7 + $0xf2c] ss:$52 sps:$4 sm:$0xff]  }
 0x520   : > { %10346 = vmatprep.subr.bf16.mxu0 %v20180_v20  ;;  %18093 = vmatprep.subr.bf16.mxu1 %v20181_v23  ;;  %v20223_v20 = vld [vmem:[%s21840_s7 + $0xe58] ss:$52 sps:$4 sm:$0xff]   ;;  %v20227_v23 = vld [vmem:[%s21840_s7 + $0x2388] ss:$52 sps:$4 sm:$0xff]  }
 0x521   : > { %v20273_v14 = vld [vmem:[%s21853_s18 + $0x150] ss:$24 sps:$4 sm:$0xff]  }
 0x523   : > { %10347 = vmatpush1.bf16.msra.mxu0 %v20178_v24  ;;  %18094 = vmatpush3.bf16.msra.mxu1 %v20182_v25  ;;  %v20230_v24 = vld [vmem:[%s21840_s7 + $0xec4] ss:$52 sps:$4 sm:$0xff]  }
 0x524   : > { %10348 = vmatprep.subr.bf16.mxu0 %v20185_v28  ;;  %18095 = vmatprep.subr.bf16.mxu1 %v20186_v29  ;;  %v20233_v25 = vld [vmem:[%s21853_s18 + $0x4] ss:$24 sps:$4 sm:$0xff]   ;;  %v11140_v28 = vmax.f32 %v18148_v19, 0.0 }
 0x525   : > { %v20228_v29 = vld [vmem:[%s21840_s7 + $0xec0] ss:$52 sps:$4 sm:$0xff]  }
 0x526   : > { %v20284_v19 = vld [vmem:[%s21840_s7 + $0x126c] ss:$52 sps:$4 sm:$0xff]  }
 0x527   : > { %10349 = vmatpush1.bf16.msra.mxu0 %v20183_v30  ;;  %18096 = vmatpush3.bf16.msra.mxu1 %v20187_v36  ;;  %v20231_v30 = vld [vmem:[%s21853_s18] ss:$24 sps:$4 sm:$0xff]   ;;  %v20239_v36 = vld [vmem:[%s21853_s18 + $0x34] ss:$24 sps:$4 sm:$0xff]  }
 0x528   : > { %10350 = vmatprep.subr.bf16.mxu0 %v20190_v37  ;;  %18125 = vmatprep.subr.bf16.mxu1 %v20191_v39  ;;  %v23279_v37 = vpack.c.bf16 %v11140_v28, %v11140_v28  ;;  %v20234_v39 = vld [vmem:[%s21840_s7 + $0xf28] ss:$52 sps:$4 sm:$0xff]  }
 0x529   : > { %v20293_v28 = vld [vmem:[%s21853_s18 + $0x1e4] ss:$24 sps:$4 sm:$0xff]  }
 0x52a   : > { %11012 = vmatmul.mubr.bf16.vlgmr.msra.gmra.mrb[16].mxu1 %v21957_v22 }
 0x52b   : > { %10351 = vmatpush1.bf16.msra.mxu0 %v20188_v40  ;;  %18126 = vmatpush3.bf16.msra.mxu1 %v20192_v32  ;;  %v20237_v40 = vld [vmem:[%s21853_s18 + $0x30] ss:$24 sps:$4 sm:$0xff]  }
 0x52c   : > { %10352 = vmatprep.subr.bf16.mxu0 %v20195_v57  ;;  %18127 = vmatprep.subr.bf16.mxu1 %v20196_v41  ;;  %v20242_v32 = vld [vmem:[%s21840_s7 + $0xf94] ss:$52 sps:$4 sm:$0xff]   ;;  %v20240_v41 = vld [vmem:[%s21840_s7 + $0xf90] ss:$52 sps:$4 sm:$0xff]  }
 0x52d   : > { %11091 = vmatprep.mubr.bf16.mxu1 %v22069_v49  ;;  %v20245_v57 = vld [vmem:[%s21853_s18 + $0x64] ss:$24 sps:$4 sm:$0xff]  }
 0x52f   : > { %10353 = vmatpush1.bf16.msra.mxu0 %v20193_v45  ;;  %18128 = vmatpush3.bf16.msra.mxu1 %v20197_v46  ;;  %v20243_v45 = vld [vmem:[%s21853_s18 + $0x60] ss:$24 sps:$4 sm:$0xff]  }
 0x530   : > { %10354 = vmatprep.subr.bf16.mxu0 %v20200_v51  ;;  %18129 = vmatprep.subr.bf16.mxu1 %v20201_v27  ;;  %v20248_v46 = vld [vmem:[%s21840_s7 + $0xffc] ss:$52 sps:$4 sm:$0xff]   ;;  %v20246_v27 = vld [vmem:[%s21840_s7 + $0xff8] ss:$52 sps:$4 sm:$0xff]  }
 0x531   : > { %v20251_v51 = vld [vmem:[%s21853_s18 + $0x94] ss:$24 sps:$4 sm:$0xff]  }
 0x533   : > { %10355 = vmatpush1.bf16.msra.mxu0 %v20198_v52  ;;  %18130 = vmatpush3.bf16.msra.mxu1 %v20202_v53  ;;  %v20249_v52 = vld [vmem:[%s21853_s18 + $0x90] ss:$24 sps:$4 sm:$0xff]  }
 0x534   : > { %10356 = vmatprep.subr.bf16.mxu0 %v20205_v54  ;;  %18131 = vmatprep.subr.bf16.mxu1 %v20206_v55  ;;  %v20254_v53 = vld [vmem:[%s21840_s7 + $0x1064] ss:$52 sps:$4 sm:$0xff]   ;;  %v20252_v55 = vld [vmem:[%s21840_s7 + $0x1060] ss:$52 sps:$4 sm:$0xff]  }
 0x535   : > { %v20257_v54 = vld [vmem:[%s21853_s18 + $0xc4] ss:$24 sps:$4 sm:$0xff]  }
 0x537   : > { %10357 = vmatpush1.bf16.msra.mxu0 %v20203_v56  ;;  %18132 = vmatpush3.bf16.msra.mxu1 %v20207_v59  ;;  %v20255_v56 = vld [vmem:[%s21853_s18 + $0xc0] ss:$24 sps:$4 sm:$0xff]   ;;  %v20260_v59 = vld [vmem:[%s21840_s7 + $0x10cc] ss:$52 sps:$4 sm:$0xff]  }
 0x538   : > { %10367 = vmatprep.subr.bf16.mxu0 %v20210_v60  ;;  %18133 = vmatprep.subr.bf16.mxu1 %v20211_v63  ;;  %v20263_v60 = vld [vmem:[%s21853_s18 + $0xf4] ss:$24 sps:$4 sm:$0xff]  }
 0x539   : > { %v20258_v63 = vld [vmem:[%s21840_s7 + $0x10c8] ss:$52 sps:$4 sm:$0xff]  }
 0x53a   : > { %10359 = vmatmul.mubr.bf16.vlgmr.msra.gmra.mrb[12].mxu0 %v22058_v42  ;;  %v20218_v42 = vld [vmem:[%s21840_s7 + $0xdf0] ss:$52 sps:$4 sm:$0xff]  }
 0x53b   : > { %10368 = vmatpush1.bf16.msra.mxu0 %v20208_v0  ;;  %18134 = vmatpush3.bf16.msra.mxu1 %v20212_v6  ;;  %v20261_v0 = vld [vmem:[%s21853_s18 + $0xf0] ss:$24 sps:$4 sm:$0xff]  }
 0x53c   : > { %10369 = vmatprep.subr.bf16.mxu0 %v20215_v7  ;;  %18135 = vmatprep.subr.bf16.mxu1 %v20216_v34  ;;  %v20266_v6 = vld [vmem:[%s21840_s7 + $0x1134] ss:$52 sps:$4 sm:$0xff]   ;;  %v20264_v34 = vld [vmem:[%s21840_s7 + $0x1130] ss:$52 sps:$4 sm:$0xff]  }
 0x53d   : > { %10399 = vmatprep.mubr.bf16.mxu0 %v22067_v48  ;;  %v20269_v7 = vld [vmem:[%s21853_s18 + $0x124] ss:$24 sps:$4 sm:$0xff]  }
 0x53f   : > { %10370 = vmatpush1.bf16.msra.mxu0 %v20213_v9  ;;  %18136 = vmatpush3.bf16.msra.mxu1 %v20217_v10  ;;  %v20267_v9 = vld [vmem:[%s21853_s18 + $0x120] ss:$24 sps:$4 sm:$0xff]  }
 0x540   : > { %10371 = vmatprep.subr.bf16.mxu0 %v20220_v11  ;;  %18137 = vmatprep.subr.bf16.mxu1 %v20221_v12  ;;  %v20272_v10 = vld [vmem:[%s21840_s7 + $0x119c] ss:$52 sps:$4 sm:$0xff]   ;;  %v20270_v12 = vld [vmem:[%s21840_s7 + $0x1198] ss:$52 sps:$4 sm:$0xff]  }
 0x541   : > { %v20275_v11 = vld [vmem:[%s21853_s18 + $0x154] ss:$24 sps:$4 sm:$0xff]  }
 0x543   : > { %10372 = vmatpush1.bf16.msra.mxu0 %v20218_v42  ;;  %18138 = vmatpush3.bf16.msra.mxu1 %v20222_v16  ;;  %v20278_v42 = vld [vmem:[%s21840_s7 + $0x1204] ss:$52 sps:$4 sm:$0xff]  }
 0x544   : > { %10373 = vmatprep.subr.bf16.mxu0 %v20225_v17  ;;  %18139 = vmatprep.subr.bf16.mxu1 %v20226_v18  ;;  %v20281_v16 = vld [vmem:[%s21853_s18 + $0x184] ss:$24 sps:$4 sm:$0xff]   ;;  %v20279_v18 = vld [vmem:[%s21853_s18 + $0x180] ss:$24 sps:$4 sm:$0xff]  }
 0x545   : > { %v20276_v17 = vld [vmem:[%s21840_s7 + $0x1200] ss:$52 sps:$4 sm:$0xff]  }
 0x547   : > { %10374 = vmatpush1.bf16.msra.mxu0 %v20223_v20  ;;  %18140 = vmatpush3.bf16.msra.mxu1 %v20227_v23  ;;  %v20287_v20 = vld [vmem:[%s21853_s18 + $0x1b4] ss:$24 sps:$4 sm:$0xff]  }
 0x548   : > { %10375 = vmatprep.subr.bf16.mxu0 %v20230_v24  ;;  %14911 = vmatprep.subr.bf16.mxu1 %v20233_v25  ;;  %v20282_v23 = vld [vmem:[%s21840_s7 + $0x1268] ss:$52 sps:$4 sm:$0xff]  }
 0x549   : > { %v20285_v24 = vld [vmem:[%s21853_s18 + $0x1b0] ss:$24 sps:$4 sm:$0xff]  }
 0x54a   : > { %11092 = vmatmul.mubr.bf16.vlgmr.msra.gmra.mrb[20].mxu1 %v22149_v3  ;;  %v20290_v25 = vld [vmem:[%s21840_s7 + $0x12d4] ss:$52 sps:$4 sm:$0xff]  }
 0x54b   : > { %10376 = vmatpush1.bf16.msra.mxu0 %v20228_v29  ;;  %14912 = vmatpush1.bf16.msra.mxu1 %v20231_v30  ;;  %v20288_v29 = vld [vmem:[%s21840_s7 + $0x12d0] ss:$52 sps:$4 sm:$0xff]  }
 0x54c   : > { %14943 = vmatprep.mubr.bf16.mxu1 %v23279_v37  ;;  %10377 = vmatprep.subr.bf16.mxu0 %v20236_v15  ;;  %v20291_v30 = vld [vmem:[%s21853_s18 + $0x1e0] ss:$24 sps:$4 sm:$0xff]  }
 0x54d   : > { %14913 = vmatprep.subr.bf16.mxu1 %v20239_v36  ;;  %v20296_v15 = vld [vmem:[%s21840_s7 + $0x133c] ss:$52 sps:$4 sm:$0xff]  }
 0x54e   : > { %v20299_v36 = vld [vmem:[%s21853_s18 + $0x214] ss:$24 sps:$4 sm:$0xff]  }
 0x54f   : > { %10378 = vmatpush1.bf16.msra.mxu0 %v20234_v39  ;;  %14914 = vmatpush1.bf16.msra.mxu1 %v20237_v40  ;;  %v20294_v39 = vld [vmem:[%s21840_s7 + $0x1338] ss:$52 sps:$4 sm:$0xff]  }
 0x550   : > { %10379 = vmatprep.subr.bf16.mxu0 %v20242_v32  ;;  %14915 = vmatprep.subr.bf16.mxu1 %v20245_v57  ;;  %v20297_v40 = vld [vmem:[%s21853_s18 + $0x210] ss:$24 sps:$4 sm:$0xff]   ;;  %v20305_v57 = vld [vmem:[%s21853_s18 + $0x244] ss:$24 sps:$4 sm:$0xff]  }
 0x551   : > { %v20302_v32 = vld [vmem:[%s21840_s7 + $0x13a4] ss:$52 sps:$4 sm:$0xff]  }
 0x553   : > { %10380 = vmatpush1.bf16.msra.mxu0 %v20240_v41  ;;  %14916 = vmatpush1.bf16.msra.mxu1 %v20243_v45  ;;  %v20300_v41 = vld [vmem:[%s21840_s7 + $0x13a0] ss:$52 sps:$4 sm:$0xff]  }
 0x554   : > { %10381 = vmatprep.subr.bf16.mxu0 %v20248_v46  ;;  %14917 = vmatprep.subr.bf16.mxu1 %v20251_v51  ;;  %v20303_v45 = vld [vmem:[%s21853_s18 + $0x240] ss:$24 sps:$4 sm:$0xff]   ;;  %v23330_v46 = vsub.s32 0, %v21900_v44  ;;  %v20308_v51 = vld [vmem:[%s21840_s7 + $0x140c] ss:$52 sps:$4 sm:$0xff]  }
 0x557   : > { %10382 = vmatpush1.bf16.msra.mxu0 %v20246_v27  ;;  %14918 = vmatpush1.bf16.msra.mxu1 %v20249_v52  ;;  %v20311_v27 = vld [vmem:[%s21853_s18 + $0x274] ss:$24 sps:$4 sm:$0xff]  }
 0x558   : > { %10383 = vmatprep.subr.bf16.mxu0 %v20254_v53  ;;  %14919 = vmatprep.subr.bf16.mxu1 %v20257_v54  ;;  %v20306_v52 = vld [vmem:[%s21840_s7 + $0x1408] ss:$52 sps:$4 sm:$0xff]   ;;  %v1943_v54 = vrot.slane %v23262_v13, %v23330_v46 }
 0x559   : > { %v20309_v53 = vld [vmem:[%s21853_s18 + $0x270] ss:$24 sps:$4 sm:$0xff]  }
 0x55b   : > { %10384 = vmatpush1.bf16.msra.mxu0 %v20252_v55  ;;  %14920 = vmatpush1.bf16.msra.mxu1 %v20255_v56  ;;  %v20314_v55 = vld [vmem:[%s21840_s7 + $0x1474] ss:$52 sps:$4 sm:$0xff]  }
 0x55c   : > { %10385 = vmatprep.subr.bf16.mxu0 %v20260_v59  ;;  %14921 = vmatprep.subr.bf16.mxu1 %v20263_v60  ;;  %v20317_v56 = vld [vmem:[%s21853_s18 + $0x2a4] ss:$24 sps:$4 sm:$0xff]   ;;  %v20312_v59 = vld [vmem:[%s21840_s7 + $0x1470] ss:$52 sps:$4 sm:$0xff]  }
 0x55d   : > { %v20315_v60 = vld [vmem:[%s21853_s18 + $0x2a0] ss:$24 sps:$4 sm:$0xff]  }
 0x55f   : > { %10386 = vmatpush1.bf16.msra.mxu0 %v20258_v63  ;;  %14922 = vmatpush1.bf16.msra.mxu1 %v20261_v0  ;;  %v18147_v63 = vadd.f32 %v22651_v47, %v1943_v54  ;;  %v20320_v0 = vld [vmem:[%s21840_s7 + $0x14dc] ss:$52 sps:$4 sm:$0xff]   ;;  %v11142_v47 = vmax.f32 %v22876_v33, 0.0  ;;  %v20362_v54 = vld [vmem:[%s21840_s7 + $0x17b4] ss:$52 sps:$4 sm:$0xff]  }
 0x560   : > { %10387 = vmatprep.subr.bf16.mxu0 %v20266_v6  ;;  %14923 = vmatprep.subr.bf16.mxu1 %v20269_v7  ;;  %v20323_v6 = vld [vmem:[%s21853_s18 + $0x2d4] ss:$24 sps:$4 sm:$0xff]  }
 0x561   : > { %v20318_v7 = vld [vmem:[%s21840_s7 + $0x14d8] ss:$52 sps:$4 sm:$0xff]   ;;  %v20330_v33 = vld [vmem:[%s21840_s7 + $0x15a8] ss:$52 sps:$4 sm:$0xff]  }
 0x563   : > { %10388 = vmatpush1.bf16.msra.mxu0 %v20264_v34  ;;  %14924 = vmatpush1.bf16.msra.mxu1 %v20267_v9  ;;  %v11139_v34 = vmax.f32 %v18147_v63, 0.0  ;;  %v20326_v9 = vld [vmem:[%s21840_s7 + $0x1544] ss:$52 sps:$4 sm:$0xff]  }
 0x564   : > { %10389 = vmatprep.subr.bf16.mxu0 %v20272_v10  ;;  %14925 = vmatprep.subr.bf16.mxu1 %v20275_v11  ;;  %v20329_v10 = vld [vmem:[%s21853_s18 + $0x304] ss:$24 sps:$4 sm:$0xff]   ;;  %v20371_v63 = vld [vmem:[%s21853_s18 + $0x454] ss:$24 sps:$4 sm:$0xff]  }
 0x565   : > { %v20324_v11 = vld [vmem:[%s21840_s7 + $0x1540] ss:$52 sps:$4 sm:$0xff]  }
 0x567   : > { %10390 = vmatpush1.bf16.msra.mxu0 %v20270_v12  ;;  %14926 = vmatpush1.bf16.msra.mxu1 %v20273_v14  ;;  %v20327_v12 = vld [vmem:[%s21853_s18 + $0x300] ss:$24 sps:$4 sm:$0xff]   ;;  %v23354_v14 = vpack.c.bf16 %v11139_v34, %v11139_v34 }
 0x568   : > { %10391 = vmatprep.subr.bf16.mxu0 %v20278_v42  ;;  %14927 = vmatprep.subr.bf16.mxu1 %v20281_v16  ;;  %v20332_v42 = vld [vmem:[%s21840_s7 + $0x15ac] ss:$52 sps:$4 sm:$0xff]  }
 0x569   : > { %v20335_v16 = vld [vmem:[%s21853_s18 + $0x334] ss:$24 sps:$4 sm:$0xff]   ;;  %v20372_v34 = vld [vmem:[%s21840_s7 + $0x1880] ss:$52 sps:$4 sm:$0xff]  }
 0x56b   : > { %10392 = vmatpush1.bf16.msra.mxu0 %v20276_v17  ;;  %14928 = vmatpush1.bf16.msra.mxu1 %v20279_v18  ;;  %v23358_v17 = vpack.c.bf16 %v11142_v47, %v11142_v47  ;;  %v20333_v18 = vld [vmem:[%s21853_s18 + $0x330] ss:$24 sps:$4 sm:$0xff]   ;;  %v20383_v47 = vld [vmem:[%s21853_s18 + $0x4b4] ss:$24 sps:$4 sm:$0xff]  }
 0x56c   : > { %10393 = vmatprep.subr.bf16.mxu0 %v20284_v19  ;;  %14929 = vmatprep.subr.bf16.mxu1 %v20287_v20  ;;  %v20338_v19 = vld [vmem:[%s21840_s7 + $0x1614] ss:$52 sps:$4 sm:$0xff]  }
 0x56d   : > { %v20341_v20 = vld [vmem:[%s21853_s18 + $0x364] ss:$24 sps:$4 sm:$0xff]  }
 0x56f   : > { %10394 = vmatpush1.bf16.msra.mxu0 %v20282_v23  ;;  %14930 = vmatpush1.bf16.msra.mxu1 %v20285_v24 }
 0x570   : > { %10395 = vmatprep.subr.bf16.mxu0 %v20290_v25  ;;  %14931 = vmatprep.subr.bf16.mxu1 %v20293_v28  ;;  %v20336_v28 = vld [vmem:[%s21840_s7 + $0x1610] ss:$52 sps:$4 sm:$0xff]  }
 0x573   : > { %10396 = vmatpush1.bf16.msra.mxu0 %v20288_v29  ;;  %14932 = vmatpush1.bf16.msra.mxu1 %v20291_v30  ;;  %v20339_v29 = vld [vmem:[%s21853_s18 + $0x360] ss:$24 sps:$4 sm:$0xff]  }
 0x574   : > { %10397 = vmatprep.subr.bf16.mxu0 %v20296_v15  ;;  %14933 = vmatprep.subr.bf16.mxu1 %v20299_v36  ;;  %v20344_v15 = vld [vmem:[%s21840_s7 + $0x167c] ss:$52 sps:$4 sm:$0xff]  }
 0x575   : > { %v20347_v36 = vld [vmem:[%s21853_s18 + $0x394] ss:$24 sps:$4 sm:$0xff]  }
 0x577   : > { %10398 = vmatpush1.bf16.msra.mxu0 %v20294_v39  ;;  %14934 = vmatpush1.bf16.msra.mxu1 %v20297_v40  ;;  %v20342_v39 = vld [vmem:[%s21840_s7 + $0x1678] ss:$52 sps:$4 sm:$0xff]  }
 0x578   : > { %10408 = vmatprep.subr.bf16.mxu0 %v20302_v32  ;;  %14935 = vmatprep.subr.bf16.mxu1 %v20305_v57  ;;  %v20345_v40 = vld [vmem:[%s21853_s18 + $0x390] ss:$24 sps:$4 sm:$0xff]   ;;  %v20353_v57 = vld [vmem:[%s21853_s18 + $0x3c4] ss:$24 sps:$4 sm:$0xff]  }
 0x579   : > { %v20350_v32 = vld [vmem:[%s21840_s7 + $0x16e4] ss:$52 sps:$4 sm:$0xff]  }
 0x57a   : > { %10400 = vmatmul.mubr.bf16.vlgmr.msra.gmra.mrb[12].mxu0 %v22145_v2 }
 0x57b   : > { %10409 = vmatpush1.bf16.msra.mxu0 %v20300_v41  ;;  %14936 = vmatpush1.bf16.msra.mxu1 %v20303_v45  ;;  %v20348_v41 = vld [vmem:[%s21840_s7 + $0x16e0] ss:$52 sps:$4 sm:$0xff]  }
 0x57c   : > { %10410 = vmatprep.subr.bf16.mxu0 %v20308_v51  ;;  %14937 = vmatprep.subr.bf16.mxu1 %v20311_v27  ;;  %v20351_v45 = vld [vmem:[%s21853_s18 + $0x3c0] ss:$24 sps:$4 sm:$0xff]   ;;  %v20356_v51 = vld [vmem:[%s21840_s7 + $0x174c] ss:$52 sps:$4 sm:$0xff]  }
 0x57d   : > { %10440 = vmatprep.mubr.bf16.mxu0 %v21935_v5  ;;  %v20321_v5 = vld [vmem:[%s21853_s18 + $0x2d0] ss:$24 sps:$4 sm:$0xff]   ;;  %v20359_v27 = vld [vmem:[%s21853_s18 + $0x3f4] ss:$24 sps:$4 sm:$0xff]  }
 0x57f   : > { %10411 = vmatpush1.bf16.msra.mxu0 %v20306_v52  ;;  %14938 = vmatpush1.bf16.msra.mxu1 %v20309_v53  ;;  %v20354_v52 = vld [vmem:[%s21840_s7 + $0x1748] ss:$52 sps:$4 sm:$0xff]  }
 0x580   : > { %10412 = vmatprep.subr.bf16.mxu0 %v20314_v55  ;;  %14939 = vmatprep.subr.bf16.mxu1 %v20317_v56  ;;  %v20357_v53 = vld [vmem:[%s21853_s18 + $0x3f0] ss:$24 sps:$4 sm:$0xff]   ;;  %v20365_v55 = vld [vmem:[%s21853_s18 + $0x424] ss:$24 sps:$4 sm:$0xff]  }
 0x581   : > { %v20360_v56 = vld [vmem:[%s21840_s7 + $0x17b0] ss:$52 sps:$4 sm:$0xff]  }
 0x583   : > { %10413 = vmatpush1.bf16.msra.mxu0 %v20312_v59  ;;  %14940 = vmatpush1.bf16.msra.mxu1 %v20315_v60  ;;  %v20363_v59 = vld [vmem:[%s21853_s18 + $0x420] ss:$24 sps:$4 sm:$0xff]  }
 0x584   : > { %10414 = vmatprep.subr.bf16.mxu0 %v20320_v0  ;;  %14941 = vmatprep.subr.bf16.mxu1 %v20323_v6  ;;  %v20368_v60 = vld [vmem:[%s21840_s7 + $0x181c] ss:$52 sps:$4 sm:$0xff]   ;;  %v20366_v0 = vld [vmem:[%s21840_s7 + $0x1818] ss:$52 sps:$4 sm:$0xff]  }
 0x585   : > { %v20369_v6 = vld [vmem:[%s21853_s18 + $0x450] ss:$24 sps:$4 sm:$0xff]  }
 0x587   : > { %10415 = vmatpush1.bf16.msra.mxu0 %v20318_v7  ;;  %14942 = vmatpush1.bf16.msra.mxu1 %v20321_v5  ;;  %v20374_v7 = vld [vmem:[%s21840_s7 + $0x1884] ss:$52 sps:$4 sm:$0xff]  }
 0x588   : > { %10416 = vmatprep.subr.bf16.mxu0 %v20326_v9  ;;  %14952 = vmatprep.subr.bf16.mxu1 %v20329_v10  ;;  %v20377_v5 = vld [vmem:[%s21853_s18 + $0x484] ss:$24 sps:$4 sm:$0xff]   ;;  %v20375_v9 = vld [vmem:[%s21853_s18 + $0x480] ss:$24 sps:$4 sm:$0xff]  }
 0x589   : > { %v20380_v10 = vld [vmem:[%s21840_s7 + $0x18ec] ss:$52 sps:$4 sm:$0xff]  }
 0x58a   : > { %14944 = vmatmul.mubr.bf16.vlgmr.msra.gmra.mrb[24].mxu1 %v23354_v14 }
 0x58b   : > { %10417 = vmatpush1.bf16.msra.mxu0 %v20324_v11  ;;  %14953 = vmatpush1.bf16.msra.mxu1 %v20327_v12  ;;  %v20378_v11 = vld [vmem:[%s21840_s7 + $0x18e8] ss:$52 sps:$4 sm:$0xff]  }
 0x58c   : > { %14984 = vmatprep.mubr.bf16.mxu1 %v23358_v17  ;;  %10418 = vmatprep.subr.bf16.mxu0 %v20332_v42  ;;  %v20381_v12 = vld [vmem:[%s21853_s18 + $0x4b0] ss:$24 sps:$4 sm:$0xff]  }
 0x58d   : > { %v23366_v23 = vpop.f32.mrb[8].mxu0  ;;  %14954 = vmatprep.subr.bf16.mxu1 %v20335_v16  ;;  %v20386_v42 = vld [vmem:[%s21840_s7 + $0x1954] ss:$52 sps:$4 sm:$0xff]  }
 0x58e   : > { %v23368_v24 = vpop.f32.mrb[9].mxu0  ;;  %v20389_v16 = vld [vmem:[%s21853_s18 + $0x4e4] ss:$24 sps:$4 sm:$0xff]  }
 0x58f   : > { %v9995_v25 = vpop.f32.mrb[10].mxu0  ;;  %10419 = vmatpush1.bf16.msra.mxu0 %v20330_v33  ;;  %14955 = vmatpush1.bf16.msra.mxu1 %v20333_v18  ;;  %v20384_v33 = vld [vmem:[%s21840_s7 + $0x1950] ss:$52 sps:$4 sm:$0xff]  }
 0x590   : > { %v9996_v30 = vpop.f32.mrb[11].mxu0  ;;  %10420 = vmatprep.subr.bf16.mxu0 %v20338_v19  ;;  %14956 = vmatprep.subr.bf16.mxu1 %v20341_v20  ;;  %v20387_v18 = vld [vmem:[%s21853_s18 + $0x4e0] ss:$24 sps:$4 sm:$0xff]   ;;  %v20395_v20 = vld [vmem:[%s21853_s18 + $0x514] ss:$24 sps:$4 sm:$0xff]  }
 0x591   : > { %v20392_v19 = vld [vmem:[%s21840_s7 + $0x19bc] ss:$52 sps:$4 sm:$0xff]   ;;  %v20390_v25 = vld [vmem:[%s21840_s7 + $0x19b8] ss:$52 sps:$4 sm:$0xff]  }
 0x592   : > { %v20401_v30 = vld [vmem:[%s21853_s18 + $0x544] ss:$24 sps:$4 sm:$0xff]  }
 0x593   : > { %10421 = vmatpush1.bf16.msra.mxu0 %v20336_v28  ;;  %14957 = vmatpush1.bf16.msra.mxu1 %v20339_v29  ;;  %v20393_v28 = vld [vmem:[%s21853_s18 + $0x510] ss:$24 sps:$4 sm:$0xff]  }
 0x594   : > { %10422 = vmatprep.subr.bf16.mxu0 %v20344_v15  ;;  %14958 = vmatprep.subr.bf16.mxu1 %v20347_v36  ;;  %v20398_v29 = vld [vmem:[%s21840_s7 + $0x1a24] ss:$52 sps:$4 sm:$0xff]   ;;  %v20396_v15 = vld [vmem:[%s21840_s7 + $0x1a20] ss:$52 sps:$4 sm:$0xff]  }
 0x595   : > { %v20399_v36 = vld [vmem:[%s21853_s18 + $0x540] ss:$24 sps:$4 sm:$0xff]  }
 0x597   : > { %10423 = vmatpush1.bf16.msra.mxu0 %v20342_v39  ;;  %14959 = vmatpush1.bf16.msra.mxu1 %v20345_v40  ;;  %v20404_v39 = vld [vmem:[%s21840_s7 + $0x1a8c] ss:$52 sps:$4 sm:$0xff]  }
 0x598   : > { %10424 = vmatprep.subr.bf16.mxu0 %v20350_v32  ;;  %14960 = vmatprep.subr.bf16.mxu1 %v20353_v57  ;;  %v20407_v40 = vld [vmem:[%s21853_s18 + $0x574] ss:$24 sps:$4 sm:$0xff]   ;;  %v1962_v32 = vsub.s32 5, %v21900_v44 }
 0x599   : > { %v20402_v57 = vld [vmem:[%s21840_s7 + $0x1a88] ss:$52 sps:$4 sm:$0xff]  }
 0x59b   : > { %10425 = vmatpush1.bf16.msra.mxu0 %v20348_v41  ;;  %14961 = vmatpush1.bf16.msra.mxu1 %v20351_v45  ;;  %v20405_v41 = vld [vmem:[%s21853_s18 + $0x570] ss:$24 sps:$4 sm:$0xff]  }
 0x59c   : > { %10426 = vmatprep.subr.bf16.mxu0 %v20356_v51  ;;  %14962 = vmatprep.subr.bf16.mxu1 %v20359_v27  ;;  %v20410_v45 = vld [vmem:[%s21840_s7 + $0x1af4] ss:$52 sps:$4 sm:$0xff]  }
 0x59d   : > { %v20413_v51 = vld [vmem:[%s21853_s18 + $0x5a4] ss:$24 sps:$4 sm:$0xff]  }
 0x59f   : > { %10427 = vmatpush1.bf16.msra.mxu0 %v20354_v52  ;;  %14963 = vmatpush1.bf16.msra.mxu1 %v20357_v53 }
 0x5a0   : > { %10428 = vmatprep.subr.bf16.mxu0 %v20362_v54  ;;  %14964 = vmatprep.subr.bf16.mxu1 %v20365_v55  ;;  %v20408_v54 = vld [vmem:[%s21840_s7 + $0x1af0] ss:$52 sps:$4 sm:$0xff]  }
 0x5a1   : > { %v20411_v55 = vld [vmem:[%s21853_s18 + $0x5a0] ss:$24 sps:$4 sm:$0xff]  }
 0x5a3   : > { %10429 = vmatpush1.bf16.msra.mxu0 %v20360_v56  ;;  %14965 = vmatpush1.bf16.msra.mxu1 %v20363_v59  ;;  %v20416_v59 = vld [vmem:[%s21840_s7 + $0x1b5c] ss:$52 sps:$4 sm:$0xff]  }
 0x5a4   : > { %10430 = vmatprep.subr.bf16.mxu0 %v20368_v60  ;;  %14966 = vmatprep.subr.bf16.mxu1 %v20371_v63  ;;  %v20419_v60 = vld [vmem:[%s21853_s18 + $0x5d4] ss:$24 sps:$4 sm:$0xff]  }
 0x5a7   : > { %10431 = vmatpush1.bf16.msra.mxu0 %v20366_v0  ;;  %14967 = vmatpush1.bf16.msra.mxu1 %v20369_v6  ;;  %v20414_v0 = vld [vmem:[%s21840_s7 + $0x1b58] ss:$52 sps:$4 sm:$0xff]  }
 0x5a8   : > { %10432 = vmatprep.subr.bf16.mxu0 %v20374_v7  ;;  %14968 = vmatprep.subr.bf16.mxu1 %v20377_v5  ;;  %v20417_v6 = vld [vmem:[%s21853_s18 + $0x5d0] ss:$24 sps:$4 sm:$0xff]   ;;  %v11141_v7 = vmax.f32 %v22871_v26, 0.0  ;;  %v20431_v26 = vld [vmem:[%s21853_s18 + $0x634] ss:$24 sps:$4 sm:$0xff]  }
 0x5a9   : > { %v20422_v5 = vld [vmem:[%s21840_s7 + $0x1bc4] ss:$52 sps:$4 sm:$0xff]  }
 0x5ab   : > { %10433 = vmatpush1.bf16.msra.mxu0 %v20372_v34  ;;  %14969 = vmatpush1.bf16.msra.mxu1 %v20375_v9  ;;  %v20425_v34 = vld [vmem:[%s21853_s18 + $0x604] ss:$24 sps:$4 sm:$0xff]  }
 0x5ac   : > { %10434 = vmatprep.subr.bf16.mxu0 %v20380_v10  ;;  %14970 = vmatprep.subr.bf16.mxu1 %v20383_v47  ;;  %v20420_v10 = vld [vmem:[%s21840_s7 + $0x1bc0] ss:$52 sps:$4 sm:$0xff]   ;;  %v23440_v47 = vpack.c.bf16 %v11141_v7, %v11141_v7 }
 0x5ad   : > { %v20468_v7 = vld [vmem:[%s21840_s7 + $0x1f00] ss:$52 sps:$4 sm:$0xff]  }
 0x5af   : > { %10435 = vmatpush1.bf16.msra.mxu0 %v20378_v11  ;;  %14971 = vmatpush1.bf16.msra.mxu1 %v20381_v12  ;;  %v20428_v11 = vld [vmem:[%s21840_s7 + $0x1c2c] ss:$52 sps:$4 sm:$0xff]  }
 0x5b0   : > { %10436 = vmatprep.subr.bf16.mxu0 %v20386_v42  ;;  %14972 = vmatprep.subr.bf16.mxu1 %v20389_v16  ;;  %v20426_v42 = vld [vmem:[%s21840_s7 + $0x1c28] ss:$52 sps:$4 sm:$0xff]  }
 0x5b1   : > { %v20429_v16 = vld [vmem:[%s21853_s18 + $0x630] ss:$24 sps:$4 sm:$0xff]  }
 0x5b3   : > { %10437 = vmatpush1.bf16.msra.mxu0 %v20384_v33  ;;  %14973 = vmatpush1.bf16.msra.mxu1 %v20387_v18  ;;  %v20434_v33 = vld [vmem:[%s21840_s7 + $0x1c94] ss:$52 sps:$4 sm:$0xff]  }
 0x5b4   : > { %10438 = vmatprep.subr.bf16.mxu0 %v20392_v19  ;;  %14974 = vmatprep.subr.bf16.mxu1 %v20395_v20  ;;  %v20437_v18 = vld [vmem:[%s21853_s18 + $0x664] ss:$24 sps:$4 sm:$0xff]   ;;  %v20432_v19 = vld [vmem:[%s21840_s7 + $0x1c90] ss:$52 sps:$4 sm:$0xff]  }
 0x5b5   : > { %v20435_v20 = vld [vmem:[%s21853_s18 + $0x660] ss:$24 sps:$4 sm:$0xff]  }
 0x5b7   : > { %10439 = vmatpush1.bf16.msra.mxu0 %v20390_v25  ;;  %14975 = vmatpush1.bf16.msra.mxu1 %v20393_v28  ;;  %v20440_v25 = vld [vmem:[%s21840_s7 + $0x1cfc] ss:$52 sps:$4 sm:$0xff]  }
 0x5b8   : > { %10449 = vmatprep.subr.bf16.mxu0 %v20398_v29  ;;  %14976 = vmatprep.subr.bf16.mxu1 %v20401_v30  ;;  %v20443_v28 = vld [vmem:[%s21853_s18 + $0x694] ss:$24 sps:$4 sm:$0xff]   ;;  %v20441_v30 = vld [vmem:[%s21853_s18 + $0x690] ss:$24 sps:$4 sm:$0xff]  }
 0x5b9   : > { %v20438_v29 = vld [vmem:[%s21840_s7 + $0x1cf8] ss:$52 sps:$4 sm:$0xff]  }
 0x5ba   : > { %10441 = vmatmul.mubr.bf16.vlgmr.msra.gmra.mrb[12].mxu0 %v21957_v22  ;;  %v1963_v22 = vrot.slane %v23262_v13, %v1962_v32 }
 0x5bb   : > { %10450 = vmatpush1.bf16.msra.mxu0 %v20396_v15  ;;  %14977 = vmatpush1.bf16.msra.mxu1 %v20399_v36  ;;  %v20446_v15 = vld [vmem:[%s21840_s7 + $0x1d64] ss:$52 sps:$4 sm:$0xff]  }
 0x5bc   : > { %10451 = vmatprep.subr.bf16.mxu0 %v20404_v39  ;;  %14978 = vmatprep.subr.bf16.mxu1 %v20407_v40  ;;  %v18154_v63 = vadd.f32 %v23368_v24, %v1963_v22  ;;  %v20423_v24 = vld [vmem:[%s21853_s18 + $0x600] ss:$24 sps:$4 sm:$0xff]   ;;  %v20449_v36 = vld [vmem:[%s21853_s18 + $0x6c4] ss:$24 sps:$4 sm:$0xff]  }
 0x5bd   : > { %v23420_v27 = vpop.f32.mrb[8].mxu1  ;;  %10481 = vmatprep.mubr.bf16.mxu0 %v22006_v61  ;;  %v20444_v39 = vld [vmem:[%s21840_s7 + $0x1d60] ss:$52 sps:$4 sm:$0xff]  }
 0x5be   : > { %v23426_v52 = vpop.f32.mrb[9].mxu1  ;;  %v11144_v9 = vmax.f32 %v18154_v63, 0.0  ;;  %v20447_v40 = vld [vmem:[%s21853_s18 + $0x6c0] ss:$24 sps:$4 sm:$0xff]   ;;  %v20465_v63 = vld [vmem:[%s21853_s18 + $0x750] ss:$24 sps:$4 sm:$0xff]  }
 0x5bf   : > { %10452 = vmatpush1.bf16.msra.mxu0 %v20402_v57  ;;  %v10856_v53 = vpop.f32.mrb[10].mxu1  ;;  %14979 = vmatpush1.bf16.msra.mxu1 %v20405_v41  ;;  %v20452_v57 = vld [vmem:[%s21840_s7 + $0x1dcc] ss:$52 sps:$4 sm:$0xff]   ;;  %v20458_v22 = vld [vmem:[%s21840_s7 + $0x1e34] ss:$52 sps:$4 sm:$0xff]  }
 0x5c0   : > { %v10857_v56 = vpop.f32.mrb[11].mxu1  ;;  %10453 = vmatprep.subr.bf16.mxu0 %v20410_v45  ;;  %14980 = vmatprep.subr.bf16.mxu1 %v20413_v51  ;;  %v23444_v12 = vpack.c.bf16 %v11144_v9, %v11144_v9  ;;  %v20455_v41 = vld [vmem:[%s21853_s18 + $0x6f4] ss:$24 sps:$4 sm:$0xff]   ;;  %v20453_v51 = vld [vmem:[%s21853_s18 + $0x6f0] ss:$24 sps:$4 sm:$0xff]  }
 0x5c1   : > { %v20450_v45 = vld [vmem:[%s21840_s7 + $0x1dc8] ss:$52 sps:$4 sm:$0xff]  }
 0x5c2   : > { %v20461_v53 = vld [vmem:[%s21853_s18 + $0x724] ss:$24 sps:$4 sm:$0xff]   ;;  %v20479_v9 = vld [vmem:[%s21853_s18 + $0x7b4] ss:$24 sps:$4 sm:$0xff]  }
 0x5c3   : > { %10454 = vmatpush1.bf16.msra.mxu0 %v20408_v54  ;;  %14981 = vmatpush1.bf16.msra.mxu1 %v20411_v55  ;;  %v20456_v54 = vld [vmem:[%s21840_s7 + $0x1e30] ss:$52 sps:$4 sm:$0xff]  }
 0x5c4   : > { %10455 = vmatprep.subr.bf16.mxu0 %v20416_v59  ;;  %14982 = vmatprep.subr.bf16.mxu1 %v20419_v60  ;;  %v20459_v55 = vld [vmem:[%s21853_s18 + $0x720] ss:$24 sps:$4 sm:$0xff]   ;;  %v20467_v59 = vld [vmem:[%s21853_s18 + $0x754] ss:$24 sps:$4 sm:$0xff]  }
 0x5c5   : > { %v20464_v56 = vld [vmem:[%s21840_s7 + $0x1e9c] ss:$52 sps:$4 sm:$0xff]   ;;  %v20462_v60 = vld [vmem:[%s21840_s7 + $0x1e98] ss:$52 sps:$4 sm:$0xff]  }
 0x5c7   : > { %10456 = vmatpush1.bf16.msra.mxu0 %v20414_v0  ;;  %14983 = vmatpush1.bf16.msra.mxu1 %v20417_v6  ;;  %v20470_v0 = vld [vmem:[%s21840_s7 + $0x1f04] ss:$52 sps:$4 sm:$0xff]  }
 0x5c8   : > { %10457 = vmatprep.subr.bf16.mxu0 %v20422_v5  ;;  %14993 = vmatprep.subr.bf16.mxu1 %v20425_v34  ;;  %v20473_v6 = vld [vmem:[%s21853_s18 + $0x784] ss:$24 sps:$4 sm:$0xff]   ;;  %v20471_v5 = vld [vmem:[%s21853_s18 + $0x780] ss:$24 sps:$4 sm:$0xff]  }
 0x5c9   : > { %v20476_v34 = vld [vmem:[%s21840_s7 + $0x1f6c] ss:$52 sps:$4 sm:$0xff]  }
 0x5ca   : > { %14985 = vmatmul.mubr.bf16.vlgmr.msra.gmra.mrb[24].mxu1 %v23440_v47 }
 0x5cb   : > { %10458 = vmatpush1.bf16.msra.mxu0 %v20420_v10  ;;  %14994 = vmatpush1.bf16.msra.mxu1 %v20423_v24  ;;  %v20474_v10 = vld [vmem:[%s21840_s7 + $0x1f68] ss:$52 sps:$4 sm:$0xff]  }
 0x5cc   : > { %15025 = vmatprep.mubr.bf16.mxu1 %v23444_v12  ;;  %10459 = vmatprep.subr.bf16.mxu0 %v20428_v11  ;;  %v20477_v24 = vld [vmem:[%s21853_s18 + $0x7b0] ss:$24 sps:$4 sm:$0xff]  }
 0x5cd   : > { %14995 = vmatprep.subr.bf16.mxu1 %v20431_v26  ;;  %v20482_v11 = vld [vmem:[%s21840_s7 + $0x1fd4] ss:$52 sps:$4 sm:$0xff]  }
 0x5ce   : > { %v20485_v26 = vld [vmem:[%s21853_s18 + $0x7e4] ss:$24 sps:$4 sm:$0xff]  }
 0x5cf   : > { %10460 = vmatpush1.bf16.msra.mxu0 %v20426_v42  ;;  %14996 = vmatpush1.bf16.msra.mxu1 %v20429_v16  ;;  %v20480_v42 = vld [vmem:[%s21840_s7 + $0x1fd0] ss:$52 sps:$4 sm:$0xff]  }
 0x5d0   : > { %10461 = vmatprep.subr.bf16.mxu0 %v20434_v33  ;;  %14997 = vmatprep.subr.bf16.mxu1 %v20437_v18  ;;  %v20483_v16 = vld [vmem:[%s21853_s18 + $0x7e0] ss:$24 sps:$4 sm:$0xff]   ;;  %v20491_v18 = vld [vmem:[%s21853_s18 + $0x814] ss:$24 sps:$4 sm:$0xff]  }
 0x5d1   : > { %v20488_v33 = vld [vmem:[%s21840_s7 + $0x203c] ss:$52 sps:$4 sm:$0xff]  }
 0x5d3   : > { %10462 = vmatpush1.bf16.msra.mxu0 %v20432_v19  ;;  %14998 = vmatpush1.bf16.msra.mxu1 %v20435_v20  ;;  %v20486_v19 = vld [vmem:[%s21840_s7 + $0x2038] ss:$52 sps:$4 sm:$0xff]  }
 0x5d4   : > { %10463 = vmatprep.subr.bf16.mxu0 %v20440_v25  ;;  %14999 = vmatprep.subr.bf16.mxu1 %v20443_v28  ;;  %v20489_v20 = vld [vmem:[%s21853_s18 + $0x810] ss:$24 sps:$4 sm:$0xff]   ;;  %v20497_v28 = vld [vmem:[%s21853_s18 + $0x844] ss:$24 sps:$4 sm:$0xff]  }
 0x5d5   : > { %v20494_v25 = vld [vmem:[%s21840_s7 + $0x20a4] ss:$52 sps:$4 sm:$0xff]  }
 0x5d7   : > { %10464 = vmatpush1.bf16.msra.mxu0 %v20438_v29  ;;  %15000 = vmatpush1.bf16.msra.mxu1 %v20441_v30  ;;  %v20492_v29 = vld [vmem:[%s21840_s7 + $0x20a0] ss:$52 sps:$4 sm:$0xff]  }
 0x5d8   : > { %10465 = vmatprep.subr.bf16.mxu0 %v20446_v15  ;;  %15001 = vmatprep.subr.bf16.mxu1 %v20449_v36  ;;  %v20495_v30 = vld [vmem:[%s21853_s18 + $0x840] ss:$24 sps:$4 sm:$0xff]   ;;  %v23495_v15 = vsub.s32 4, %v21900_v44  ;;  %v20500_v36 = vld [vmem:[%s21840_s7 + $0x210c] ss:$52 sps:$4 sm:$0xff]  }
 0x5db   : > { %10466 = vmatpush1.bf16.msra.mxu0 %v20444_v39  ;;  %15002 = vmatpush1.bf16.msra.mxu1 %v20447_v40  ;;  %v20503_v39 = vld [vmem:[%s21853_s18 + $0x874] ss:$24 sps:$4 sm:$0xff]   ;;  %v1970_v40 = vsub.s32 7, %v21900_v44 }
 0x5dc   : > { %10467 = vmatprep.subr.bf16.mxu0 %v20452_v57  ;;  %15003 = vmatprep.subr.bf16.mxu1 %v20455_v41  ;;  %v20498_v57 = vld [vmem:[%s21840_s7 + $0x2108] ss:$52 sps:$4 sm:$0xff]  }
 0x5dd   : > { %v20501_v41 = vld [vmem:[%s21853_s18 + $0x870] ss:$24 sps:$4 sm:$0xff]  }
 0x5df   : > { %10468 = vmatpush1.bf16.msra.mxu0 %v20450_v45  ;;  %15004 = vmatpush1.bf16.msra.mxu1 %v20453_v51  ;;  %v1959_v45 = vrot.slane %v23262_v13, %v23495_v15  ;;  %v20506_v51 = vld [vmem:[%s21840_s7 + $0x2174] ss:$52 sps:$4 sm:$0xff]  }
 0x5e0   : > { %10469 = vmatprep.subr.bf16.mxu0 %v20458_v22  ;;  %15005 = vmatprep.subr.bf16.mxu1 %v20461_v53  ;;  %v20509_v22 = vld [vmem:[%s21853_s18 + $0x8a4] ss:$24 sps:$4 sm:$0xff]   ;;  %v1971_v53 = vrot.slane %v23262_v13, %v1970_v40  ;;  %v20513_v13 = vld [vmem:[%s21853_s18 + $0x8d0] ss:$24 sps:$4 sm:$0xff]  }
 0x5e1   : > { %v20548_v40 = vld [vmem:[%s21840_s7 + $0x244c] ss:$52 sps:$4 sm:$0xff]  }
 0x5e3   : > { %10470 = vmatpush1.bf16.msra.mxu0 %v20456_v54  ;;  %15006 = vmatpush1.bf16.msra.mxu1 %v20459_v55  ;;  %v20504_v54 = vld [vmem:[%s21840_s7 + $0x2170] ss:$52 sps:$4 sm:$0xff]  }
 0x5e4   : > { %10471 = vmatprep.subr.bf16.mxu0 %v20464_v56  ;;  %15007 = vmatprep.subr.bf16.mxu1 %v20467_v59  ;;  %v20507_v55 = vld [vmem:[%s21853_s18 + $0x8a0] ss:$24 sps:$4 sm:$0xff]   ;;  %v18153_v56 = vadd.f32 %v23366_v23, %v1959_v45  ;;  %v20521_v23 = vld [vmem:[%s21853_s18 + $0x904] ss:$24 sps:$4 sm:$0xff]   ;;  %v20549_v45 = vld [vmem:[%s21853_s18 + $0x9f0] ss:$24 sps:$4 sm:$0xff]  }
 0x5e5   : > { %v20512_v59 = vld [vmem:[%s21840_s7 + $0x21dc] ss:$52 sps:$4 sm:$0xff]  }
 0x5e7   : > { %10472 = vmatpush1.bf16.msra.mxu0 %v20462_v60  ;;  %15008 = vmatpush1.bf16.msra.mxu1 %v20465_v63  ;;  %v20515_v60 = vld [vmem:[%s21853_s18 + $0x8d4] ss:$24 sps:$4 sm:$0xff]   ;;  %v18156_v63 = vadd.f32 %v22928_v38, %v1971_v53  ;;  %v20519_v38 = vld [vmem:[%s21853_s18 + $0x900] ss:$24 sps:$4 sm:$0xff]  }
 0x5e8   : > { %10473 = vmatprep.subr.bf16.mxu0 %v20470_v0  ;;  %15009 = vmatprep.subr.bf16.mxu1 %v20473_v6  ;;  %v11143_v0 = vmax.f32 %v18153_v56, 0.0  ;;  %v20518_v6 = vld [vmem:[%s21840_s7 + $0x2244] ss:$52 sps:$4 sm:$0xff]  }
 0x5e9   : > { %v20552_v53 = vld [vmem:[%s21840_s7 + $0x24b0] ss:$52 sps:$4 sm:$0xff]  }
 0x5ea   : > { %v20563_v56 = vld [vmem:[%s21853_s18 + $0xa54] ss:$24 sps:$4 sm:$0xff]  }
 0x5eb   : > { %10474 = vmatpush1.bf16.msra.mxu0 %v20468_v7  ;;  %15010 = vmatpush1.bf16.msra.mxu1 %v20471_v5  ;;  %v11146_v7 = vmax.f32 %v18156_v63, 0.0  ;;  %v20516_v5 = vld [vmem:[%s21840_s7 + $0x2240] ss:$52 sps:$4 sm:$0xff]   ;;  %v20566_v63 = vld [vmem:[%s21840_s7 + $0x2584] ss:$52 sps:$4 sm:$0xff]  }
 0x5ec   : > { %10475 = vmatprep.subr.bf16.mxu0 %v20476_v34  ;;  %15011 = vmatprep.subr.bf16.mxu1 %v20479_v9  ;;  %v23521_v34 = vpack.c.bf16 %v11143_v0, %v11143_v0  ;;  %v20524_v9 = vld [vmem:[%s21840_s7 + $0x22ac] ss:$52 sps:$4 sm:$0xff]   ;;  %v20567_v0 = vld [vmem:[%s21853_s18 + $0xa80] ss:$24 sps:$4 sm:$0xff]  }
 0x5ef   : > { %10476 = vmatpush1.bf16.msra.mxu0 %v20474_v10  ;;  %15012 = vmatpush1.bf16.msra.mxu1 %v20477_v24  ;;  %v20527_v10 = vld [vmem:[%s21853_s18 + $0x934] ss:$24 sps:$4 sm:$0xff]   ;;  %v23525_v24 = vpack.c.bf16 %v11146_v7, %v11146_v7 }
 0x5f0   : > { %10477 = vmatprep.subr.bf16.mxu0 %v20482_v11  ;;  %15013 = vmatprep.subr.bf16.mxu1 %v20485_v26  ;;  %v20522_v11 = vld [vmem:[%s21840_s7 + $0x22a8] ss:$52 sps:$4 sm:$0xff]  }
 0x5f1   : > { %v20525_v26 = vld [vmem:[%s21853_s18 + $0x930] ss:$24 sps:$4 sm:$0xff]  }
 0x5f2   : > { %v20570_v7 = vld [vmem:[%s21840_s7 + $0x25e8] ss:$52 sps:$4 sm:$0xff]  }
 0x5f3   : > { %10478 = vmatpush1.bf16.msra.mxu0 %v20480_v42  ;;  %15014 = vmatpush1.bf16.msra.mxu1 %v20483_v16  ;;  %v20530_v42 = vld [vmem:[%s21840_s7 + $0x2314] ss:$52 sps:$4 sm:$0xff]  }
 0x5f4   : > { %10479 = vmatprep.subr.bf16.mxu0 %v20488_v33  ;;  %15015 = vmatprep.subr.bf16.mxu1 %v20491_v18  ;;  %v20533_v16 = vld [vmem:[%s21853_s18 + $0x964] ss:$24 sps:$4 sm:$0xff]   ;;  %v20528_v33 = vld [vmem:[%s21840_s7 + $0x2310] ss:$52 sps:$4 sm:$0xff]  }
 0x5f5   : > { %v20531_v18 = vld [vmem:[%s21853_s18 + $0x960] ss:$24 sps:$4 sm:$0xff]  }
 0x5f7   : > { %10480 = vmatpush1.bf16.msra.mxu0 %v20486_v19  ;;  %15016 = vmatpush1.bf16.msra.mxu1 %v20489_v20  ;;  %v20536_v19 = vld [vmem:[%s21840_s7 + $0x237c] ss:$52 sps:$4 sm:$0xff]  }
 0x5f8   : > { %10490 = vmatprep.subr.bf16.mxu0 %v20494_v25  ;;  %15017 = vmatprep.subr.bf16.mxu1 %v20497_v28  ;;  %v20539_v20 = vld [vmem:[%s21853_s18 + $0x994] ss:$24 sps:$4 sm:$0xff]   ;;  %v20537_v28 = vld [vmem:[%s21853_s18 + $0x990] ss:$24 sps:$4 sm:$0xff]  }
 0x5f9   : > { %v20534_v25 = vld [vmem:[%s21840_s7 + $0x2378] ss:$52 sps:$4 sm:$0xff]  }
 0x5fa   : > { %10482 = vmatmul.mubr.bf16.vlgmr.msra.gmra.mrb[12].mxu0 %v22062_v43 }
 0x5fb   : > { %10491 = vmatpush1.bf16.msra.mxu0 %v20492_v29  ;;  %15018 = vmatpush1.bf16.msra.mxu1 %v20495_v30  ;;  %v20542_v29 = vld [vmem:[%s21840_s7 + $0x23e4] ss:$52 sps:$4 sm:$0xff]  }
 0x5fc   : > { %10492 = vmatprep.subr.bf16.mxu0 %v20500_v36  ;;  %15019 = vmatprep.subr.bf16.mxu1 %v20503_v39  ;;  %v20545_v30 = vld [vmem:[%s21853_s18 + $0x9c4] ss:$24 sps:$4 sm:$0xff]   ;;  %v20543_v39 = vld [vmem:[%s21853_s18 + $0x9c0] ss:$24 sps:$4 sm:$0xff]  }
 0x5fd   : > { %10522 = vmatprep.mubr.bf16.mxu0 %v22069_v49  ;;  %v20510_v49 = vld [vmem:[%s21840_s7 + $0x21d8] ss:$52 sps:$4 sm:$0xff]   ;;  %v20540_v36 = vld [vmem:[%s21840_s7 + $0x23e0] ss:$52 sps:$4 sm:$0xff]  }
 0x5ff   : > { %10493 = vmatpush1.bf16.msra.mxu0 %v20498_v57  ;;  %15020 = vmatpush1.bf16.msra.mxu1 %v20501_v41  ;;  %v20551_v57 = vld [vmem:[%s21853_s18 + $0x9f4] ss:$24 sps:$4 sm:$0xff]  }
 0x600   : > { %10494 = vmatprep.subr.bf16.mxu0 %v20506_v51  ;;  %15021 = vmatprep.subr.bf16.mxu1 %v20509_v22  ;;  %v20546_v41 = vld [vmem:[%s21840_s7 + $0x2448] ss:$52 sps:$4 sm:$0xff]  }
 0x601   : > { %v20554_v51 = vld [vmem:[%s21840_s7 + $0x24b4] ss:$52 sps:$4 sm:$0xff]  }
 0x602   : > { %v20557_v22 = vld [vmem:[%s21853_s18 + $0xa24] ss:$24 sps:$4 sm:$0xff]  }
 0x603   : > { %10495 = vmatpush1.bf16.msra.mxu0 %v20504_v54  ;;  %15022 = vmatpush1.bf16.msra.mxu1 %v20507_v55  ;;  %v20555_v54 = vld [vmem:[%s21853_s18 + $0xa20] ss:$24 sps:$4 sm:$0xff]  }
 0x604   : > { %10496 = vmatprep.subr.bf16.mxu0 %v20512_v59  ;;  %15023 = vmatprep.subr.bf16.mxu1 %v20515_v60  ;;  %v20560_v55 = vld [vmem:[%s21840_s7 + $0x251c] ss:$52 sps:$4 sm:$0xff]   ;;  %v20558_v59 = vld [vmem:[%s21840_s7 + $0x2518] ss:$52 sps:$4 sm:$0xff]  }
 0x605   : > { %v20561_v60 = vld [vmem:[%s21853_s18 + $0xa50] ss:$24 sps:$4 sm:$0xff]  }
 0x607   : > { %10497 = vmatpush1.bf16.msra.mxu0 %v20510_v49  ;;  %15024 = vmatpush1.bf16.msra.mxu1 %v20513_v13  ;;  %v20569_v49 = vld [vmem:[%s21853_s18 + $0xa84] ss:$24 sps:$4 sm:$0xff]  }
 0x608   : > { %10498 = vmatprep.subr.bf16.mxu0 %v20518_v6  ;;  %15034 = vmatprep.subr.bf16.mxu1 %v20521_v23  ;;  %v20564_v13 = vld [vmem:[%s21840_s7 + $0x2580] ss:$52 sps:$4 sm:$0xff]   ;;  %v20575_v23 = vld [vmem:[%s21853_s18 + $0xab4] ss:$24 sps:$4 sm:$0xff]  }
 0x609   : > { %v20572_v6 = vld [vmem:[%s21840_s7 + $0x25ec] ss:$52 sps:$4 sm:$0xff]  }
 0x60a   : > { %15026 = vmatmul.mubr.bf16.vlgmr.msra.gmra.mrb[24].mxu1 %v23521_v34 }
 0x60b   : > { %10499 = vmatpush1.bf16.msra.mxu0 %v20516_v5  ;;  %15035 = vmatpush1.bf16.msra.mxu1 %v20519_v38  ;;  %v20573_v5 = vld [vmem:[%s21853_s18 + $0xab0] ss:$24 sps:$4 sm:$0xff]  }
 0x60c   : > { %15066 = vmatprep.mubr.bf16.mxu1 %v23525_v24  ;;  %10500 = vmatprep.subr.bf16.mxu0 %v20524_v9  ;;  %v20578_v38 = vld [vmem:[%s21840_s7 + $0x2654] ss:$52 sps:$4 sm:$0xff]  }
 0x60d   : > { %15036 = vmatprep.subr.bf16.mxu1 %v20527_v10  ;;  %v20581_v9 = vld [vmem:[%s21853_s18 + $0xae4] ss:$24 sps:$4 sm:$0xff]   ;;  %v20576_v10 = vld [vmem:[%s21840_s7 + $0x2650] ss:$52 sps:$4 sm:$0xff]  }
 0x60f   : > { %10501 = vmatpush1.bf16.msra.mxu0 %v20522_v11  ;;  %15037 = vmatpush1.bf16.msra.mxu1 %v20525_v26  ;;  %v20579_v11 = vld [vmem:[%s21853_s18 + $0xae0] ss:$24 sps:$4 sm:$0xff]  }
 0x610   : > { %10502 = vmatprep.subr.bf16.mxu0 %v20530_v42  ;;  %15038 = vmatprep.subr.bf16.mxu1 %v20533_v16  ;;  %v20584_v26 = vld [vmem:[%s21840_s7 + $0x26bc] ss:$52 sps:$4 sm:$0xff]   ;;  %v20582_v16 = vld [vmem:[%s21840_s7 + $0x26b8] ss:$52 sps:$4 sm:$0xff]  }
 0x611   : > { %v20587_v42 = vld [vmem:[%s21853_s18 + $0xb14] ss:$24 sps:$4 sm:$0xff]  }
 0x613   : > { %10503 = vmatpush1.bf16.msra.mxu0 %v20528_v33  ;;  %15039 = vmatpush1.bf16.msra.mxu1 %v20531_v18  ;;  %v20585_v33 = vld [vmem:[%s21853_s18 + $0xb10] ss:$24 sps:$4 sm:$0xff]  }
 0x614   : > { %10504 = vmatprep.subr.bf16.mxu0 %v20536_v19  ;;  %15040 = vmatprep.subr.bf16.mxu1 %v20539_v20  ;;  %v20590_v18 = vld [vmem:[%s21840_s7 + $0x2724] ss:$52 sps:$4 sm:$0xff]   ;;  %v20588_v20 = vld [vmem:[%s21840_s7 + $0x2720] ss:$52 sps:$4 sm:$0xff]  }
 0x615   : > { %v20593_v19 = vld [vmem:[%s21853_s18 + $0xb44] ss:$24 sps:$4 sm:$0xff]  }
 0x617   : > { %10505 = vmatpush1.bf16.msra.mxu0 %v20534_v25  ;;  %15041 = vmatpush1.bf16.msra.mxu1 %v20537_v28  ;;  %v20591_v25 = vld [vmem:[%s21853_s18 + $0xb40] ss:$24 sps:$4 sm:$0xff]   ;;  %v1966_v28 = vsub.s32 6, %v21900_v44 }
 0x618   : > { %10506 = vmatprep.subr.bf16.mxu0 %v20542_v29  ;;  %15042 = vmatprep.subr.bf16.mxu1 %v20545_v30  ;;  %v20596_v29 = vld [vmem:[%s21840_s7 + $0x278c] ss:$52 sps:$4 sm:$0xff]  }
 0x619   : > { %v20599_v30 = vld [vmem:[%s21853_s18 + $0xb74] ss:$24 sps:$4 sm:$0xff]  }
 0x61b   : > { %10507 = vmatpush1.bf16.msra.mxu0 %v20540_v36  ;;  %15043 = vmatpush1.bf16.msra.mxu1 %v20543_v39  ;;  %v20594_v36 = vld [vmem:[%s21840_s7 + $0x2788] ss:$52 sps:$4 sm:$0xff]  }
 0x61c   : > { %10508 = vmatprep.subr.bf16.mxu0 %v20548_v40  ;;  %15044 = vmatprep.subr.bf16.mxu1 %v20551_v57  ;;  %v20597_v39 = vld [vmem:[%s21853_s18 + $0xb70] ss:$24 sps:$4 sm:$0xff]  }
 0x61d   : > { %v21441_v40 = vld [vmem:[%s21847_s27] sm:$0xff] }
 0x61e   : > { %v1967_v57 = vrot.slane %v21441_v40, %v1966_v28 }
 0x61f   : > { %10509 = vmatpush1.bf16.msra.mxu0 %v20546_v41  ;;  %15045 = vmatpush1.bf16.msra.mxu1 %v20549_v45  ;;  %v20602_v41 = vld [vmem:[%s21840_s7 + $0x27f4] ss:$52 sps:$4 sm:$0xff]  }
 0x620   : > { %10510 = vmatprep.subr.bf16.mxu0 %v20554_v51  ;;  %15046 = vmatprep.subr.bf16.mxu1 %v20557_v22  ;;  %v20605_v45 = vld [vmem:[%s21853_s18 + $0xba4] ss:$24 sps:$4 sm:$0xff]   ;;  %v20603_v51 = vld [vmem:[%s21853_s18 + $0xba0] ss:$24 sps:$4 sm:$0xff]   ;;  %v18155_v22 = vadd.f32 %v22925_v31, %v1967_v57 }
 0x621   : > { %v20637_v57 = vld [vmem:[%s21840_s7 + $0x30] ss:$52 sps:$4 sm:$0xff]  }
 0x623   : > { %10511 = vmatpush1.bf16.msra.mxu0 %v20552_v53  ;;  %15047 = vmatpush1.bf16.msra.mxu1 %v20555_v54  ;;  %v20608_v53 = vld [vmem:[%s21840_s7 + $0x285c] ss:$52 sps:$4 sm:$0xff]  }
 0x624   : > { %10512 = vmatprep.subr.bf16.mxu0 %v20560_v55  ;;  %15048 = vmatprep.subr.bf16.mxu1 %v20563_v56  ;;  %v20611_v54 = vld [vmem:[%s21853_s18 + $0xbd4] ss:$24 sps:$4 sm:$0xff]   ;;  %v20609_v56 = vld [vmem:[%s21853_s18 + $0xbd0] ss:$24 sps:$4 sm:$0xff]  }
 0x625   : > { %v20606_v55 = vld [vmem:[%s21840_s7 + $0x2858] ss:$52 sps:$4 sm:$0xff]  }
 0x627   : > { %10513 = vmatpush1.bf16.msra.mxu0 %v20558_v59  ;;  %15049 = vmatpush1.bf16.msra.mxu1 %v20561_v60  ;;  %v18053_v59 = vpop.f32.mrb[12].mxu1  ;;  %v11145_v60 = vmax.f32 %v18155_v22, 0.0  ;;  %v20642_v22 = vld [vmem:[%s21840_s7 + $0x4a8] ss:$52 sps:$4 sm:$0xff]  }
 0x628   : > { %10514 = vmatprep.subr.bf16.mxu0 %v20566_v63  ;;  %15050 = vmatprep.subr.bf16.mxu1 %v20569_v49  ;;  %v20614_v63 = vld [vmem:[%s21840_s7 + $0x28c4] ss:$52 sps:$4 sm:$0xff]   ;;  %v18054_v49 = vpop.f32.mrb[13].mxu1 }
 0x629   : > { %v23594_v31 = vadd.f32 %v18054_v49, %v18053_v59  ;;  %v20648_v59 = vld [vmem:[%s21840_s7 + $0x5e0] ss:$52 sps:$4 sm:$0xff]   ;;  %v20651_v49 = vld [vmem:[%s21840_s7 + $0x308] ss:$52 sps:$4 sm:$0xff]  }
 0x62b   : > { %10515 = vmatpush1.bf16.msra.mxu0 %v20564_v13  ;;  %15051 = vmatpush1.bf16.msra.mxu1 %v20567_v0  ;;  %v18056_v13 = vpop.f32.mrb[14].mxu1 }
 0x62c   : > { %10516 = vmatprep.subr.bf16.mxu0 %v20572_v6  ;;  %15052 = vmatprep.subr.bf16.mxu1 %v20575_v23  ;;  %v18057_v0 = vpop.f32.mrb[15].mxu1  ;;  %v20612_v6 = vld [vmem:[%s21840_s7 + $0x28c0] ss:$52 sps:$4 sm:$0xff]   ;;  %v23597_v23 = vpack.c.bf16 %v11145_v60, %v11145_v60 }
 0x62d   : > { %v18097_v28 = vpop.f32.mrb[16].mxu1  ;;  %v20649_v60 = vld [vmem:[%s21840_s7 + $0x2a0] ss:$52 sps:$4 sm:$0xff]  }
 0x62e   : > { %v20705_v0 = vld [vmem:[%s21853_s18 + $0xc00] ss:$24 sps:$4 sm:$0xff]  }
 0x62f   : > { %10517 = vmatpush1.bf16.msra.mxu0 %v20570_v7  ;;  %15053 = vmatpush1.bf16.msra.mxu1 %v20573_v5  ;;  %v20617_v7 = vld [vmem:[%s21840_s7 + $0x292c] ss:$52 sps:$4 sm:$0xff]   ;;  %v20615_v5 = vld [vmem:[%s21840_s7 + $0x2928] ss:$52 sps:$4 sm:$0xff]  }
 0x630   : > { %10518 = vmatprep.subr.bf16.mxu0 %v20578_v38  ;;  %15054 = vmatprep.subr.bf16.mxu1 %v20581_v9  ;;  %v20620_v38 = vld [vmem:[%s21840_s7 + $0x2994] ss:$52 sps:$4 sm:$0xff]   ;;  %v20618_v9 = vld [vmem:[%s21840_s7 + $0x2990] ss:$52 sps:$4 sm:$0xff]  }
 0x633   : > { %10519 = vmatpush1.bf16.msra.mxu0 %v20576_v10  ;;  %15055 = vmatpush1.bf16.msra.mxu1 %v20579_v11  ;;  %v20623_v10 = vld [vmem:[%s21840_s7 + $0x29fc] ss:$52 sps:$4 sm:$0xff]   ;;  %v20621_v11 = vld [vmem:[%s21840_s7 + $0x29f8] ss:$52 sps:$4 sm:$0xff]  }
 0x634   : > { %10520 = vmatprep.subr.bf16.mxu0 %v20584_v26  ;;  %15056 = vmatprep.subr.bf16.mxu1 %v20587_v42  ;;  %v20626_v26 = vld [vmem:[%s21840_s7 + $0x2a64] ss:$52 sps:$4 sm:$0xff]   ;;  %v20624_v42 = vld [vmem:[%s21840_s7 + $0x2a60] ss:$52 sps:$4 sm:$0xff]  }
 0x637   : > { %10521 = vmatpush1.bf16.msra.mxu0 %v20582_v16  ;;  %15057 = vmatpush1.bf16.msra.mxu1 %v20585_v33  ;;  %v20629_v16 = vld [vmem:[%s21840_s7 + $0x2acc] ss:$52 sps:$4 sm:$0xff]   ;;  %v20627_v33 = vld [vmem:[%s21840_s7 + $0x2ac8] ss:$52 sps:$4 sm:$0xff]  }
 0x638   : > { %10531 = vmatprep.subr.bf16.mxu0 %v20590_v18  ;;  %15058 = vmatprep.subr.bf16.mxu1 %v20593_v19  ;;  %v20632_v18 = vld [vmem:[%s21840_s7 + $0x2b34] ss:$52 sps:$4 sm:$0xff]   ;;  %v20630_v19 = vld [vmem:[%s21840_s7 + $0x2b30] ss:$52 sps:$4 sm:$0xff]  }
 0x63a   : > { %10523 = vmatmul.mubr.bf16.vlgmr.msra.gmra.mrb[12].mxu0 %v22149_v3  ;;  %v20600_v3 = vld [vmem:[%s21840_s7 + $0x27f0] ss:$52 sps:$4 sm:$0xff]  }
 0x63b   : > { %10532 = vmatpush1.bf16.msra.mxu0 %v20588_v20  ;;  %15059 = vmatpush1.bf16.msra.mxu1 %v20591_v25  ;;  %v20635_v20 = vld [vmem:[%s21840_s7 + $0x2b9c] ss:$52 sps:$4 sm:$0xff]   ;;  %v20633_v25 = vld [vmem:[%s21840_s7 + $0x2b98] ss:$52 sps:$4 sm:$0xff]  }
 0x63c   : > { %10533 = vmatprep.subr.bf16.mxu0 %v20596_v29  ;;  %15060 = vmatprep.subr.bf16.mxu1 %v20599_v30  ;;  %v20636_v29 = vld [vmem:[%s21840_s7 + $0x370] ss:$52 sps:$4 sm:$0xff]   ;;  %v18098_v30 = vpop.f32.mrb[17].mxu1 }
 0x63d   : > { %17383 = vmatprep.mubr.msk.bf16.mxu0 %vm9133_vm0, %v22154_v8 }
 0x63f   : > { %10534 = vmatpush1.bf16.msra.mxu0 %v20594_v36  ;;  %15061 = vmatpush1.bf16.msra.mxu1 %v20597_v39  ;;  %v23615_v36 = vadd.f32 %v18098_v30, %v18097_v28  ;;  %v18100_v39 = vpop.f32.mrb[18].mxu1  ;;  %v20725_v28 = vld [vmem:[%s21853_s18 + $0xc94] ss:$24 sps:$4 sm:$0xff]   ;;  %v20729_v30 = vld [vmem:[%s21853_s18 + $0xcc0] ss:$24 sps:$4 sm:$0xff]  }
 0x640   : > { %10535 = vmatprep.subr.bf16.mxu0 %v20602_v41  ;;  %15062 = vmatprep.subr.bf16.mxu1 %v20605_v45  ;;  %v18101_v40 = vpop.f32.mrb[19].mxu1  ;;  %v20638_v41 = vld [vmem:[%s21840_s7 + $0x3d8] ss:$52 sps:$4 sm:$0xff]  }
 0x641   : > { %v20639_v45 = vld [vmem:[%s21840_s7 + $0x98] ss:$52 sps:$4 sm:$0xff]   ;;  %v18141_v13 = vpop.f32.mrb[20].mxu1  ;;  %v20660_v40 = vld [vmem:[%s21840_s7 + $0x1210] ss:$52 sps:$4 sm:$0xff]  }
 0x642   : > { %v20731_v39 = vld [vmem:[%s21853_s18 + $0xcc4] ss:$24 sps:$4 sm:$0xff]  }
 0x643   : > { %10536 = vmatpush1.bf16.msra.mxu0 %v20600_v3  ;;  %15063 = vmatpush1.bf16.msra.mxu1 %v20603_v51  ;;  %v20640_v3 = vld [vmem:[%s21840_s7 + $0x440] ss:$52 sps:$4 sm:$0xff]  }
 0x644   : > { %10537 = vmatprep.subr.bf16.mxu0 %v20608_v53  ;;  %15064 = vmatprep.subr.bf16.mxu1 %v20611_v54  ;;  %v20641_v51 = vld [vmem:[%s21840_s7 + $0x100] ss:$52 sps:$4 sm:$0xff]   ;;  %v20643_v53 = vld [vmem:[%s21840_s7 + $0x168] ss:$52 sps:$4 sm:$0xff]   ;;  %v20644_v54 = vld [vmem:[%s21840_s7 + $0x510] ss:$52 sps:$4 sm:$0xff]  }
 0x647   : > { %10538 = vmatpush1.bf16.msra.mxu0 %v20606_v55  ;;  %15065 = vmatpush1.bf16.msra.mxu1 %v20609_v56  ;;  %v20645_v55 = vld [vmem:[%s21840_s7 + $0x1d0] ss:$52 sps:$4 sm:$0xff]   ;;  %v20647_v56 = vld [vmem:[%s21840_s7 + $0x238] ss:$52 sps:$4 sm:$0xff]  }
 0x648   : > { %10539 = vmatprep.subr.bf16.mxu0 %v20614_v63  ;;  %v20650_v63 = vld [vmem:[%s21840_s7 + $0x648] ss:$52 sps:$4 sm:$0xff]  }
 0x64a   : > { %15067 = vmatmul.mubr.bf16.vlgmr.msra.gmra.mrb[24].mxu1 %v23597_v23 }
 0x64b   : > { %10540 = vmatpush1.bf16.msra.mxu0 %v20612_v6  ;;  %v20707_v6 = vld [vmem:[%s21853_s18 + $0xc04] ss:$24 sps:$4 sm:$0xff]  }
 0x64c   : > { %10541 = vmatprep.subr.bf16.mxu0 %v20617_v7  ;;  %v20652_v7 = vld [vmem:[%s21840_s7 + $0x1070] ss:$52 sps:$4 sm:$0xff]   ;;  %15075 = vmatprep.subr.bf16.mxu1 %v20707_v6 }
 0x64d   : > { %15076 = vmatpush1.bf16.msra.mxu1 %v20705_v0  ;;  %v20669_v0 = vld [vmem:[%s21840_s7 + $0x1a30] ss:$52 sps:$4 sm:$0xff]  }
 0x64e   : > { %v20759_v6 = vld [vmem:[%s21853_s18 + $0xdb0] ss:$24 sps:$4 sm:$0xff]  }
 0x64f   : > { %10542 = vmatpush1.bf16.msra.mxu0 %v20615_v5  ;;  %v18142_v5 = vpop.f32.mrb[21].mxu1 }
 0x650   : > { %10543 = vmatprep.subr.bf16.mxu0 %v20620_v38  ;;  %v23637_v38 = vadd.f32 %v18142_v5, %v18141_v13  ;;  %v20668_v13 = vld [vmem:[%s21840_s7 + $0x1d70] ss:$52 sps:$4 sm:$0xff]   ;;  %v20670_v5 = vld [vmem:[%s21840_s7 + $0x1dd8] ss:$52 sps:$4 sm:$0xff]  }
 0x653   : > { %10544 = vmatpush1.bf16.msra.mxu0 %v20618_v9  ;;  %v18144_v9 = vpop.f32.mrb[22].mxu1 }
 0x654   : > { %10545 = vmatprep.subr.bf16.mxu0 %v20623_v10  ;;  %v18145_v10 = vpop.f32.mrb[23].mxu1  ;;  %v20671_v9 = vld [vmem:[%s21840_s7 + $0x1a98] ss:$52 sps:$4 sm:$0xff]  }
 0x655   : > { %v20765_v10 = vld [vmem:[%s21853_s18 + $0xde0] ss:$24 sps:$4 sm:$0xff]  }
 0x657   : > { %10546 = vmatpush1.bf16.msra.mxu0 %v20621_v11  ;;  %v20653_v11 = vld [vmem:[%s21840_s7 + $0xd30] ss:$52 sps:$4 sm:$0xff]  }
 0x658   : > { %10547 = vmatprep.subr.bf16.mxu0 %v20626_v26  ;;  %v20711_v26 = vld [vmem:[%s21853_s18 + $0xc30] ss:$24 sps:$4 sm:$0xff]  }
 0x65b   : > { %10548 = vmatpush1.bf16.msra.mxu0 %v20624_v42  ;;  %v20713_v42 = vld [vmem:[%s21853_s18 + $0xc34] ss:$24 sps:$4 sm:$0xff]  }
 0x65c   : > { %10549 = vmatprep.subr.bf16.mxu0 %v20629_v16  ;;  %v20654_v16 = vld [vmem:[%s21840_s7 + $0x10d8] ss:$52 sps:$4 sm:$0xff]   ;;  %15077 = vmatprep.subr.bf16.mxu1 %v20713_v42  ;;  %v20673_v42 = vld [vmem:[%s21840_s7 + $0x1b00] ss:$52 sps:$4 sm:$0xff]  }
 0x65d   : > { %15078 = vmatpush1.bf16.msra.mxu1 %v20711_v26  ;;  %v20672_v26 = vld [vmem:[%s21840_s7 + $0x1e40] ss:$52 sps:$4 sm:$0xff]  }
 0x65f   : > { %10550 = vmatpush1.bf16.msra.mxu0 %v20627_v33  ;;  %v20655_v33 = vld [vmem:[%s21840_s7 + $0xd98] ss:$52 sps:$4 sm:$0xff]  }
 0x660   : > { %10551 = vmatprep.subr.bf16.mxu0 %v20632_v18  ;;  %v20717_v18 = vld [vmem:[%s21853_s18 + $0xc60] ss:$24 sps:$4 sm:$0xff]  }
 0x663   : > { %10552 = vmatpush1.bf16.msra.mxu0 %v20630_v19  ;;  %v20719_v19 = vld [vmem:[%s21853_s18 + $0xc64] ss:$24 sps:$4 sm:$0xff]  }
 0x664   : > { %10553 = vmatprep.subr.bf16.mxu0 %v20635_v20  ;;  %v20656_v20 = vld [vmem:[%s21840_s7 + $0x1140] ss:$52 sps:$4 sm:$0xff]   ;;  %15079 = vmatprep.subr.bf16.mxu1 %v20719_v19 }
 0x665   : > { %15080 = vmatpush1.bf16.msra.mxu1 %v20717_v18  ;;  %v20777_v18 = vld [vmem:[%s21853_s18 + $0xe40] ss:$24 sps:$4 sm:$0xff]   ;;  %v20779_v19 = vld [vmem:[%s21853_s18 + $0xe44] ss:$24 sps:$4 sm:$0xff]  }
 0x666   : > { %15081 = vmatprep.subr.bf16.mxu1 %v20725_v28  ;;  %v20785_v28 = vld [vmem:[%s21853_s18 + $0xe74] ss:$24 sps:$4 sm:$0xff]  }
 0x667   : > { %10554 = vmatpush1.bf16.msra.mxu0 %v20633_v25  ;;  %v20657_v25 = vld [vmem:[%s21840_s7 + $0xe00] ss:$52 sps:$4 sm:$0xff]  }
 0x668   : > { %18015 = vmatprep.subr.bf16.mxu0 %v20636_v29  ;;  %v20658_v29 = vld [vmem:[%s21840_s7 + $0x11a8] ss:$52 sps:$4 sm:$0xff]  }
 0x66a   : > { %10564 = vmatmul.mubr.bf16.vlgmr.msra.gmra.mrb[12].mxu0 %v22208_v4 }
 0x66b   : > { %18016 = vmatpush3.bf16.msra.mxu0 %v20637_v57  ;;  %10891 = vmatprep.mubr.bf16.mxu0 %v21927_v62  ;;  %v20646_v62 = vld [vmem:[%s21840_s7 + $0x578] ss:$52 sps:$4 sm:$0xff]   ;;  %v20661_v57 = vld [vmem:[%s21840_s7 + $0xed0] ss:$52 sps:$4 sm:$0xff]  }
 0x66c   : > { %18017 = vmatprep.subr.bf16.mxu0 %v20638_v41  ;;  %v20735_v41 = vld [vmem:[%s21853_s18 + $0xcf0] ss:$24 sps:$4 sm:$0xff]  }
 0x66f   : > { %18018 = vmatpush3.bf16.msra.mxu0 %v20639_v45  ;;  %v20737_v45 = vld [vmem:[%s21853_s18 + $0xcf4] ss:$24 sps:$4 sm:$0xff]  }
 0x670   : > { %18019 = vmatprep.subr.bf16.mxu0 %v20640_v3  ;;  %v20662_v3 = vld [vmem:[%s21840_s7 + $0x1278] ss:$52 sps:$4 sm:$0xff]  }
 0x673   : > { %18020 = vmatpush3.bf16.msra.mxu0 %v20641_v51  ;;  %v20663_v51 = vld [vmem:[%s21840_s7 + $0xf38] ss:$52 sps:$4 sm:$0xff]  }
 0x674   : > { %18021 = vmatprep.subr.bf16.mxu0 %v20642_v22  ;;  %v20741_v22 = vld [vmem:[%s21853_s18 + $0xd20] ss:$24 sps:$4 sm:$0xff]  }
 0x677   : > { %18022 = vmatpush3.bf16.msra.mxu0 %v20643_v53  ;;  %v20743_v53 = vld [vmem:[%s21853_s18 + $0xd24] ss:$24 sps:$4 sm:$0xff]  }
 0x678   : > { %18023 = vmatprep.subr.bf16.mxu0 %v20644_v54  ;;  %v20664_v54 = vld [vmem:[%s21840_s7 + $0x12e0] ss:$52 sps:$4 sm:$0xff]  }
 0x67b   : > { %18024 = vmatpush3.bf16.msra.mxu0 %v20645_v55  ;;  %v20665_v55 = vld [vmem:[%s21840_s7 + $0xfa0] ss:$52 sps:$4 sm:$0xff]  }
 0x67c   : > { %18025 = vmatprep.subr.bf16.mxu0 %v20646_v62  ;;  %v20747_v62 = vld [vmem:[%s21853_s18 + $0xd50] ss:$24 sps:$4 sm:$0xff]  }
 0x67f   : > { %18026 = vmatpush3.bf16.msra.mxu0 %v20647_v56  ;;  %v20749_v56 = vld [vmem:[%s21853_s18 + $0xd54] ss:$24 sps:$4 sm:$0xff]  }
 0x680   : > { %18027 = vmatprep.subr.bf16.mxu0 %v20648_v59  ;;  %v20666_v59 = vld [vmem:[%s21840_s7 + $0x1348] ss:$52 sps:$4 sm:$0xff]  }
 0x683   : > { %18028 = vmatpush3.bf16.msra.mxu0 %v20649_v60  ;;  %v20667_v60 = vld [vmem:[%s21840_s7 + $0x1008] ss:$52 sps:$4 sm:$0xff]  }
 0x684   : > { %18029 = vmatprep.subr.bf16.mxu0 %v20650_v63  ;;  %v20753_v63 = vld [vmem:[%s21853_s18 + $0xd80] ss:$24 sps:$4 sm:$0xff]  }
 0x687   : > { %18030 = vmatpush3.bf16.msra.mxu0 %v20651_v49  ;;  %v20755_v49 = vld [vmem:[%s21853_s18 + $0xd84] ss:$24 sps:$4 sm:$0xff]  }
 0x688   : > { %18059 = vmatprep.subr.bf16.mxu0 %v20652_v7  ;;  %v20761_v7 = vld [vmem:[%s21853_s18 + $0xdb4] ss:$24 sps:$4 sm:$0xff]  }
 0x68a   : > { %10892 = vmatmul.mubr.bf16.vlgmr.msra.gmra.mrb[16].mxu0 %v21955_v21  ;;  %v20723_v21 = vld [vmem:[%s21853_s18 + $0xc90] ss:$24 sps:$4 sm:$0xff]  }
 0x68b   : > { %18060 = vmatpush3.bf16.msra.mxu0 %v20653_v11  ;;  %10971 = vmatprep.mubr.bf16.mxu0 %v22067_v48  ;;  %v20659_v48 = vld [vmem:[%s21840_s7 + $0xe68] ss:$52 sps:$4 sm:$0xff]  }
 0x68c   : > { %18061 = vmatprep.subr.bf16.mxu0 %v20654_v16  ;;  %15082 = vmatpush1.bf16.msra.mxu1 %v20723_v21  ;;  %v20767_v11 = vld [vmem:[%s21853_s18 + $0xde4] ss:$24 sps:$4 sm:$0xff]   ;;  %v20773_v16 = vld [vmem:[%s21853_s18 + $0xe14] ss:$24 sps:$4 sm:$0xff]   ;;  %v20783_v21 = vld [vmem:[%s21853_s18 + $0xe70] ss:$24 sps:$4 sm:$0xff]  }
 0x68d   : > { %15083 = vmatprep.subr.bf16.mxu1 %v20731_v39  ;;  %v20791_v39 = vld [vmem:[%s21853_s18 + $0xea4] ss:$24 sps:$4 sm:$0xff]  }
 0x68f   : > { %18062 = vmatpush3.bf16.msra.mxu0 %v20655_v33  ;;  %v20674_v33 = vld [vmem:[%s21840_s7 + $0x1ea8] ss:$52 sps:$4 sm:$0xff]  }
 0x690   : > { %18063 = vmatprep.subr.bf16.mxu0 %v20656_v20  ;;  %15084 = vmatpush1.bf16.msra.mxu1 %v20729_v30  ;;  %v20676_v20 = vld [vmem:[%s21840_s7 + $0x1f10] ss:$52 sps:$4 sm:$0xff]   ;;  %v20680_v30 = vld [vmem:[%s21840_s7 + $0x1fe0] ss:$52 sps:$4 sm:$0xff]  }
 0x691   : > { %15085 = vmatprep.subr.bf16.mxu1 %v20737_v45  ;;  %v20797_v45 = vld [vmem:[%s21853_s18 + $0xed4] ss:$24 sps:$4 sm:$0xff]  }
 0x693   : > { %18064 = vmatpush3.bf16.msra.mxu0 %v20657_v25  ;;  %v20677_v25 = vld [vmem:[%s21840_s7 + $0x1bd0] ss:$52 sps:$4 sm:$0xff]  }
 0x694   : > { %18065 = vmatprep.subr.bf16.mxu0 %v20658_v29  ;;  %15086 = vmatpush1.bf16.msra.mxu1 %v20735_v41  ;;  %v20678_v29 = vld [vmem:[%s21840_s7 + $0x1f78] ss:$52 sps:$4 sm:$0xff]   ;;  %v20682_v41 = vld [vmem:[%s21840_s7 + $0x2048] ss:$52 sps:$4 sm:$0xff]  }
 0x695   : > { %15087 = vmatprep.subr.bf16.mxu1 %v20743_v53  ;;  %v20684_v53 = vld [vmem:[%s21840_s7 + $0x2730] ss:$52 sps:$4 sm:$0xff]  }
 0x697   : > { %18066 = vmatpush3.bf16.msra.mxu0 %v20659_v48  ;;  %v20679_v48 = vld [vmem:[%s21840_s7 + $0x1c38] ss:$52 sps:$4 sm:$0xff]  }
 0x698   : > { %18067 = vmatprep.subr.bf16.mxu0 %v20660_v40  ;;  %15088 = vmatpush1.bf16.msra.mxu1 %v20741_v22  ;;  %v20789_v40 = vld [vmem:[%s21853_s18 + $0xea0] ss:$24 sps:$4 sm:$0xff]   ;;  %v20803_v22 = vld [vmem:[%s21853_s18 + $0xf04] ss:$24 sps:$4 sm:$0xff]  }
 0x699   : > { %15089 = vmatprep.subr.bf16.mxu1 %v20749_v56  ;;  %v20687_v56 = vld [vmem:[%s21840_s7 + $0x2868] ss:$52 sps:$4 sm:$0xff]  }
 0x69b   : > { %18068 = vmatpush3.bf16.msra.mxu0 %v20661_v57  ;;  %v20681_v57 = vld [vmem:[%s21840_s7 + $0x1ca0] ss:$52 sps:$4 sm:$0xff]  }
 0x69c   : > { %18069 = vmatprep.subr.bf16.mxu0 %v20662_v3  ;;  %15090 = vmatpush1.bf16.msra.mxu1 %v20747_v62  ;;  %v20795_v3 = vld [vmem:[%s21853_s18 + $0xed0] ss:$24 sps:$4 sm:$0xff]  }
 0x69d   : > { %15091 = vmatprep.subr.bf16.mxu1 %v20755_v49  ;;  %v20686_v62 = vld [vmem:[%s21840_s7 + $0x2800] ss:$52 sps:$4 sm:$0xff]   ;;  %v20693_v49 = vld [vmem:[%s21840_s7 + $0x2ad8] ss:$52 sps:$4 sm:$0xff]  }
 0x69f   : > { %18070 = vmatpush3.bf16.msra.mxu0 %v20663_v51  ;;  %v20683_v51 = vld [vmem:[%s21840_s7 + $0x1d08] ss:$52 sps:$4 sm:$0xff]  }
 0x6a0   : > { %18071 = vmatprep.subr.bf16.mxu0 %v20664_v54  ;;  %15092 = vmatpush1.bf16.msra.mxu1 %v20753_v63  ;;  %v21615_v54 = vmov 0   ;;  %v20692_v63 = vld [vmem:[%s21840_s7 + $0x2a70] ss:$52 sps:$4 sm:$0xff]  }
 0x6a1   : > { %15093 = vmatprep.subr.bf16.mxu1 %v20761_v7  ;;  %v20696_v7 = vld [vmem:[%s21853_s18 + $0x8] ss:$24 sps:$4 sm:$0xff]  }
 0x6a3   : > { %18072 = vmatpush3.bf16.msra.mxu0 %v20665_v55  ;;  %v20685_v55 = vld [vmem:[%s21840_s7 + $0x2798] ss:$52 sps:$4 sm:$0xff]  }
 0x6a4   : > { %18073 = vmatprep.subr.bf16.mxu0 %v20666_v59  ;;  %15094 = vmatpush1.bf16.msra.mxu1 %v20759_v6  ;;  %v20690_v59 = vld [vmem:[%s21840_s7 + $0x29a0] ss:$52 sps:$4 sm:$0xff]  }
 0x6a5   : > { %15095 = vmatprep.subr.bf16.mxu1 %v20767_v11  ;;  %v20698_v6 = vld [vmem:[%s21853_s18 + $0xc] ss:$24 sps:$4 sm:$0xff]   ;;  %v20702_v11 = vld [vmem:[%s21853_s18 + $0x68] ss:$24 sps:$4 sm:$0xff]  }
 0x6a7   : > { %18074 = vmatpush3.bf16.msra.mxu0 %v20667_v60  ;;  %v20691_v60 = vld [vmem:[%s21840_s7 + $0x2a08] ss:$52 sps:$4 sm:$0xff]  }
 0x6a8   : > { %18103 = vmatprep.subr.bf16.mxu0 %v20668_v13  ;;  %15096 = vmatpush1.bf16.msra.mxu1 %v20765_v10  ;;  %v20694_v13 = vld [vmem:[%s21840_s7 + $0x2b40] ss:$52 sps:$4 sm:$0xff]  }
 0x6a9   : > { %15097 = vmatprep.subr.bf16.mxu1 %v20773_v16  ;;  %v20704_v10 = vld [vmem:[%s21853_s18 + $0x6c] ss:$24 sps:$4 sm:$0xff]   ;;  %v20722_v16 = vld [vmem:[%s21853_s18 + $0xfc] ss:$24 sps:$4 sm:$0xff]  }
 0x6aa   : > { %10972 = vmatmul.mubr.bf16.vlgmr.msra.gmra.mrb[20].mxu0 %v22145_v2  ;;  %v20771_v2 = vld [vmem:[%s21853_s18 + $0xe10] ss:$24 sps:$4 sm:$0xff]  }
 0x6ab   : > { %18104 = vmatpush3.bf16.msra.mxu0 %v20669_v0  ;;  %11051 = vmatprep.mubr.bf16.mxu0 %v22006_v61  ;;  %v20675_v61 = vld [vmem:[%s21840_s7 + $0x1b68] ss:$52 sps:$4 sm:$0xff]  }
 0x6ac   : > { %18105 = vmatprep.subr.bf16.mxu0 %v20670_v5  ;;  %15098 = vmatpush1.bf16.msra.mxu1 %v20771_v2  ;;  %v20695_v0 = vld [vmem:[%s21840_s7 + $0x2ba8] ss:$52 sps:$4 sm:$0xff]   ;;  %v20701_v5 = vld [vmem:[%s21853_s18 + $0x3c] ss:$24 sps:$4 sm:$0xff]  }
 0x6ad   : > { %15099 = vmatprep.subr.bf16.mxu1 %v20779_v19  ;;  %v20714_v2 = vld [vmem:[%s21853_s18 + $0xc8] ss:$24 sps:$4 sm:$0xff]   ;;  %v20734_v19 = vld [vmem:[%s21853_s18 + $0x15c] ss:$24 sps:$4 sm:$0xff]  }
 0x6af   : > { %18106 = vmatpush3.bf16.msra.mxu0 %v20671_v9  ;;  %v20699_v9 = vld [vmem:[%s21853_s18 + $0x38] ss:$24 sps:$4 sm:$0xff]  }
 0x6b0   : > { %18107 = vmatprep.subr.bf16.mxu0 %v20672_v26  ;;  %15100 = vmatpush1.bf16.msra.mxu1 %v20777_v18  ;;  %v20710_v26 = vld [vmem:[%s21853_s18 + $0x9c] ss:$24 sps:$4 sm:$0xff]   ;;  %v20726_v18 = vld [vmem:[%s21853_s18 + $0x128] ss:$24 sps:$4 sm:$0xff]  }
 0x6b1   : > { %15101 = vmatprep.subr.bf16.mxu1 %v20785_v28  ;;  %v20746_v28 = vld [vmem:[%s21853_s18 + $0x1bc] ss:$24 sps:$4 sm:$0xff]  }
 0x6b3   : > { %18108 = vmatpush3.bf16.msra.mxu0 %v20673_v42  ;;  %v20708_v42 = vld [vmem:[%s21853_s18 + $0x98] ss:$24 sps:$4 sm:$0xff]  }
 0x6b4   : > { %18109 = vmatprep.subr.bf16.mxu0 %v20674_v33  ;;  %15102 = vmatpush1.bf16.msra.mxu1 %v20783_v21  ;;  %v20720_v33 = vld [vmem:[%s21853_s18 + $0xf8] ss:$24 sps:$4 sm:$0xff]   ;;  %v20738_v21 = vld [vmem:[%s21853_s18 + $0x188] ss:$24 sps:$4 sm:$0xff]  }
 0x6b5   : > { %15103 = vmatprep.subr.bf16.mxu1 %v20791_v39  ;;  %v20758_v39 = vld [vmem:[%s21853_s18 + $0x21c] ss:$24 sps:$4 sm:$0xff]  }
 0x6b7   : > { %18110 = vmatpush3.bf16.msra.mxu0 %v20675_v61  ;;  %v20728_v61 = vld [vmem:[%s21853_s18 + $0x12c] ss:$24 sps:$4 sm:$0xff]  }
 0x6b8   : > { %18111 = vmatprep.subr.bf16.mxu0 %v20676_v20  ;;  %15104 = vmatpush1.bf16.msra.mxu1 %v20789_v40  ;;  %v20732_v20 = vld [vmem:[%s21853_s18 + $0x158] ss:$24 sps:$4 sm:$0xff]  }
 0x6b9   : > { %15105 = vmatprep.subr.bf16.mxu1 %v20797_v45  ;;  %v20756_v40 = vld [vmem:[%s21853_s18 + $0x218] ss:$24 sps:$4 sm:$0xff]   ;;  %v20770_v45 = vld [vmem:[%s21853_s18 + $0x27c] ss:$24 sps:$4 sm:$0xff]  }
 0x6bb   : > { %18112 = vmatpush3.bf16.msra.mxu0 %v20677_v25  ;;  %v20740_v25 = vld [vmem:[%s21853_s18 + $0x18c] ss:$24 sps:$4 sm:$0xff]  }
 0x6bc   : > { %18113 = vmatprep.subr.bf16.mxu0 %v20678_v29  ;;  %15106 = vmatpush1.bf16.msra.mxu1 %v20795_v3  ;;  %v20744_v29 = vld [vmem:[%s21853_s18 + $0x1b8] ss:$24 sps:$4 sm:$0xff]  }
 0x6bd   : > { %15116 = vmatprep.subr.bf16.mxu1 %v20803_v22  ;;  %v20768_v3 = vld [vmem:[%s21853_s18 + $0x278] ss:$24 sps:$4 sm:$0xff]   ;;  %v20774_v22 = vld [vmem:[%s21853_s18 + $0x2a8] ss:$24 sps:$4 sm:$0xff]  }
 0x6bf   : > { %18114 = vmatpush3.bf16.msra.mxu0 %v20679_v48  ;;  %v20752_v48 = vld [vmem:[%s21853_s18 + $0x1ec] ss:$24 sps:$4 sm:$0xff]  }
 0x6c0   : > { %18115 = vmatprep.subr.bf16.mxu0 %v20680_v30  ;;  %v20750_v30 = vld [vmem:[%s21853_s18 + $0x1e8] ss:$24 sps:$4 sm:$0xff]  }
 0x6c3   : > { %18116 = vmatpush3.bf16.msra.mxu0 %v20681_v57  ;;  %v20764_v57 = vld [vmem:[%s21853_s18 + $0x24c] ss:$24 sps:$4 sm:$0xff]  }
 0x6c4   : > { %18117 = vmatprep.subr.bf16.mxu0 %v20682_v41  ;;  %v20762_v41 = vld [vmem:[%s21853_s18 + $0x248] ss:$24 sps:$4 sm:$0xff]  }
 0x6c7   : > { %18118 = vmatpush3.bf16.msra.mxu0 %v20683_v51  ;;  %v20776_v51 = vld [vmem:[%s21853_s18 + $0x2ac] ss:$24 sps:$4 sm:$0xff]  }
 0x6c8   : > { %11099 = vmatprep.subr.bf16.mxu0 %v21615_v54 }
 0x6ca   : > { %11052 = vmatmul.mubr.bf16.vlgmr.msra.gmra.mrb[24].mxu0 %v22062_v43  ;;  %v20688_v43 = vld [vmem:[%s21840_s7 + $0x28d0] ss:$52 sps:$4 sm:$0xff]  }
 0x6cb   : > { %11100 = vmatpush1.bf16.msra.mxu0 %v20684_v53  ;;  %17385 = vmatprep.mubr.msk.bf16.mxu0 %vm9133_vm0, %v22154_v8  ;;  %v20689_v8 = vld [vmem:[%s21840_s7 + $0x2938] ss:$52 sps:$4 sm:$0xff]  }
 0x6cc   : > { %11101 = vmatprep.subr.bf16.mxu0 %v21615_v54  ;;  %v20782_v53 = vld [vmem:[%s21853_s18 + $0x2dc] ss:$24 sps:$4 sm:$0xff]  }
 0x6cf   : > { %11102 = vmatpush1.bf16.msra.mxu0 %v20685_v55  ;;  %v20780_v55 = vld [vmem:[%s21853_s18 + $0x2d8] ss:$24 sps:$4 sm:$0xff]  }
 0x6d0   : > { %11103 = vmatprep.subr.bf16.mxu0 %v21615_v54 }
 0x6d3   : > { %11104 = vmatpush1.bf16.msra.mxu0 %v20686_v62  ;;  %v20788_v62 = vld [vmem:[%s21853_s18 + $0x30c] ss:$24 sps:$4 sm:$0xff]  }
 0x6d4   : > { %11105 = vmatprep.subr.bf16.mxu0 %v21615_v54 }
 0x6d7   : > { %11106 = vmatpush1.bf16.msra.mxu0 %v20687_v56  ;;  %v23768_v56 = vld [vmem:[%s21847_s27 + $0x8] sm:$0x1f] }
 0x6d8   : > { %11107 = vmatprep.subr.bf16.mxu0 %v21615_v54 }
 0x6db   : > { %11108 = vmatpush1.bf16.msra.mxu0 %v20688_v43  ;;  %v20786_v43 = vld [vmem:[%s21853_s18 + $0x308] ss:$24 sps:$4 sm:$0xff]  }
 0x6dc   : > { %11109 = vmatprep.subr.bf16.mxu0 %v21615_v54 }
 0x6df   : > { %11110 = vmatpush1.bf16.msra.mxu0 %v20689_v8  ;;  %v20794_v8 = vld [vmem:[%s21853_s18 + $0x33c] ss:$24 sps:$4 sm:$0xff]  }
 0x6e0   : > { %11111 = vmatprep.subr.bf16.mxu0 %v21615_v54 }
 0x6e3   : > { %11112 = vmatpush1.bf16.msra.mxu0 %v20690_v59  ;;  %v1987_v59 = vrot.slane %v23768_v56, %v22858_v35 }
 0x6e4   : > { %11113 = vmatprep.subr.bf16.mxu0 %v21615_v54 }
 0x6e7   : > { %11114 = vmatpush1.bf16.msra.mxu0 %v20691_v60  ;;  %v1975_v60 = vrot.slane %v23768_v56, %v23330_v46 }
 0x6e8   : > { %11115 = vmatprep.subr.bf16.mxu0 %v21615_v54 }
 0x6eb   : > { %11116 = vmatpush1.bf16.msra.mxu0 %v20692_v63  ;;  %v1979_v63 = vrot.slane %v23768_v56, %v23253_v58 }
 0x6ec   : > { %11117 = vmatprep.subr.bf16.mxu0 %v21615_v54 }
 0x6ef   : > { %11118 = vmatpush1.bf16.msra.mxu0 %v20693_v49  ;;  %v20792_v49 = vld [vmem:[%s21853_s18 + $0x338] ss:$24 sps:$4 sm:$0xff]  }
 0x6f0   : > { %11119 = vmatprep.subr.bf16.mxu0 %v21615_v54 }
 0x6f3   : > { %11120 = vmatpush1.bf16.msra.mxu0 %v20694_v13  ;;  %v20800_v13 = vld [vmem:[%s21853_s18 + $0x36c] ss:$24 sps:$4 sm:$0xff]  }
 0x6f4   : > { %11121 = vmatprep.subr.bf16.mxu0 %v21615_v54 }
 0x6f7   : > { %11122 = vmatpush1.bf16.msra.mxu0 %v20695_v0  ;;  %v18160_v0 = vadd.f32 %v23426_v52, %v1987_v59  ;;  %v20801_v52 = vld [vmem:[%s21853_s18 + $0xf00] ss:$24 sps:$4 sm:$0xff]   ;;  %v20839_v59 = vld [vmem:[%s21853_s18 + $0x1024] ss:$24 sps:$4 sm:$0xff]  }
 0x6f8   : > { %15198 = vmatprep.subr.bf16.mxu0 %v20698_v6 }
 0x6fa   : > { %11132 = vmatmul.mubr.bf16.vlgmr.msra.gmra.mrb[28].mxu0 %v22208_v4  ;;  %v20716_v4 = vld [vmem:[%s21853_s18 + $0xcc] ss:$24 sps:$4 sm:$0xff]  }
 0x6fb   : > { %15199 = vmatpush1.bf16.msra.mxu0 %v20696_v7  ;;  %15230 = vmatprep.mubr.bf16.mxu0 %v23279_v37 }
 0x6fc   : > { %15200 = vmatprep.subr.bf16.mxu0 %v20701_v5 }
 0x6ff   : > { %15201 = vmatpush1.bf16.msra.mxu0 %v20699_v9 }
 0x700   : > { %15202 = vmatprep.subr.bf16.mxu0 %v20704_v10 }
 0x703   : > { %15203 = vmatpush1.bf16.msra.mxu0 %v20702_v11  ;;  %v20798_v11 = vld [vmem:[%s21853_s18 + $0x368] ss:$24 sps:$4 sm:$0xff]  }
 0x704   : > { %15204 = vmatprep.subr.bf16.mxu0 %v20710_v26 }
 0x707   : > { %15205 = vmatpush1.bf16.msra.mxu0 %v20708_v42 }
 0x708   : > { %15206 = vmatprep.subr.bf16.mxu0 %v20716_v4  ;;  %v20806_v4 = vld [vmem:[%s21853_s18 + $0x39c] ss:$24 sps:$4 sm:$0xff]  }
 0x70b   : > { %15207 = vmatpush1.bf16.msra.mxu0 %v20714_v2  ;;  %v11150_v2 = vmax.f32 %v18160_v0, 0.0 }
 0x70c   : > { %15208 = vmatprep.subr.bf16.mxu0 %v20722_v16 }
 0x70f   : > { %15209 = vmatpush1.bf16.msra.mxu0 %v20720_v33 }
 0x710   : > { %15210 = vmatprep.subr.bf16.mxu0 %v20728_v61 }
 0x713   : > { %15211 = vmatpush1.bf16.msra.mxu0 %v20726_v18  ;;  %v20804_v18 = vld [vmem:[%s21853_s18 + $0x398] ss:$24 sps:$4 sm:$0xff]  }
 0x714   : > { %15212 = vmatprep.subr.bf16.mxu0 %v20734_v19  ;;  %v20809_v19 = vld [vmem:[%s21853_s18 + $0xf34] ss:$24 sps:$4 sm:$0xff]  }
 0x717   : > { %15213 = vmatpush1.bf16.msra.mxu0 %v20732_v20  ;;  %v23792_v20 = vpack.c.bf16 %v11150_v2, %v11150_v2 }
 0x718   : > { %15214 = vmatprep.subr.bf16.mxu0 %v20740_v25  ;;  %v20812_v25 = vld [vmem:[%s21853_s18 + $0x3cc] ss:$24 sps:$4 sm:$0xff]  }
 0x71b   : > { %15215 = vmatpush1.bf16.msra.mxu0 %v20738_v21  ;;  %v20807_v21 = vld [vmem:[%s21853_s18 + $0xf30] ss:$24 sps:$4 sm:$0xff]  }
 0x71c   : > { %15216 = vmatprep.subr.bf16.mxu0 %v20746_v28  ;;  %v20810_v28 = vld [vmem:[%s21853_s18 + $0x3c8] ss:$24 sps:$4 sm:$0xff]  }
 0x71f   : > { %15217 = vmatpush1.bf16.msra.mxu0 %v20744_v29  ;;  %v20815_v29 = vld [vmem:[%s21853_s18 + $0xf64] ss:$24 sps:$4 sm:$0xff]  }
 0x720   : > { %15218 = vmatprep.subr.bf16.mxu0 %v20752_v48  ;;  %v20818_v48 = vld [vmem:[%s21853_s18 + $0x3fc] ss:$24 sps:$4 sm:$0xff]  }
 0x723   : > { %15219 = vmatpush1.bf16.msra.mxu0 %v20750_v30  ;;  %v20813_v30 = vld [vmem:[%s21853_s18 + $0xf60] ss:$24 sps:$4 sm:$0xff]  }
 0x724   : > { %15220 = vmatprep.subr.bf16.mxu0 %v20758_v39  ;;  %v20816_v39 = vld [vmem:[%s21853_s18 + $0x3f8] ss:$24 sps:$4 sm:$0xff]  }
 0x727   : > { %15221 = vmatpush1.bf16.msra.mxu0 %v20756_v40  ;;  %v20821_v40 = vld [vmem:[%s21853_s18 + $0xf94] ss:$24 sps:$4 sm:$0xff]  }
 0x728   : > { %15222 = vmatprep.subr.bf16.mxu0 %v20764_v57  ;;  %v20824_v57 = vld [vmem:[%s21853_s18 + $0x42c] ss:$24 sps:$4 sm:$0xff]  }
 0x72b   : > { %15223 = vmatpush1.bf16.msra.mxu0 %v20762_v41  ;;  %v20819_v41 = vld [vmem:[%s21853_s18 + $0xf90] ss:$24 sps:$4 sm:$0xff]  }
 0x72c   : > { %15224 = vmatprep.subr.bf16.mxu0 %v20770_v45  ;;  %v20822_v45 = vld [vmem:[%s21853_s18 + $0x428] ss:$24 sps:$4 sm:$0xff]  }
 0x72f   : > { %15225 = vmatpush1.bf16.msra.mxu0 %v20768_v3  ;;  %v20827_v3 = vld [vmem:[%s21853_s18 + $0xfc4] ss:$24 sps:$4 sm:$0xff]  }
 0x730   : > { %15226 = vmatprep.subr.bf16.mxu0 %v20776_v51  ;;  %v20830_v51 = vld [vmem:[%s21853_s18 + $0x45c] ss:$24 sps:$4 sm:$0xff]  }
 0x733   : > { %15227 = vmatpush1.bf16.msra.mxu0 %v20774_v22  ;;  %v20825_v22 = vld [vmem:[%s21853_s18 + $0xfc0] ss:$24 sps:$4 sm:$0xff]  }
 0x734   : > { %15228 = vmatprep.subr.bf16.mxu0 %v20782_v53  ;;  %v20828_v53 = vld [vmem:[%s21853_s18 + $0x458] ss:$24 sps:$4 sm:$0xff]  }
 0x737   : > { %15229 = vmatpush1.bf16.msra.mxu0 %v20780_v55  ;;  %v20833_v55 = vld [vmem:[%s21853_s18 + $0xff4] ss:$24 sps:$4 sm:$0xff]  }
 0x738   : > { %15239 = vmatprep.subr.bf16.mxu0 %v20788_v62  ;;  %v20836_v62 = vld [vmem:[%s21853_s18 + $0x48c] ss:$24 sps:$4 sm:$0xff]  }
 0x73a   : > { %15231 = vmatmul.mubr.bf16.vlgmr.msra.gmra.mrb[32].mxu0 %v23354_v14 }
 0x73b   : > { %15240 = vmatpush1.bf16.msra.mxu0 %v20786_v43  ;;  %15271 = vmatprep.mubr.bf16.mxu0 %v23358_v17  ;;  %v20831_v43 = vld [vmem:[%s21853_s18 + $0xff0] ss:$24 sps:$4 sm:$0xff]  }
 0x73c   : > { %15241 = vmatprep.subr.bf16.mxu0 %v20794_v8  ;;  %v20834_v8 = vld [vmem:[%s21853_s18 + $0x488] ss:$24 sps:$4 sm:$0xff]  }
 0x73d   : > { %v10565_v6 = vpop.f32.mrb[12].mxu0 }
 0x73e   : > { %v18157_v7 = vadd.f32 %v10565_v6, %v1975_v60  ;;  %v10567_v5 = vpop.f32.mrb[13].mxu0  ;;  %v20842_v60 = vld [vmem:[%s21853_s18 + $0x4bc] ss:$24 sps:$4 sm:$0xff]   ;;  %v1991_v6 = vrot.slane %v23768_v56, %v23495_v15 }
 0x73f   : > { %v18158_v9 = vadd.f32 %v10567_v5, %v1979_v63  ;;  %v10569_v10 = vpop.f32.mrb[14].mxu0  ;;  %15242 = vmatpush1.bf16.msra.mxu0 %v20792_v49  ;;  %v20837_v63 = vld [vmem:[%s21853_s18 + $0x1020] ss:$24 sps:$4 sm:$0xff]  }
 0x740   : > { %v11147_v26 = vmax.f32 %v18157_v7, 0.0  ;;  %v10570_v42 = vpop.f32.mrb[15].mxu0  ;;  %15243 = vmatprep.subr.bf16.mxu0 %v20800_v13  ;;  %v20840_v49 = vld [vmem:[%s21853_s18 + $0x4b8] ss:$24 sps:$4 sm:$0xff]   ;;  %v20845_v13 = vld [vmem:[%s21853_s18 + $0x1054] ss:$24 sps:$4 sm:$0xff]  }
 0x741   : > { %v11148_v16 = vmax.f32 %v18158_v9, 0.0  ;;  %v20848_v7 = vld [vmem:[%s21853_s18 + $0x4ec] ss:$24 sps:$4 sm:$0xff]   ;;  %v20846_v42 = vld [vmem:[%s21853_s18 + $0x4e8] ss:$24 sps:$4 sm:$0xff]  }
 0x742   : > { %v23788_v61 = vpack.c.bf16 %v11147_v26, %v11147_v26 }
 0x743   : > { %v23785_v33 = vpack.c.bf16 %v11148_v16, %v11148_v16  ;;  %15244 = vmatpush1.bf16.msra.mxu0 %v20798_v11  ;;  %v20843_v11 = vld [vmem:[%s21853_s18 + $0x1050] ss:$24 sps:$4 sm:$0xff]   ;;  %v20854_v16 = vld [vmem:[%s21853_s18 + $0x51c] ss:$24 sps:$4 sm:$0xff]  }
 0x744   : > { %15245 = vmatprep.subr.bf16.mxu0 %v20806_v4  ;;  %v20851_v4 = vld [vmem:[%s21853_s18 + $0x1084] ss:$24 sps:$4 sm:$0xff]  }
 0x745   : > { %15107 = vmatprep.mubr.bf16.mxu1 %v23785_v33 }
 0x746   : > { %15108 = vmatmul.mubr.bf16.vlgmr.msra.gmra.mrb[24].mxu1 %v23788_v61 }
 0x747   : > { %15117 = vmatpush1.bf16.msra.mxu1 %v20801_v52  ;;  %15148 = vmatprep.mubr.bf16.mxu1 %v23792_v20  ;;  %v20849_v52 = vld [vmem:[%s21853_s18 + $0x1080] ss:$24 sps:$4 sm:$0xff]  }
 0x748   : > { %15246 = vmatpush1.bf16.msra.mxu0 %v20804_v18  ;;  %15118 = vmatprep.subr.bf16.mxu1 %v20809_v19  ;;  %v20852_v19 = vld [vmem:[%s21853_s18 + $0x518] ss:$24 sps:$4 sm:$0xff]  }
 0x749   : > { %15247 = vmatprep.subr.bf16.mxu0 %v20812_v25  ;;  %v20857_v25 = vld [vmem:[%s21853_s18 + $0x10b4] ss:$24 sps:$4 sm:$0xff]  }
 0x74b   : > { %15119 = vmatpush1.bf16.msra.mxu1 %v20807_v21  ;;  %v20860_v21 = vld [vmem:[%s21853_s18 + $0x54c] ss:$24 sps:$4 sm:$0xff]  }
 0x74c   : > { %15248 = vmatpush1.bf16.msra.mxu0 %v20810_v28  ;;  %15120 = vmatprep.subr.bf16.mxu1 %v20815_v29  ;;  %v20855_v28 = vld [vmem:[%s21853_s18 + $0x10b0] ss:$24 sps:$4 sm:$0xff]  }
 0x74d   : > { %15249 = vmatprep.subr.bf16.mxu0 %v20818_v48  ;;  %v20858_v29 = vld [vmem:[%s21853_s18 + $0x548] ss:$24 sps:$4 sm:$0xff]   ;;  %v20863_v48 = vld [vmem:[%s21853_s18 + $0x10e4] ss:$24 sps:$4 sm:$0xff]  }
 0x74f   : > { %15121 = vmatpush1.bf16.msra.mxu1 %v20813_v30  ;;  %v20861_v30 = vld [vmem:[%s21853_s18 + $0x10e0] ss:$24 sps:$4 sm:$0xff]  }
 0x750   : > { %15250 = vmatpush1.bf16.msra.mxu0 %v20816_v39  ;;  %15122 = vmatprep.subr.bf16.mxu1 %v20821_v40  ;;  %v20864_v39 = vld [vmem:[%s21853_s18 + $0x578] ss:$24 sps:$4 sm:$0xff]   ;;  %v20869_v40 = vld [vmem:[%s21853_s18 + $0x1114] ss:$24 sps:$4 sm:$0xff]  }
 0x751   : > { %15251 = vmatprep.subr.bf16.mxu0 %v20824_v57  ;;  %v20872_v57 = vld [vmem:[%s21853_s18 + $0x5ac] ss:$24 sps:$4 sm:$0xff]  }
 0x753   : > { %15123 = vmatpush1.bf16.msra.mxu1 %v20819_v41  ;;  %v20867_v41 = vld [vmem:[%s21853_s18 + $0x1110] ss:$24 sps:$4 sm:$0xff]  }
 0x754   : > { %15252 = vmatpush1.bf16.msra.mxu0 %v20822_v45  ;;  %15124 = vmatprep.subr.bf16.mxu1 %v20827_v3  ;;  %v20870_v45 = vld [vmem:[%s21853_s18 + $0x5a8] ss:$24 sps:$4 sm:$0xff]   ;;  %v20875_v3 = vld [vmem:[%s21853_s18 + $0x1144] ss:$24 sps:$4 sm:$0xff]  }
 0x755   : > { %15253 = vmatprep.subr.bf16.mxu0 %v20830_v51  ;;  %v20878_v51 = vld [vmem:[%s21853_s18 + $0x5dc] ss:$24 sps:$4 sm:$0xff]  }
 0x757   : > { %15125 = vmatpush1.bf16.msra.mxu1 %v20825_v22  ;;  %v20873_v22 = vld [vmem:[%s21853_s18 + $0x1140] ss:$24 sps:$4 sm:$0xff]  }
 0x758   : > { %15254 = vmatpush1.bf16.msra.mxu0 %v20828_v53  ;;  %15126 = vmatprep.subr.bf16.mxu1 %v20833_v55  ;;  %v20876_v53 = vld [vmem:[%s21853_s18 + $0x5d8] ss:$24 sps:$4 sm:$0xff]   ;;  %v20881_v55 = vld [vmem:[%s21853_s18 + $0x1174] ss:$24 sps:$4 sm:$0xff]  }
 0x759   : > { %15255 = vmatprep.subr.bf16.mxu0 %v20836_v62  ;;  %v20884_v62 = vld [vmem:[%s21853_s18 + $0x60c] ss:$24 sps:$4 sm:$0xff]  }
 0x75b   : > { %15127 = vmatpush1.bf16.msra.mxu1 %v20831_v43  ;;  %v20879_v43 = vld [vmem:[%s21853_s18 + $0x1170] ss:$24 sps:$4 sm:$0xff]  }
 0x75c   : > { %15256 = vmatpush1.bf16.msra.mxu0 %v20834_v8  ;;  %15128 = vmatprep.subr.bf16.mxu1 %v20839_v59  ;;  %v1983_v8 = vrot.slane %v23768_v56, %v22852_v1  ;;  %v20882_v59 = vld [vmem:[%s21853_s18 + $0x608] ss:$24 sps:$4 sm:$0xff]   ;;  %v20893_v56 = vld [vmem:[%s21853_s18 + $0x11d4] ss:$24 sps:$4 sm:$0xff]  }
 0x75d   : > { %v18031_v0 = vpop.f32.mrb[16].mxu0  ;;  %15257 = vmatprep.subr.bf16.mxu0 %v20842_v60  ;;  %v20887_v60 = vld [vmem:[%s21853_s18 + $0x11a4] ss:$24 sps:$4 sm:$0xff]  }
 0x75e   : > { %v18032_v5 = vpop.f32.mrb[17].mxu0 }
 0x75f   : > { %v18033_v9 = vadd.f32 %v18032_v5, %v18031_v0  ;;  %15129 = vmatpush1.bf16.msra.mxu1 %v20837_v63  ;;  %v18034_v10 = vpop.f32.mrb[18].mxu0  ;;  %v20890_v63 = vld [vmem:[%s21853_s18 + $0x63c] ss:$24 sps:$4 sm:$0xff]   ;;  %v20888_v0 = vld [vmem:[%s21853_s18 + $0x638] ss:$24 sps:$4 sm:$0xff]  }
 0x760   : > { %15258 = vmatpush1.bf16.msra.mxu0 %v20840_v49  ;;  %v18035_v26 = vpop.f32.mrb[19].mxu0  ;;  %15130 = vmatprep.subr.bf16.mxu1 %v20845_v13  ;;  %v20885_v49 = vld [vmem:[%s21853_s18 + $0x11a0] ss:$24 sps:$4 sm:$0xff]   ;;  %v18159_v13 = vadd.f32 %v23420_v27, %v1983_v8 }
 0x761   : > { %v10894_v2 = vadd.f32 %v18033_v9, %v1991_v6  ;;  %15259 = vmatprep.subr.bf16.mxu0 %v20848_v7  ;;  %v20896_v7 = vld [vmem:[%s21853_s18 + $0x66c] ss:$24 sps:$4 sm:$0xff]   ;;  %v20912_v8 = vld [vmem:[%s21853_s18 + $0x788] ss:$24 sps:$4 sm:$0xff]  }
 0x762   : > { %v11149_v27 = vmax.f32 %v18159_v13, 0.0  ;;  %v20977_v13 = vld [vmem:[%s21853_s18 + $0x1354] ss:$24 sps:$4 sm:$0xff]  }
 0x763   : > { %15131 = vmatpush1.bf16.msra.mxu1 %v20843_v11  ;;  %v23830_v18 = vadd.f32 %v23594_v31, %v10894_v2  ;;  %v20866_v31 = vld [vmem:[%s21853_s18 + $0x57c] ss:$24 sps:$4 sm:$0xff]   ;;  %v20891_v11 = vld [vmem:[%s21853_s18 + $0x11d0] ss:$24 sps:$4 sm:$0xff]  }
 0x764   : > { %15260 = vmatpush1.bf16.msra.mxu0 %v20846_v42  ;;  %15132 = vmatprep.subr.bf16.mxu1 %v20851_v4  ;;  %v20894_v42 = vld [vmem:[%s21853_s18 + $0x668] ss:$24 sps:$4 sm:$0xff]   ;;  %v20935_v4 = vld [vmem:[%s21853_s18 + $0x1204] ss:$24 sps:$4 sm:$0xff]  }
 0x765   : > { %15261 = vmatprep.subr.bf16.mxu0 %v20854_v16  ;;  %v20899_v16 = vld [vmem:[%s21853_s18 + $0x69c] ss:$24 sps:$4 sm:$0xff]  }
 0x767   : > { %15133 = vmatpush1.bf16.msra.mxu1 %v20849_v52 }
 0x768   : > { %15262 = vmatpush1.bf16.msra.mxu0 %v20852_v19  ;;  %15134 = vmatprep.subr.bf16.mxu1 %v20857_v25  ;;  %v20933_v19 = vld [vmem:[%s21853_s18 + $0x1200] ss:$24 sps:$4 sm:$0xff]   ;;  %v23873_v25 = vpack.c.bf16 %v11149_v27, %v11149_v27  ;;  %v20983_v27 = vld [vmem:[%s21853_s18 + $0x14] ss:$24 sps:$4 sm:$0xff]  }
 0x769   : > { %15263 = vmatprep.subr.bf16.mxu0 %v20860_v21  ;;  %v20897_v21 = vld [vmem:[%s21853_s18 + $0x698] ss:$24 sps:$4 sm:$0xff]  }
 0x76b   : > { %15135 = vmatpush1.bf16.msra.mxu1 %v20855_v28  ;;  %v20941_v28 = vld [vmem:[%s21853_s18 + $0x1234] ss:$24 sps:$4 sm:$0xff]  }
 0x76c   : > { %15264 = vmatpush1.bf16.msra.mxu0 %v20858_v29  ;;  %15136 = vmatprep.subr.bf16.mxu1 %v20863_v48  ;;  %v20900_v29 = vld [vmem:[%s21853_s18 + $0x6c8] ss:$24 sps:$4 sm:$0xff]   ;;  %v20947_v48 = vld [vmem:[%s21853_s18 + $0x1264] ss:$24 sps:$4 sm:$0xff]  }
 0x76d   : > { %15265 = vmatprep.subr.bf16.mxu0 %v20866_v31  ;;  %v20905_v31 = vld [vmem:[%s21853_s18 + $0x6fc] ss:$24 sps:$4 sm:$0xff]  }
 0x76f   : > { %15137 = vmatpush1.bf16.msra.mxu1 %v20861_v30  ;;  %v20945_v30 = vld [vmem:[%s21853_s18 + $0x1260] ss:$24 sps:$4 sm:$0xff]  }
 0x770   : > { %15266 = vmatpush1.bf16.msra.mxu0 %v20864_v39  ;;  %15138 = vmatprep.subr.bf16.mxu1 %v20869_v40  ;;  %v20903_v39 = vld [vmem:[%s21853_s18 + $0x6f8] ss:$24 sps:$4 sm:$0xff]   ;;  %v20953_v40 = vld [vmem:[%s21853_s18 + $0x1294] ss:$24 sps:$4 sm:$0xff]  }
 0x771   : > { %15267 = vmatprep.subr.bf16.mxu0 %v20872_v57  ;;  %v20908_v57 = vld [vmem:[%s21853_s18 + $0x72c] ss:$24 sps:$4 sm:$0xff]  }
 0x773   : > { %15139 = vmatpush1.bf16.msra.mxu1 %v20867_v41  ;;  %v20951_v41 = vld [vmem:[%s21853_s18 + $0x1290] ss:$24 sps:$4 sm:$0xff]  }
 0x774   : > { %15268 = vmatpush1.bf16.msra.mxu0 %v20870_v45  ;;  %15140 = vmatprep.subr.bf16.mxu1 %v20875_v3  ;;  %v20906_v45 = vld [vmem:[%s21853_s18 + $0x728] ss:$24 sps:$4 sm:$0xff]   ;;  %v20959_v3 = vld [vmem:[%s21853_s18 + $0x12c4] ss:$24 sps:$4 sm:$0xff]  }
 0x775   : > { %15269 = vmatprep.subr.bf16.mxu0 %v20878_v51  ;;  %v20911_v51 = vld [vmem:[%s21853_s18 + $0x75c] ss:$24 sps:$4 sm:$0xff]  }
 0x777   : > { %15141 = vmatpush1.bf16.msra.mxu1 %v20873_v22  ;;  %v20957_v22 = vld [vmem:[%s21853_s18 + $0x12c0] ss:$24 sps:$4 sm:$0xff]  }
 0x778   : > { %15270 = vmatpush1.bf16.msra.mxu0 %v20876_v53  ;;  %15142 = vmatprep.subr.bf16.mxu1 %v20881_v55  ;;  %v20909_v53 = vld [vmem:[%s21853_s18 + $0x758] ss:$24 sps:$4 sm:$0xff]   ;;  %v20965_v55 = vld [vmem:[%s21853_s18 + $0x12f4] ss:$24 sps:$4 sm:$0xff]  }
 0x779   : > { %15280 = vmatprep.subr.bf16.mxu0 %v20884_v62  ;;  %v20914_v62 = vld [vmem:[%s21853_s18 + $0x78c] ss:$24 sps:$4 sm:$0xff]  }
 0x77b   : > { %15143 = vmatpush1.bf16.msra.mxu1 %v20879_v43  ;;  %15272 = vmatmul.mubr.bf16.vlgmr.msra.gmra.mrb[32].mxu0 %v23440_v47  ;;  %v20963_v43 = vld [vmem:[%s21853_s18 + $0x12f0] ss:$24 sps:$4 sm:$0xff]  }
 0x77c   : > { %15281 = vmatpush1.bf16.msra.mxu0 %v20882_v59  ;;  %15312 = vmatprep.mubr.bf16.mxu0 %v23444_v12  ;;  %v20971_v59 = vld [vmem:[%s21853_s18 + $0x1324] ss:$24 sps:$4 sm:$0xff]  }
 0x77d   : > { %v18075_v6 = vpop.f32.mrb[20].mxu0  ;;  %15144 = vmatprep.subr.bf16.mxu1 %v20887_v60  ;;  %15282 = vmatprep.subr.bf16.mxu0 %v20890_v63  ;;  %v20917_v60 = vld [vmem:[%s21853_s18 + $0x7bc] ss:$24 sps:$4 sm:$0xff]   ;;  %v20969_v63 = vld [vmem:[%s21853_s18 + $0x1320] ss:$24 sps:$4 sm:$0xff]  }
 0x77e   : > { %v18076_v5 = vpop.f32.mrb[21].mxu0 }
 0x77f   : > { %v18077_v9 = vadd.f32 %v18076_v5, %v18075_v6  ;;  %15145 = vmatpush1.bf16.msra.mxu1 %v20885_v49  ;;  %v18078_v10 = vpop.f32.mrb[22].mxu0  ;;  %v20915_v49 = vld [vmem:[%s21853_s18 + $0x7b8] ss:$24 sps:$4 sm:$0xff]  }
 0x780   : > { %15283 = vmatpush1.bf16.msra.mxu0 %v20888_v0  ;;  %v18079_v26 = vpop.f32.mrb[23].mxu0  ;;  %15146 = vmatprep.subr.bf16.mxu1 %v20893_v56  ;;  %v20920_v56 = vld [vmem:[%s21853_s18 + $0x7ec] ss:$24 sps:$4 sm:$0xff]  }
 0x781   : > { %v10974_v2 = vadd.f32 %v18077_v9, %v23830_v18  ;;  %15284 = vmatprep.subr.bf16.mxu0 %v20896_v7  ;;  %v20902_v18 = vld [vmem:[%s21853_s18 + $0x6cc] ss:$24 sps:$4 sm:$0xff]   ;;  %v20975_v9 = vld [vmem:[%s21853_s18 + $0x1350] ss:$24 sps:$4 sm:$0xff]  }
 0x783   : > { %15147 = vmatpush1.bf16.msra.mxu1 %v20891_v11  ;;  %v23870_v52 = vadd.f32 %v23615_v36, %v10974_v2  ;;  %v20939_v36 = vld [vmem:[%s21853_s18 + $0x1230] ss:$24 sps:$4 sm:$0xff]  }
 0x784   : > { %15285 = vmatpush1.bf16.msra.mxu0 %v20894_v42  ;;  %15157 = vmatprep.subr.bf16.mxu1 %v20935_v4  ;;  %v20918_v11 = vld [vmem:[%s21853_s18 + $0x7e8] ss:$24 sps:$4 sm:$0xff]   ;;  %v20923_v42 = vld [vmem:[%s21853_s18 + $0x81c] ss:$24 sps:$4 sm:$0xff]   ;;  %v20921_v2 = vld [vmem:[%s21853_s18 + $0x818] ss:$24 sps:$4 sm:$0xff]  }
 0x785   : > { %15286 = vmatprep.subr.bf16.mxu0 %v20899_v16  ;;  %v20926_v16 = vld [vmem:[%s21853_s18 + $0x84c] ss:$24 sps:$4 sm:$0xff]  }
 0x786   : > { %15149 = vmatmul.mubr.bf16.vlgmr.msra.gmra.mrb[24].mxu1 %v23873_v25 }
 0x787   : > { %15158 = vmatpush1.bf16.msra.mxu1 %v20933_v19  ;;  %15189 = vmatprep.mubr.bf16.mxu1 %v21615_v54  ;;  %v20924_v19 = vld [vmem:[%s21853_s18 + $0x848] ss:$24 sps:$4 sm:$0xff]  }
 0x788   : > { %15287 = vmatpush1.bf16.msra.mxu0 %v20897_v21  ;;  %15159 = vmatprep.subr.bf16.mxu1 %v20941_v28  ;;  %v20927_v21 = vld [vmem:[%s21853_s18 + $0x878] ss:$24 sps:$4 sm:$0xff]   ;;  %v20930_v28 = vld [vmem:[%s21853_s18 + $0x8a8] ss:$24 sps:$4 sm:$0xff]  }
 0x789   : > { %15288 = vmatprep.subr.bf16.mxu0 %v20902_v18  ;;  %v20938_v18 = vld [vmem:[%s21853_s18 + $0x8dc] ss:$24 sps:$4 sm:$0xff]  }
 0x78b   : > { %15160 = vmatpush1.bf16.msra.mxu1 %v20939_v36  ;;  %v20936_v36 = vld [vmem:[%s21853_s18 + $0x8d8] ss:$24 sps:$4 sm:$0xff]  }
 0x78c   : > { %15289 = vmatpush1.bf16.msra.mxu0 %v20900_v29  ;;  %15161 = vmatprep.subr.bf16.mxu1 %v20947_v48  ;;  %v20944_v29 = vld [vmem:[%s21853_s18 + $0x90c] ss:$24 sps:$4 sm:$0xff]   ;;  %v20942_v48 = vld [vmem:[%s21853_s18 + $0x908] ss:$24 sps:$4 sm:$0xff]  }
 0x78d   : > { %15290 = vmatprep.subr.bf16.mxu0 %v20905_v31  ;;  %v20950_v31 = vld [vmem:[%s21853_s18 + $0x93c] ss:$24 sps:$4 sm:$0xff]  }
 0x78f   : > { %15162 = vmatpush1.bf16.msra.mxu1 %v20945_v30  ;;  %v20948_v30 = vld [vmem:[%s21853_s18 + $0x938] ss:$24 sps:$4 sm:$0xff]  }
 0x790   : > { %15291 = vmatpush1.bf16.msra.mxu0 %v20903_v39  ;;  %15163 = vmatprep.subr.bf16.mxu1 %v20953_v40  ;;  %v20956_v39 = vld [vmem:[%s21853_s18 + $0x96c] ss:$24 sps:$4 sm:$0xff]   ;;  %v20954_v40 = vld [vmem:[%s21853_s18 + $0x968] ss:$24 sps:$4 sm:$0xff]  }
 0x791   : > { %15292 = vmatprep.subr.bf16.mxu0 %v20908_v57  ;;  %v20962_v57 = vld [vmem:[%s21853_s18 + $0x99c] ss:$24 sps:$4 sm:$0xff]  }
 0x793   : > { %15164 = vmatpush1.bf16.msra.mxu1 %v20951_v41  ;;  %v20960_v41 = vld [vmem:[%s21853_s18 + $0x998] ss:$24 sps:$4 sm:$0xff]  }
 0x794   : > { %15293 = vmatpush1.bf16.msra.mxu0 %v20906_v45  ;;  %15165 = vmatprep.subr.bf16.mxu1 %v20959_v3  ;;  %v20968_v45 = vld [vmem:[%s21853_s18 + $0x9cc] ss:$24 sps:$4 sm:$0xff]   ;;  %v20966_v3 = vld [vmem:[%s21853_s18 + $0x9c8] ss:$24 sps:$4 sm:$0xff]  }
 0x795   : > { %15294 = vmatprep.subr.bf16.mxu0 %v20911_v51  ;;  %v20974_v51 = vld [vmem:[%s21853_s18 + $0x9fc] ss:$24 sps:$4 sm:$0xff]  }
 0x797   : > { %15166 = vmatpush1.bf16.msra.mxu1 %v20957_v22  ;;  %v20972_v22 = vld [vmem:[%s21853_s18 + $0x9f8] ss:$24 sps:$4 sm:$0xff]  }
 0x798   : > { %15295 = vmatpush1.bf16.msra.mxu0 %v20909_v53  ;;  %15167 = vmatprep.subr.bf16.mxu1 %v20965_v55  ;;  %v20980_v55 = vld [vmem:[%s21853_s18 + $0xa2c] ss:$24 sps:$4 sm:$0xff]  }
 0x799   : > { %15296 = vmatprep.subr.bf16.mxu0 %v20914_v62 }
 0x79b   : > { %15168 = vmatpush1.bf16.msra.mxu1 %v20963_v43 }
 0x79c   : > { %15297 = vmatpush1.bf16.msra.mxu0 %v20912_v8  ;;  %15169 = vmatprep.subr.bf16.mxu1 %v20971_v59 }
 0x79d   : > { %v18119_v0 = vpop.f32.mrb[24].mxu0  ;;  %15298 = vmatprep.subr.bf16.mxu0 %v20917_v60 }
 0x79e   : > { %v18120_v6 = vpop.f32.mrb[25].mxu0 }
 0x79f   : > { %v18121_v7 = vadd.f32 %v18120_v6, %v18119_v0  ;;  %v18122_v5 = vpop.f32.mrb[26].mxu0  ;;  %15170 = vmatpush1.bf16.msra.mxu1 %v20969_v63  ;;  %v20978_v63 = vld [vmem:[%s21853_s18 + $0xa28] ss:$24 sps:$4 sm:$0xff]   ;;  %v20986_v0 = vld [vmem:[%s21853_s18 + $0xa5c] ss:$24 sps:$4 sm:$0xff]  }
 0x7a0   : > { %15299 = vmatpush1.bf16.msra.mxu0 %v20915_v49  ;;  %v18123_v10 = vpop.f32.mrb[27].mxu0  ;;  %15171 = vmatprep.subr.bf16.mxu1 %v20977_v13  ;;  %v20981_v49 = vld [vmem:[%s21853_s18 + $0x10] ss:$24 sps:$4 sm:$0xff]   ;;  %v20992_v5 = vld [vmem:[%s21853_s18 + $0xa8c] ss:$24 sps:$4 sm:$0xff]  }
 0x7a1   : > { %v11054_v26 = vadd.f32 %v18121_v7, %v23870_v52  ;;  %15300 = vmatprep.subr.bf16.mxu0 %v20920_v56  ;;  %v20929_v52 = vld [vmem:[%s21853_s18 + $0x87c] ss:$24 sps:$4 sm:$0xff]   ;;  %v20984_v6 = vld [vmem:[%s21853_s18 + $0xa58] ss:$24 sps:$4 sm:$0xff]   ;;  %v20990_v10 = vld [vmem:[%s21853_s18 + $0xa88] ss:$24 sps:$4 sm:$0xff]  }
 0x7a2   : > { %v20989_v56 = vld [vmem:[%s21853_s18 + $0x44] ss:$24 sps:$4 sm:$0xff]   ;;  %v20987_v7 = vld [vmem:[%s21853_s18 + $0x40] ss:$24 sps:$4 sm:$0xff]  }
 0x7a3   : > { %v11094_v4 = vadd.f32 %v23637_v38, %v11054_v26  ;;  %15172 = vmatpush1.bf16.msra.mxu1 %v20975_v9  ;;  %v20932_v38 = vld [vmem:[%s21853_s18 + $0x8ac] ss:$24 sps:$4 sm:$0xff]  }
 0x7a4   : > { %15301 = vmatpush1.bf16.msra.mxu0 %v20918_v11  ;;  %15485 = vmatprep.subr.bf16.mxu1 %v20983_v27  ;;  %v20995_v9 = vld [vmem:[%s21853_s18 + $0x74] ss:$24 sps:$4 sm:$0xff]   ;;  %v20993_v11 = vld [vmem:[%s21853_s18 + $0x70] ss:$24 sps:$4 sm:$0xff]   ;;  %v21001_v26 = vld [vmem:[%s21853_s18 + $0xa4] ss:$24 sps:$4 sm:$0xff]  }
 0x7a5   : > { %15302 = vmatprep.subr.bf16.mxu0 %v20923_v42  ;;  %v20998_v27 = vld [vmem:[%s21853_s18 + $0xabc] ss:$24 sps:$4 sm:$0xff]   ;;  %v20999_v42 = vld [vmem:[%s21853_s18 + $0xa0] ss:$24 sps:$4 sm:$0xff]  }
 0x7a8   : > { %15303 = vmatpush1.bf16.msra.mxu0 %v20921_v2  ;;  %v21007_v2 = vld [vmem:[%s21853_s18 + $0xd4] ss:$24 sps:$4 sm:$0xff]  }
 0x7a9   : > { %15304 = vmatprep.subr.bf16.mxu0 %v20926_v16  ;;  %v21002_v16 = vld [vmem:[%s21853_s18 + $0xae8] ss:$24 sps:$4 sm:$0xff]  }
 0x7ac   : > { %15305 = vmatpush1.bf16.msra.mxu0 %v20924_v19  ;;  %v21005_v19 = vld [vmem:[%s21853_s18 + $0xd0] ss:$24 sps:$4 sm:$0xff]  }
 0x7ad   : > { %15306 = vmatprep.subr.bf16.mxu0 %v20929_v52  ;;  %v21010_v52 = vld [vmem:[%s21853_s18 + $0xb1c] ss:$24 sps:$4 sm:$0xff]  }
 0x7b0   : > { %15307 = vmatpush1.bf16.msra.mxu0 %v20927_v21  ;;  %v21013_v21 = vld [vmem:[%s21853_s18 + $0x104] ss:$24 sps:$4 sm:$0xff]  }
 0x7b1   : > { %15308 = vmatprep.subr.bf16.mxu0 %v20932_v38  ;;  %v21008_v38 = vld [vmem:[%s21853_s18 + $0xb18] ss:$24 sps:$4 sm:$0xff]  }
 0x7b4   : > { %15309 = vmatpush1.bf16.msra.mxu0 %v20930_v28  ;;  %v21011_v28 = vld [vmem:[%s21853_s18 + $0x100] ss:$24 sps:$4 sm:$0xff]  }
 0x7b5   : > { %15310 = vmatprep.subr.bf16.mxu0 %v20938_v18  ;;  %v21016_v18 = vld [vmem:[%s21853_s18 + $0xb4c] ss:$24 sps:$4 sm:$0xff]  }
 0x7b8   : > { %15311 = vmatpush1.bf16.msra.mxu0 %v20936_v36  ;;  %v21019_v36 = vld [vmem:[%s21853_s18 + $0x134] ss:$24 sps:$4 sm:$0xff]  }
 0x7b9   : > { %15321 = vmatprep.subr.bf16.mxu0 %v20944_v29  ;;  %v21014_v29 = vld [vmem:[%s21853_s18 + $0xb48] ss:$24 sps:$4 sm:$0xff]  }
 0x7bb   : > { %15313 = vmatmul.mubr.bf16.vlgmr.msra.gmra.mrb[32].mxu0 %v23521_v34 }
 0x7bc   : > { %15322 = vmatpush1.bf16.msra.mxu0 %v20942_v48  ;;  %15353 = vmatprep.mubr.bf16.mxu0 %v23525_v24  ;;  %v21017_v48 = vld [vmem:[%s21853_s18 + $0x130] ss:$24 sps:$4 sm:$0xff]  }
 0x7bd   : > { %15323 = vmatprep.subr.bf16.mxu0 %v20950_v31  ;;  %v21022_v31 = vld [vmem:[%s21853_s18 + $0xb7c] ss:$24 sps:$4 sm:$0xff]  }
 0x7c0   : > { %15324 = vmatpush1.bf16.msra.mxu0 %v20948_v30  ;;  %v21025_v30 = vld [vmem:[%s21853_s18 + $0x164] ss:$24 sps:$4 sm:$0xff]  }
 0x7c1   : > { %15325 = vmatprep.subr.bf16.mxu0 %v20956_v39  ;;  %v21020_v39 = vld [vmem:[%s21853_s18 + $0xb78] ss:$24 sps:$4 sm:$0xff]  }
 0x7c4   : > { %15326 = vmatpush1.bf16.msra.mxu0 %v20954_v40  ;;  %v21023_v40 = vld [vmem:[%s21853_s18 + $0x160] ss:$24 sps:$4 sm:$0xff]  }
 0x7c5   : > { %15327 = vmatprep.subr.bf16.mxu0 %v20962_v57  ;;  %v21028_v57 = vld [vmem:[%s21853_s18 + $0xbac] ss:$24 sps:$4 sm:$0xff]  }
 0x7c8   : > { %15328 = vmatpush1.bf16.msra.mxu0 %v20960_v41  ;;  %v21031_v41 = vld [vmem:[%s21853_s18 + $0x194] ss:$24 sps:$4 sm:$0xff]  }
 0x7c9   : > { %15329 = vmatprep.subr.bf16.mxu0 %v20968_v45  ;;  %v21026_v45 = vld [vmem:[%s21853_s18 + $0xba8] ss:$24 sps:$4 sm:$0xff]  }
 0x7cc   : > { %15330 = vmatpush1.bf16.msra.mxu0 %v20966_v3  ;;  %v21029_v3 = vld [vmem:[%s21853_s18 + $0x190] ss:$24 sps:$4 sm:$0xff]  }
 0x7cd   : > { %v11133_v53 = vpop.f32.mrb[28].mxu0  ;;  %15331 = vmatprep.subr.bf16.mxu0 %v20974_v51  ;;  %v21034_v51 = vld [vmem:[%s21853_s18 + $0xbdc] ss:$24 sps:$4 sm:$0xff]  }
 0x7ce   : > { %v11134_v62 = vadd.f32 %v11133_v53, %v11094_v4  ;;  %v11135_v43 = vpop.f32.mrb[29].mxu0  ;;  %v21004_v4 = vld [vmem:[%s21853_s18 + $0xaec] ss:$24 sps:$4 sm:$0xff]   ;;  %v21032_v53 = vld [vmem:[%s21853_s18 + $0xbd8] ss:$24 sps:$4 sm:$0xff]  }
 0x7cf   : > { %v11136_v8 = vpop.f32.mrb[30].mxu0  ;;  %v21043_v43 = vld [vmem:[%s21853_s18 + $0x1f4] ss:$24 sps:$4 sm:$0xff]  }
 0x7d0   : > { %v11151_v59 = vmax.f32 %v11134_v62, 0.0  ;;  %15332 = vmatpush1.bf16.msra.mxu0 %v20972_v22  ;;  %v11137_v60 = vpop.f32.mrb[31].mxu0  ;;  %v21037_v22 = vld [vmem:[%s21853_s18 + $0x1c4] ss:$24 sps:$4 sm:$0xff]   ;;  %v21038_v8 = vld [vmem:[%s21853_s18 + $0xc08] ss:$24 sps:$4 sm:$0xff]  }
 0x7d1   : > { %15333 = vmatprep.subr.bf16.mxu0 %v20980_v55  ;;  %v21035_v55 = vld [vmem:[%s21853_s18 + $0x1c0] ss:$24 sps:$4 sm:$0xff]   ;;  %v21040_v62 = vld [vmem:[%s21853_s18 + $0xc0c] ss:$24 sps:$4 sm:$0xff]   ;;  %v21046_v60 = vld [vmem:[%s21853_s18 + $0xc3c] ss:$24 sps:$4 sm:$0xff]  }
 0x7d2   : > { %v23936_v13 = vpack.c.bf16 %v11151_v59, %v11151_v59  ;;  %v21041_v59 = vld [vmem:[%s21853_s18 + $0x1f0] ss:$24 sps:$4 sm:$0xff]  }
 0x7d4   : > { %15334 = vmatpush1.bf16.msra.mxu0 %v20978_v63  ;;  %15190 = vmatmul.mubr.bf16.vlgmr.msra.gmra.mrb[24].mxu1 %v23936_v13  ;;  %v21049_v63 = vld [vmem:[%s21853_s18 + $0x224] ss:$24 sps:$4 sm:$0xff]  }
 0x7d5   : > { %15486 = vmatpush1.bf16.msra.mxu1 %v20981_v49  ;;  %15517 = vmatprep.mubr.bf16.mxu1 %v23279_v37  ;;  %v20996_v37 = vld [vmem:[%s21853_s18 + $0xab8] ss:$24 sps:$4 sm:$0xff]  }
 0x7d6   : > { %15335 = vmatprep.subr.bf16.mxu0 %v20986_v0  ;;  %15487 = vmatprep.subr.bf16.mxu1 %v20989_v56  ;;  %v21044_v49 = vld [vmem:[%s21853_s18 + $0xc38] ss:$24 sps:$4 sm:$0xff]   ;;  %v21052_v56 = vld [vmem:[%s21853_s18 + $0xc6c] ss:$24 sps:$4 sm:$0xff]  }
 0x7d7   : > { %v21047_v0 = vld [vmem:[%s21853_s18 + $0x220] ss:$24 sps:$4 sm:$0xff]  }
 0x7d8   : > { %15336 = vmatpush1.bf16.msra.mxu0 %v20984_v6  ;;  %v21055_v6 = vld [vmem:[%s21853_s18 + $0x254] ss:$24 sps:$4 sm:$0xff]  }
 0x7d9   : > { %15488 = vmatpush1.bf16.msra.mxu1 %v20987_v7  ;;  %15337 = vmatprep.subr.bf16.mxu0 %v20992_v5  ;;  %v21050_v7 = vld [vmem:[%s21853_s18 + $0xc68] ss:$24 sps:$4 sm:$0xff]  }
 0x7da   : > { %15489 = vmatprep.subr.bf16.mxu1 %v20995_v9  ;;  %v21053_v5 = vld [vmem:[%s21853_s18 + $0x250] ss:$24 sps:$4 sm:$0xff]   ;;  %v21058_v9 = vld [vmem:[%s21853_s18 + $0xc9c] ss:$24 sps:$4 sm:$0xff]  }
 0x7dc   : > { %15338 = vmatpush1.bf16.msra.mxu0 %v20990_v10  ;;  %v21061_v10 = vld [vmem:[%s21853_s18 + $0x284] ss:$24 sps:$4 sm:$0xff]  }
 0x7dd   : > { %15490 = vmatpush1.bf16.msra.mxu1 %v20993_v11  ;;  %15339 = vmatprep.subr.bf16.mxu0 %v20998_v27  ;;  %v21056_v11 = vld [vmem:[%s21853_s18 + $0xc98] ss:$24 sps:$4 sm:$0xff]  }
 0x7de   : > { %15491 = vmatprep.subr.bf16.mxu1 %v21001_v26  ;;  %v21059_v27 = vld [vmem:[%s21853_s18 + $0x280] ss:$24 sps:$4 sm:$0xff]   ;;  %v21064_v26 = vld [vmem:[%s21853_s18 + $0xccc] ss:$24 sps:$4 sm:$0xff]  }
 0x7e0   : > { %15340 = vmatpush1.bf16.msra.mxu0 %v20996_v37  ;;  %v21067_v37 = vld [vmem:[%s21853_s18 + $0x2b4] ss:$24 sps:$4 sm:$0xff]  }
 0x7e1   : > { %15492 = vmatpush1.bf16.msra.mxu1 %v20999_v42  ;;  %15341 = vmatprep.subr.bf16.mxu0 %v21004_v4  ;;  %v21062_v42 = vld [vmem:[%s21853_s18 + $0xcc8] ss:$24 sps:$4 sm:$0xff]  }
 0x7e2   : > { %15493 = vmatprep.subr.bf16.mxu1 %v21007_v2  ;;  %v21065_v4 = vld [vmem:[%s21853_s18 + $0x2b0] ss:$24 sps:$4 sm:$0xff]   ;;  %v21070_v2 = vld [vmem:[%s21853_s18 + $0xcfc] ss:$24 sps:$4 sm:$0xff]  }
 0x7e4   : > { %15342 = vmatpush1.bf16.msra.mxu0 %v21002_v16  ;;  %v21073_v16 = vld [vmem:[%s21853_s18 + $0x2e4] ss:$24 sps:$4 sm:$0xff]  }
 0x7e5   : > { %15494 = vmatpush1.bf16.msra.mxu1 %v21005_v19  ;;  %15343 = vmatprep.subr.bf16.mxu0 %v21010_v52  ;;  %v21068_v19 = vld [vmem:[%s21853_s18 + $0xcf8] ss:$24 sps:$4 sm:$0xff]  }
 0x7e6   : > { %15495 = vmatprep.subr.bf16.mxu1 %v21013_v21  ;;  %v21071_v52 = vld [vmem:[%s21853_s18 + $0x2e0] ss:$24 sps:$4 sm:$0xff]   ;;  %v21076_v21 = vld [vmem:[%s21853_s18 + $0xd2c] ss:$24 sps:$4 sm:$0xff]  }
 0x7e8   : > { %15344 = vmatpush1.bf16.msra.mxu0 %v21008_v38  ;;  %v21079_v38 = vld [vmem:[%s21853_s18 + $0x314] ss:$24 sps:$4 sm:$0xff]  }
 0x7e9   : > { %15496 = vmatpush1.bf16.msra.mxu1 %v21011_v28  ;;  %15345 = vmatprep.subr.bf16.mxu0 %v21016_v18  ;;  %v21074_v28 = vld [vmem:[%s21853_s18 + $0xd28] ss:$24 sps:$4 sm:$0xff]  }
 0x7ea   : > { %15497 = vmatprep.subr.bf16.mxu1 %v21019_v36  ;;  %v21077_v18 = vld [vmem:[%s21853_s18 + $0x310] ss:$24 sps:$4 sm:$0xff]   ;;  %v21082_v36 = vld [vmem:[%s21853_s18 + $0xd5c] ss:$24 sps:$4 sm:$0xff]  }
 0x7ec   : > { %15346 = vmatpush1.bf16.msra.mxu0 %v21014_v29  ;;  %v21085_v29 = vld [vmem:[%s21853_s18 + $0x344] ss:$24 sps:$4 sm:$0xff]  }
 0x7ed   : > { %15498 = vmatpush1.bf16.msra.mxu1 %v21017_v48  ;;  %15347 = vmatprep.subr.bf16.mxu0 %v21022_v31  ;;  %v21080_v48 = vld [vmem:[%s21853_s18 + $0xd58] ss:$24 sps:$4 sm:$0xff]  }
 0x7ee   : > { %15499 = vmatprep.subr.bf16.mxu1 %v21025_v30  ;;  %v21083_v31 = vld [vmem:[%s21853_s18 + $0x340] ss:$24 sps:$4 sm:$0xff]   ;;  %v21088_v30 = vld [vmem:[%s21853_s18 + $0xd8c] ss:$24 sps:$4 sm:$0xff]  }
 0x7f0   : > { %15348 = vmatpush1.bf16.msra.mxu0 %v21020_v39  ;;  %v21091_v39 = vld [vmem:[%s21853_s18 + $0x374] ss:$24 sps:$4 sm:$0xff]  }
 0x7f1   : > { %15500 = vmatpush1.bf16.msra.mxu1 %v21023_v40  ;;  %15349 = vmatprep.subr.bf16.mxu0 %v21028_v57  ;;  %v21086_v40 = vld [vmem:[%s21853_s18 + $0xd88] ss:$24 sps:$4 sm:$0xff]   ;;  %v21094_v57 = vld [vmem:[%s21853_s18 + $0xdbc] ss:$24 sps:$4 sm:$0xff]  }
 0x7f2   : > { %15501 = vmatprep.subr.bf16.mxu1 %v21031_v41  ;;  %v21097_v41 = vld [vmem:[%s21853_s18 + $0x3a4] ss:$24 sps:$4 sm:$0xff]  }
 0x7f4   : > { %15350 = vmatpush1.bf16.msra.mxu0 %v21026_v45  ;;  %v21095_v45 = vld [vmem:[%s21853_s18 + $0x3a0] ss:$24 sps:$4 sm:$0xff]  }
 0x7f5   : > { %15502 = vmatpush1.bf16.msra.mxu1 %v21029_v3  ;;  %15351 = vmatprep.subr.bf16.mxu0 %v21034_v51  ;;  %v21100_v3 = vld [vmem:[%s21853_s18 + $0xdec] ss:$24 sps:$4 sm:$0xff]  }
 0x7f6   : > { %15503 = vmatprep.subr.bf16.mxu1 %v21037_v22  ;;  %v21103_v51 = vld [vmem:[%s21853_s18 + $0x3d4] ss:$24 sps:$4 sm:$0xff]   ;;  %v21098_v22 = vld [vmem:[%s21853_s18 + $0xde8] ss:$24 sps:$4 sm:$0xff]  }
 0x7f8   : > { %15352 = vmatpush1.bf16.msra.mxu0 %v21032_v53  ;;  %v21101_v53 = vld [vmem:[%s21853_s18 + $0x3d0] ss:$24 sps:$4 sm:$0xff]  }
 0x7f9   : > { %15504 = vmatpush1.bf16.msra.mxu1 %v21035_v55  ;;  %15362 = vmatprep.subr.bf16.mxu0 %v21040_v62  ;;  %v21106_v55 = vld [vmem:[%s21853_s18 + $0xe1c] ss:$24 sps:$4 sm:$0xff]  }
 0x7fa   : > { %15505 = vmatprep.subr.bf16.mxu1 %v21043_v43  ;;  %v21109_v62 = vld [vmem:[%s21853_s18 + $0x404] ss:$24 sps:$4 sm:$0xff]   ;;  %v21104_v43 = vld [vmem:[%s21853_s18 + $0xe18] ss:$24 sps:$4 sm:$0xff]  }
 0x7fb   : > { %15354 = vmatmul.mubr.bf16.vlgmr.msra.gmra.mrb[32].mxu0 %v23597_v23 }
 0x7fc   : > { %15363 = vmatpush1.bf16.msra.mxu0 %v21038_v8  ;;  %15394 = vmatprep.mubr.bf16.mxu0 %v23785_v33  ;;  %v21107_v8 = vld [vmem:[%s21853_s18 + $0x400] ss:$24 sps:$4 sm:$0xff]  }
 0x7fd   : > { %15506 = vmatpush1.bf16.msra.mxu1 %v21041_v59  ;;  %15364 = vmatprep.subr.bf16.mxu0 %v21046_v60  ;;  %v21112_v59 = vld [vmem:[%s21853_s18 + $0xe4c] ss:$24 sps:$4 sm:$0xff]  }
 0x7fe   : > { %15507 = vmatprep.subr.bf16.mxu1 %v21049_v63  ;;  %v21115_v60 = vld [vmem:[%s21853_s18 + $0x434] ss:$24 sps:$4 sm:$0xff]   ;;  %v21110_v63 = vld [vmem:[%s21853_s18 + $0xe48] ss:$24 sps:$4 sm:$0xff]  }
 0x800   : > { %15365 = vmatpush1.bf16.msra.mxu0 %v21044_v49  ;;  %v21113_v49 = vld [vmem:[%s21853_s18 + $0x430] ss:$24 sps:$4 sm:$0xff]  }
 0x801   : > { %15508 = vmatpush1.bf16.msra.mxu1 %v21047_v0  ;;  %15366 = vmatprep.subr.bf16.mxu0 %v21052_v56  ;;  %v21118_v0 = vld [vmem:[%s21853_s18 + $0xe7c] ss:$24 sps:$4 sm:$0xff]  }
 0x802   : > { %15509 = vmatprep.subr.bf16.mxu1 %v21055_v6  ;;  %v21121_v56 = vld [vmem:[%s21853_s18 + $0x464] ss:$24 sps:$4 sm:$0xff]   ;;  %v21116_v6 = vld [vmem:[%s21853_s18 + $0xe78] ss:$24 sps:$4 sm:$0xff]  }
 0x804   : > { %15367 = vmatpush1.bf16.msra.mxu0 %v21050_v7  ;;  %v21119_v7 = vld [vmem:[%s21853_s18 + $0x460] ss:$24 sps:$4 sm:$0xff]  }
 0x805   : > { %15510 = vmatpush1.bf16.msra.mxu1 %v21053_v5  ;;  %15368 = vmatprep.subr.bf16.mxu0 %v21058_v9  ;;  %v21124_v5 = vld [vmem:[%s21853_s18 + $0xeac] ss:$24 sps:$4 sm:$0xff]  }
 0x806   : > { %15511 = vmatprep.subr.bf16.mxu1 %v21061_v10  ;;  %v21127_v9 = vld [vmem:[%s21853_s18 + $0x494] ss:$24 sps:$4 sm:$0xff]   ;;  %v21122_v10 = vld [vmem:[%s21853_s18 + $0xea8] ss:$24 sps:$4 sm:$0xff]  }
 0x808   : > { %15369 = vmatpush1.bf16.msra.mxu0 %v21056_v11  ;;  %v21125_v11 = vld [vmem:[%s21853_s18 + $0x490] ss:$24 sps:$4 sm:$0xff]  }
 0x809   : > { %15512 = vmatpush1.bf16.msra.mxu1 %v21059_v27  ;;  %15370 = vmatprep.subr.bf16.mxu0 %v21064_v26  ;;  %v21130_v27 = vld [vmem:[%s21853_s18 + $0xedc] ss:$24 sps:$4 sm:$0xff]  }
 0x80a   : > { %15513 = vmatprep.subr.bf16.mxu1 %v21067_v37  ;;  %v21133_v26 = vld [vmem:[%s21853_s18 + $0x4c4] ss:$24 sps:$4 sm:$0xff]   ;;  %v21128_v37 = vld [vmem:[%s21853_s18 + $0xed8] ss:$24 sps:$4 sm:$0xff]  }
 0x80c   : > { %15371 = vmatpush1.bf16.msra.mxu0 %v21062_v42  ;;  %v21131_v42 = vld [vmem:[%s21853_s18 + $0x4c0] ss:$24 sps:$4 sm:$0xff]  }
 0x80d   : > { %15514 = vmatpush1.bf16.msra.mxu1 %v21065_v4  ;;  %15372 = vmatprep.subr.bf16.mxu0 %v21070_v2  ;;  %v21136_v4 = vld [vmem:[%s21853_s18 + $0xf0c] ss:$24 sps:$4 sm:$0xff]  }
 0x80e   : > { %15515 = vmatprep.subr.bf16.mxu1 %v21073_v16  ;;  %v21139_v2 = vld [vmem:[%s21853_s18 + $0x4f4] ss:$24 sps:$4 sm:$0xff]   ;;  %v21134_v16 = vld [vmem:[%s21853_s18 + $0xf08] ss:$24 sps:$4 sm:$0xff]  }
 0x810   : > { %15373 = vmatpush1.bf16.msra.mxu0 %v21068_v19  ;;  %v21137_v19 = vld [vmem:[%s21853_s18 + $0x4f0] ss:$24 sps:$4 sm:$0xff]  }
 0x811   : > { %15516 = vmatpush1.bf16.msra.mxu1 %v21071_v52  ;;  %15374 = vmatprep.subr.bf16.mxu0 %v21076_v21  ;;  %v21142_v52 = vld [vmem:[%s21853_s18 + $0xf3c] ss:$24 sps:$4 sm:$0xff]  }
 0x812   : > { %15526 = vmatprep.subr.bf16.mxu1 %v21079_v38  ;;  %v21145_v21 = vld [vmem:[%s21853_s18 + $0x524] ss:$24 sps:$4 sm:$0xff]   ;;  %v21140_v38 = vld [vmem:[%s21853_s18 + $0xf38] ss:$24 sps:$4 sm:$0xff]  }
 0x814   : > { %15375 = vmatpush1.bf16.msra.mxu0 %v21074_v28  ;;  %15518 = vmatmul.mubr.bf16.vlgmr.msra.gmra.mrb[28].mxu1 %v23354_v14  ;;  %v21089_v14 = vld [vmem:[%s21853_s18 + $0x370] ss:$24 sps:$4 sm:$0xff]   ;;  %v21143_v28 = vld [vmem:[%s21853_s18 + $0x520] ss:$24 sps:$4 sm:$0xff]  }
 0x815   : > { %15527 = vmatpush1.bf16.msra.mxu1 %v21077_v18  ;;  %15558 = vmatprep.mubr.bf16.mxu1 %v23358_v17  ;;  %v21092_v17 = vld [vmem:[%s21853_s18 + $0xdb8] ss:$24 sps:$4 sm:$0xff]   ;;  %v21148_v18 = vld [vmem:[%s21853_s18 + $0xf6c] ss:$24 sps:$4 sm:$0xff]  }
 0x816   : > { %15376 = vmatprep.subr.bf16.mxu0 %v21082_v36  ;;  %15528 = vmatprep.subr.bf16.mxu1 %v21085_v29  ;;  %v21151_v36 = vld [vmem:[%s21853_s18 + $0x554] ss:$24 sps:$4 sm:$0xff]   ;;  %v21146_v29 = vld [vmem:[%s21853_s18 + $0xf68] ss:$24 sps:$4 sm:$0xff]  }
 0x818   : > { %15377 = vmatpush1.bf16.msra.mxu0 %v21080_v48  ;;  %v21149_v48 = vld [vmem:[%s21853_s18 + $0x550] ss:$24 sps:$4 sm:$0xff]  }
 0x819   : > { %15529 = vmatpush1.bf16.msra.mxu1 %v21083_v31  ;;  %15378 = vmatprep.subr.bf16.mxu0 %v21088_v30  ;;  %v21154_v31 = vld [vmem:[%s21853_s18 + $0xf9c] ss:$24 sps:$4 sm:$0xff]  }
 0x81a   : > { %15530 = vmatprep.subr.bf16.mxu1 %v21091_v39  ;;  %v21157_v30 = vld [vmem:[%s21853_s18 + $0x584] ss:$24 sps:$4 sm:$0xff]   ;;  %v21152_v39 = vld [vmem:[%s21853_s18 + $0xf98] ss:$24 sps:$4 sm:$0xff]  }
 0x81c   : > { %15379 = vmatpush1.bf16.msra.mxu0 %v21086_v40  ;;  %v21155_v40 = vld [vmem:[%s21853_s18 + $0x580] ss:$24 sps:$4 sm:$0xff]  }
 0x81d   : > { %15531 = vmatpush1.bf16.msra.mxu1 %v21089_v14  ;;  %15380 = vmatprep.subr.bf16.mxu0 %v21094_v57  ;;  %v21160_v14 = vld [vmem:[%s21853_s18 + $0xfcc] ss:$24 sps:$4 sm:$0xff]  }
 0x81e   : > { %15532 = vmatprep.subr.bf16.mxu1 %v21097_v41  ;;  %v21163_v57 = vld [vmem:[%s21853_s18 + $0x5b4] ss:$24 sps:$4 sm:$0xff]   ;;  %v21158_v41 = vld [vmem:[%s21853_s18 + $0xfc8] ss:$24 sps:$4 sm:$0xff]  }
 0x820   : > { %15381 = vmatpush1.bf16.msra.mxu0 %v21092_v17  ;;  %v21161_v17 = vld [vmem:[%s21853_s18 + $0x5b0] ss:$24 sps:$4 sm:$0xff]  }
 0x821   : > { %15533 = vmatpush1.bf16.msra.mxu1 %v21095_v45  ;;  %15382 = vmatprep.subr.bf16.mxu0 %v21100_v3  ;;  %v21166_v45 = vld [vmem:[%s21853_s18 + $0xffc] ss:$24 sps:$4 sm:$0xff]  }
 0x822   : > { %15534 = vmatprep.subr.bf16.mxu1 %v21103_v51  ;;  %v21169_v3 = vld [vmem:[%s21853_s18 + $0x5e4] ss:$24 sps:$4 sm:$0xff]   ;;  %v21164_v51 = vld [vmem:[%s21853_s18 + $0xff8] ss:$24 sps:$4 sm:$0xff]  }
 0x824   : > { %15383 = vmatpush1.bf16.msra.mxu0 %v21098_v22  ;;  %v21167_v22 = vld [vmem:[%s21853_s18 + $0x5e0] ss:$24 sps:$4 sm:$0xff]  }
 0x825   : > { %15535 = vmatpush1.bf16.msra.mxu1 %v21101_v53  ;;  %15384 = vmatprep.subr.bf16.mxu0 %v21106_v55  ;;  %v21172_v53 = vld [vmem:[%s21853_s18 + $0x102c] ss:$24 sps:$4 sm:$0xff]  }
 0x826   : > { %15536 = vmatprep.subr.bf16.mxu1 %v21109_v62  ;;  %v21175_v55 = vld [vmem:[%s21853_s18 + $0x614] ss:$24 sps:$4 sm:$0xff]   ;;  %v21170_v62 = vld [vmem:[%s21853_s18 + $0x1028] ss:$24 sps:$4 sm:$0xff]  }
 0x828   : > { %15385 = vmatpush1.bf16.msra.mxu0 %v21104_v43  ;;  %v21173_v43 = vld [vmem:[%s21853_s18 + $0x610] ss:$24 sps:$4 sm:$0xff]  }
 0x829   : > { %15537 = vmatpush1.bf16.msra.mxu1 %v21107_v8  ;;  %15386 = vmatprep.subr.bf16.mxu0 %v21112_v59  ;;  %v21178_v8 = vld [vmem:[%s21853_s18 + $0x105c] ss:$24 sps:$4 sm:$0xff]  }
 0x82a   : > { %15538 = vmatprep.subr.bf16.mxu1 %v21115_v60  ;;  %v21181_v59 = vld [vmem:[%s21853_s18 + $0x644] ss:$24 sps:$4 sm:$0xff]   ;;  %v21176_v60 = vld [vmem:[%s21853_s18 + $0x1058] ss:$24 sps:$4 sm:$0xff]  }
 0x82c   : > { %15387 = vmatpush1.bf16.msra.mxu0 %v21110_v63  ;;  %v21179_v63 = vld [vmem:[%s21853_s18 + $0x640] ss:$24 sps:$4 sm:$0xff]  }
 0x82d   : > { %15539 = vmatpush1.bf16.msra.mxu1 %v21113_v49  ;;  %15388 = vmatprep.subr.bf16.mxu0 %v21118_v0  ;;  %v21184_v49 = vld [vmem:[%s21853_s18 + $0x108c] ss:$24 sps:$4 sm:$0xff]  }
 0x82e   : > { %15540 = vmatprep.subr.bf16.mxu1 %v21121_v56  ;;  %v21187_v0 = vld [vmem:[%s21853_s18 + $0x674] ss:$24 sps:$4 sm:$0xff]   ;;  %v21182_v56 = vld [vmem:[%s21853_s18 + $0x1088] ss:$24 sps:$4 sm:$0xff]  }
 0x830   : > { %15389 = vmatpush1.bf16.msra.mxu0 %v21116_v6  ;;  %v21190_v6 = vld [vmem:[%s21853_s18 + $0x10bc] ss:$24 sps:$4 sm:$0xff]  }
 0x831   : > { %15541 = vmatpush1.bf16.msra.mxu1 %v21119_v7  ;;  %15390 = vmatprep.subr.bf16.mxu0 %v21124_v5  ;;  %v21193_v7 = vld [vmem:[%s21853_s18 + $0x6a4] ss:$24 sps:$4 sm:$0xff]   ;;  %v21191_v5 = vld [vmem:[%s21853_s18 + $0x6a0] ss:$24 sps:$4 sm:$0xff]  }
 0x832   : > { %15542 = vmatprep.subr.bf16.mxu1 %v21127_v9  ;;  %v21196_v9 = vld [vmem:[%s21853_s18 + $0x10ec] ss:$24 sps:$4 sm:$0xff]  }
 0x834   : > { %15391 = vmatpush1.bf16.msra.mxu0 %v21122_v10  ;;  %v21199_v10 = vld [vmem:[%s21853_s18 + $0x6d4] ss:$24 sps:$4 sm:$0xff]  }
 0x835   : > { %15543 = vmatpush1.bf16.msra.mxu1 %v21125_v11  ;;  %15392 = vmatprep.subr.bf16.mxu0 %v21130_v27  ;;  %v21194_v11 = vld [vmem:[%s21853_s18 + $0x10e8] ss:$24 sps:$4 sm:$0xff]  }
 0x836   : > { %15544 = vmatprep.subr.bf16.mxu1 %v21133_v26  ;;  %v21197_v27 = vld [vmem:[%s21853_s18 + $0x6d0] ss:$24 sps:$4 sm:$0xff]   ;;  %v21202_v26 = vld [vmem:[%s21853_s18 + $0x111c] ss:$24 sps:$4 sm:$0xff]  }
 0x838   : > { %15393 = vmatpush1.bf16.msra.mxu0 %v21128_v37  ;;  %v21205_v37 = vld [vmem:[%s21853_s18 + $0x704] ss:$24 sps:$4 sm:$0xff]  }
 0x839   : > { %15545 = vmatpush1.bf16.msra.mxu1 %v21131_v42  ;;  %15403 = vmatprep.subr.bf16.mxu0 %v21136_v4  ;;  %v21200_v42 = vld [vmem:[%s21853_s18 + $0x1118] ss:$24 sps:$4 sm:$0xff]  }
 0x83a   : > { %15546 = vmatprep.subr.bf16.mxu1 %v21139_v2  ;;  %v21203_v4 = vld [vmem:[%s21853_s18 + $0x700] ss:$24 sps:$4 sm:$0xff]   ;;  %v21208_v2 = vld [vmem:[%s21853_s18 + $0x114c] ss:$24 sps:$4 sm:$0xff]  }
 0x83b   : > { %15395 = vmatmul.mubr.bf16.vlgmr.msra.gmra.mrb[32].mxu0 %v23788_v61 }
 0x83c   : > { %15404 = vmatpush1.bf16.msra.mxu0 %v21134_v16  ;;  %15435 = vmatprep.mubr.bf16.mxu0 %v23792_v20  ;;  %v21211_v16 = vld [vmem:[%s21853_s18 + $0x734] ss:$24 sps:$4 sm:$0xff]  }
 0x83d   : > { %15547 = vmatpush1.bf16.msra.mxu1 %v21137_v19  ;;  %15405 = vmatprep.subr.bf16.mxu0 %v21142_v52  ;;  %v21206_v19 = vld [vmem:[%s21853_s18 + $0x1148] ss:$24 sps:$4 sm:$0xff]  }
 0x83e   : > { %15548 = vmatprep.subr.bf16.mxu1 %v21145_v21  ;;  %v21209_v52 = vld [vmem:[%s21853_s18 + $0x730] ss:$24 sps:$4 sm:$0xff]   ;;  %v21214_v21 = vld [vmem:[%s21853_s18 + $0x117c] ss:$24 sps:$4 sm:$0xff]  }
 0x840   : > { %15406 = vmatpush1.bf16.msra.mxu0 %v21140_v38  ;;  %v21217_v38 = vld [vmem:[%s21853_s18 + $0x764] ss:$24 sps:$4 sm:$0xff]  }
 0x841   : > { %15549 = vmatpush1.bf16.msra.mxu1 %v21143_v28  ;;  %15407 = vmatprep.subr.bf16.mxu0 %v21148_v18  ;;  %v21212_v28 = vld [vmem:[%s21853_s18 + $0x1178] ss:$24 sps:$4 sm:$0xff]  }
 0x842   : > { %15550 = vmatprep.subr.bf16.mxu1 %v21151_v36  ;;  %v21215_v18 = vld [vmem:[%s21853_s18 + $0x760] ss:$24 sps:$4 sm:$0xff]   ;;  %v21220_v36 = vld [vmem:[%s21853_s18 + $0x11ac] ss:$24 sps:$4 sm:$0xff]  }
 0x844   : > { %15408 = vmatpush1.bf16.msra.mxu0 %v21146_v29  ;;  %v21223_v29 = vld [vmem:[%s21853_s18 + $0x794] ss:$24 sps:$4 sm:$0xff]  }
 0x845   : > { %15551 = vmatpush1.bf16.msra.mxu1 %v21149_v48  ;;  %15409 = vmatprep.subr.bf16.mxu0 %v21154_v31  ;;  %v21218_v48 = vld [vmem:[%s21853_s18 + $0x11a8] ss:$24 sps:$4 sm:$0xff]  }
 0x846   : > { %15552 = vmatprep.subr.bf16.mxu1 %v21157_v30  ;;  %v21221_v31 = vld [vmem:[%s21853_s18 + $0x790] ss:$24 sps:$4 sm:$0xff]   ;;  %v21226_v30 = vld [vmem:[%s21853_s18 + $0x11dc] ss:$24 sps:$4 sm:$0xff]  }
 0x848   : > { %15410 = vmatpush1.bf16.msra.mxu0 %v21152_v39  ;;  %v21229_v39 = vld [vmem:[%s21853_s18 + $0x7c4] ss:$24 sps:$4 sm:$0xff]  }
 0x849   : > { %15553 = vmatpush1.bf16.msra.mxu1 %v21155_v40  ;;  %15411 = vmatprep.subr.bf16.mxu0 %v21160_v14  ;;  %v21224_v40 = vld [vmem:[%s21853_s18 + $0x11d8] ss:$24 sps:$4 sm:$0xff]  }
 0x84a   : > { %15554 = vmatprep.subr.bf16.mxu1 %v21163_v57  ;;  %v21227_v14 = vld [vmem:[%s21853_s18 + $0x7c0] ss:$24 sps:$4 sm:$0xff]   ;;  %v21232_v57 = vld [vmem:[%s21853_s18 + $0x120c] ss:$24 sps:$4 sm:$0xff]  }
 0x84c   : > { %15412 = vmatpush1.bf16.msra.mxu0 %v21158_v41  ;;  %v21235_v41 = vld [vmem:[%s21853_s18 + $0x7f4] ss:$24 sps:$4 sm:$0xff]  }
 0x84d   : > { %15555 = vmatpush1.bf16.msra.mxu1 %v21161_v17  ;;  %15413 = vmatprep.subr.bf16.mxu0 %v21166_v45  ;;  %v21230_v17 = vld [vmem:[%s21853_s18 + $0x1208] ss:$24 sps:$4 sm:$0xff]  }
 0x84e   : > { %15556 = vmatprep.subr.bf16.mxu1 %v21169_v3  ;;  %v21233_v45 = vld [vmem:[%s21853_s18 + $0x7f0] ss:$24 sps:$4 sm:$0xff]   ;;  %v21238_v3 = vld [vmem:[%s21853_s18 + $0x123c] ss:$24 sps:$4 sm:$0xff]  }
 0x850   : > { %15414 = vmatpush1.bf16.msra.mxu0 %v21164_v51  ;;  %v21241_v51 = vld [vmem:[%s21853_s18 + $0x824] ss:$24 sps:$4 sm:$0xff]  }
 0x851   : > { %15557 = vmatpush1.bf16.msra.mxu1 %v21167_v22  ;;  %15415 = vmatprep.subr.bf16.mxu0 %v21172_v53  ;;  %v21236_v22 = vld [vmem:[%s21853_s18 + $0x1238] ss:$24 sps:$4 sm:$0xff]  }
 0x852   : > { %15567 = vmatprep.subr.bf16.mxu1 %v21175_v55  ;;  %v21239_v53 = vld [vmem:[%s21853_s18 + $0x820] ss:$24 sps:$4 sm:$0xff]   ;;  %v21244_v55 = vld [vmem:[%s21853_s18 + $0x126c] ss:$24 sps:$4 sm:$0xff]  }
 0x854   : > { %15416 = vmatpush1.bf16.msra.mxu0 %v21170_v62  ;;  %15559 = vmatmul.mubr.bf16.vlgmr.msra.gmra.mrb[28].mxu1 %v23440_v47  ;;  %v21185_v47 = vld [vmem:[%s21853_s18 + $0x670] ss:$24 sps:$4 sm:$0xff]   ;;  %v21247_v62 = vld [vmem:[%s21853_s18 + $0x854] ss:$24 sps:$4 sm:$0xff]  }
 0x855   : > { %15568 = vmatpush1.bf16.msra.mxu1 %v21173_v43  ;;  %15599 = vmatprep.mubr.bf16.mxu1 %v23444_v12  ;;  %v21188_v12 = vld [vmem:[%s21853_s18 + $0x10b8] ss:$24 sps:$4 sm:$0xff]   ;;  %v21242_v43 = vld [vmem:[%s21853_s18 + $0x1268] ss:$24 sps:$4 sm:$0xff]  }
 0x856   : > { %15417 = vmatprep.subr.bf16.mxu0 %v21178_v8  ;;  %15569 = vmatprep.subr.bf16.mxu1 %v21181_v59  ;;  %v21245_v8 = vld [vmem:[%s21853_s18 + $0x850] ss:$24 sps:$4 sm:$0xff]   ;;  %v21250_v59 = vld [vmem:[%s21853_s18 + $0x129c] ss:$24 sps:$4 sm:$0xff]  }
 0x858   : > { %15418 = vmatpush1.bf16.msra.mxu0 %v21176_v60  ;;  %v21253_v60 = vld [vmem:[%s21853_s18 + $0x884] ss:$24 sps:$4 sm:$0xff]  }
 0x859   : > { %15570 = vmatpush1.bf16.msra.mxu1 %v21179_v63  ;;  %15419 = vmatprep.subr.bf16.mxu0 %v21184_v49  ;;  %v21248_v63 = vld [vmem:[%s21853_s18 + $0x1298] ss:$24 sps:$4 sm:$0xff]  }
 0x85a   : > { %15571 = vmatprep.subr.bf16.mxu1 %v21187_v0  ;;  %v21251_v49 = vld [vmem:[%s21853_s18 + $0x880] ss:$24 sps:$4 sm:$0xff]   ;;  %v21256_v0 = vld [vmem:[%s21853_s18 + $0x12cc] ss:$24 sps:$4 sm:$0xff]  }
 0x85c   : > { %15420 = vmatpush1.bf16.msra.mxu0 %v21182_v56  ;;  %v21259_v56 = vld [vmem:[%s21853_s18 + $0x8b4] ss:$24 sps:$4 sm:$0xff]  }
 0x85d   : > { %15572 = vmatpush1.bf16.msra.mxu1 %v21185_v47  ;;  %15421 = vmatprep.subr.bf16.mxu0 %v21190_v6  ;;  %v21254_v47 = vld [vmem:[%s21853_s18 + $0x12c8] ss:$24 sps:$4 sm:$0xff]  }
 0x85e   : > { %15573 = vmatprep.subr.bf16.mxu1 %v21193_v7  ;;  %v21257_v6 = vld [vmem:[%s21853_s18 + $0x8b0] ss:$24 sps:$4 sm:$0xff]   ;;  %v21262_v7 = vld [vmem:[%s21853_s18 + $0x12fc] ss:$24 sps:$4 sm:$0xff]  }
 0x860   : > { %15422 = vmatpush1.bf16.msra.mxu0 %v21188_v12  ;;  %v21265_v12 = vld [vmem:[%s21853_s18 + $0x8e4] ss:$24 sps:$4 sm:$0xff]  }
 0x861   : > { %15574 = vmatpush1.bf16.msra.mxu1 %v21191_v5  ;;  %15423 = vmatprep.subr.bf16.mxu0 %v21196_v9  ;;  %v21260_v5 = vld [vmem:[%s21853_s18 + $0x12f8] ss:$24 sps:$4 sm:$0xff]  }
 0x862   : > { %15575 = vmatprep.subr.bf16.mxu1 %v21199_v10  ;;  %v21263_v9 = vld [vmem:[%s21853_s18 + $0x8e0] ss:$24 sps:$4 sm:$0xff]   ;;  %v21268_v10 = vld [vmem:[%s21853_s18 + $0x132c] ss:$24 sps:$4 sm:$0xff]  }
 0x864   : > { %15424 = vmatpush1.bf16.msra.mxu0 %v21194_v11  ;;  %v21271_v11 = vld [vmem:[%s21853_s18 + $0x914] ss:$24 sps:$4 sm:$0xff]  }
 0x865   : > { %15576 = vmatpush1.bf16.msra.mxu1 %v21197_v27  ;;  %15425 = vmatprep.subr.bf16.mxu0 %v21202_v26  ;;  %v21266_v27 = vld [vmem:[%s21853_s18 + $0x1328] ss:$24 sps:$4 sm:$0xff]  }
 0x866   : > { %15577 = vmatprep.subr.bf16.mxu1 %v21205_v37  ;;  %v21269_v26 = vld [vmem:[%s21853_s18 + $0x910] ss:$24 sps:$4 sm:$0xff]   ;;  %v21274_v37 = vld [vmem:[%s21853_s18 + $0x135c] ss:$24 sps:$4 sm:$0xff]  }
 0x868   : > { %15426 = vmatpush1.bf16.msra.mxu0 %v21200_v42  ;;  %v21277_v42 = vld [vmem:[%s21853_s18 + $0x944] ss:$24 sps:$4 sm:$0xff]  }
 0x869   : > { %15578 = vmatpush1.bf16.msra.mxu1 %v21203_v4  ;;  %15427 = vmatprep.subr.bf16.mxu0 %v21208_v2  ;;  %v21272_v4 = vld [vmem:[%s21853_s18 + $0x1358] ss:$24 sps:$4 sm:$0xff]  }
 0x86a   : > { %15579 = vmatprep.subr.bf16.mxu1 %v21211_v16  ;;  %v21275_v2 = vld [vmem:[%s21853_s18 + $0x940] ss:$24 sps:$4 sm:$0xff]   ;;  %v21280_v16 = vld [vmem:[%s21853_s18 + $0x974] ss:$24 sps:$4 sm:$0xff]  }
 0x86c   : > { %15428 = vmatpush1.bf16.msra.mxu0 %v21206_v19  ;;  %v21278_v19 = vld [vmem:[%s21853_s18 + $0x970] ss:$24 sps:$4 sm:$0xff]  }
 0x86d   : > { %15580 = vmatpush1.bf16.msra.mxu1 %v21209_v52  ;;  %15429 = vmatprep.subr.bf16.mxu0 %v21214_v21  ;;  %v21283_v52 = vld [vmem:[%s21853_s18 + $0x9a4] ss:$24 sps:$4 sm:$0xff]   ;;  %v21284_v21 = vld [vmem:[%s21853_s18 + $0x9d0] ss:$24 sps:$4 sm:$0xff]  }
 0x86e   : > { %15581 = vmatprep.subr.bf16.mxu1 %v21217_v38  ;;  %v21289_v38 = vld [vmem:[%s21853_s18 + $0xa04] ss:$24 sps:$4 sm:$0xff]  }
 0x870   : > { %15430 = vmatpush1.bf16.msra.mxu0 %v21212_v28  ;;  %v21287_v28 = vld [vmem:[%s21853_s18 + $0xa00] ss:$24 sps:$4 sm:$0xff]  }
 0x871   : > { %15582 = vmatpush1.bf16.msra.mxu1 %v21215_v18  ;;  %15431 = vmatprep.subr.bf16.mxu0 %v21220_v36  ;;  %v21292_v18 = vld [vmem:[%s21853_s18 + $0xa34] ss:$24 sps:$4 sm:$0xff]  }
 0x872   : > { %15583 = vmatprep.subr.bf16.mxu1 %v21223_v29 }
 0x874   : > { %15432 = vmatpush1.bf16.msra.mxu0 %v21218_v48 }
 0x875   : > { %15584 = vmatpush1.bf16.msra.mxu1 %v21221_v31  ;;  %15433 = vmatprep.subr.bf16.mxu0 %v21226_v30  ;;  %v21290_v30 = vld [vmem:[%s21853_s18 + $0xa30] ss:$24 sps:$4 sm:$0xff]  }
 0x876   : > { %15585 = vmatprep.subr.bf16.mxu1 %v21229_v39 }
 0x878   : > { %15434 = vmatpush1.bf16.msra.mxu0 %v21224_v40  ;;  %v21295_v40 = vld [vmem:[%s21853_s18 + $0xa64] ss:$24 sps:$4 sm:$0xff]  }
 0x879   : > { %15586 = vmatpush1.bf16.msra.mxu1 %v21227_v14  ;;  %15444 = vmatprep.subr.bf16.mxu0 %v21232_v57  ;;  %v21293_v14 = vld [vmem:[%s21853_s18 + $0xa60] ss:$24 sps:$4 sm:$0xff]   ;;  %v21298_v57 = vld [vmem:[%s21853_s18 + $0xa94] ss:$24 sps:$4 sm:$0xff]  }
 0x87a   : > { %15587 = vmatprep.subr.bf16.mxu1 %v21235_v41  ;;  %v21296_v41 = vld [vmem:[%s21853_s18 + $0xa90] ss:$24 sps:$4 sm:$0xff]  }
 0x87b   : > { %15436 = vmatmul.mubr.bf16.vlgmr.msra.gmra.mrb[32].mxu0 %v23873_v25 }
 0x87c   : > { %15445 = vmatpush1.bf16.msra.mxu0 %v21230_v17  ;;  %15476 = vmatprep.mubr.bf16.mxu0 %v21615_v54  ;;  %v21301_v17 = vld [vmem:[%s21853_s18 + $0xac4] ss:$24 sps:$4 sm:$0xff]  }
 0x87d   : > { %15588 = vmatpush1.bf16.msra.mxu1 %v21233_v45  ;;  %15446 = vmatprep.subr.bf16.mxu0 %v21238_v3  ;;  %v21299_v45 = vld [vmem:[%s21853_s18 + $0xac0] ss:$24 sps:$4 sm:$0xff]   ;;  %v21304_v3 = vld [vmem:[%s21853_s18 + $0xaf4] ss:$24 sps:$4 sm:$0xff]  }
 0x87e   : > { %15589 = vmatprep.subr.bf16.mxu1 %v21241_v51  ;;  %v21302_v51 = vld [vmem:[%s21853_s18 + $0xaf0] ss:$24 sps:$4 sm:$0xff]  }
 0x880   : > { %15447 = vmatpush1.bf16.msra.mxu0 %v21236_v22  ;;  %v21307_v22 = vld [vmem:[%s21853_s18 + $0xb24] ss:$24 sps:$4 sm:$0xff]  }
 0x881   : > { %15590 = vmatpush1.bf16.msra.mxu1 %v21239_v53  ;;  %15448 = vmatprep.subr.bf16.mxu0 %v21244_v55  ;;  %v21305_v53 = vld [vmem:[%s21853_s18 + $0xb20] ss:$24 sps:$4 sm:$0xff]   ;;  %v21310_v55 = vld [vmem:[%s21853_s18 + $0xb54] ss:$24 sps:$4 sm:$0xff]  }
 0x882   : > { %15591 = vmatprep.subr.bf16.mxu1 %v21247_v62  ;;  %v21308_v62 = vld [vmem:[%s21853_s18 + $0xb50] ss:$24 sps:$4 sm:$0xff]  }
 0x884   : > { %15449 = vmatpush1.bf16.msra.mxu0 %v21242_v43  ;;  %v21313_v43 = vld [vmem:[%s21853_s18 + $0xb84] ss:$24 sps:$4 sm:$0xff]  }
 0x885   : > { %15592 = vmatpush1.bf16.msra.mxu1 %v21245_v8  ;;  %15450 = vmatprep.subr.bf16.mxu0 %v21250_v59  ;;  %v21311_v8 = vld [vmem:[%s21853_s18 + $0xb80] ss:$24 sps:$4 sm:$0xff]   ;;  %v21316_v59 = vld [vmem:[%s21853_s18 + $0xbb4] ss:$24 sps:$4 sm:$0xff]  }
 0x886   : > { %15593 = vmatprep.subr.bf16.mxu1 %v21253_v60  ;;  %v21314_v60 = vld [vmem:[%s21853_s18 + $0xbb0] ss:$24 sps:$4 sm:$0xff]  }
 0x888   : > { %15451 = vmatpush1.bf16.msra.mxu0 %v21248_v63  ;;  %v21319_v63 = vld [vmem:[%s21853_s18 + $0xbe4] ss:$24 sps:$4 sm:$0xff]  }
 0x889   : > { %15594 = vmatpush1.bf16.msra.mxu1 %v21251_v49  ;;  %15452 = vmatprep.subr.bf16.mxu0 %v21256_v0  ;;  %v21317_v49 = vld [vmem:[%s21853_s18 + $0xbe0] ss:$24 sps:$4 sm:$0xff]   ;;  %v21322_v0 = vld [vmem:[%s21853_s18 + $0xc14] ss:$24 sps:$4 sm:$0xff]  }
 0x88a   : > { %15595 = vmatprep.subr.bf16.mxu1 %v21259_v56  ;;  %v21320_v56 = vld [vmem:[%s21853_s18 + $0xc10] ss:$24 sps:$4 sm:$0xff]  }
 0x88c   : > { %15453 = vmatpush1.bf16.msra.mxu0 %v21254_v47  ;;  %v21325_v47 = vld [vmem:[%s21853_s18 + $0xc44] ss:$24 sps:$4 sm:$0xff]  }
 0x88d   : > { %15596 = vmatpush1.bf16.msra.mxu1 %v21257_v6  ;;  %15454 = vmatprep.subr.bf16.mxu0 %v21262_v7  ;;  %v21323_v6 = vld [vmem:[%s21853_s18 + $0xc40] ss:$24 sps:$4 sm:$0xff]   ;;  %v21328_v7 = vld [vmem:[%s21853_s18 + $0xc74] ss:$24 sps:$4 sm:$0xff]  }
 0x88e   : > { %15597 = vmatprep.subr.bf16.mxu1 %v21265_v12  ;;  %v21326_v12 = vld [vmem:[%s21853_s18 + $0xc70] ss:$24 sps:$4 sm:$0xff]  }
 0x890   : > { %15455 = vmatpush1.bf16.msra.mxu0 %v21260_v5  ;;  %v21331_v5 = vld [vmem:[%s21853_s18 + $0xca4] ss:$24 sps:$4 sm:$0xff]  }
 0x891   : > { %15598 = vmatpush1.bf16.msra.mxu1 %v21263_v9  ;;  %15456 = vmatprep.subr.bf16.mxu0 %v21268_v10  ;;  %v21329_v9 = vld [vmem:[%s21853_s18 + $0xca0] ss:$24 sps:$4 sm:$0xff]   ;;  %v21332_v10 = vld [vmem:[%s21853_s18 + $0xcd0] ss:$24 sps:$4 sm:$0xff]  }
 0x892   : > { %15608 = vmatprep.subr.bf16.mxu1 %v21271_v11  ;;  %v21335_v11 = vld [vmem:[%s21853_s18 + $0xd00] ss:$24 sps:$4 sm:$0xff]  }
 0x894   : > { %15457 = vmatpush1.bf16.msra.mxu0 %v21266_v27  ;;  %15600 = vmatmul.mubr.bf16.vlgmr.msra.gmra.mrb[28].mxu1 %v23521_v34  ;;  %v21281_v34 = vld [vmem:[%s21853_s18 + $0x9a0] ss:$24 sps:$4 sm:$0xff]   ;;  %v21340_v27 = vld [vmem:[%s21853_s18 + $0xd34] ss:$24 sps:$4 sm:$0xff]  }
 0x895   : > { %15609 = vmatpush1.bf16.msra.mxu1 %v21269_v26  ;;  %15640 = vmatprep.mubr.bf16.mxu1 %v23525_v24  ;;  %v21286_v24 = vld [vmem:[%s21853_s18 + $0x9d4] ss:$24 sps:$4 sm:$0xff]   ;;  %v21338_v26 = vld [vmem:[%s21853_s18 + $0xd30] ss:$24 sps:$4 sm:$0xff]  }
 0x896   : > { %15458 = vmatprep.subr.bf16.mxu0 %v21274_v37  ;;  %15610 = vmatprep.subr.bf16.mxu1 %v21277_v42  ;;  %v21343_v37 = vld [vmem:[%s21853_s18 + $0xd64] ss:$24 sps:$4 sm:$0xff]   ;;  %v21341_v42 = vld [vmem:[%s21853_s18 + $0xd60] ss:$24 sps:$4 sm:$0xff]  }
 0x898   : > { %15459 = vmatpush1.bf16.msra.mxu0 %v21272_v4  ;;  %v21346_v4 = vld [vmem:[%s21853_s18 + $0xd94] ss:$24 sps:$4 sm:$0xff]  }
 0x899   : > { %15611 = vmatpush1.bf16.msra.mxu1 %v21275_v2  ;;  %v21344_v2 = vld [vmem:[%s21853_s18 + $0xd90] ss:$24 sps:$4 sm:$0xff]  }
 0x89a   : > { %15612 = vmatprep.subr.bf16.mxu1 %v21280_v16  ;;  %v21349_v16 = vld [vmem:[%s21853_s18 + $0xdc4] ss:$24 sps:$4 sm:$0xff]  }
 0x89b   : > { %15477 = vmatmul.mubr.bf16.vlgmr.msra.gmra.mrb[32].mxu0 %v23936_v13 }
 0x89d   : > { %15613 = vmatpush1.bf16.msra.mxu1 %v21278_v19  ;;  %v21347_v19 = vld [vmem:[%s21853_s18 + $0xdc0] ss:$24 sps:$4 sm:$0xff]  }
 0x89e   : > { %15614 = vmatprep.subr.bf16.mxu1 %v21283_v52  ;;  %v21352_v52 = vld [vmem:[%s21853_s18 + $0xdf4] ss:$24 sps:$4 sm:$0xff]  }
 0x8a1   : > { %15615 = vmatpush1.bf16.msra.mxu1 %v21281_v34  ;;  %v21350_v34 = vld [vmem:[%s21853_s18 + $0xdf0] ss:$24 sps:$4 sm:$0xff]  }
 0x8a2   : > { %15616 = vmatprep.subr.bf16.mxu1 %v21286_v24  ;;  %v21355_v24 = vld [vmem:[%s21853_s18 + $0xe24] ss:$24 sps:$4 sm:$0xff]  }
 0x8a5   : > { %15617 = vmatpush1.bf16.msra.mxu1 %v21284_v21  ;;  %v21353_v21 = vld [vmem:[%s21853_s18 + $0xe20] ss:$24 sps:$4 sm:$0xff]  }
 0x8a6   : > { %15618 = vmatprep.subr.bf16.mxu1 %v21289_v38  ;;  %v21358_v38 = vld [vmem:[%s21853_s18 + $0xe54] ss:$24 sps:$4 sm:$0xff]  }
 0x8a7   : > { %v24158_v36 = vpop.f32.mrb[24].mxu1 }
 0x8a8   : > { %v24160_v29 = vpop.f32.mrb[25].mxu1 }
 0x8a9   : > { %v15778_v48 = vcombine.low %v24158_v36, %v24160_v29  ;;  %15619 = vmatpush1.bf16.msra.mxu1 %v21287_v28  ;;  %v15195_v31 = vpop.f32.mrb[26].mxu1  ;;  %v21356_v28 = vld [vmem:[%s21853_s18 + $0xe50] ss:$24 sps:$4 sm:$0xff]   ;;  %v15815_v36 = vld [vmem:[#allocation8] sm:$0x3f] (!%p18010_p0) }
 0x8aa   : > { %v15196_v39 = vpop.f32.mrb[27].mxu1  ;;  %15620 = vmatprep.subr.bf16.mxu1 %v21292_v18  ;;  %v21361_v18 = vld [vmem:[%s21853_s18 + $0xe84] ss:$24 sps:$4 sm:$0xff]   ;;  %v21359_v31 = vld [vmem:[%s21853_s18 + $0xe80] ss:$24 sps:$4 sm:$0xff]   ;;  %v15820_v29 = vrot.slane (!%p18010_p0), %v15815_v36, %v23330_v46 }
 0x8ab   : > { %v21362_v39 = vld [vmem:[%s21853_s18 + $0xeb0] ss:$24 sps:$4 sm:$0xff]  }
 0x8ad   : > { %15621 = vmatpush1.bf16.msra.mxu1 %v21290_v30  ;;  %v21364_v30 = vld [vmem:[%s21853_s18 + $0xeb4] ss:$24 sps:$4 sm:$0xff]  }
 0x8ae   : > { %15622 = vmatprep.subr.bf16.mxu1 %v21295_v40  ;;  %v21367_v40 = vld [vmem:[%s21853_s18 + $0xee4] ss:$24 sps:$4 sm:$0xff]  }
 0x8b1   : > { %15623 = vmatpush1.bf16.msra.mxu1 %v21293_v14  ;;  %v21365_v14 = vld [vmem:[%s21853_s18 + $0xee0] ss:$24 sps:$4 sm:$0xff]  }
 0x8b2   : > { %15624 = vmatprep.subr.bf16.mxu1 %v21298_v57  ;;  %v21370_v57 = vld [vmem:[%s21853_s18 + $0xf14] ss:$24 sps:$4 sm:$0xff]  }
 0x8b5   : > { %15625 = vmatpush1.bf16.msra.mxu1 %v21296_v41  ;;  %v21368_v41 = vld [vmem:[%s21853_s18 + $0xf10] ss:$24 sps:$4 sm:$0xff]  }
 0x8b6   : > { %15626 = vmatprep.subr.bf16.mxu1 %v21301_v17  ;;  %v21373_v17 = vld [vmem:[%s21853_s18 + $0xf44] ss:$24 sps:$4 sm:$0xff]  }
 0x8b9   : > { %15627 = vmatpush1.bf16.msra.mxu1 %v21299_v45  ;;  %v21371_v45 = vld [vmem:[%s21853_s18 + $0xf40] ss:$24 sps:$4 sm:$0xff]  }
 0x8ba   : > { %15628 = vmatprep.subr.bf16.mxu1 %v21304_v3  ;;  %v21376_v3 = vld [vmem:[%s21853_s18 + $0xf74] ss:$24 sps:$4 sm:$0xff]  }
 0x8bd   : > { %15629 = vmatpush1.bf16.msra.mxu1 %v21302_v51  ;;  %v21374_v51 = vld [vmem:[%s21853_s18 + $0xf70] ss:$24 sps:$4 sm:$0xff]  }
 0x8be   : > { %15630 = vmatprep.subr.bf16.mxu1 %v21307_v22  ;;  %v21379_v22 = vld [vmem:[%s21853_s18 + $0xfa4] ss:$24 sps:$4 sm:$0xff]  }
 0x8c1   : > { %15631 = vmatpush1.bf16.msra.mxu1 %v21305_v53  ;;  %v21377_v53 = vld [vmem:[%s21853_s18 + $0xfa0] ss:$24 sps:$4 sm:$0xff]  }
 0x8c2   : > { %15632 = vmatprep.subr.bf16.mxu1 %v21310_v55  ;;  %v21380_v55 = vld [vmem:[%s21853_s18 + $0xfd0] ss:$24 sps:$4 sm:$0xff]  }
 0x8c5   : > { %15633 = vmatpush1.bf16.msra.mxu1 %v21308_v62  ;;  %v21383_v62 = vld [vmem:[%s21853_s18 + $0x1000] ss:$24 sps:$4 sm:$0xff]  }
 0x8c6   : > { %15634 = vmatprep.subr.bf16.mxu1 %v21313_v43  ;;  %v21388_v43 = vld [vmem:[%s21853_s18 + $0x1034] ss:$24 sps:$4 sm:$0xff]  }
 0x8c9   : > { %15635 = vmatpush1.bf16.msra.mxu1 %v21311_v8  ;;  %v21386_v8 = vld [vmem:[%s21853_s18 + $0x1030] ss:$24 sps:$4 sm:$0xff]  }
 0x8ca   : > { %15636 = vmatprep.subr.bf16.mxu1 %v21316_v59  ;;  %v21391_v59 = vld [vmem:[%s21853_s18 + $0x1064] ss:$24 sps:$4 sm:$0xff]  }
 0x8cd   : > { %15637 = vmatpush1.bf16.msra.mxu1 %v21314_v60  ;;  %v21389_v60 = vld [vmem:[%s21853_s18 + $0x1060] ss:$24 sps:$4 sm:$0xff]  }
 0x8ce   : > { %15638 = vmatprep.subr.bf16.mxu1 %v21319_v63  ;;  %v21394_v63 = vld [vmem:[%s21853_s18 + $0x1094] ss:$24 sps:$4 sm:$0xff]  }
 0x8d1   : > { %15639 = vmatpush1.bf16.msra.mxu1 %v21317_v49  ;;  %v21392_v49 = vld [vmem:[%s21853_s18 + $0x1090] ss:$24 sps:$4 sm:$0xff]  }
 0x8d2   : > { %15649 = vmatprep.subr.bf16.mxu1 %v21322_v0  ;;  %v21397_v0 = vld [vmem:[%s21853_s18 + $0x10c4] ss:$24 sps:$4 sm:$0xff]  }
 0x8d4   : > { %15641 = vmatmul.mubr.bf16.vlgmr.msra.gmra.mrb[28].mxu1 %v23597_v23  ;;  %v21334_v23 = vld [vmem:[%s21853_s18 + $0xcd4] ss:$24 sps:$4 sm:$0xff]  }
 0x8d5   : > { %15650 = vmatpush1.bf16.msra.mxu1 %v21320_v56  ;;  %15681 = vmatprep.mubr.bf16.mxu1 %v23785_v33  ;;  %v21337_v33 = vld [vmem:[%s21853_s18 + $0xd04] ss:$24 sps:$4 sm:$0xff]   ;;  %v21395_v56 = vld [vmem:[%s21853_s18 + $0x10c0] ss:$24 sps:$4 sm:$0xff]  }
 0x8d6   : > { %15651 = vmatprep.subr.bf16.mxu1 %v21325_v47  ;;  %v21400_v47 = vld [vmem:[%s21853_s18 + $0x10f4] ss:$24 sps:$4 sm:$0xff]  }
 0x8d9   : > { %15652 = vmatpush1.bf16.msra.mxu1 %v21323_v6  ;;  %v21398_v6 = vld [vmem:[%s21853_s18 + $0x10f0] ss:$24 sps:$4 sm:$0xff]  }
 0x8da   : > { %15653 = vmatprep.subr.bf16.mxu1 %v21328_v7  ;;  %v21403_v7 = vld [vmem:[%s21853_s18 + $0x1124] ss:$24 sps:$4 sm:$0xff]  }
 0x8dd   : > { %15654 = vmatpush1.bf16.msra.mxu1 %v21326_v12  ;;  %v21401_v12 = vld [vmem:[%s21853_s18 + $0x1120] ss:$24 sps:$4 sm:$0xff]  }
 0x8de   : > { %15655 = vmatprep.subr.bf16.mxu1 %v21331_v5  ;;  %v21406_v5 = vld [vmem:[%s21853_s18 + $0x1154] ss:$24 sps:$4 sm:$0xff]  }
 0x8e1   : > { %15656 = vmatpush1.bf16.msra.mxu1 %v21329_v9  ;;  %v21404_v9 = vld [vmem:[%s21853_s18 + $0x1150] ss:$24 sps:$4 sm:$0xff]  }
 0x8e2   : > { %15657 = vmatprep.subr.bf16.mxu1 %v21334_v23  ;;  %v21409_v23 = vld [vmem:[%s21853_s18 + $0x1184] ss:$24 sps:$4 sm:$0xff]  }
 0x8e5   : > { %15658 = vmatpush1.bf16.msra.mxu1 %v21332_v10  ;;  %v21407_v10 = vld [vmem:[%s21853_s18 + $0x1180] ss:$24 sps:$4 sm:$0xff]  }
 0x8e6   : > { %15659 = vmatprep.subr.bf16.mxu1 %v21337_v33  ;;  %v21412_v33 = vld [vmem:[%s21853_s18 + $0x11b4] ss:$24 sps:$4 sm:$0xff]  }
 0x8e9   : > { %15660 = vmatpush1.bf16.msra.mxu1 %v21335_v11  ;;  %v21410_v11 = vld [vmem:[%s21853_s18 + $0x11b0] ss:$24 sps:$4 sm:$0xff]  }
 0x8ea   : > { %15661 = vmatprep.subr.bf16.mxu1 %v21340_v27  ;;  %v21415_v27 = vld [vmem:[%s21853_s18 + $0x11e4] ss:$24 sps:$4 sm:$0xff]  }
 0x8ed   : > { %15662 = vmatpush1.bf16.msra.mxu1 %v21338_v26  ;;  %v21413_v26 = vld [vmem:[%s21853_s18 + $0x11e0] ss:$24 sps:$4 sm:$0xff]  }
 0x8ee   : > { %15663 = vmatprep.subr.bf16.mxu1 %v21343_v37  ;;  %v21418_v37 = vld [vmem:[%s21853_s18 + $0x1214] ss:$24 sps:$4 sm:$0xff]  }
 0x8f1   : > { %15664 = vmatpush1.bf16.msra.mxu1 %v21341_v42  ;;  %v21416_v42 = vld [vmem:[%s21853_s18 + $0x1210] ss:$24 sps:$4 sm:$0xff]  }
 0x8f2   : > { %15665 = vmatprep.subr.bf16.mxu1 %v21346_v4  ;;  %v21421_v4 = vld [vmem:[%s21853_s18 + $0x1244] ss:$24 sps:$4 sm:$0xff]  }
 0x8f5   : > { %15666 = vmatpush1.bf16.msra.mxu1 %v21344_v2  ;;  %v21419_v2 = vld [vmem:[%s21853_s18 + $0x1240] ss:$24 sps:$4 sm:$0xff]  }
 0x8f6   : > { %15667 = vmatprep.subr.bf16.mxu1 %v21349_v16  ;;  %v21424_v16 = vld [vmem:[%s21853_s18 + $0x1274] ss:$24 sps:$4 sm:$0xff]  }
 0x8f9   : > { %15668 = vmatpush1.bf16.msra.mxu1 %v21347_v19  ;;  %v21422_v19 = vld [vmem:[%s21853_s18 + $0x1270] ss:$24 sps:$4 sm:$0xff]  }
 0x8fa   : > { %15669 = vmatprep.subr.bf16.mxu1 %v21352_v52  ;;  %v21427_v52 = vld [vmem:[%s21853_s18 + $0x12a4] ss:$24 sps:$4 sm:$0xff]  }
 0x8fd   : > { %15670 = vmatpush1.bf16.msra.mxu1 %v21350_v34  ;;  %v21425_v34 = vld [vmem:[%s21853_s18 + $0x12a0] ss:$24 sps:$4 sm:$0xff]  }
 0x8fe   : > { %15671 = vmatprep.subr.bf16.mxu1 %v21355_v24  ;;  %v21428_v24 = vld [vmem:[%s21853_s18 + $0x12d0] ss:$24 sps:$4 sm:$0xff]  }
 0x901   : > { %15672 = vmatpush1.bf16.msra.mxu1 %v21353_v21  ;;  %v21433_v21 = vld [vmem:[%s21853_s18 + $0x1304] ss:$24 sps:$4 sm:$0xff]  }
 0x902   : > { %15673 = vmatprep.subr.bf16.mxu1 %v21358_v38  ;;  %v21436_v38 = vld [vmem:[%s21853_s18 + $0x1334] ss:$24 sps:$4 sm:$0xff]  }
 0x905   : > { %15674 = vmatpush1.bf16.msra.mxu1 %v21356_v28  ;;  %v21434_v28 = vld [vmem:[%s21853_s18 + $0x1330] ss:$24 sps:$4 sm:$0xff]  }
 0x906   : > { %15675 = vmatprep.subr.bf16.mxu1 %v21361_v18  ;;  %v21439_v18 = vld [vmem:[%s21853_s18 + $0x1364] ss:$24 sps:$4 sm:$0xff]  }
 0x909   : > { %15676 = vmatpush1.bf16.msra.mxu1 %v21359_v31  ;;  %v21437_v31 = vld [vmem:[%s21853_s18 + $0x1360] ss:$24 sps:$4 sm:$0xff]  }
 0x90a   : > { %15677 = vmatprep.subr.bf16.mxu1 %v21364_v30 }
 0x90d   : > { %15678 = vmatpush1.bf16.msra.mxu1 %v21362_v39 }
 0x90e   : > { %15679 = vmatprep.subr.bf16.mxu1 %v21367_v40 }
 0x911   : > { %15680 = vmatpush1.bf16.msra.mxu1 %v21365_v14 }
 0x912   : > { %15690 = vmatprep.subr.bf16.mxu1 %v21370_v57 }
 0x914   : > { %15682 = vmatmul.mubr.bf16.vlgmr.msra.gmra.mrb[28].mxu1 %v23788_v61  ;;  %v21382_v61 = vld [vmem:[%s21853_s18 + $0xfd4] ss:$24 sps:$4 sm:$0xff]  }
 0x915   : > { %15691 = vmatpush1.bf16.msra.mxu1 %v21368_v41  ;;  %15722 = vmatprep.mubr.bf16.mxu1 %v23792_v20  ;;  %v21385_v20 = vld [vmem:[%s21853_s18 + $0x1004] ss:$24 sps:$4 sm:$0xff]   ;;  %v15786_v41 = vrot.slane %v15778_v48, %v21908_v50  ;;  %v15828_v48 = vrot.slane (!%p18010_p0), %v15815_v36, %v22852_v1 }
 0x916   : > { %15692 = vmatprep.subr.bf16.mxu1 %v21373_v17 }
 0x919   : > { %15693 = vmatpush1.bf16.msra.mxu1 %v21371_v45  ;;  %v11152_v45 = vld [vmem:[#allocation2] sm:$0xff] }
 0x91a   : > { %15694 = vmatprep.subr.bf16.mxu1 %v21376_v3 }
 0x91d   : > { %15695 = vmatpush1.bf16.msra.mxu1 %v21374_v51 }
 0x91e   : > { %15696 = vmatprep.subr.bf16.mxu1 %v21379_v22 }
 0x921   : > { %15697 = vmatpush1.bf16.msra.mxu1 %v21377_v53 }
 0x922   : > { %15698 = vmatprep.subr.bf16.mxu1 %v21382_v61 }
 0x925   : > { %15699 = vmatpush1.bf16.msra.mxu1 %v21380_v55 }
 0x926   : > { %15700 = vmatprep.subr.bf16.mxu1 %v21385_v20  ;;  %v11153_v20 = vld [vmem:[#allocation2 + $0x8] sm:$0xf] }
 0x929   : > { %15701 = vmatpush1.bf16.msra.mxu1 %v21383_v62 }
 0x92a   : > { %15702 = vmatprep.subr.bf16.mxu1 %v21388_v43 }
 0x92d   : > { %15703 = vmatpush1.bf16.msra.mxu1 %v21386_v8 }
 0x92e   : > { %15704 = vmatprep.subr.bf16.mxu1 %v21391_v59  ;;  %v15832_v59 = vrot.slane (!%p18010_p0), %v15815_v36, %v22858_v35 }
 0x931   : > { %15705 = vmatpush1.bf16.msra.mxu1 %v21389_v60  ;;  %v15836_v60 = vrot.slane (!%p18010_p0), %v15815_v36, %v23495_v15 }
 0x932   : > { %15706 = vmatprep.subr.bf16.mxu1 %v21394_v63  ;;  %v15840_v63 = vrot.slane (!%p18010_p0), %v15815_v36, %v1962_v32 }
 0x935   : > { %15707 = vmatpush1.bf16.msra.mxu1 %v21392_v49 }
 0x936   : > { %15708 = vmatprep.subr.bf16.mxu1 %v21397_v0  ;;  %v15842_v0 = vcombine.low (!%p18010_p0), %v15828_v48, %v15832_v59 }
 0x939   : > { %15709 = vmatpush1.bf16.msra.mxu1 %v21395_v56  ;;  %v15858_v56 = vcombine.low (!%p18010_p0), %v15836_v60, %v15840_v63 }
 0x93a   : > { %15710 = vmatprep.subr.bf16.mxu1 %v21400_v47 }
 0x93d   : > { %15711 = vmatpush1.bf16.msra.mxu1 %v21398_v6  ;;  %v15856_v6 = vrot.slane (!%p18010_p0), %v15842_v0, %v21908_v50 }
 0x93e   : > { %15712 = vmatprep.subr.bf16.mxu1 %v21403_v7 }
 0x941   : > { %15713 = vmatpush1.bf16.msra.mxu1 %v21401_v12 }
 0x942   : > { %15714 = vmatprep.subr.bf16.mxu1 %v21406_v5 }
 0x945   : > { %15715 = vmatpush1.bf16.msra.mxu1 %v21404_v9 }
 0x946   : > { %15716 = vmatprep.subr.bf16.mxu1 %v21409_v23 }
 0x949   : > { %15717 = vmatpush1.bf16.msra.mxu1 %v21407_v10 }
 0x94a   : > { %15718 = vmatprep.subr.bf16.mxu1 %v21412_v33 }
 0x94d   : > { %15719 = vmatpush1.bf16.msra.mxu1 %v21410_v11 }
 0x94e   : > { %15720 = vmatprep.subr.bf16.mxu1 %v21415_v27 }
 0x951   : > { %15721 = vmatpush1.bf16.msra.mxu1 %v21413_v26 }
 0x952   : > { %15731 = vmatprep.subr.bf16.mxu1 %v21418_v37 }
 0x954   : > { %15723 = vmatmul.mubr.bf16.vlgmr.msra.gmra.mrb[28].mxu1 %v23873_v25  ;;  %v21430_v25 = vld [vmem:[%s21853_s18 + $0x12d4] ss:$24 sps:$4 sm:$0xff]  }
 0x955   : > { %15732 = vmatpush1.bf16.msra.mxu1 %v21416_v42  ;;  %15763 = vmatprep.mubr.bf16.mxu1 %v21615_v54  ;;  %v21431_v54 = vld [vmem:[%s21853_s18 + $0x1300] ss:$24 sps:$4 sm:$0xff]  }
 0x956   : > { %15733 = vmatprep.subr.bf16.mxu1 %v21421_v4 }
 0x959   : > { %15734 = vmatpush1.bf16.msra.mxu1 %v21419_v2 }
 0x95a   : > { %15735 = vmatprep.subr.bf16.mxu1 %v21424_v16 }
 0x95d   : > { %15736 = vmatpush1.bf16.msra.mxu1 %v21422_v19 }
 0x95e   : > { %15737 = vmatprep.subr.bf16.mxu1 %v21427_v52 }
 0x961   : > { %15738 = vmatpush1.bf16.msra.mxu1 %v21425_v34 }
 0x962   : > { %15739 = vmatprep.subr.bf16.mxu1 %v21430_v25 }
 0x965   : > { %15740 = vmatpush1.bf16.msra.mxu1 %v21428_v24 }
 0x966   : > { %15741 = vmatprep.subr.bf16.mxu1 %v21433_v21 }
 0x969   : > { %15742 = vmatpush1.bf16.msra.mxu1 %v21431_v54 }
 0x96a   : > { %15743 = vmatprep.subr.bf16.mxu1 %v21436_v38 }
 0x96d   : > { %15744 = vmatpush1.bf16.msra.mxu1 %v21434_v28 }
 0x96e   : > { %v15478_v30 = vpop.f32.mrb[32].mxu0  ;;  %15745 = vmatprep.subr.bf16.mxu1 %v21439_v18 }
 0x96f   : > { %v15480_v39 = vpop.f32.mrb[33].mxu0 }
 0x970   : > { %v15779_v40 = vcombine.low %v15478_v30, %v15480_v39  ;;  %v15482_v14 = vpop.f32.mrb[34].mxu0 }
 0x971   : > { %v15483_v57 = vpop.f32.mrb[35].mxu0  ;;  %15746 = vmatpush1.bf16.msra.mxu1 %v21437_v31 }
 0x972   : > { %v15793_v17 = vrot.slane %v15779_v40, %v21908_v50 }
 0x974   : > { %v15794_v3 = vcombine.low %v15786_v41, %v15793_v17  ;;  %15764 = vmatmul.mubr.bf16.vlgmr.msra.gmra.mrb[28].mxu1 %v23936_v13  ;;  %v15824_v13 = vrot.slane (!%p18010_p0), %v15815_v36, %v23253_v58  ;;  %v15865_v58 = vrot.slane (!%p18010_p0), %v15858_v56, %v21908_v50 }
 0x976   : > { %v15805_v51 = vadd.f32 %v15794_v3, %v11152_v45  ;;  %v15841_v49 = vcombine.low (!%p18010_p0), %v15820_v29, %v15824_v13 }
 0x978   : > { %15807 = vst [vmem:[#allocation2] sm:$0xff] %v15805_v51  ;;  %v15849_v47 = vrot.slane (!%p18010_p0), %v15841_v49, %v21908_v50 }
 0x97a   : > { %v15857_v12 = vcombine.low (!%p18010_p0), %v15849_v47, %v15856_v6 }
 0x97f   : > { %v15813_v46 = vld [vmem:[#allocation2] sm:$0xff] (!%p18010_p0) }
 0x980   : > { %v15868_v5 = vadd.f32 (!%p18010_p0), %v15857_v12, %v15813_v46 }
 0x982   : > { %15870 = vst [vmem:[%s24311_s5] sm:$0xff] (!%p18010_p0), %v15868_v5 }
 0xa47   : > { %v15765_v22 = vpop.f32.mrb[28].mxu1 }
 0xa48   : > { %v15767_v53 = vpop.f32.mrb[29].mxu1 }
 0xa49   : > { %v15795_v61 = vcombine.low %v15765_v22, %v15767_v53  ;;  %v15769_v55 = vpop.f32.mrb[30].mxu1  ;;  %15812 = sbr.rel (%p18010_p0) target bundleno = 2650 (0xa5a), region = 64 }
 0xa4a   : > { %v15770_v62 = vpop.f32.mrb[31].mxu1 }
 0xa4b   : > { %v15802_v43 = vrot.slane %v15795_v61, %v21908_v50 }
 0xa4d   : > { %v15806_v8 = vadd.f32 %v15802_v43, %v11153_v20 }
 0xa4f   : > { %15808 = vst [vmem:[#allocation2 + $0x8] sm:$0xf] %v15806_v8 }
 0xa56   : > { %v15814_v7 = vld [vmem:[#allocation2 + $0x8] sm:$0xf] }
 0xa57   : > { %v15869_v1 = vadd.f32 %v15865_v58, %v15814_v7 }
 0xa59   : > { %15871 = vst [vmem:[%s24311_s5 + $0x8] sm:$0xf] %v15869_v1 }
 0xa5a PF: > { %p19_p4 = scmp.ge.s32.totalorder %s21667_s22, 6   ;;  %s24334_s18 = smov %s21594_s19 }
 0xa5b   : > { %s24335_s19 = smov %s21598_s20  ;;  %s24336_s20 = smov %s21677_s25 }
 0xa5c   : > { %s24337_s21 = smov %s21667_s22  ;;  %21 = sbr.rel (!%p19_p4) target bundleno = 8 (0x8), region = 112 }
 0xa63   :  { %15883 = vsyncpa [#allocation4], 1 }
 0xa64   :  { %15885 = vsyncpa [#allocation4 + $0x1], 1 }
 0xa65   :  { %15886 = vsyncpa [#allocation6], 1 }
 0xa66   :  { %15888 = vsyncpa [#allocation6 + $0x1], 1 }
 0xa67   :  { %15889 = vsyncpa [#allocation9], 1 }

</bundles_post_ra>
